<compile_context>
chip_gen: v6e
topology: v6e:2x2x1
jax: 0.10.0
libtpu: 0.0.40
codegen_flags: <defaults>
</compile_context>

<pallas_src>
import functools

import jax
import jax.numpy as jnp
from jax.experimental import pallas as pl
from jax.experimental.pallas import tpu as pltpu

INPUT_SIZE = 896          # 8 * 8 * 14, already a multiple of 128
H1 = 1000
H2 = 1000
H3 = 1000
H4 = 200
OUTPUT_SIZE = 4672

# Lane-dense (multiple-of-128) padded dims used inside the kernel.
_PAD = lambda d: ((d + 127) // 128) * 128
H1_P, H2_P, H3_P, H4_P = _PAD(H1), _PAD(H2), _PAD(H3), _PAD(H4)     # 1024,1024,1024,256
OUT_P = _PAD(OUTPUT_SIZE)                                            # 4736

_LAYER_DIMS = [(INPUT_SIZE, H1), (H1, H2), (H2, H3), (H3, H4), (H4, OUTPUT_SIZE)]
_LAYER_DIMS_P = [(INPUT_SIZE, H1_P), (H1_P, H2_P), (H2_P, H3_P), (H3_P, H4_P), (H4_P, OUT_P)]


def _round_up(v, m):
    return (v + m - 1) // m * m


def _mlp_kernel(x_ref,
                w1_ref, b1_ref,
                w2_ref, b2_ref,
                w3_ref, b3_ref,
                w4_ref, b4_ref,
                w5_ref, b5_ref,
                o_ref):
    # x tile: (block_m, 896) f32.  Weights: bf16, padded to 128-aligned dims (resident).
    # Biases: (1, out_pad) f32.  All matmuls accumulate in f32 on the MXU; bias-add and
    # tanh stay in f32 on the VPU/EUP (portable to v5e).
    def layer(h, w_ref, b_ref, activate):
        y = jnp.dot(h.astype(jnp.bfloat16), w_ref[...],
                    preferred_element_type=jnp.float32) + b_ref[...]
        return jnp.tanh(y) if activate else y

    h = x_ref[...]
    h = layer(h, w1_ref, b1_ref, True)
    h = layer(h, w2_ref, b2_ref, True)
    h = layer(h, w3_ref, b3_ref, True)
    h = layer(h, w4_ref, b4_ref, True)
    o_ref[...] = layer(h, w5_ref, b5_ref, False)


def prepare_params(params):
    """One-time prep: cast weights to bf16 and zero-pad all dims to multiples of 128.

    `params` is a list of (W, b) with W shaped (in_features, out_features) in f32.
    Returns a flat tuple of padded (W_bf16, b_f32[1, out_pad]) pairs for the kernel.
    """
    prepped = []
    for (w, b), (pin, pout) in zip(params, _LAYER_DIMS_P):
        fi, fo = w.shape
        w_p = jnp.zeros((pin, pout), jnp.bfloat16).at[:fi, :fo].set(
            w.astype(jnp.bfloat16))
        b_p = jnp.zeros((1, pout), jnp.float32).at[0, :fo].set(
            b.astype(jnp.float32))
        prepped.append((w_p, b_p))
    return tuple(prepped)


@functools.partial(jax.jit, static_argnames=())
def model_forward(x, prepped_params):
    """x: array with leading batch dim whose remaining dims flatten to 896.

    prepped_params: output of prepare_params(...).
    Returns (B, 4672) float32 logits (no softmax), matching torch Model.forward.
    """
    x = x.astype(jnp.float32)
    B = x.shape[0]
    x2d = x.reshape(B, -1)
    assert x2d.shape[1] == INPUT_SIZE

    # Batch tiling: at least one full sublane (8 rows), at most 128 rows per tile.
    block_m = min(128, _round_up(B, 8))
    B_pad = _round_up(B, block_m)
    if B_pad != B:
        x2d = jnp.pad(x2d, ((0, B_pad - B), (0, 0)))
    grid_m = B_pad // block_m

    (w1, b1), (w2, b2), (w3, b3), (w4, b4), (w5, b5) = prepped_params

    # Weights / biases: constant index_map -> DMA'd once, VMEM-resident across the grid.
    w_specs = []
    for (pin, pout) in _LAYER_DIMS_P:
        w_specs.append(pl.BlockSpec((pin, pout), lambda i: (0, 0)))
        w_specs.append(pl.BlockSpec((1, pout), lambda i: (0, 0)))

    in_specs = [pl.BlockSpec((block_m, INPUT_SIZE), lambda i: (i, 0))] + w_specs
    out_specs = pl.BlockSpec((block_m, OUT_P), lambda i: (i, 0))

    flops = 2 * B_pad * sum(pin * pout for (pin, pout) in _LAYER_DIMS_P)
    transcendentals = B_pad * (H1_P + H2_P + H3_P + H4_P)
    weight_bytes = sum(pin * pout * 2 + pout * 4 for (pin, pout) in _LAYER_DIMS_P)
    bytes_accessed = weight_bytes + B_pad * INPUT_SIZE * 4 + B_pad * OUT_P * 4

    out_padded = pl.pallas_call(
        _mlp_kernel,
        out_shape=jax.ShapeDtypeStruct((B_pad, OUT_P), jnp.float32),
        grid=(grid_m,),
        in_specs=in_specs,
        out_specs=out_specs,
        compiler_params=pltpu.CompilerParams(
            dimension_semantics=("parallel",),     # v7x: split batch tiles across 2 TCs
            vmem_limit_bytes=48 << 20,             # fits v7x's 64 MiB physical VMEM
        ),
        cost_estimate=pl.CostEstimate(
            flops=flops,
            transcendentals=transcendentals,
            bytes_accessed=bytes_accessed,
        ),
    )(x2d,
      w1, b1, w2, b2, w3, b3, w4, b4, w5, b5)

    return out_padded[:B, :OUTPUT_SIZE]


def init_params(key):
    """Deterministic init mimicking torch.nn.Linear default: U(-1/sqrt(fan_in), 1/sqrt(fan_in))."""
    params = []
    for (fan_in, fan_out) in _LAYER_DIMS:
        key, kw, kb = jax.random.split(key, 3)
        bound = 1.0 / jnp.sqrt(jnp.float32(fan_in))
        w = jax.random.uniform(kw, (fan_in, fan_out), jnp.float32, -bound, bound)
        b = jax.random.uniform(kb, (fan_out,), jnp.float32, -bound, bound)
        params.append((w, b))
    return params


def _reference_forward_f32(x, params):
    """Pure-f32 reference of the original torch forward (for a loose sanity check)."""
    h = x.astype(jnp.float32).reshape(x.shape[0], -1)
    for i, (w, b) in enumerate(params):
        h = h @ w + b
        if i < len(params) - 1:
            h = jnp.tanh(h)
    return h


def _reference_forward_bf16(x, params):
    """Reference that applies the same bf16-weight / bf16-activation quantization
    (f32 accumulate) as the kernel, for a tight numerical check."""
    h = x.astype(jnp.float32).reshape(x.shape[0], -1)
    for i, (w, b) in enumerate(params):
        y = jnp.dot(h.astype(jnp.bfloat16), w.astype(jnp.bfloat16),
                    preferred_element_type=jnp.float32) + b.astype(jnp.float32)
        h = jnp.tanh(y) if i < len(params) - 1 else y
    return h


if __name__ == "__main__":
    key = jax.random.PRNGKey(0)
    kx, kp = jax.random.split(key)

    # Board-encoding-like input: (batch=2, rank=8, file=8, planes=14) -> flattens to 896.
    x = jax.random.randint(kx, (2, 8, 8, 14), 0, 2, dtype=jnp.int32)

    params = init_params(kp)
    prepped = prepare_params(params)

    out = model_forward(x, prepped)
    out = jax.block_until_ready(out)

    assert out.shape == (2, OUTPUT_SIZE)

    # Tight check against a pure-JAX implementation of the same bf16-weight math.
    ref_bf16 = _reference_forward_bf16(x, params)
    assert jnp.allclose(out, ref_bf16, atol=2e-3, rtol=2e-3), (
        float(jnp.max(jnp.abs(out - ref_bf16))))

    # Loose sanity check against the full-f32 torch-equivalent forward.
    ref_f32 = _reference_forward_f32(x, params)
    assert jnp.allclose(out, ref_f32, atol=1e-1, rtol=1e-1), (
        float(jnp.max(jnp.abs(out - ref_f32))))

    print("KERNEL_OK")
</pallas_src>

<mosaic_0001>
module attributes {stable_mosaic.version = 11 : i64} {
  func.func @_mlp_kernel(%arg0: i32, %arg1: memref<8x896xf32, #tpu.memory_space<vmem>>, %arg2: memref<896x1024xbf16, #tpu.memory_space<vmem>>, %arg3: memref<1x1024xf32, #tpu.memory_space<vmem>>, %arg4: memref<1024x1024xbf16, #tpu.memory_space<vmem>>, %arg5: memref<1x1024xf32, #tpu.memory_space<vmem>>, %arg6: memref<1024x1024xbf16, #tpu.memory_space<vmem>>, %arg7: memref<1x1024xf32, #tpu.memory_space<vmem>>, %arg8: memref<1024x256xbf16, #tpu.memory_space<vmem>>, %arg9: memref<1x256xf32, #tpu.memory_space<vmem>>, %arg10: memref<256x4736xbf16, #tpu.memory_space<vmem>>, %arg11: memref<1x4736xf32, #tpu.memory_space<vmem>>, %arg12: memref<8x4736xf32, #tpu.memory_space<vmem>>) attributes {dimension_semantics = [#tpu.dimension_semantics<parallel>], iteration_bounds = array<i64: 1>, scalar_prefetch = 0 : i64, scratch_operands = 0 : i64, tpu.core_type = #tpu.core_type<tc>, window_params = [{transform_indices = @transform_0, window_bounds = array<i64: 8, 896>}, {pipeline_mode = #tpu.pipeline_mode<synchronous>, transform_indices = @transform_1, window_bounds = array<i64: 896, 1024>}, {pipeline_mode = #tpu.pipeline_mode<synchronous>, transform_indices = @transform_2, window_bounds = array<i64: 1, 1024>}, {pipeline_mode = #tpu.pipeline_mode<synchronous>, transform_indices = @transform_3, window_bounds = array<i64: 1024, 1024>}, {pipeline_mode = #tpu.pipeline_mode<synchronous>, transform_indices = @transform_4, window_bounds = array<i64: 1, 1024>}, {pipeline_mode = #tpu.pipeline_mode<synchronous>, transform_indices = @transform_5, window_bounds = array<i64: 1024, 1024>}, {pipeline_mode = #tpu.pipeline_mode<synchronous>, transform_indices = @transform_6, window_bounds = array<i64: 1, 1024>}, {pipeline_mode = #tpu.pipeline_mode<synchronous>, transform_indices = @transform_7, window_bounds = array<i64: 1024, 256>}, {pipeline_mode = #tpu.pipeline_mode<synchronous>, transform_indices = @transform_8, window_bounds = array<i64: 1, 256>}, {pipeline_mode = #tpu.pipeline_mode<synchronous>, transform_indices = @transform_9, window_bounds = array<i64: 256, 4736>}, {pipeline_mode = #tpu.pipeline_mode<synchronous>, transform_indices = @transform_10, window_bounds = array<i64: 1, 4736>}, {transform_indices = @transform_11, window_bounds = array<i64: 8, 4736>}]} {
    %c0 = arith.constant 0 : index
    %c0_0 = arith.constant 0 : index
    %0 = vector.load %arg1[%c0, %c0_0] : memref<8x896xf32, #tpu.memory_space<vmem>>, vector<8x896xf32>
    %1 = arith.truncf %0 : vector<8x896xf32> to vector<8x896xbf16>
    %c0_1 = arith.constant 0 : index
    %c0_2 = arith.constant 0 : index
    %2 = vector.load %arg2[%c0_1, %c0_2] : memref<896x1024xbf16, #tpu.memory_space<vmem>>, vector<896x1024xbf16>
    %cst = arith.constant dense<0.000000e+00> : vector<8x1024xf32>
    %3 = tpu.matmul %1, %2, %cst {dimension_numbers = #tpu.dot_dimension_numbers<[1], [0], [0], [1], [0, 0, 1, 1], [], []>} : vector<8x896xbf16>, vector<896x1024xbf16>, vector<8x1024xf32> -> vector<8x1024xf32>
    %c0_3 = arith.constant 0 : index
    %c0_4 = arith.constant 0 : index
    %4 = vector.load %arg3[%c0_3, %c0_4] : memref<1x1024xf32, #tpu.memory_space<vmem>>, vector<1x1024xf32>
    %5 = vector.broadcast %4 : vector<1x1024xf32> to vector<8x1024xf32>
    %6 = arith.addf %3, %5 : vector<8x1024xf32>
    %7 = math.tanh %6 : vector<8x1024xf32>
    %8 = arith.truncf %7 : vector<8x1024xf32> to vector<8x1024xbf16>
    %c0_5 = arith.constant 0 : index
    %c0_6 = arith.constant 0 : index
    %9 = vector.load %arg4[%c0_5, %c0_6] : memref<1024x1024xbf16, #tpu.memory_space<vmem>>, vector<1024x1024xbf16>
    %cst_7 = arith.constant dense<0.000000e+00> : vector<8x1024xf32>
    %10 = tpu.matmul %8, %9, %cst_7 {dimension_numbers = #tpu.dot_dimension_numbers<[1], [0], [0], [1], [0, 0, 1, 1], [], []>} : vector<8x1024xbf16>, vector<1024x1024xbf16>, vector<8x1024xf32> -> vector<8x1024xf32>
    %c0_8 = arith.constant 0 : index
    %c0_9 = arith.constant 0 : index
    %11 = vector.load %arg5[%c0_8, %c0_9] : memref<1x1024xf32, #tpu.memory_space<vmem>>, vector<1x1024xf32>
    %12 = vector.broadcast %11 : vector<1x1024xf32> to vector<8x1024xf32>
    %13 = arith.addf %10, %12 : vector<8x1024xf32>
    %14 = math.tanh %13 : vector<8x1024xf32>
    %15 = arith.truncf %14 : vector<8x1024xf32> to vector<8x1024xbf16>
    %c0_10 = arith.constant 0 : index
    %c0_11 = arith.constant 0 : index
    %16 = vector.load %arg6[%c0_10, %c0_11] : memref<1024x1024xbf16, #tpu.memory_space<vmem>>, vector<1024x1024xbf16>
    %cst_12 = arith.constant dense<0.000000e+00> : vector<8x1024xf32>
    %17 = tpu.matmul %15, %16, %cst_12 {dimension_numbers = #tpu.dot_dimension_numbers<[1], [0], [0], [1], [0, 0, 1, 1], [], []>} : vector<8x1024xbf16>, vector<1024x1024xbf16>, vector<8x1024xf32> -> vector<8x1024xf32>
    %c0_13 = arith.constant 0 : index
    %c0_14 = arith.constant 0 : index
    %18 = vector.load %arg7[%c0_13, %c0_14] : memref<1x1024xf32, #tpu.memory_space<vmem>>, vector<1x1024xf32>
    %19 = vector.broadcast %18 : vector<1x1024xf32> to vector<8x1024xf32>
    %20 = arith.addf %17, %19 : vector<8x1024xf32>
    %21 = math.tanh %20 : vector<8x1024xf32>
    %22 = arith.truncf %21 : vector<8x1024xf32> to vector<8x1024xbf16>
    %c0_15 = arith.constant 0 : index
    %c0_16 = arith.constant 0 : index
    %23 = vector.load %arg8[%c0_15, %c0_16] : memref<1024x256xbf16, #tpu.memory_space<vmem>>, vector<1024x256xbf16>
    %cst_17 = arith.constant dense<0.000000e+00> : vector<8x256xf32>
    %24 = tpu.matmul %22, %23, %cst_17 {dimension_numbers = #tpu.dot_dimension_numbers<[1], [0], [0], [1], [0, 0, 1, 1], [], []>} : vector<8x1024xbf16>, vector<1024x256xbf16>, vector<8x256xf32> -> vector<8x256xf32>
    %c0_18 = arith.constant 0 : index
    %c0_19 = arith.constant 0 : index
    %25 = vector.load %arg9[%c0_18, %c0_19] : memref<1x256xf32, #tpu.memory_space<vmem>>, vector<1x256xf32>
    %26 = vector.broadcast %25 : vector<1x256xf32> to vector<8x256xf32>
    %27 = arith.addf %24, %26 : vector<8x256xf32>
    %28 = math.tanh %27 : vector<8x256xf32>
    %29 = arith.truncf %28 : vector<8x256xf32> to vector<8x256xbf16>
    %c0_20 = arith.constant 0 : index
    %c0_21 = arith.constant 0 : index
    %30 = vector.load %arg10[%c0_20, %c0_21] : memref<256x4736xbf16, #tpu.memory_space<vmem>>, vector<256x4736xbf16>
    %cst_22 = arith.constant dense<0.000000e+00> : vector<8x4736xf32>
    %31 = tpu.matmul %29, %30, %cst_22 {dimension_numbers = #tpu.dot_dimension_numbers<[1], [0], [0], [1], [0, 0, 1, 1], [], []>} : vector<8x256xbf16>, vector<256x4736xbf16>, vector<8x4736xf32> -> vector<8x4736xf32>
    %c0_23 = arith.constant 0 : index
    %c0_24 = arith.constant 0 : index
    %32 = vector.load %arg11[%c0_23, %c0_24] : memref<1x4736xf32, #tpu.memory_space<vmem>>, vector<1x4736xf32>
    %33 = vector.broadcast %32 : vector<1x4736xf32> to vector<8x4736xf32>
    %34 = arith.addf %31, %33 : vector<8x4736xf32>
    %c0_25 = arith.constant 0 : index
    %c0_26 = arith.constant 0 : index
    %35 = vector.load %arg12[%c0_25, %c0_26] : memref<8x4736xf32, #tpu.memory_space<vmem>>, vector<8x4736xf32>
    tpu.vector_store %arg12[%c0_25, %c0_26], %34 {strides = array<i32>} : memref<8x4736xf32, #tpu.memory_space<vmem>>, vector<8x4736xf32>,
    return
  }
  func.func @transform_0(%arg0: i32) -> (i32, i32) {
    %c0_i32 = arith.constant 0 : i32
    %c0_i32_0 = arith.constant 0 : i32
    return %arg0, %c0_i32 : i32, i32
  }
  func.func @transform_1(%arg0: i32) -> (i32, i32) {
    %c0_i32 = arith.constant 0 : i32
    %c0_i32_0 = arith.constant 0 : i32
    %c0_i32_1 = arith.constant 0 : i32
    return %c0_i32, %c0_i32_0 : i32, i32
  }
  func.func @transform_2(%arg0: i32) -> (i32, i32) {
    %c0_i32 = arith.constant 0 : i32
    %c0_i32_0 = arith.constant 0 : i32
    %c0_i32_1 = arith.constant 0 : i32
    return %c0_i32, %c0_i32_0 : i32, i32
  }
  func.func @transform_3(%arg0: i32) -> (i32, i32) {
    %c0_i32 = arith.constant 0 : i32
    %c0_i32_0 = arith.constant 0 : i32
    %c0_i32_1 = arith.constant 0 : i32
    return %c0_i32, %c0_i32_0 : i32, i32
  }
  func.func @transform_4(%arg0: i32) -> (i32, i32) {
    %c0_i32 = arith.constant 0 : i32
    %c0_i32_0 = arith.constant 0 : i32
    %c0_i32_1 = arith.constant 0 : i32
    return %c0_i32, %c0_i32_0 : i32, i32
  }
  func.func @transform_5(%arg0: i32) -> (i32, i32) {
    %c0_i32 = arith.constant 0 : i32
    %c0_i32_0 = arith.constant 0 : i32
    %c0_i32_1 = arith.constant 0 : i32
    return %c0_i32, %c0_i32_0 : i32, i32
  }
  func.func @transform_6(%arg0: i32) -> (i32, i32) {
    %c0_i32 = arith.constant 0 : i32
    %c0_i32_0 = arith.constant 0 : i32
    %c0_i32_1 = arith.constant 0 : i32
    return %c0_i32, %c0_i32_0 : i32, i32
  }
  func.func @transform_7(%arg0: i32) -> (i32, i32) {
    %c0_i32 = arith.constant 0 : i32
    %c0_i32_0 = arith.constant 0 : i32
    %c0_i32_1 = arith.constant 0 : i32
    return %c0_i32, %c0_i32_0 : i32, i32
  }
  func.func @transform_8(%arg0: i32) -> (i32, i32) {
    %c0_i32 = arith.constant 0 : i32
    %c0_i32_0 = arith.constant 0 : i32
    %c0_i32_1 = arith.constant 0 : i32
    return %c0_i32, %c0_i32_0 : i32, i32
  }
  func.func @transform_9(%arg0: i32) -> (i32, i32) {
    %c0_i32 = arith.constant 0 : i32
    %c0_i32_0 = arith.constant 0 : i32
    %c0_i32_1 = arith.constant 0 : i32
    return %c0_i32, %c0_i32_0 : i32, i32
  }
  func.func @transform_10(%arg0: i32) -> (i32, i32) {
    %c0_i32 = arith.constant 0 : i32
    %c0_i32_0 = arith.constant 0 : i32
    %c0_i32_1 = arith.constant 0 : i32
    return %c0_i32, %c0_i32_0 : i32, i32
  }
  func.func @transform_11(%arg0: i32) -> (i32, i32) {
    %c0_i32 = arith.constant 0 : i32
    %c0_i32_0 = arith.constant 0 : i32
    return %arg0, %c0_i32 : i32, i32
  }
}

</mosaic_0001>

<bundles_post_ra>
// kernel: model_forward.1
= control target key start
LH: loop header
LB: loop body
LE: loop exit
PB: predicated region body
PF: predicated region fallthrough
CT: control target
= control target key end

     0   :  { %16 = vsyncpa [#allocation3], 0  ;;  %s21088_s0 = inlined_call_operand.vmem [shape: f32[8,896], index: 0, kind: input, shape index: {}]   ;;  %s21089_s1 = inlined_call_operand.hbm [shape: bf16[896,1024], index: 1, kind: input, shape index: {}]   ;;  %s21090_s2 = inlined_call_operand.hbm [shape: f32[1,1024], index: 2, kind: input, shape index: {}]   ;;  %s21091_s3 = inlined_call_operand.hbm [shape: bf16[1024,1024], index: 3, kind: input, shape index: {}]   ;;  %s21092_s4 = inlined_call_operand.hbm [shape: f32[1,1024], index: 4, kind: input, shape index: {}]   ;;  %s21093_s5 = inlined_call_operand.hbm [shape: bf16[1024,1024], index: 5, kind: input, shape index: {}]   ;;  %s21094_s6 = inlined_call_operand.hbm [shape: f32[1,1024], index: 6, kind: input, shape index: {}]   ;;  %s21095_s7 = inlined_call_operand.hbm [shape: bf16[1024,256], index: 7, kind: input, shape index: {}]   ;;  %s21096_s8 = inlined_call_operand.hbm [shape: f32[1,256], index: 8, kind: input, shape index: {}]   ;;  %s21097_s9 = inlined_call_operand.hbm [shape: bf16[256,4736], index: 9, kind: input, shape index: {}]   ;;  %s21098_s10 = inlined_call_operand.hbm [shape: f32[1,4736], index: 10, kind: input, shape index: {}]   ;;  %s21099_s11 = inlined_call_operand.vmem [shape: f32[8,4736], index: 11, kind: output, shape index: {}]  }
   0x1   :  { %17 = vsyncpa [#allocation5], 0 }
   0x2   :  { %18 = vsyncpa [#allocation8], 0 }
   0x3   :  { %19 = vsyncpa [#allocation11], 0 }
   0x4   :  { %20 = vsyncpa [#allocation14], 0 }
   0x5   :  { %21 = vsyncpa [#allocation17], 0  ;;  %s20278_s17 = smov [#allocation4]   ;;  %s20279_s19 = smov [#allocation7]  }
   0x6   :  { %s42_s18 = sshll.u32 %s20278_s17, 4  ;;  %s64_s20 = sshll.u32 %s20279_s19, 4  ;;  %s43_s18 = int_to_ptr.vmem [resolvable:$true] %s42_s18  ;;  %s65_s20 = int_to_ptr.vmem [resolvable:$true] %s64_s20 }
   0x7   :  { %s20074_s21 = scalar_lea.vmem %s43_s18, 128  ;;  %p20079_p1 = scmp.lt.s32.totalorder %s43_s18, %s43_s18 }
   0x8   :  { %p20075_p0 = scmp.ne.s32.totalorder %s43_s18, %s20074_s21  ;;  %p20080_p2 = scmp.lt.s32.totalorder %s20074_s21, %s20074_s21 }
   0xa   :  { %p20081_p3 = por %p20080_p2, %p20079_p1 }
   0xc   :  { %p20082_p4 = pnand %p20081_p3, %p20075_p0 }
   0xe   :  { %20085 = shalt.err (!%p20082_p4)
}
   0xf   :  { %45 = dma.hbm_to_vmem [thread:$0]  %s21090_s2, 128, %s43_s18, [#allocation5]  }
  0x10   :  { %s20094_s24 = scalar_lea.vmem %s65_s20, 128  ;;  %p20099_p6 = scmp.lt.s32.totalorder %s65_s20, %s65_s20 }
  0x11   :  { %p20095_p5 = scmp.ne.s32.totalorder %s65_s20, %s20094_s24  ;;  %p20100_p7 = scmp.lt.s32.totalorder %s20094_s24, %s20094_s24 }
  0x13   :  { %p20101_p8 = por %p20100_p7, %p20099_p6 }
  0x15   :  { %p20102_p9 = pnand %p20101_p8, %p20095_p5 }
  0x17   :  { %20105 = shalt.err (!%p20102_p9)
}
  0x18   :  { %67 = dma.hbm_to_vmem [thread:$0]  %s21092_s4, 128, %s65_s20, [#allocation8]  }
  0x19   :  { %s20280_s27 = smov [#allocation10]   ;;  %s20281_s29 = smov [#allocation13]  }
  0x1a   :  { %s86_s28 = sshll.u32 %s20280_s27, 4  ;;  %s108_s30 = sshll.u32 %s20281_s29, 4  ;;  %s87_s28 = int_to_ptr.vmem [resolvable:$true] %s86_s28  ;;  %s109_s30 = int_to_ptr.vmem [resolvable:$true] %s108_s30 }
  0x1b   :  { %s20114_s12 = scalar_lea.vmem %s87_s28, 128  ;;  %p20119_p11 = scmp.lt.s32.totalorder %s87_s28, %s87_s28 }
  0x1c   :  { %p20115_p10 = scmp.ne.s32.totalorder %s87_s28, %s20114_s12  ;;  %p20120_p12 = scmp.lt.s32.totalorder %s20114_s12, %s20114_s12 }
  0x1e   :  { %p20121_p13 = por %p20120_p12, %p20119_p11 }
  0x20   :  { %p20122_p0 = pnand %p20121_p13, %p20115_p10 }
  0x22   :  { %20125 = shalt.err (!%p20122_p0)
}
  0x23   :  { %89 = dma.hbm_to_vmem [thread:$0]  %s21094_s6, 128, %s87_s28, [#allocation11]  }
  0x24   :  { %s20134_s14 = scalar_lea.vmem %s109_s30, 32  ;;  %p20139_p2 = scmp.lt.s32.totalorder %s109_s30, %s109_s30 }
  0x25   :  { %p20135_p1 = scmp.ne.s32.totalorder %s109_s30, %s20134_s14  ;;  %p20140_p3 = scmp.lt.s32.totalorder %s20134_s14, %s20134_s14 }
  0x27   :  { %p20141_p4 = por %p20140_p3, %p20139_p2 }
  0x29   :  { %p20142_p5 = pnand %p20141_p4, %p20135_p1 }
  0x2b   :  { %20145 = shalt.err (!%p20142_p5)
}
  0x2c   :  { %111 = dma.hbm_to_vmem [thread:$0]  %s21096_s8, 32, %s109_s30, [#allocation14]  }
  0x2d   :  { %s20282_s16 = smov [#allocation2]  }
  0x2e   :  { %s29_s17 = sshll.u32 %s20282_s16, 4  ;;  %s30_s17 = int_to_ptr.vmem [resolvable:$true] %s29_s17 }
  0x2f   :  { %s20154_s18 = scalar_lea.vmem %s30_s17, 57344  ;;  %p20159_p7 = scmp.lt.s32.totalorder %s30_s17, %s30_s17 }
  0x30   :  { %p20155_p6 = scmp.ne.s32.totalorder %s30_s17, %s20154_s18  ;;  %p20160_p8 = scmp.lt.s32.totalorder %s20154_s18, %s20154_s18 }
  0x32   :  { %p20161_p9 = por %p20160_p8, %p20159_p7 }
  0x34   :  { %p20162_p10 = pnand %p20161_p9, %p20155_p6 }
  0x36   :  { %20165 = shalt.err (!%p20162_p10)
}
  0x37   :  { %s20283_s6 = smov 512   ;;  %s20284_s19 = smov 32  }
  0x38   :  { %35 = dma.hbm_to_vmem [thread:$0]  %s21089_s1, 57344, %s30_s17, [#allocation3], %s20283_s6, %s20283_s6, %s20284_s19  }
  0x39   :  { %s20285_s22 = smov [#allocation6]   ;;  %s20286_s8 = smov [#allocation9]  }
  0x3a   :  { %s51_s23 = sshll.u32 %s20285_s22, 4  ;;  %s73_s24 = sshll.u32 %s20286_s8, 4  ;;  %s52_s23 = int_to_ptr.vmem [resolvable:$true] %s51_s23  ;;  %s74_s24 = int_to_ptr.vmem [resolvable:$true] %s73_s24 }
  0x3b   :  { %s20174_s25 = scalar_lea.vmem %s52_s23, 65536  ;;  %p20179_p12 = scmp.lt.s32.totalorder %s52_s23, %s52_s23 }
  0x3c   :  { %p20175_p11 = scmp.ne.s32.totalorder %s52_s23, %s20174_s25  ;;  %p20180_p13 = scmp.lt.s32.totalorder %s20174_s25, %s20174_s25 }
  0x3e   :  { %p20181_p0 = por %p20180_p13, %p20179_p12 }
  0x40   :  { %p20182_p1 = pnand %p20181_p0, %p20175_p11 }
  0x42   :  { %20185 = shalt.err (!%p20182_p1)
}
  0x43   :  { %57 = dma.hbm_to_vmem [thread:$0]  %s21091_s3, 65536, %s52_s23, [#allocation5], %s20283_s6, %s20283_s6, %s20284_s19  }
  0x44   :  { %s20194_s28 = scalar_lea.vmem %s74_s24, 65536  ;;  %p20199_p3 = scmp.lt.s32.totalorder %s74_s24, %s74_s24 }
  0x45   :  { %p20195_p2 = scmp.ne.s32.totalorder %s74_s24, %s20194_s28  ;;  %p20200_p4 = scmp.lt.s32.totalorder %s20194_s28, %s20194_s28 }
  0x47   :  { %p20201_p5 = por %p20200_p4, %p20199_p3 }
  0x49   :  { %p20202_p6 = pnand %p20201_p5, %p20195_p2 }
  0x4b   :  { %20205 = shalt.err (!%p20202_p6)
}
  0x4c   :  { %79 = dma.hbm_to_vmem [thread:$0]  %s21093_s5, 65536, %s74_s24, [#allocation8], %s20283_s6, %s20283_s6, %s20284_s19  }
  0x4d   :  { %s20287_s30 = smov [#allocation12]  }
  0x4e   :  { %s95_s12 = sshll.u32 %s20287_s30, 4  ;;  %s96_s12 = int_to_ptr.vmem [resolvable:$true] %s95_s12 }
  0x4f   :  { %s20214_s2 = scalar_lea.vmem %s96_s12, 16384  ;;  %p20219_p8 = scmp.lt.s32.totalorder %s96_s12, %s96_s12 }
  0x50   :  { %p20215_p7 = scmp.ne.s32.totalorder %s96_s12, %s20214_s2  ;;  %p20220_p9 = scmp.lt.s32.totalorder %s20214_s2, %s20214_s2 }
  0x52   :  { %p20221_p10 = por %p20220_p9, %p20219_p8 }
  0x54   :  { %p20222_p11 = pnand %p20221_p10, %p20215_p7 }
  0x56   :  { %20225 = shalt.err (!%p20222_p11)
}
  0x57   :  { %s20288_s3 = smov 128   ;;  %s20289_s13 = smov 8  }
  0x58   :  { %101 = dma.hbm_to_vmem [thread:$0]  %s21095_s7, 16384, %s96_s12, [#allocation11], %s20288_s3, %s20288_s3, %s20289_s13  }
  0x59   :  { %s20290_s15 = smov [#allocation15]  }
  0x5a   :  { %s117_s16 = sshll.u32 %s20290_s15, 4  ;;  %s118_s16 = int_to_ptr.vmem [resolvable:$true] %s117_s16 }
  0x5b   :  { %s20234_s5 = scalar_lea.vmem %s118_s16, 75776  ;;  %p20239_p13 = scmp.lt.s32.totalorder %s118_s16, %s118_s16 }
  0x5c   :  { %p20235_p12 = scmp.ne.s32.totalorder %s118_s16, %s20234_s5  ;;  %p20240_p0 = scmp.lt.s32.totalorder %s20234_s5, %s20234_s5 }
  0x5e   :  { %p20241_p1 = por %p20240_p0, %p20239_p13 }
  0x60   :  { %p20242_p2 = pnand %p20241_p1, %p20235_p12 }
  0x62   :  { %20245 = shalt.err (!%p20242_p2)
}
  0x63   :  { %s20291_s17 = smov 2368   ;;  %s20292_s18 = smov 148  }
  0x64   :  { %123 = dma.hbm_to_vmem [thread:$0]  %s21097_s9, 75776, %s118_s16, [#allocation14], %s20291_s17, %s20291_s17, %s20292_s18  }
  0x65   :  { %s20293_s20 = smov [#allocation16]  }
  0x66   :  { %s130_s21 = sshll.u32 %s20293_s20, 4  ;;  %s131_s21 = int_to_ptr.vmem [resolvable:$true] %s130_s21 }
  0x67   :  { %s20254_s7 = scalar_lea.vmem %s131_s21, 592  ;;  %s20258_s22 = scalar_lea.vmem %s131_s21, 608 }
  0x68   :  { %p20255_p3 = scmp.ne.s32.totalorder %s131_s21, %s20254_s7  ;;  %p20259_p4 = scmp.lt.s32.totalorder %s131_s21, %s131_s21 }
  0x69   :  { %p20260_p5 = scmp.lt.s32.totalorder %s20258_s22, %s20254_s7 }
  0x6b   :  { %p20261_p6 = por %p20260_p5, %p20259_p4 }
  0x6d   :  { %p20262_p7 = pnand %p20261_p6, %p20255_p3 }
  0x6f   :  { %20265 = shalt.err (!%p20262_p7)
}
  0x70   :  { %133 = dma.hbm_to_vmem [thread:$0]  %s21098_s10, 592, %s131_s21, [#allocation17]  }
  0x71   :  { %20266 = dma.done.wait [#allocation3], 57344  }
  0x72   :  { %20267 = vsyncadd [#allocation3], 4294909952 }
  0x73   :  { %20268 = dma.done.wait [#allocation5], 65664  }
  0x74   :  { %20269 = vsyncadd [#allocation5], 4294901632 }
  0x75   :  { %20270 = dma.done.wait [#allocation8], 65664  }
  0x76   :  { %20271 = vsyncadd [#allocation8], 4294901632 }
  0x77   :  { %20272 = dma.done.wait [#allocation11], 16512  }
  0x78   :  { %20273 = vsyncadd [#allocation11], 4294950784 }
  0x79   :  { %20274 = dma.done.wait [#allocation14], 75808  }
  0x7a   :  { %20275 = vsyncadd [#allocation14], 4294891488 }
  0x7b   :  { %20276 = dma.done.wait [#allocation17], 592  }
  0x7c   :  { %20277 = vsyncadd [#allocation17], 4294966704  ;;  %v235_v0 = vld [vmem:[#allocation2 + $0x1c0] sm:$0xff]  ;;  %v166_v53 = vld [vmem:[%s21088_s0 + $0x8] sm:$0xff] }
  0x7d   :  { %v239_v1 = vld [vmem:[#allocation2 + $0x1e0] sm:$0xff]  ;;  %v168_v54 = vld [vmem:[%s21088_s0 + $0x18] sm:$0xff]  ;;  %v20391_v58 = vpack.c.bf16 %v166_v53, %v166_v53 }
  0x7e   :  { %v363_v2 = vld [vmem:[#allocation2 + $0x5c0] sm:$0xff]  ;;  %v16762_v3 = vcombine.high %v235_v0, %v239_v1  ;;  %v16761_v5 = vcombine.low %v235_v0, %v239_v1  ;;  %v20393_v59 = vpack.c.bf16 %v168_v54, %v168_v54 }
  0x7f   :  { %v367_v4 = vld [vmem:[#allocation2 + $0x5e0] sm:$0xff]  ;;  %2941 = vmatprep.mubr.bf16.mxu0 %v20391_v58 }
  0x80   :  { %v227_v6 = vld [vmem:[#allocation2 + $0x180] sm:$0xff]  ;;  %v16890_v8 = vcombine.high %v363_v2, %v367_v4  ;;  %v16889_v9 = vcombine.low %v363_v2, %v367_v4  ;;  %2909 = vmatprep.subr.bf16.mxu0 %v16762_v3  ;;  %2982 = vmatprep.mubr.bf16.mxu1 %v20393_v59 }
  0x81   :  { %v231_v7 = vld [vmem:[#allocation2 + $0x1a0] sm:$0xff]  ;;  %2910 = vmatpush1.bf16.msra.mxu0 %v16761_v5 }
  0x82   :  { %v16754_v10 = vcombine.high %v227_v6, %v231_v7  ;;  %v355_v11 = vld [vmem:[#allocation2 + $0x580] sm:$0xff]  ;;  %2950 = vmatprep.subr.bf16.mxu1 %v16890_v8  ;;  %v16753_v18 = vcombine.low %v227_v6, %v231_v7 }
  0x83   :  { %v359_v12 = vld [vmem:[#allocation2 + $0x5a0] sm:$0xff]  ;;  %2951 = vmatpush1.bf16.msra.mxu1 %v16889_v9 }
  0x84   :  { %v219_v13 = vld [vmem:[#allocation2 + $0x140] sm:$0xff]  ;;  %v16882_v14 = vcombine.high %v355_v11, %v359_v12  ;;  %2911 = vmatprep.subr.bf16.mxu0 %v16754_v10  ;;  %v16881_v19 = vcombine.low %v355_v11, %v359_v12 }
  0x85   :  { %v223_v15 = vld [vmem:[#allocation2 + $0x160] sm:$0xff]  ;;  %2912 = vmatpush1.bf16.msra.mxu0 %v16753_v18 }
  0x86   :  { %v347_v16 = vld [vmem:[#allocation2 + $0x540] sm:$0xff]  ;;  %v16746_v20 = vcombine.high %v219_v13, %v223_v15  ;;  %2952 = vmatprep.subr.bf16.mxu1 %v16882_v14  ;;  %v16745_v26 = vcombine.low %v219_v13, %v223_v15 }
  0x87   :  { %v351_v17 = vld [vmem:[#allocation2 + $0x560] sm:$0xff]  ;;  %2953 = vmatpush1.bf16.msra.mxu1 %v16881_v19 }
  0x88   :  { %v16874_v21 = vcombine.high %v347_v16, %v351_v17  ;;  %v211_v22 = vld [vmem:[#allocation2 + $0x100] sm:$0xff]  ;;  %2913 = vmatprep.subr.bf16.mxu0 %v16746_v20  ;;  %v16873_v27 = vcombine.low %v347_v16, %v351_v17 }
  0x89   :  { %v215_v23 = vld [vmem:[#allocation2 + $0x120] sm:$0xff]  ;;  %2914 = vmatpush1.bf16.msra.mxu0 %v16745_v26 }
  0x8a   :  { %v339_v24 = vld [vmem:[#allocation2 + $0x500] sm:$0xff]  ;;  %v16738_v28 = vcombine.high %v211_v22, %v215_v23  ;;  %2954 = vmatprep.subr.bf16.mxu1 %v16874_v21  ;;  %v16737_v34 = vcombine.low %v211_v22, %v215_v23 }
  0x8b   :  { %v343_v25 = vld [vmem:[#allocation2 + $0x520] sm:$0xff]  ;;  %2955 = vmatpush1.bf16.msra.mxu1 %v16873_v27 }
  0x8c   :  { %v16866_v29 = vcombine.high %v339_v24, %v343_v25  ;;  %v203_v30 = vld [vmem:[#allocation2 + $0xc0] sm:$0xff]  ;;  %2915 = vmatprep.subr.bf16.mxu0 %v16738_v28  ;;  %v16865_v35 = vcombine.low %v339_v24, %v343_v25 }
  0x8d   :  { %v207_v31 = vld [vmem:[#allocation2 + $0xe0] sm:$0xff]  ;;  %2916 = vmatpush1.bf16.msra.mxu0 %v16737_v34 }
  0x8e   :  { %v331_v32 = vld [vmem:[#allocation2 + $0x4c0] sm:$0xff]  ;;  %v16730_v36 = vcombine.high %v203_v30, %v207_v31  ;;  %2956 = vmatprep.subr.bf16.mxu1 %v16866_v29  ;;  %v16729_v42 = vcombine.low %v203_v30, %v207_v31 }
  0x8f   :  { %v335_v33 = vld [vmem:[#allocation2 + $0x4e0] sm:$0xff]  ;;  %2957 = vmatpush1.bf16.msra.mxu1 %v16865_v35 }
  0x90   :  { %v16858_v37 = vcombine.high %v331_v32, %v335_v33  ;;  %v195_v38 = vld [vmem:[#allocation2 + $0x80] sm:$0xff]  ;;  %2917 = vmatprep.subr.bf16.mxu0 %v16730_v36  ;;  %v16857_v43 = vcombine.low %v331_v32, %v335_v33 }
  0x91   :  { %v199_v39 = vld [vmem:[#allocation2 + $0xa0] sm:$0xff]  ;;  %2918 = vmatpush1.bf16.msra.mxu0 %v16729_v42 }
  0x92   :  { %v323_v40 = vld [vmem:[#allocation2 + $0x480] sm:$0xff]  ;;  %v16722_v44 = vcombine.high %v195_v38, %v199_v39  ;;  %2958 = vmatprep.subr.bf16.mxu1 %v16858_v37  ;;  %v16721_v50 = vcombine.low %v195_v38, %v199_v39 }
  0x93   :  { %v327_v41 = vld [vmem:[#allocation2 + $0x4a0] sm:$0xff]  ;;  %2959 = vmatpush1.bf16.msra.mxu1 %v16857_v43 }
  0x94   :  { %v16850_v45 = vcombine.high %v323_v40, %v327_v41  ;;  %v187_v46 = vld [vmem:[#allocation2 + $0x40] sm:$0xff]  ;;  %2919 = vmatprep.subr.bf16.mxu0 %v16722_v44  ;;  %v16849_v51 = vcombine.low %v323_v40, %v327_v41 }
  0x95   :  { %v191_v47 = vld [vmem:[#allocation2 + $0x60] sm:$0xff]  ;;  %2920 = vmatpush1.bf16.msra.mxu0 %v16721_v50 }
  0x96   :  { %v315_v48 = vld [vmem:[#allocation2 + $0x440] sm:$0xff]  ;;  %v16714_v52 = vcombine.high %v187_v46, %v191_v47  ;;  %2960 = vmatprep.subr.bf16.mxu1 %v16850_v45  ;;  %v16713_v62 = vcombine.low %v187_v46, %v191_v47 }
  0x97   :  { %v319_v49 = vld [vmem:[#allocation2 + $0x460] sm:$0xff]  ;;  %2961 = vmatpush1.bf16.msra.mxu1 %v16849_v51 }
  0x98   :  { %v16842_v55 = vcombine.high %v315_v48, %v319_v49  ;;  %v179_v56 = vld [vmem:[#allocation2] sm:$0xff]  ;;  %2921 = vmatprep.subr.bf16.mxu0 %v16714_v52  ;;  %v16841_v63 = vcombine.low %v315_v48, %v319_v49 }
  0x99   :  { %v183_v57 = vld [vmem:[#allocation2 + $0x20] sm:$0xff]  ;;  %2922 = vmatpush1.bf16.msra.mxu0 %v16713_v62 }
  0x9a   :  { %v307_v60 = vld [vmem:[#allocation2 + $0x400] sm:$0xff]  ;;  %v16706_v0 = vcombine.high %v179_v56, %v183_v57  ;;  %2962 = vmatprep.subr.bf16.mxu1 %v16842_v55  ;;  %v16705_v6 = vcombine.low %v179_v56, %v183_v57 }
  0x9b   :  { %v311_v61 = vld [vmem:[#allocation2 + $0x420] sm:$0xff]  ;;  %2963 = vmatpush1.bf16.msra.mxu1 %v16841_v63 }
  0x9c   :  { %v16834_v1 = vcombine.high %v307_v60, %v311_v61  ;;  %v299_v2 = vld [vmem:[#allocation2 + $0x3c0] sm:$0xff]  ;;  %2923 = vmatprep.subr.bf16.mxu0 %v16706_v0  ;;  %v16833_v7 = vcombine.low %v307_v60, %v311_v61 }
  0x9d   :  { %v303_v3 = vld [vmem:[#allocation2 + $0x3e0] sm:$0xff]  ;;  %2924 = vmatpush1.bf16.msra.mxu0 %v16705_v6 }
  0x9e   :  { %v427_v4 = vld [vmem:[#allocation2 + $0x7c0] sm:$0xff]  ;;  %v16826_v8 = vcombine.high %v299_v2, %v303_v3  ;;  %2964 = vmatprep.subr.bf16.mxu1 %v16834_v1  ;;  %v16825_v14 = vcombine.low %v299_v2, %v303_v3 }
  0x9f   :  { %v431_v5 = vld [vmem:[#allocation2 + $0x7e0] sm:$0xff]  ;;  %2965 = vmatpush1.bf16.msra.mxu1 %v16833_v7 }
  0xa0   :  { %v16954_v9 = vcombine.high %v427_v4, %v431_v5  ;;  %v291_v10 = vld [vmem:[#allocation2 + $0x380] sm:$0xff]  ;;  %2925 = vmatprep.subr.bf16.mxu0 %v16826_v8  ;;  %v16953_v15 = vcombine.low %v427_v4, %v431_v5 }
  0xa1   :  { %v295_v11 = vld [vmem:[#allocation2 + $0x3a0] sm:$0xff]  ;;  %2926 = vmatpush2.bf16.msra.mxu0 %v16825_v14 }
  0xa2   :  { %v419_v12 = vld [vmem:[#allocation2 + $0x780] sm:$0xff]  ;;  %v16818_v16 = vcombine.high %v291_v10, %v295_v11  ;;  %2966 = vmatprep.subr.bf16.mxu1 %v16954_v9  ;;  %v16817_v22 = vcombine.low %v291_v10, %v295_v11  ;;  %v167_v11 = vld [vmem:[%s21088_s0 + $0x10] sm:$0xff] }
  0xa3   :  { %v423_v13 = vld [vmem:[#allocation2 + $0x7a0] sm:$0xff]  ;;  %2967 = vmatpush2.bf16.msra.mxu1 %v16953_v15 }
  0xa4   :  { %v16946_v17 = vcombine.high %v419_v12, %v423_v13  ;;  %v283_v18 = vld [vmem:[#allocation2 + $0x340] sm:$0xff]  ;;  %2927 = vmatprep.subr.bf16.mxu0 %v16818_v16  ;;  %v16945_v23 = vcombine.low %v419_v12, %v423_v13 }
  0xa5   :  { %v287_v19 = vld [vmem:[#allocation2 + $0x360] sm:$0xff]  ;;  %2928 = vmatpush2.bf16.msra.mxu0 %v16817_v22 }
  0xa6   :  { %v411_v20 = vld [vmem:[#allocation2 + $0x740] sm:$0xff]  ;;  %v16810_v24 = vcombine.high %v283_v18, %v287_v19  ;;  %2968 = vmatprep.subr.bf16.mxu1 %v16946_v17  ;;  %v16809_v30 = vcombine.low %v283_v18, %v287_v19  ;;  %v20405_v19 = vpack.c.bf16 %v167_v11, %v167_v11 }
  0xa7   :  { %v415_v21 = vld [vmem:[#allocation2 + $0x760] sm:$0xff]  ;;  %2969 = vmatpush2.bf16.msra.mxu1 %v16945_v23 }
  0xa8   :  { %v16938_v25 = vcombine.high %v411_v20, %v415_v21  ;;  %v275_v26 = vld [vmem:[#allocation2 + $0x300] sm:$0xff]  ;;  %2929 = vmatprep.subr.bf16.mxu0 %v16810_v24  ;;  %v16937_v31 = vcombine.low %v411_v20, %v415_v21  ;;  %v170_v21 = vld [vmem:[%s21088_s0 + $0x28] sm:$0xff] }
  0xa9   :  { %v279_v27 = vld [vmem:[#allocation2 + $0x320] sm:$0xff]  ;;  %2930 = vmatpush2.bf16.msra.mxu0 %v16809_v30 }
  0xaa   :  { %v403_v28 = vld [vmem:[#allocation2 + $0x700] sm:$0xff]  ;;  %v16802_v32 = vcombine.high %v275_v26, %v279_v27  ;;  %2970 = vmatprep.subr.bf16.mxu1 %v16938_v25  ;;  %v16801_v38 = vcombine.low %v275_v26, %v279_v27 }
  0xab   :  { %v407_v29 = vld [vmem:[#allocation2 + $0x720] sm:$0xff]  ;;  %2971 = vmatpush2.bf16.msra.mxu1 %v16937_v31 }
  0xac   :  { %v16930_v33 = vcombine.high %v403_v28, %v407_v29  ;;  %v267_v34 = vld [vmem:[#allocation2 + $0x2c0] sm:$0xff]  ;;  %2931 = vmatprep.subr.bf16.mxu0 %v16802_v32  ;;  %v16929_v39 = vcombine.low %v403_v28, %v407_v29  ;;  %v20411_v29 = vpack.c.bf16 %v170_v21, %v170_v21 }
  0xad   :  { %v271_v35 = vld [vmem:[#allocation2 + $0x2e0] sm:$0xff]  ;;  %2932 = vmatpush2.bf16.msra.mxu0 %v16801_v38  ;;  %v20294_v38 = vmov 0  }
  0xae   :  { %v395_v36 = vld [vmem:[#allocation2 + $0x6c0] sm:$0xff]  ;;  %v16794_v40 = vcombine.high %v267_v34, %v271_v35  ;;  %2972 = vmatprep.subr.bf16.mxu1 %v16930_v33  ;;  %v16793_v46 = vcombine.low %v267_v34, %v271_v35 }
  0xaf   :  { %v399_v37 = vld [vmem:[#allocation2 + $0x6e0] sm:$0xff]  ;;  %2973 = vmatpush2.bf16.msra.mxu1 %v16929_v39 }
  0xb0   :  { %v16922_v41 = vcombine.high %v395_v36, %v399_v37  ;;  %v259_v42 = vld [vmem:[#allocation2 + $0x280] sm:$0xff]  ;;  %2933 = vmatprep.subr.bf16.mxu0 %v16794_v40  ;;  %v16921_v47 = vcombine.low %v395_v36, %v399_v37 }
  0xb1   :  { %v263_v43 = vld [vmem:[#allocation2 + $0x2a0] sm:$0xff]  ;;  %2934 = vmatpush2.bf16.msra.mxu0 %v16793_v46 }
  0xb2   :  { %v387_v44 = vld [vmem:[#allocation2 + $0x680] sm:$0xff]  ;;  %v16786_v48 = vcombine.high %v259_v42, %v263_v43  ;;  %2974 = vmatprep.subr.bf16.mxu1 %v16922_v41  ;;  %v16785_v54 = vcombine.low %v259_v42, %v263_v43 }
  0xb3   :  { %v391_v45 = vld [vmem:[#allocation2 + $0x6a0] sm:$0xff]  ;;  %2975 = vmatpush2.bf16.msra.mxu1 %v16921_v47 }
  0xb4   :  { %v16914_v49 = vcombine.high %v387_v44, %v391_v45  ;;  %v251_v50 = vld [vmem:[#allocation2 + $0x240] sm:$0xff]  ;;  %2935 = vmatprep.subr.bf16.mxu0 %v16786_v48  ;;  %v16913_v55 = vcombine.low %v387_v44, %v391_v45 }
  0xb5   :  { %v255_v51 = vld [vmem:[#allocation2 + $0x260] sm:$0xff]  ;;  %2936 = vmatpush2.bf16.msra.mxu0 %v16785_v54 }
  0xb6   :  { %v379_v52 = vld [vmem:[#allocation2 + $0x640] sm:$0xff]  ;;  %v16778_v56 = vcombine.high %v251_v50, %v255_v51  ;;  %2976 = vmatprep.subr.bf16.mxu1 %v16914_v49  ;;  %v16777_v0 = vcombine.low %v251_v50, %v255_v51 }
  0xb7   :  { %v383_v53 = vld [vmem:[#allocation2 + $0x660] sm:$0xff]  ;;  %2977 = vmatpush2.bf16.msra.mxu1 %v16913_v55 }
  0xb8   :  { %v16906_v57 = vcombine.high %v379_v52, %v383_v53  ;;  %v243_v60 = vld [vmem:[#allocation2 + $0x200] sm:$0xff]  ;;  %2937 = vmatprep.subr.bf16.mxu0 %v16778_v56  ;;  %v16905_v1 = vcombine.low %v379_v52, %v383_v53 }
  0xb9   :  { %v247_v61 = vld [vmem:[#allocation2 + $0x220] sm:$0xff]  ;;  %2938 = vmatpush2.bf16.msra.mxu0 %v16777_v0 }
  0xba   :  { %v371_v62 = vld [vmem:[#allocation2 + $0x600] sm:$0xff]  ;;  %v16770_v2 = vcombine.high %v243_v60, %v247_v61  ;;  %2978 = vmatprep.subr.bf16.mxu1 %v16906_v57  ;;  %v16769_v8 = vcombine.low %v243_v60, %v247_v61 }
  0xbb   :  { %v375_v63 = vld [vmem:[#allocation2 + $0x620] sm:$0xff]  ;;  %2979 = vmatpush2.bf16.msra.mxu1 %v16905_v1 }
  0xbc   :  { %v16898_v3 = vcombine.high %v371_v62, %v375_v63  ;;  %v491_v4 = vld [vmem:[#allocation2 + $0x9c0] sm:$0xff]  ;;  %2939 = vmatprep.subr.bf16.mxu0 %v16770_v2  ;;  %v16897_v10 = vcombine.low %v371_v62, %v375_v63 }
  0xbd   :  { %v495_v5 = vld [vmem:[#allocation2 + $0x9e0] sm:$0xff]  ;;  %2940 = vmatpush2.bf16.msra.mxu0 %v16769_v8 }
  0xbe   :  { %v619_v6 = vld [vmem:[#allocation2 + $0xdc0] sm:$0xff]  ;;  %v17018_v12 = vcombine.high %v491_v4, %v495_v5  ;;  %2980 = vmatprep.subr.bf16.mxu1 %v16898_v3  ;;  %v17017_v20 = vcombine.low %v491_v4, %v495_v5 }
  0xbf   :  { %v623_v7 = vld [vmem:[#allocation2 + $0xde0] sm:$0xff]  ;;  %2981 = vmatpush2.bf16.msra.mxu1 %v16897_v10 }
  0xc0   :  { %v165_v9 = vld [vmem:[%s21088_s0] sm:$0xff]  ;;  %v17146_v13 = vcombine.high %v619_v6, %v623_v7  ;;  %2991 = vmatprep.subr.bf16.mxu0 %v17018_v12  ;;  %v17145_v22 = vcombine.low %v619_v6, %v623_v7 }
  0xc1   :  { %v483_v14 = vld [vmem:[#allocation2 + $0x980] sm:$0xff]  ;;  %v20403_v16 = vpack.c.bf16 %v165_v9, %v165_v9 }
  0xc2   :  { %v487_v15 = vld [vmem:[#allocation2 + $0x9a0] sm:$0xff]  ;;  %3032 = vmatprep.subr.bf16.mxu1 %v17146_v13  ;;  %2983 = vmatmul.mubr.bf16.vlgmr.msra.gmra.mxu1 %v20405_v19 }
  0xc3   :  { %v611_v17 = vld [vmem:[#allocation2 + $0xd80] sm:$0xff]  ;;  %v17010_v23 = vcombine.high %v483_v14, %v487_v15  ;;  %2942 = vmatmul.mubr.bf16.vlgmr.msra.gmra.mxu0 %v20403_v16  ;;  %v17009_v30 = vcombine.low %v483_v14, %v487_v15  ;;  %3033 = vmatpush1.bf16.msra.mxu1 %v17145_v22  ;;  %v236_v14 = vld [vmem:[#allocation2 + $0x1c8] sm:$0xff] }
  0xc4   :  { %v615_v18 = vld [vmem:[#allocation2 + $0xda0] sm:$0xff]  ;;  %2992 = vmatpush1.bf16.msra.mxu0 %v17017_v20  ;;  %3064 = vmatprep.mubr.bf16.mxu1 %v20294_v38 }
  0xc5   :  { %v17138_v24 = vcombine.high %v611_v17, %v615_v18  ;;  %v475_v25 = vld [vmem:[#allocation2 + $0x940] sm:$0xff]  ;;  %2993 = vmatprep.subr.bf16.mxu0 %v17010_v23  ;;  %v17137_v31 = vcombine.low %v611_v17, %v615_v18  ;;  %3023 = vmatprep.mubr.bf16.mxu0 %v20411_v29  ;;  %v240_v17 = vld [vmem:[#allocation2 + $0x1e8] sm:$0xff]  ;;  %v171_v18 = vld [vmem:[%s21088_s0 + $0x30] sm:$0xff] }
  0xc6   :  { %v479_v26 = vld [vmem:[#allocation2 + $0x960] sm:$0xff] }
  0xc7   :  { %v603_v27 = vld [vmem:[#allocation2 + $0xd40] sm:$0xff]  ;;  %v17002_v32 = vcombine.high %v475_v25, %v479_v26  ;;  %3034 = vmatprep.subr.bf16.mxu1 %v17138_v24  ;;  %v17001_v39 = vcombine.low %v475_v25, %v479_v26  ;;  %v228_v25 = vld [vmem:[#allocation2 + $0x188] sm:$0xff]  ;;  %v16764_v26 = vcombine.high %v236_v14, %v240_v17 }
  0xc8   :  { %v607_v28 = vld [vmem:[#allocation2 + $0xd60] sm:$0xff]  ;;  %2994 = vmatpush1.bf16.msra.mxu0 %v17009_v30  ;;  %3035 = vmatpush1.bf16.msra.mxu1 %v17137_v31  ;;  %v20419_v30 = vpack.c.bf16 %v171_v18, %v171_v18  ;;  %v16763_v31 = vcombine.low %v236_v14, %v240_v17  ;;  %v180_v14 = vld [vmem:[#allocation2 + $0x8] sm:$0xff] }
  0xc9   :  { %v467_v33 = vld [vmem:[#allocation2 + $0x900] sm:$0xff]  ;;  %v17130_v36 = vcombine.high %v603_v27, %v607_v28  ;;  %2995 = vmatprep.subr.bf16.mxu0 %v17002_v32  ;;  %v17129_v40 = vcombine.low %v603_v27, %v607_v28  ;;  %v232_v27 = vld [vmem:[#allocation2 + $0x1a8] sm:$0xff] }
  0xca   :  { %v471_v34 = vld [vmem:[#allocation2 + $0x920] sm:$0xff]  ;;  %v184_v17 = vld [vmem:[#allocation2 + $0x28] sm:$0xff] }
  0xcb   :  { %v595_v35 = vld [vmem:[#allocation2 + $0xd00] sm:$0xff]  ;;  %v16994_v41 = vcombine.high %v467_v33, %v471_v34  ;;  %3036 = vmatprep.subr.bf16.mxu1 %v17130_v36  ;;  %v16993_v47 = vcombine.low %v467_v33, %v471_v34  ;;  %v16756_v36 = vcombine.high %v228_v25, %v232_v27 }
  0xcc   :  { %v599_v37 = vld [vmem:[#allocation2 + $0xd20] sm:$0xff]  ;;  %2996 = vmatpush1.bf16.msra.mxu0 %v17001_v39  ;;  %3037 = vmatpush1.bf16.msra.mxu1 %v17129_v40  ;;  %v16755_v40 = vcombine.low %v228_v25, %v232_v27  ;;  %v16708_v25 = vcombine.high %v180_v14, %v184_v17  ;;  %v368_v27 = vld [vmem:[#allocation2 + $0x5e8] sm:$0xff] }
  0xcd   :  { %v459_v42 = vld [vmem:[#allocation2 + $0x8c0] sm:$0xff]  ;;  %v17122_v45 = vcombine.high %v595_v35, %v599_v37  ;;  %2997 = vmatprep.subr.bf16.mxu0 %v16994_v41  ;;  %v17121_v48 = vcombine.low %v595_v35, %v599_v37  ;;  %v220_v35 = vld [vmem:[#allocation2 + $0x148] sm:$0xff] }
  0xce   :  { %v463_v43 = vld [vmem:[#allocation2 + $0x8e0] sm:$0xff]  ;;  %v224_v37 = vld [vmem:[#allocation2 + $0x168] sm:$0xff] }
  0xcf   :  { %v587_v44 = vld [vmem:[#allocation2 + $0xcc0] sm:$0xff]  ;;  %v16986_v49 = vcombine.high %v459_v42, %v463_v43  ;;  %3038 = vmatprep.subr.bf16.mxu1 %v17122_v45  ;;  %v16985_v55 = vcombine.low %v459_v42, %v463_v43  ;;  %v16748_v45 = vcombine.high %v220_v35, %v224_v37 }
  0xd0   :  { %v591_v46 = vld [vmem:[#allocation2 + $0xce0] sm:$0xff]  ;;  %2998 = vmatpush1.bf16.msra.mxu0 %v16993_v47  ;;  %3039 = vmatpush1.bf16.msra.mxu1 %v17121_v48  ;;  %v16747_v48 = vcombine.low %v220_v35, %v224_v37  ;;  %v356_v35 = vld [vmem:[#allocation2 + $0x588] sm:$0xff] }
  0xd1   :  { %v451_v50 = vld [vmem:[#allocation2 + $0x880] sm:$0xff]  ;;  %v17114_v53 = vcombine.high %v587_v44, %v591_v46  ;;  %2999 = vmatprep.subr.bf16.mxu0 %v16986_v49  ;;  %v17113_v56 = vcombine.low %v587_v44, %v591_v46  ;;  %v212_v44 = vld [vmem:[#allocation2 + $0x108] sm:$0xff] }
  0xd2   :  { %v455_v51 = vld [vmem:[#allocation2 + $0x8a0] sm:$0xff]  ;;  %v216_v46 = vld [vmem:[#allocation2 + $0x128] sm:$0xff] }
  0xd3   :  { %v579_v52 = vld [vmem:[#allocation2 + $0xc80] sm:$0xff]  ;;  %v16978_v57 = vcombine.high %v451_v50, %v455_v51  ;;  %3040 = vmatprep.subr.bf16.mxu1 %v17114_v53  ;;  %v16977_v1 = vcombine.low %v451_v50, %v455_v51  ;;  %v16740_v53 = vcombine.high %v212_v44, %v216_v46  ;;  %v360_v37 = vld [vmem:[#allocation2 + $0x5a8] sm:$0xff] }
  0xd4   :  { %v583_v54 = vld [vmem:[#allocation2 + $0xca0] sm:$0xff]  ;;  %3000 = vmatpush1.bf16.msra.mxu0 %v16985_v55  ;;  %3041 = vmatpush1.bf16.msra.mxu1 %v17113_v56  ;;  %v16739_v56 = vcombine.low %v212_v44, %v216_v46  ;;  %v288_v44 = vld [vmem:[#allocation2 + $0x368] sm:$0xff] }
  0xd5   :  { %v443_v60 = vld [vmem:[#allocation2 + $0x840] sm:$0xff]  ;;  %v17106_v63 = vcombine.high %v579_v52, %v583_v54  ;;  %3001 = vmatprep.subr.bf16.mxu0 %v16978_v57  ;;  %v17105_v2 = vcombine.low %v579_v52, %v583_v54  ;;  %v204_v52 = vld [vmem:[#allocation2 + $0xc8] sm:$0xff] }
  0xd6   :  { %v447_v61 = vld [vmem:[#allocation2 + $0x860] sm:$0xff]  ;;  %v208_v54 = vld [vmem:[#allocation2 + $0xe8] sm:$0xff] }
  0xd7   :  { %v571_v62 = vld [vmem:[#allocation2 + $0xc40] sm:$0xff]  ;;  %v16970_v3 = vcombine.high %v443_v60, %v447_v61  ;;  %3042 = vmatprep.subr.bf16.mxu1 %v17106_v63  ;;  %v16969_v9 = vcombine.low %v443_v60, %v447_v61  ;;  %v16732_v63 = vcombine.high %v204_v52, %v208_v54  ;;  %v348_v46 = vld [vmem:[#allocation2 + $0x548] sm:$0xff] }
  0xd8   :  { %v575_v0 = vld [vmem:[#allocation2 + $0xc60] sm:$0xff]  ;;  %3002 = vmatpush1.bf16.msra.mxu0 %v16977_v1  ;;  %3043 = vmatpush1.bf16.msra.mxu1 %v17105_v2  ;;  %v16731_v2 = vcombine.low %v204_v52, %v208_v54  ;;  %v280_v52 = vld [vmem:[#allocation2 + $0x328] sm:$0xff] }
  0xd9   :  { %v435_v4 = vld [vmem:[#allocation2 + $0x800] sm:$0xff]  ;;  %v17098_v7 = vcombine.high %v571_v62, %v575_v0  ;;  %3003 = vmatprep.subr.bf16.mxu0 %v16970_v3  ;;  %v17097_v10 = vcombine.low %v571_v62, %v575_v0  ;;  %v196_v62 = vld [vmem:[#allocation2 + $0x88] sm:$0xff] }
  0xda   :  { %v439_v5 = vld [vmem:[#allocation2 + $0x820] sm:$0xff]  ;;  %v200_v0 = vld [vmem:[#allocation2 + $0xa8] sm:$0xff] }
  0xdb   :  { %v563_v6 = vld [vmem:[#allocation2 + $0xc00] sm:$0xff]  ;;  %v16962_v11 = vcombine.high %v435_v4, %v439_v5  ;;  %3044 = vmatprep.subr.bf16.mxu1 %v17098_v7  ;;  %v16961_v20 = vcombine.low %v435_v4, %v439_v5  ;;  %v16724_v7 = vcombine.high %v196_v62, %v200_v0 }
  0xdc   :  { %v567_v8 = vld [vmem:[#allocation2 + $0xc20] sm:$0xff]  ;;  %3004 = vmatpush1.bf16.msra.mxu0 %v16969_v9  ;;  %3045 = vmatpush1.bf16.msra.mxu1 %v17097_v10  ;;  %v16723_v10 = vcombine.low %v196_v62, %v200_v0  ;;  %v272_v62 = vld [vmem:[#allocation2 + $0x2e8] sm:$0xff] }
  0xdd   :  { %v555_v12 = vld [vmem:[#allocation2 + $0xbc0] sm:$0xff]  ;;  %v17090_v15 = vcombine.high %v563_v6, %v567_v8  ;;  %3005 = vmatprep.subr.bf16.mxu0 %v16962_v11  ;;  %v17089_v21 = vcombine.low %v563_v6, %v567_v8  ;;  %v188_v6 = vld [vmem:[#allocation2 + $0x48] sm:$0xff] }
  0xde   :  { %v559_v13 = vld [vmem:[#allocation2 + $0xbe0] sm:$0xff]  ;;  %v192_v8 = vld [vmem:[#allocation2 + $0x68] sm:$0xff] }
  0xdf   :  { %v17082_v22 = vcombine.high %v555_v12, %v559_v13  ;;  %v547_v23 = vld [vmem:[#allocation2 + $0xb80] sm:$0xff]  ;;  %3046 = vmatprep.subr.bf16.mxu1 %v17090_v15  ;;  %v17081_v28 = vcombine.low %v555_v12, %v559_v13  ;;  %v16716_v15 = vcombine.high %v188_v6, %v192_v8 }
  0xe0   :  { %v551_v24 = vld [vmem:[#allocation2 + $0xba0] sm:$0xff]  ;;  %3006 = vmatpush1.bf16.msra.mxu0 %v16961_v20  ;;  %3047 = vmatpush1.bf16.msra.mxu1 %v17089_v21  ;;  %v16715_v20 = vcombine.low %v188_v6, %v192_v8  ;;  %v264_v6 = vld [vmem:[#allocation2 + $0x2a8] sm:$0xff] }
  0xe1   :  { %3007 = vmatprep.subr.bf16.mxu0 %v17082_v22  ;;  %v17074_v32 = vcombine.high %v547_v23, %v551_v24  ;;  %v539_v33 = vld [vmem:[#allocation2 + $0xb40] sm:$0xff]  ;;  %3073 = vmatprep.subr.bf16.mxu1 %v16764_v26  ;;  %v17073_v39 = vcombine.low %v547_v23, %v551_v24  ;;  %v300_v22 = vld [vmem:[#allocation2 + $0x3c8] sm:$0xff] }
  0xe2   :  { %v543_v34 = vld [vmem:[#allocation2 + $0xb60] sm:$0xff]  ;;  %v304_v23 = vld [vmem:[#allocation2 + $0x3e8] sm:$0xff] }
  0xe3   :  { %3065 = vmatmul.mubr.bf16.vlgmr.msra.gmra.mxu1 %v20419_v30  ;;  %v17066_v41 = vcombine.high %v539_v33, %v543_v34  ;;  %v531_v42 = vld [vmem:[#allocation2 + $0xb00] sm:$0xff]  ;;  %v17065_v47 = vcombine.low %v539_v33, %v543_v34  ;;  %v364_v24 = vld [vmem:[#allocation2 + $0x5c8] sm:$0xff] }
  0xe4   :  { %3008 = vmatpush2.bf16.msra.mxu0 %v17081_v28  ;;  %3074 = vmatpush1.bf16.msra.mxu1 %v16763_v31  ;;  %v535_v43 = vld [vmem:[#allocation2 + $0xb20] sm:$0xff]  ;;  %v16707_v31 = vcombine.low %v180_v14, %v184_v17  ;;  %v292_v33 = vld [vmem:[#allocation2 + $0x388] sm:$0xff] }
  0xe5   :  { %3009 = vmatprep.subr.bf16.mxu0 %v17074_v32  ;;  %3075 = vmatprep.subr.bf16.mxu1 %v16756_v36  ;;  %v17058_v49 = vcombine.high %v531_v42, %v535_v43  ;;  %v523_v50 = vld [vmem:[#allocation2 + $0xac0] sm:$0xff]  ;;  %v17057_v55 = vcombine.low %v531_v42, %v535_v43  ;;  %v16892_v32 = vcombine.high %v364_v24, %v368_v27  ;;  %v296_v34 = vld [vmem:[#allocation2 + $0x3a8] sm:$0xff] }
  0xe6   :  { %3105 = vmatprep.mubr.bf16.mxu1 %v20391_v58  ;;  %v527_v51 = vld [vmem:[#allocation2 + $0xae0] sm:$0xff]  ;;  %v16828_v36 = vcombine.high %v300_v22, %v304_v23  ;;  %v16884_v42 = vcombine.high %v356_v35, %v360_v37  ;;  %v284_v43 = vld [vmem:[#allocation2 + $0x348] sm:$0xff] }
  0xe7   :  { %v17050_v57 = vcombine.high %v523_v50, %v527_v51  ;;  %v515_v60 = vld [vmem:[#allocation2 + $0xa80] sm:$0xff]  ;;  %v17049_v1 = vcombine.low %v523_v50, %v527_v51  ;;  %v276_v51 = vld [vmem:[#allocation2 + $0x308] sm:$0xff]  ;;  %v16812_v54 = vcombine.high %v284_v43, %v288_v44 }
  0xe8   :  { %3010 = vmatpush2.bf16.msra.mxu0 %v17073_v39  ;;  %3076 = vmatpush1.bf16.msra.mxu1 %v16755_v40  ;;  %v519_v61 = vld [vmem:[#allocation2 + $0xaa0] sm:$0xff]  ;;  %v16891_v40 = vcombine.low %v364_v24, %v368_v27  ;;  %v16804_v0 = vcombine.high %v276_v51, %v280_v52  ;;  %v256_v14 = vld [vmem:[#allocation2 + $0x268] sm:$0xff] }
  0xe9   :  { %3011 = vmatprep.subr.bf16.mxu0 %v17066_v41  ;;  %3077 = vmatprep.subr.bf16.mxu1 %v16748_v45  ;;  %v17042_v3 = vcombine.high %v515_v60, %v519_v61  ;;  %v507_v4 = vld [vmem:[#allocation2 + $0xa40] sm:$0xff]  ;;  %v17041_v9 = vcombine.low %v515_v60, %v519_v61  ;;  %v16827_v41 = vcombine.low %v300_v22, %v304_v23  ;;  %v268_v61 = vld [vmem:[#allocation2 + $0x2c8] sm:$0xff] }
  0xea   :  { %v511_v5 = vld [vmem:[#allocation2 + $0xa60] sm:$0xff]  ;;  %v16820_v45 = vcombine.high %v292_v33, %v296_v34  ;;  %v16796_v8 = vcombine.high %v268_v61, %v272_v62  ;;  %v244_v23 = vld [vmem:[#allocation2 + $0x208] sm:$0xff] }
  0xeb   :  { %v17034_v11 = vcombine.high %v507_v4, %v511_v5  ;;  %v499_v12 = vld [vmem:[#allocation2 + $0xa00] sm:$0xff]  ;;  %v17033_v18 = vcombine.low %v507_v4, %v511_v5  ;;  %v260_v5 = vld [vmem:[#allocation2 + $0x288] sm:$0xff] }
  0xec   :  { %3012 = vmatpush2.bf16.msra.mxu0 %v17065_v47  ;;  %3078 = vmatpush1.bf16.msra.mxu1 %v16747_v48  ;;  %v503_v13 = vld [vmem:[#allocation2 + $0xa20] sm:$0xff]  ;;  %v352_v47 = vld [vmem:[#allocation2 + $0x568] sm:$0xff]  ;;  %v16883_v48 = vcombine.low %v356_v35, %v360_v37  ;;  %v16788_v17 = vcombine.high %v260_v5, %v264_v6 }
  0xed   :  { %3013 = vmatprep.subr.bf16.mxu0 %v17058_v49  ;;  %3079 = vmatprep.subr.bf16.mxu1 %v16740_v53  ;;  %v17026_v21 = vcombine.high %v499_v12, %v503_v13  ;;  %v169_v26 = vld [vmem:[%s21088_s0 + $0x20] sm:$0xff]  ;;  %v17025_v28 = vcombine.low %v499_v12, %v503_v13  ;;  %v16819_v49 = vcombine.low %v292_v33, %v296_v34  ;;  %v340_v53 = vld [vmem:[#allocation2 + $0x508] sm:$0xff] }
  0xee   :  { %v20426_v39 = vpack.c.bf16 %v169_v26, %v169_v26  ;;  %v16876_v50 = vcombine.high %v348_v46, %v352_v47  ;;  %v252_v13 = vld [vmem:[#allocation2 + $0x248] sm:$0xff] }
  0xef   :  { %v248_v24 = vld [vmem:[#allocation2 + $0x228] sm:$0xff]  ;;  %v16780_v26 = vcombine.high %v252_v13, %v256_v14 }
  0xf0   :  { %3014 = vmatpush2.bf16.msra.mxu0 %v17057_v55  ;;  %3080 = vmatpush1.bf16.msra.mxu1 %v16739_v56  ;;  %v344_v55 = vld [vmem:[#allocation2 + $0x528] sm:$0xff]  ;;  %v16875_v56 = vcombine.low %v348_v46, %v352_v47 }
  0xf1   :  { %3015 = vmatprep.subr.bf16.mxu0 %v17050_v57  ;;  %3081 = vmatprep.subr.bf16.mxu1 %v16732_v63  ;;  %v16811_v57 = vcombine.low %v284_v43, %v288_v44  ;;  %v16868_v60 = vcombine.high %v340_v53, %v344_v55  ;;  %v332_v63 = vld [vmem:[#allocation2 + $0x4c8] sm:$0xff] }
  0xf2   :  { %v312_v27 = vld [vmem:[#allocation2 + $0x428] sm:$0xff] }
  0xf3   :  { %v428_v33 = vld [vmem:[#allocation2 + $0x7c8] sm:$0xff] }
  0xf4   :  { %3016 = vmatpush2.bf16.msra.mxu0 %v17049_v1  ;;  %3082 = vmatpush1.bf16.msra.mxu1 %v16731_v2  ;;  %v336_v1 = vld [vmem:[#allocation2 + $0x4e8] sm:$0xff]  ;;  %v16867_v2 = vcombine.low %v340_v53, %v344_v55 }
  0xf5   :  { %3017 = vmatprep.subr.bf16.mxu0 %v17042_v3  ;;  %3083 = vmatprep.subr.bf16.mxu1 %v16724_v7  ;;  %v16803_v3 = vcombine.low %v276_v51, %v280_v52  ;;  %v16860_v4 = vcombine.high %v332_v63, %v336_v1  ;;  %v324_v7 = vld [vmem:[#allocation2 + $0x488] sm:$0xff] }
  0xf6   :  { %v432_v34 = vld [vmem:[#allocation2 + $0x7e8] sm:$0xff] }
  0xf7   :  { %v492_v35 = vld [vmem:[#allocation2 + $0x9c8] sm:$0xff] }
  0xf8   :  { %3018 = vmatpush2.bf16.msra.mxu0 %v17041_v9  ;;  %3084 = vmatpush1.bf16.msra.mxu1 %v16723_v10  ;;  %v328_v9 = vld [vmem:[#allocation2 + $0x4a8] sm:$0xff]  ;;  %v16859_v10 = vcombine.low %v332_v63, %v336_v1 }
  0xf9   :  { %3019 = vmatprep.subr.bf16.mxu0 %v17034_v11  ;;  %3085 = vmatprep.subr.bf16.mxu1 %v16716_v15  ;;  %v16795_v11 = vcombine.low %v268_v61, %v272_v62  ;;  %v16852_v12 = vcombine.high %v324_v7, %v328_v9  ;;  %v316_v15 = vld [vmem:[#allocation2 + $0x448] sm:$0xff] }
  0xfa   :  { %v496_v37 = vld [vmem:[#allocation2 + $0x9e8] sm:$0xff] }
  0xfb   :  { %v420_v43 = vld [vmem:[#allocation2 + $0x788] sm:$0xff]  ;;  %v17020_v46 = vcombine.high %v492_v35, %v496_v37 }
  0xfc   :  { %3020 = vmatpush2.bf16.msra.mxu0 %v17033_v18  ;;  %3086 = vmatpush1.bf16.msra.mxu1 %v16715_v20  ;;  %v320_v18 = vld [vmem:[#allocation2 + $0x468] sm:$0xff]  ;;  %v16851_v20 = vcombine.low %v324_v7, %v328_v9 }
  0xfd   :  { %3021 = vmatprep.subr.bf16.mxu0 %v17026_v21  ;;  %3087 = vmatprep.subr.bf16.mxu1 %v16708_v25  ;;  %v16787_v21 = vcombine.low %v260_v5, %v264_v6  ;;  %v16844_v22 = vcombine.high %v316_v15, %v320_v18  ;;  %v308_v25 = vld [vmem:[#allocation2 + $0x408] sm:$0xff] }
  0xfe   :  { %v424_v44 = vld [vmem:[#allocation2 + $0x7a8] sm:$0xff] }
  0xff   :  { %v488_v47 = vld [vmem:[#allocation2 + $0x9a8] sm:$0xff] }
 0x100   :  { %3022 = vmatpush2.bf16.msra.mxu0 %v17025_v28  ;;  %3088 = vmatpush1.bf16.msra.mxu1 %v16707_v31  ;;  %v16843_v28 = vcombine.low %v316_v15, %v320_v18  ;;  %v16779_v31 = vcombine.low %v252_v13, %v256_v14  ;;  %v412_v51 = vld [vmem:[#allocation2 + $0x748] sm:$0xff] }
 0x101   :  { %3114 = vmatprep.subr.bf16.mxu0 %v16892_v32  ;;  %3089 = vmatprep.subr.bf16.mxu1 %v16828_v36  ;;  %v16836_v32 = vcombine.high %v308_v25, %v312_v27  ;;  %v16772_v36 = vcombine.high %v244_v23, %v248_v24  ;;  %v416_v52 = vld [vmem:[#allocation2 + $0x768] sm:$0xff] }
 0x102   :  { %v476_v53 = vld [vmem:[#allocation2 + $0x948] sm:$0xff] }
 0x103   :  { %3024 = vmatmul.mubr.bf16.vlgmr.msra.gmra.mxu0 %v20426_v39  ;;  %v480_v55 = vld [vmem:[#allocation2 + $0x968] sm:$0xff] }
 0x104   :  { %3115 = vmatpush1.bf16.msra.mxu0 %v16891_v40  ;;  %3146 = vmatprep.mubr.bf16.mxu0 %v20393_v59  ;;  %v16835_v40 = vcombine.low %v308_v25, %v312_v27  ;;  %v404_v61 = vld [vmem:[#allocation2 + $0x708] sm:$0xff] }
 0x105   :  { %3090 = vmatpush2.bf16.msra.mxu1 %v16827_v41  ;;  %3116 = vmatprep.subr.bf16.mxu0 %v16884_v42  ;;  %v16771_v41 = vcombine.low %v244_v23, %v248_v24  ;;  %v16956_v42 = vcombine.high %v428_v33, %v432_v34  ;;  %v408_v62 = vld [vmem:[#allocation2 + $0x728] sm:$0xff] }
 0x106   :  { %3091 = vmatprep.subr.bf16.mxu1 %v16820_v45  ;;  %v484_v45 = vld [vmem:[#allocation2 + $0x988] sm:$0xff] }
 0x107   :  { %v468_v63 = vld [vmem:[#allocation2 + $0x908] sm:$0xff] }
 0x108   :  { %3117 = vmatpush1.bf16.msra.mxu0 %v16883_v48  ;;  %v16955_v48 = vcombine.low %v428_v33, %v432_v34  ;;  %v472_v1 = vld [vmem:[#allocation2 + $0x928] sm:$0xff] }
 0x109   :  { %3092 = vmatpush2.bf16.msra.mxu1 %v16819_v49  ;;  %3118 = vmatprep.subr.bf16.mxu0 %v16876_v50  ;;  %v17019_v49 = vcombine.low %v492_v35, %v496_v37  ;;  %v16948_v50 = vcombine.high %v420_v43, %v424_v44  ;;  %v396_v5 = vld [vmem:[#allocation2 + $0x6c8] sm:$0xff] }
 0x10a   :  { %3093 = vmatprep.subr.bf16.mxu1 %v16812_v54  ;;  %v17012_v54 = vcombine.high %v484_v45, %v488_v47  ;;  %v400_v6 = vld [vmem:[#allocation2 + $0x6e8] sm:$0xff] }
 0x10b   :  { %v460_v7 = vld [vmem:[#allocation2 + $0x8c8] sm:$0xff] }
 0x10c   :  { %3119 = vmatpush1.bf16.msra.mxu0 %v16875_v56  ;;  %v16947_v56 = vcombine.low %v420_v43, %v424_v44  ;;  %v464_v9 = vld [vmem:[#allocation2 + $0x8e8] sm:$0xff] }
 0x10d   :  { %3094 = vmatpush2.bf16.msra.mxu1 %v16811_v57  ;;  %3120 = vmatprep.subr.bf16.mxu0 %v16868_v60  ;;  %v17011_v57 = vcombine.low %v484_v45, %v488_v47  ;;  %v16940_v60 = vcombine.high %v412_v51, %v416_v52  ;;  %v388_v13 = vld [vmem:[#allocation2 + $0x688] sm:$0xff] }
 0x10e   :  { %3095 = vmatprep.subr.bf16.mxu1 %v16804_v0  ;;  %v17004_v0 = vcombine.high %v476_v53, %v480_v55  ;;  %v392_v14 = vld [vmem:[#allocation2 + $0x6a8] sm:$0xff] }
 0x10f   :  { %v452_v15 = vld [vmem:[#allocation2 + $0x888] sm:$0xff] }
 0x110   :  { %3121 = vmatpush1.bf16.msra.mxu0 %v16867_v2  ;;  %v16939_v2 = vcombine.low %v412_v51, %v416_v52  ;;  %v456_v18 = vld [vmem:[#allocation2 + $0x8a8] sm:$0xff] }
 0x111   :  { %3096 = vmatpush2.bf16.msra.mxu1 %v16803_v3  ;;  %3122 = vmatprep.subr.bf16.mxu0 %v16860_v4  ;;  %v17003_v3 = vcombine.low %v476_v53, %v480_v55  ;;  %v16932_v4 = vcombine.high %v404_v61, %v408_v62  ;;  %v380_v23 = vld [vmem:[#allocation2 + $0x648] sm:$0xff] }
 0x112   :  { %3097 = vmatprep.subr.bf16.mxu1 %v16796_v8  ;;  %v16996_v8 = vcombine.high %v468_v63, %v472_v1  ;;  %v384_v24 = vld [vmem:[#allocation2 + $0x668] sm:$0xff] }
 0x113   :  { %v444_v25 = vld [vmem:[#allocation2 + $0x848] sm:$0xff] }
 0x114   :  { %3123 = vmatpush1.bf16.msra.mxu0 %v16859_v10  ;;  %v16931_v10 = vcombine.low %v404_v61, %v408_v62  ;;  %v448_v27 = vld [vmem:[#allocation2 + $0x868] sm:$0xff] }
 0x115   :  { %3098 = vmatpush2.bf16.msra.mxu1 %v16795_v11  ;;  %3124 = vmatprep.subr.bf16.mxu0 %v16852_v12  ;;  %v16995_v11 = vcombine.low %v468_v63, %v472_v1  ;;  %v16924_v12 = vcombine.high %v396_v5, %v400_v6  ;;  %v372_v33 = vld [vmem:[#allocation2 + $0x608] sm:$0xff] }
 0x116   :  { %3099 = vmatprep.subr.bf16.mxu1 %v16788_v17  ;;  %v16988_v17 = vcombine.high %v460_v7, %v464_v9  ;;  %v376_v34 = vld [vmem:[#allocation2 + $0x628] sm:$0xff] }
 0x117   :  { %v436_v35 = vld [vmem:[#allocation2 + $0x808] sm:$0xff] }
 0x118   :  { %3125 = vmatpush1.bf16.msra.mxu0 %v16851_v20  ;;  %v16923_v20 = vcombine.low %v396_v5, %v400_v6  ;;  %v440_v37 = vld [vmem:[#allocation2 + $0x828] sm:$0xff] }
 0x119   :  { %3100 = vmatpush2.bf16.msra.mxu1 %v16787_v21  ;;  %3126 = vmatprep.subr.bf16.mxu0 %v16844_v22  ;;  %v16987_v21 = vcombine.low %v460_v7, %v464_v9  ;;  %v16916_v22 = vcombine.high %v388_v13, %v392_v14  ;;  %v556_v43 = vld [vmem:[#allocation2 + $0xbc8] sm:$0xff] }
 0x11a   :  { %3101 = vmatprep.subr.bf16.mxu1 %v16780_v26  ;;  %v16980_v26 = vcombine.high %v452_v15, %v456_v18  ;;  %v560_v44 = vld [vmem:[#allocation2 + $0xbe8] sm:$0xff] }
 0x11b   :  { %v620_v45 = vld [vmem:[#allocation2 + $0xdc8] sm:$0xff] }
 0x11c   :  { %3127 = vmatpush1.bf16.msra.mxu0 %v16843_v28  ;;  %v16915_v28 = vcombine.low %v388_v13, %v392_v14  ;;  %v624_v47 = vld [vmem:[#allocation2 + $0xde8] sm:$0xff] }
 0x11d   :  { %3102 = vmatpush2.bf16.msra.mxu1 %v16779_v31  ;;  %3128 = vmatprep.subr.bf16.mxu0 %v16836_v32  ;;  %v16979_v31 = vcombine.low %v452_v15, %v456_v18  ;;  %v16908_v32 = vcombine.high %v380_v23, %v384_v24  ;;  %v548_v51 = vld [vmem:[#allocation2 + $0xb88] sm:$0xff] }
 0x11e   :  { %3103 = vmatprep.subr.bf16.mxu1 %v16772_v36  ;;  %v16972_v36 = vcombine.high %v444_v25, %v448_v27  ;;  %v552_v52 = vld [vmem:[#allocation2 + $0xba8] sm:$0xff] }
 0x11f   :  { %v612_v53 = vld [vmem:[#allocation2 + $0xd88] sm:$0xff] }
 0x120   :  { %3129 = vmatpush1.bf16.msra.mxu0 %v16835_v40  ;;  %v16907_v40 = vcombine.low %v380_v23, %v384_v24  ;;  %v616_v55 = vld [vmem:[#allocation2 + $0xda8] sm:$0xff] }
 0x121   :  { %3104 = vmatpush2.bf16.msra.mxu1 %v16771_v41  ;;  %3130 = vmatprep.subr.bf16.mxu0 %v16956_v42  ;;  %v16971_v41 = vcombine.low %v444_v25, %v448_v27  ;;  %v16900_v42 = vcombine.high %v372_v33, %v376_v34  ;;  %v540_v61 = vld [vmem:[#allocation2 + $0xb48] sm:$0xff] }
 0x122   :  { %3155 = vmatprep.subr.bf16.mxu1 %v17020_v46  ;;  %v16964_v46 = vcombine.high %v436_v35, %v440_v37  ;;  %v544_v62 = vld [vmem:[#allocation2 + $0xb68] sm:$0xff] }
 0x123   :  { %v604_v63 = vld [vmem:[#allocation2 + $0xd48] sm:$0xff] }
 0x124   :  { %3106 = vmatmul.mubr.bf16.vlgmr.msra.gmra.mxu1 %v20403_v16  ;;  %3131 = vmatpush2.bf16.msra.mxu0 %v16955_v48  ;;  %v16899_v48 = vcombine.low %v372_v33, %v376_v34  ;;  %v608_v1 = vld [vmem:[#allocation2 + $0xd68] sm:$0xff] }
 0x125   :  { %3156 = vmatpush1.bf16.msra.mxu1 %v17019_v49  ;;  %3132 = vmatprep.subr.bf16.mxu0 %v16948_v50  ;;  %v16963_v49 = vcombine.low %v436_v35, %v440_v37  ;;  %v17148_v50 = vcombine.high %v620_v45, %v624_v47  ;;  %v532_v5 = vld [vmem:[#allocation2 + $0xb08] sm:$0xff] }
 0x126   :  { %3157 = vmatprep.subr.bf16.mxu1 %v17012_v54  ;;  %3187 = vmatprep.mubr.bf16.mxu1 %v20411_v29  ;;  %v17084_v54 = vcombine.high %v556_v43, %v560_v44  ;;  %v536_v6 = vld [vmem:[#allocation2 + $0xb28] sm:$0xff] }
 0x127   :  { %v596_v7 = vld [vmem:[#allocation2 + $0xd08] sm:$0xff] }
 0x128   :  { %3133 = vmatpush2.bf16.msra.mxu0 %v16947_v56  ;;  %v17147_v56 = vcombine.low %v620_v45, %v624_v47  ;;  %v600_v9 = vld [vmem:[#allocation2 + $0xd28] sm:$0xff] }
 0x129   :  { %3158 = vmatpush1.bf16.msra.mxu1 %v17011_v57  ;;  %3134 = vmatprep.subr.bf16.mxu0 %v16940_v60  ;;  %v17083_v57 = vcombine.low %v556_v43, %v560_v44  ;;  %v17140_v60 = vcombine.high %v612_v53, %v616_v55  ;;  %v524_v13 = vld [vmem:[#allocation2 + $0xac8] sm:$0xff] }
 0x12a   :  { %3159 = vmatprep.subr.bf16.mxu1 %v17004_v0  ;;  %v17076_v0 = vcombine.high %v548_v51, %v552_v52  ;;  %v528_v14 = vld [vmem:[#allocation2 + $0xae8] sm:$0xff] }
 0x12b   :  { %v588_v15 = vld [vmem:[#allocation2 + $0xcc8] sm:$0xff] }
 0x12c   :  { %3135 = vmatpush2.bf16.msra.mxu0 %v16939_v2  ;;  %v17139_v2 = vcombine.low %v612_v53, %v616_v55  ;;  %v592_v18 = vld [vmem:[#allocation2 + $0xce8] sm:$0xff]  ;;  %v365_v53 = vld [vmem:[#allocation2 + $0x5d0] sm:$0xff] }
 0x12d   :  { %3160 = vmatpush1.bf16.msra.mxu1 %v17003_v3  ;;  %3136 = vmatprep.subr.bf16.mxu0 %v16932_v4  ;;  %v17075_v3 = vcombine.low %v548_v51, %v552_v52  ;;  %v17132_v4 = vcombine.high %v604_v63, %v608_v1  ;;  %v516_v23 = vld [vmem:[#allocation2 + $0xa88] sm:$0xff]  ;;  %v237_v51 = vld [vmem:[#allocation2 + $0x1d0] sm:$0xff] }
 0x12e   :  { %3161 = vmatprep.subr.bf16.mxu1 %v16996_v8  ;;  %v17068_v8 = vcombine.high %v540_v61, %v544_v62  ;;  %v520_v24 = vld [vmem:[#allocation2 + $0xaa8] sm:$0xff]  ;;  %v241_v52 = vld [vmem:[#allocation2 + $0x1f0] sm:$0xff] }
 0x12f   :  { %v580_v25 = vld [vmem:[#allocation2 + $0xc88] sm:$0xff]  ;;  %v369_v55 = vld [vmem:[#allocation2 + $0x5f0] sm:$0xff] }
 0x130   :  { %3137 = vmatpush2.bf16.msra.mxu0 %v16931_v10  ;;  %v17131_v10 = vcombine.low %v604_v63, %v608_v1  ;;  %v584_v27 = vld [vmem:[#allocation2 + $0xca8] sm:$0xff]  ;;  %v357_v63 = vld [vmem:[#allocation2 + $0x590] sm:$0xff] }
 0x131   :  { %3162 = vmatpush1.bf16.msra.mxu1 %v16995_v11  ;;  %3138 = vmatprep.subr.bf16.mxu0 %v16924_v12  ;;  %v17067_v11 = vcombine.low %v540_v61, %v544_v62  ;;  %v17124_v12 = vcombine.high %v596_v7, %v600_v9  ;;  %v508_v33 = vld [vmem:[#allocation2 + $0xa48] sm:$0xff]  ;;  %v229_v61 = vld [vmem:[#allocation2 + $0x190] sm:$0xff] }
 0x132   :  { %3163 = vmatprep.subr.bf16.mxu1 %v16988_v17  ;;  %v17060_v17 = vcombine.high %v532_v5, %v536_v6  ;;  %v512_v34 = vld [vmem:[#allocation2 + $0xa68] sm:$0xff]  ;;  %v233_v62 = vld [vmem:[#allocation2 + $0x1b0] sm:$0xff] }
 0x133   :  { %v572_v35 = vld [vmem:[#allocation2 + $0xc48] sm:$0xff]  ;;  %v361_v1 = vld [vmem:[#allocation2 + $0x5b0] sm:$0xff] }
 0x134   :  { %3139 = vmatpush2.bf16.msra.mxu0 %v16923_v20  ;;  %v17123_v20 = vcombine.low %v596_v7, %v600_v9  ;;  %v576_v37 = vld [vmem:[#allocation2 + $0xc68] sm:$0xff]  ;;  %v349_v7 = vld [vmem:[#allocation2 + $0x550] sm:$0xff] }
 0x135   :  { %3164 = vmatpush1.bf16.msra.mxu1 %v16987_v21  ;;  %3140 = vmatprep.subr.bf16.mxu0 %v16916_v22  ;;  %v17059_v21 = vcombine.low %v532_v5, %v536_v6  ;;  %v17116_v22 = vcombine.high %v588_v15, %v592_v18  ;;  %v500_v43 = vld [vmem:[#allocation2 + $0xa08] sm:$0xff]  ;;  %v221_v5 = vld [vmem:[#allocation2 + $0x150] sm:$0xff] }
 0x136   :  { %3165 = vmatprep.subr.bf16.mxu1 %v16980_v26  ;;  %v17052_v26 = vcombine.high %v524_v13, %v528_v14  ;;  %v504_v44 = vld [vmem:[#allocation2 + $0xa28] sm:$0xff]  ;;  %v225_v6 = vld [vmem:[#allocation2 + $0x170] sm:$0xff] }
 0x137   :  { %v564_v45 = vld [vmem:[#allocation2 + $0xc08] sm:$0xff]  ;;  %v353_v9 = vld [vmem:[#allocation2 + $0x570] sm:$0xff] }
 0x138   :  { %3141 = vmatpush2.bf16.msra.mxu0 %v16915_v28  ;;  %v17115_v28 = vcombine.low %v588_v15, %v592_v18  ;;  %v568_v47 = vld [vmem:[#allocation2 + $0xc28] sm:$0xff]  ;;  %v341_v15 = vld [vmem:[#allocation2 + $0x510] sm:$0xff] }
 0x139   :  { %3166 = vmatpush1.bf16.msra.mxu1 %v16979_v31  ;;  %3142 = vmatprep.subr.bf16.mxu0 %v16908_v32  ;;  %v17051_v31 = vcombine.low %v524_v13, %v528_v14  ;;  %v17108_v32 = vcombine.high %v580_v25, %v584_v27  ;;  %v213_v13 = vld [vmem:[#allocation2 + $0x110] sm:$0xff] }
 0x13a   :  { %3167 = vmatprep.subr.bf16.mxu1 %v16972_v36  ;;  %v17044_v36 = vcombine.high %v516_v23, %v520_v24  ;;  %v217_v14 = vld [vmem:[#allocation2 + $0x130] sm:$0xff] }
 0x13b   :  { %v345_v18 = vld [vmem:[#allocation2 + $0x530] sm:$0xff] }
 0x13c   :  { %3143 = vmatpush2.bf16.msra.mxu0 %v16907_v40  ;;  %v17107_v40 = vcombine.low %v580_v25, %v584_v27  ;;  %v333_v25 = vld [vmem:[#allocation2 + $0x4d0] sm:$0xff] }
 0x13d   :  { %3168 = vmatpush1.bf16.msra.mxu1 %v16971_v41  ;;  %3144 = vmatprep.subr.bf16.mxu0 %v16900_v42  ;;  %v17043_v41 = vcombine.low %v516_v23, %v520_v24  ;;  %v17100_v42 = vcombine.high %v572_v35, %v576_v37  ;;  %v205_v23 = vld [vmem:[#allocation2 + $0xd0] sm:$0xff] }
 0x13e   :  { %3169 = vmatprep.subr.bf16.mxu1 %v16964_v46  ;;  %v17036_v46 = vcombine.high %v508_v33, %v512_v34  ;;  %v209_v24 = vld [vmem:[#allocation2 + $0xf0] sm:$0xff] }
 0x13f   :  { %v337_v27 = vld [vmem:[#allocation2 + $0x4f0] sm:$0xff] }
 0x140   :  { %3145 = vmatpush2.bf16.msra.mxu0 %v16899_v48  ;;  %v17099_v48 = vcombine.low %v572_v35, %v576_v37  ;;  %v325_v35 = vld [vmem:[#allocation2 + $0x490] sm:$0xff] }
 0x141   :  { %3170 = vmatpush1.bf16.msra.mxu1 %v16963_v49  ;;  %3196 = vmatprep.subr.bf16.mxu0 %v17148_v50  ;;  %v17035_v49 = vcombine.low %v508_v33, %v512_v34  ;;  %v17092_v50 = vcombine.high %v564_v45, %v568_v47  ;;  %v197_v33 = vld [vmem:[#allocation2 + $0x90] sm:$0xff] }
 0x142   :  { %3171 = vmatprep.subr.bf16.mxu1 %v17084_v54  ;;  %v17028_v54 = vcombine.high %v500_v43, %v504_v44  ;;  %v201_v34 = vld [vmem:[#allocation2 + $0xb0] sm:$0xff] }
 0x143   :  { %3147 = vmatmul.mubr.bf16.vlgmr.msra.gmra.mxu0 %v20405_v19  ;;  %v329_v37 = vld [vmem:[#allocation2 + $0x4b0] sm:$0xff] }
 0x144   :  { %3197 = vmatpush1.bf16.msra.mxu0 %v17147_v56  ;;  %3228 = vmatprep.mubr.bf16.mxu0 %v20294_v38  ;;  %v17091_v56 = vcombine.low %v564_v45, %v568_v47  ;;  %v317_v45 = vld [vmem:[#allocation2 + $0x450] sm:$0xff] }
 0x145   :  { %3172 = vmatpush2.bf16.msra.mxu1 %v17083_v57  ;;  %3198 = vmatprep.subr.bf16.mxu0 %v17140_v60  ;;  %v17027_v57 = vcombine.low %v500_v43, %v504_v44  ;;  %v16766_v60 = vcombine.high %v237_v51, %v241_v52  ;;  %v189_v43 = vld [vmem:[#allocation2 + $0x50] sm:$0xff] }
 0x146   :  { %3173 = vmatprep.subr.bf16.mxu1 %v17076_v0  ;;  %v16894_v0 = vcombine.high %v365_v53, %v369_v55  ;;  %v193_v44 = vld [vmem:[#allocation2 + $0x70] sm:$0xff] }
 0x147   :  { %v321_v47 = vld [vmem:[#allocation2 + $0x470] sm:$0xff] }
 0x148   :  { %3199 = vmatpush1.bf16.msra.mxu0 %v17139_v2  ;;  %v16765_v2 = vcombine.low %v237_v51, %v241_v52  ;;  %v16718_v51 = vcombine.high %v189_v43, %v193_v44  ;;  %v181_v52 = vld [vmem:[#allocation2 + $0x10] sm:$0xff] }
 0x149   :  { %3174 = vmatpush2.bf16.msra.mxu1 %v17075_v3  ;;  %3200 = vmatprep.subr.bf16.mxu0 %v17132_v4  ;;  %v16893_v3 = vcombine.low %v365_v53, %v369_v55  ;;  %v16758_v4 = vcombine.high %v229_v61, %v233_v62  ;;  %v185_v53 = vld [vmem:[#allocation2 + $0x30] sm:$0xff]  ;;  %v16846_v55 = vcombine.high %v317_v45, %v321_v47 }
 0x14a   :  { %3175 = vmatprep.subr.bf16.mxu1 %v17068_v8  ;;  %v16886_v8 = vcombine.high %v357_v63, %v361_v1 }
 0x14c   :  { %3201 = vmatpush1.bf16.msra.mxu0 %v17131_v10  ;;  %v16757_v10 = vcombine.low %v229_v61, %v233_v62  ;;  %v16845_v61 = vcombine.low %v317_v45, %v321_v47  ;;  %v16710_v62 = vcombine.high %v181_v52, %v185_v53  ;;  %v409_v45 = vld [vmem:[#allocation2 + $0x730] sm:$0xff] }
 0x14d   :  { %3176 = vmatpush2.bf16.msra.mxu1 %v17067_v11  ;;  %3202 = vmatprep.subr.bf16.mxu0 %v17124_v12  ;;  %v16885_v11 = vcombine.low %v357_v63, %v361_v1  ;;  %v16750_v12 = vcombine.high %v221_v5, %v225_v6  ;;  %v301_v63 = vld [vmem:[#allocation2 + $0x3d0] sm:$0xff] }
 0x14e   :  { %3177 = vmatprep.subr.bf16.mxu1 %v17060_v17  ;;  %v16878_v17 = vcombine.high %v349_v7, %v353_v9  ;;  %v429_v1 = vld [vmem:[#allocation2 + $0x7d0] sm:$0xff] }
 0x150   :  { %3203 = vmatpush1.bf16.msra.mxu0 %v17123_v20  ;;  %v16749_v20 = vcombine.low %v221_v5, %v225_v6  ;;  %v16709_v5 = vcombine.low %v181_v52, %v185_v53  ;;  %v269_v53 = vld [vmem:[#allocation2 + $0x2d0] sm:$0xff] }
 0x151   :  { %3178 = vmatpush2.bf16.msra.mxu1 %v17059_v21  ;;  %3204 = vmatprep.subr.bf16.mxu0 %v17116_v22  ;;  %v16877_v21 = vcombine.low %v349_v7, %v353_v9  ;;  %v16742_v22 = vcombine.high %v213_v13, %v217_v14  ;;  %v293_v9 = vld [vmem:[#allocation2 + $0x390] sm:$0xff] }
 0x152   :  { %3179 = vmatprep.subr.bf16.mxu1 %v17052_v26  ;;  %v16870_v26 = vcombine.high %v341_v15, %v345_v18 }
 0x154   :  { %3205 = vmatpush1.bf16.msra.mxu0 %v17115_v28  ;;  %v16741_v28 = vcombine.low %v213_v13, %v217_v14  ;;  %v425_v14 = vld [vmem:[#allocation2 + $0x7b0] sm:$0xff] }
 0x155   :  { %3180 = vmatpush2.bf16.msra.mxu1 %v17051_v31  ;;  %3206 = vmatprep.subr.bf16.mxu0 %v17108_v32  ;;  %v16869_v31 = vcombine.low %v341_v15, %v345_v18  ;;  %v16734_v32 = vcombine.high %v205_v23, %v209_v24 }
 0x156   :  { %3181 = vmatprep.subr.bf16.mxu1 %v17044_v36  ;;  %v16862_v36 = vcombine.high %v333_v25, %v337_v27 }
 0x158   :  { %3207 = vmatpush1.bf16.msra.mxu0 %v17107_v40  ;;  %v16733_v40 = vcombine.low %v205_v23, %v209_v24  ;;  %v413_v23 = vld [vmem:[#allocation2 + $0x750] sm:$0xff] }
 0x159   :  { %3182 = vmatpush2.bf16.msra.mxu1 %v17043_v41  ;;  %3208 = vmatprep.subr.bf16.mxu0 %v17100_v42  ;;  %v16861_v41 = vcombine.low %v333_v25, %v337_v27  ;;  %v16726_v42 = vcombine.high %v197_v33, %v201_v34 }
 0x15a   :  { %3183 = vmatprep.subr.bf16.mxu1 %v17036_v46  ;;  %v16854_v46 = vcombine.high %v325_v35, %v329_v37 }
 0x15c   :  { %3209 = vmatpush1.bf16.msra.mxu0 %v17099_v48  ;;  %v16725_v48 = vcombine.low %v197_v33, %v201_v34 }
 0x15d   :  { %3184 = vmatpush2.bf16.msra.mxu1 %v17035_v49  ;;  %3210 = vmatprep.subr.bf16.mxu0 %v17092_v50  ;;  %v629_v49 = vlaneseq  ;;  %v16853_v50 = vcombine.low %v325_v35, %v329_v37  ;;  %v281_v37 = vld [vmem:[#allocation2 + $0x330] sm:$0xff] }
 0x15e   :  { %3185 = vmatprep.subr.bf16.mxu1 %v17028_v54  ;;  %v309_v54 = vld [vmem:[#allocation2 + $0x410] sm:$0xff] }
 0x160   :  { %3211 = vmatpush1.bf16.msra.mxu0 %v17091_v56  ;;  %v313_v56 = vld [vmem:[#allocation2 + $0x430] sm:$0xff] }
 0x161   :  { %3186 = vmatpush2.bf16.msra.mxu1 %v17027_v57  ;;  %3237 = vmatprep.subr.bf16.mxu0 %v16766_v60  ;;  %v16717_v57 = vcombine.low %v189_v43, %v193_v44  ;;  %v20438_v60 = vshrl.u32 %v629_v49, 7  ;;  %v16837_v7 = vcombine.low %v309_v54, %v313_v56 }
 0x162   :  { %3278 = vmatprep.subr.bf16.mxu1 %v16894_v0  ;;  %v305_v0 = vld [vmem:[#allocation2 + $0x3f0] sm:$0xff] }
 0x163   :  { %3229 = vmatmul.mubr.bf16.vlgmr.msra.gmra.mxu0 %v20419_v30  ;;  %v20441_v6 = vsub.s32 0, %v20438_v60  ;;  %v20444_v13 = vsub.s32 1, %v20438_v60 }
 0x164   :  { %3188 = vmatmul.mubr.bf16.vlgmr.msra.gmra.mxu1 %v20426_v39  ;;  %3238 = vmatpush1.bf16.msra.mxu0 %v16765_v2  ;;  %v16838_v2 = vcombine.high %v309_v54, %v313_v56  ;;  %v273_v54 = vld [vmem:[#allocation2 + $0x2f0] sm:$0xff] }
 0x165   :  { %3279 = vmatpush1.bf16.msra.mxu1 %v16893_v3  ;;  %3239 = vmatprep.subr.bf16.mxu0 %v16758_v4  ;;  %v433_v3 = vld [vmem:[#allocation2 + $0x7f0] sm:$0xff]  ;;  %v627_v4 = vld [vmem:[#allocation4] sm:$0xff] }
 0x166   :  { %3280 = vmatprep.subr.bf16.mxu1 %v16886_v8  ;;  %3269 = vmatprep.mubr.bf16.mxu0 %v20391_v58  ;;  %v16830_v8 = vcombine.high %v301_v63, %v305_v0  ;;  %v632_v15 = vrot.slane %v627_v4, %v20441_v6  ;;  %v16957_v18 = vcombine.low %v429_v1, %v433_v3 }
 0x167   :  { %3310 = vmatprep.mubr.bf16.mxu1 %v20393_v59  ;;  %v636_v24 = vrot.slane %v627_v4, %v20444_v13 }
 0x168   :  { %3240 = vmatpush1.bf16.msra.mxu0 %v16757_v10  ;;  %v297_v10 = vld [vmem:[#allocation2 + $0x3b0] sm:$0xff] }
 0x169   :  { %3281 = vmatpush1.bf16.msra.mxu1 %v16885_v11  ;;  %3241 = vmatprep.subr.bf16.mxu0 %v16750_v12  ;;  %v421_v11 = vld [vmem:[#allocation2 + $0x790] sm:$0xff]  ;;  %v16958_v12 = vcombine.high %v429_v1, %v433_v3 }
 0x16a   :  { %3282 = vmatprep.subr.bf16.mxu1 %v16878_v17  ;;  %v16829_v17 = vcombine.low %v301_v63, %v305_v0  ;;  %v16950_v25 = vcombine.high %v421_v11, %v425_v14  ;;  %v16949_v34 = vcombine.low %v421_v11, %v425_v14  ;;  %v16798_v0 = vcombine.high %v269_v53, %v273_v54  ;;  %v261_v1 = vld [vmem:[#allocation2 + $0x290] sm:$0xff] }
 0x16b   :  { %v389_v3 = vld [vmem:[#allocation2 + $0x690] sm:$0xff] }
 0x16c   :  { %3242 = vmatpush1.bf16.msra.mxu0 %v16749_v20  ;;  %v16822_v20 = vcombine.high %v293_v9, %v297_v10  ;;  %v257_v11 = vld [vmem:[#allocation2 + $0x270] sm:$0xff] }
 0x16d   :  { %3283 = vmatpush1.bf16.msra.mxu1 %v16877_v21  ;;  %3243 = vmatprep.subr.bf16.mxu0 %v16742_v22  ;;  %v285_v21 = vld [vmem:[#allocation2 + $0x350] sm:$0xff] }
 0x16e   :  { %3284 = vmatprep.subr.bf16.mxu1 %v16870_v26  ;;  %v289_v22 = vld [vmem:[#allocation2 + $0x370] sm:$0xff] }
 0x16f   :  { %v417_v26 = vld [vmem:[#allocation2 + $0x770] sm:$0xff]  ;;  %v16814_v35 = vcombine.high %v285_v21, %v289_v22  ;;  %v16813_v49 = vcombine.low %v285_v21, %v289_v22 }
 0x170   :  { %3244 = vmatpush1.bf16.msra.mxu0 %v16741_v28  ;;  %v16942_v44 = vcombine.high %v413_v23, %v417_v26  ;;  %v245_v21 = vld [vmem:[#allocation2 + $0x210] sm:$0xff] }
 0x171   :  { %3285 = vmatpush1.bf16.msra.mxu1 %v16869_v31  ;;  %3245 = vmatprep.subr.bf16.mxu0 %v16734_v32  ;;  %v16821_v32 = vcombine.low %v293_v9, %v297_v10  ;;  %v253_v10 = vld [vmem:[#allocation2 + $0x250] sm:$0xff] }
 0x172   :  { %3286 = vmatprep.subr.bf16.mxu1 %v16862_v36  ;;  %v277_v36 = vld [vmem:[#allocation2 + $0x310] sm:$0xff] }
 0x173   :  { %v16806_v52 = vcombine.high %v277_v36, %v281_v37  ;;  %v249_v22 = vld [vmem:[#allocation2 + $0x230] sm:$0xff] }
 0x174   :  { %3246 = vmatpush1.bf16.msra.mxu0 %v16733_v40  ;;  %v405_v40 = vld [vmem:[#allocation2 + $0x710] sm:$0xff] }
 0x175   :  { %3287 = vmatpush1.bf16.msra.mxu1 %v16861_v41  ;;  %3247 = vmatprep.subr.bf16.mxu0 %v16726_v42  ;;  %v16933_v63 = vcombine.low %v405_v40, %v409_v45 }
 0x176   :  { %3288 = vmatprep.subr.bf16.mxu1 %v16854_v46 }
 0x178   :  { %3248 = vmatpush1.bf16.msra.mxu0 %v16725_v48 }
 0x179   :  { %3289 = vmatpush1.bf16.msra.mxu1 %v16853_v50  ;;  %3249 = vmatprep.subr.bf16.mxu0 %v16718_v51  ;;  %v16941_v51 = vcombine.low %v413_v23, %v417_v26  ;;  %v373_v23 = vld [vmem:[#allocation2 + $0x610] sm:$0xff]  ;;  %v16781_v26 = vcombine.low %v253_v10, %v257_v11 }
 0x17a   :  { %3290 = vmatprep.subr.bf16.mxu1 %v16846_v55  ;;  %v397_v55 = vld [vmem:[#allocation2 + $0x6d0] sm:$0xff] }
 0x17c   :  { %3250 = vmatpush1.bf16.msra.mxu0 %v16717_v57  ;;  %v16934_v57 = vcombine.high %v405_v40, %v409_v45 }
 0x17d   :  { %3291 = vmatpush1.bf16.msra.mxu1 %v16845_v61  ;;  %3251 = vmatprep.subr.bf16.mxu0 %v16710_v62  ;;  %v401_v61 = vld [vmem:[#allocation2 + $0x6f0] sm:$0xff]  ;;  %v16805_v62 = vcombine.low %v277_v36, %v281_v37  ;;  %v16773_v36 = vcombine.low %v245_v21, %v249_v22 }
 0x17e   :  { %3292 = vmatprep.subr.bf16.mxu1 %v16838_v2  ;;  %v265_v2 = vld [vmem:[#allocation2 + $0x2b0] sm:$0xff]  ;;  %v16926_v4 = vcombine.high %v397_v55, %v401_v61 }
 0x17f   :  { %v16790_v9 = vcombine.high %v261_v1, %v265_v2 }
 0x180   :  { %3252 = vmatpush1.bf16.msra.mxu0 %v16709_v5  ;;  %v393_v5 = vld [vmem:[#allocation2 + $0x6b0] sm:$0xff] }
 0x181   :  { %3293 = vmatpush1.bf16.msra.mxu1 %v16837_v7  ;;  %3253 = vmatprep.subr.bf16.mxu0 %v16830_v8  ;;  %v16797_v7 = vcombine.low %v269_v53, %v273_v54  ;;  %v16925_v8 = vcombine.low %v397_v55, %v401_v61  ;;  %v16918_v14 = vcombine.high %v389_v3, %v393_v5  ;;  %v605_v53 = vld [vmem:[#allocation2 + $0xd50] sm:$0xff] }
 0x182   :  { %3294 = vmatprep.subr.bf16.mxu1 %v16958_v12  ;;  %v2984_v31 = vpop.f32.mrf.mxu1  ;;  %v381_v12 = vld [vmem:[#allocation2 + $0x650] sm:$0xff] }
 0x183   :  { %v2943_v27 = vpop.f32.mrf.mxu0  ;;  %v609_v55 = vld [vmem:[#allocation2 + $0xd70] sm:$0xff] }
 0x184   :  { %v2944_v28 = vadd.f32 %v2943_v27, %v632_v15  ;;  %3254 = vmatpush2.bf16.msra.mxu0 %v16829_v17  ;;  %v2986_v43 = vpop.f32.mrf.mxu1  ;;  %v385_v15 = vld [vmem:[#allocation2 + $0x670] sm:$0xff]  ;;  %v16789_v17 = vcombine.low %v261_v1, %v265_v2 }
 0x185   :  { %3295 = vmatpush2.bf16.msra.mxu1 %v16957_v18  ;;  %v2945_v33 = vpop.f32.mrf.mxu0  ;;  %3255 = vmatprep.subr.bf16.mxu0 %v16822_v20  ;;  %v16917_v18 = vcombine.low %v389_v3, %v393_v5  ;;  %v16782_v20 = vcombine.high %v253_v10, %v257_v11  ;;  %v16909_v27 = vcombine.low %v381_v12, %v385_v15  ;;  %v597_v1 = vld [vmem:[#allocation2 + $0xd10] sm:$0xff] }
 0x186   :  { %v20448_v41 = vadd.f32 %v2984_v31, %v2944_v28  ;;  %v2946_v42 = vadd.f32 %v2945_v33, %v636_v24  ;;  %3296 = vmatprep.subr.bf16.mxu1 %v16950_v25  ;;  %v2988_v48 = vpop.f32.mrf.mxu1  ;;  %v16910_v24 = vcombine.high %v381_v12, %v385_v15  ;;  %v377_v25 = vld [vmem:[#allocation2 + $0x630] sm:$0xff]  ;;  %v16774_v28 = vcombine.high %v245_v21, %v249_v22 }
 0x187   :  { %v2947_v46 = vpop.f32.mrf.mxu0  ;;  %v493_v31 = vld [vmem:[#allocation2 + $0x9d0] sm:$0xff]  ;;  %v16901_v37 = vcombine.low %v373_v23, %v377_v25  ;;  %v17134_v3 = vcombine.high %v605_v53, %v609_v55 }
 0x188   :  { %v20450_v47 = vadd.f32 %v2986_v43, %v2946_v42  ;;  %3256 = vmatpush2.bf16.msra.mxu0 %v16821_v32  ;;  %v2989_v56 = vpop.f32.mrf.mxu1  ;;  %v497_v32 = vld [vmem:[#allocation2 + $0x9f0] sm:$0xff] }
 0x189   :  { %3297 = vmatpush2.bf16.msra.mxu1 %v16949_v34  ;;  %v2948_v50 = vpop.f32.mrf.mxu0  ;;  %3257 = vmatprep.subr.bf16.mxu0 %v16814_v35  ;;  %v621_v33 = vld [vmem:[#allocation2 + $0xdd0] sm:$0xff]  ;;  %v16902_v34 = vcombine.high %v373_v23, %v377_v25  ;;  %v17022_v40 = vcombine.high %v493_v31, %v497_v32  ;;  %v17021_v48 = vcombine.low %v493_v31, %v497_v32 }
 0x18a   :  { %3298 = vmatprep.subr.bf16.mxu1 %v16942_v44  ;;  %v625_v35 = vld [vmem:[#allocation2 + $0xdf0] sm:$0xff] }
 0x18b   :  { %v485_v42 = vld [vmem:[#allocation2 + $0x990] sm:$0xff]  ;;  %v17150_v45 = vcombine.high %v621_v33, %v625_v35 }
 0x18c   :  { %3258 = vmatpush2.bf16.msra.mxu0 %v16813_v49  ;;  %v489_v43 = vld [vmem:[#allocation2 + $0x9b0] sm:$0xff]  ;;  %v17149_v49 = vcombine.low %v621_v33, %v625_v35 }
 0x18d   :  { %3299 = vmatpush2.bf16.msra.mxu1 %v16941_v51  ;;  %3259 = vmatprep.subr.bf16.mxu0 %v16806_v52  ;;  %v613_v44 = vld [vmem:[#allocation2 + $0xd90] sm:$0xff]  ;;  %v17014_v50 = vcombine.high %v485_v42, %v489_v43 }
 0x18e   :  { %3300 = vmatprep.subr.bf16.mxu1 %v16934_v57  ;;  %v617_v46 = vld [vmem:[#allocation2 + $0xdb0] sm:$0xff]  ;;  %v17013_v57 = vcombine.low %v485_v42, %v489_v43 }
 0x18f   :  { %v477_v51 = vld [vmem:[#allocation2 + $0x950] sm:$0xff]  ;;  %v17142_v54 = vcombine.high %v613_v44, %v617_v46  ;;  %v17141_v61 = vcombine.low %v613_v44, %v617_v46 }
 0x190   :  { %3260 = vmatpush2.bf16.msra.mxu0 %v16805_v62  ;;  %v481_v52 = vld [vmem:[#allocation2 + $0x970] sm:$0xff] }
 0x191   :  { %3301 = vmatpush2.bf16.msra.mxu1 %v16933_v63  ;;  %3261 = vmatprep.subr.bf16.mxu0 %v16798_v0  ;;  %v17006_v62 = vcombine.high %v477_v51, %v481_v52  ;;  %v469_v63 = vld [vmem:[#allocation2 + $0x910] sm:$0xff] }
 0x192   :  { %3302 = vmatprep.subr.bf16.mxu1 %v16926_v4  ;;  %v473_v0 = vld [vmem:[#allocation2 + $0x930] sm:$0xff] }
 0x193   :  { %v601_v4 = vld [vmem:[#allocation2 + $0xd30] sm:$0xff] }
 0x194   :  { %3262 = vmatpush2.bf16.msra.mxu0 %v16797_v7  ;;  %v17005_v7 = vcombine.low %v477_v51, %v481_v52  ;;  %v461_v10 = vld [vmem:[#allocation2 + $0x8d0] sm:$0xff]  ;;  %v17126_v15 = vcombine.high %v597_v1, %v601_v4 }
 0x195   :  { %3303 = vmatpush2.bf16.msra.mxu1 %v16925_v8  ;;  %3263 = vmatprep.subr.bf16.mxu0 %v16790_v9  ;;  %v17133_v8 = vcombine.low %v605_v53, %v609_v55  ;;  %v16998_v9 = vcombine.high %v469_v63, %v473_v0  ;;  %v465_v11 = vld [vmem:[#allocation2 + $0x8f0] sm:$0xff] }
 0x196   :  { %3304 = vmatprep.subr.bf16.mxu1 %v16918_v14  ;;  %v589_v12 = vld [vmem:[#allocation2 + $0xcd0] sm:$0xff]  ;;  %v16990_v21 = vcombine.high %v461_v10, %v465_v11 }
 0x197   :  { %v453_v22 = vld [vmem:[#allocation2 + $0x890] sm:$0xff] }
 0x198   :  { %3264 = vmatpush2.bf16.msra.mxu0 %v16789_v17  ;;  %v593_v17 = vld [vmem:[#allocation2 + $0xcf0] sm:$0xff] }
 0x199   :  { %3305 = vmatpush2.bf16.msra.mxu1 %v16917_v18  ;;  %3265 = vmatprep.subr.bf16.mxu0 %v16782_v20  ;;  %v16997_v18 = vcombine.low %v469_v63, %v473_v0  ;;  %v17125_v20 = vcombine.low %v597_v1, %v601_v4  ;;  %v457_v23 = vld [vmem:[#allocation2 + $0x8b0] sm:$0xff]  ;;  %v17118_v25 = vcombine.high %v589_v12, %v593_v17 }
 0x19a   :  { %3306 = vmatprep.subr.bf16.mxu1 %v16910_v24  ;;  %v581_v24 = vld [vmem:[#allocation2 + $0xc90] sm:$0xff]  ;;  %v16982_v31 = vcombine.high %v453_v22, %v457_v23 }
 0x19b   :  { %v445_v32 = vld [vmem:[#allocation2 + $0x850] sm:$0xff] }
 0x19c   :  { %3266 = vmatpush2.bf16.msra.mxu0 %v16781_v26  ;;  %v585_v26 = vld [vmem:[#allocation2 + $0xcb0] sm:$0xff] }
 0x19d   :  { %3307 = vmatpush2.bf16.msra.mxu1 %v16909_v27  ;;  %3267 = vmatprep.subr.bf16.mxu0 %v16774_v28  ;;  %v16989_v27 = vcombine.low %v461_v10, %v465_v11  ;;  %v17117_v28 = vcombine.low %v589_v12, %v593_v17  ;;  %v449_v33 = vld [vmem:[#allocation2 + $0x870] sm:$0xff]  ;;  %v17110_v35 = vcombine.high %v581_v24, %v585_v26  ;;  %v222_v12 = vld [vmem:[#allocation2 + $0x158] sm:$0xff] }
 0x19e   :  { %3308 = vmatprep.subr.bf16.mxu1 %v16902_v34  ;;  %v573_v34 = vld [vmem:[#allocation2 + $0xc50] sm:$0xff]  ;;  %v16974_v42 = vcombine.high %v445_v32, %v449_v33 }
 0x19f   :  { %v437_v43 = vld [vmem:[#allocation2 + $0x810] sm:$0xff] }
 0x1a0   :  { %3268 = vmatpush2.bf16.msra.mxu0 %v16773_v36  ;;  %v577_v36 = vld [vmem:[#allocation2 + $0xc70] sm:$0xff] }
 0x1a1   :  { %3309 = vmatpush2.bf16.msra.mxu1 %v16901_v37  ;;  %3319 = vmatprep.subr.bf16.mxu0 %v17022_v40  ;;  %v16981_v37 = vcombine.low %v453_v22, %v457_v23  ;;  %v17109_v40 = vcombine.low %v581_v24, %v585_v26  ;;  %v441_v44 = vld [vmem:[#allocation2 + $0x830] sm:$0xff]  ;;  %v17102_v46 = vcombine.high %v573_v34, %v577_v36 }
 0x1a2   :  { %3360 = vmatprep.subr.bf16.mxu1 %v17150_v45  ;;  %v565_v45 = vld [vmem:[#allocation2 + $0xc10] sm:$0xff]  ;;  %v16966_v51 = vcombine.high %v437_v43, %v441_v44 }
 0x1a3   :  { %3270 = vmatmul.mubr.bf16.vlgmr.msra.gmra.mxu0 %v20403_v16  ;;  %v20453_v56 = vpop.f32.mrf.mxu1  ;;  %v557_v52 = vld [vmem:[#allocation2 + $0xbd0] sm:$0xff] }
 0x1a4   :  { %3311 = vmatmul.mubr.bf16.vlgmr.msra.gmra.mxu1 %v20405_v19  ;;  %3320 = vmatpush1.bf16.msra.mxu0 %v17021_v48  ;;  %v569_v48 = vld [vmem:[#allocation2 + $0xc30] sm:$0xff] }
 0x1a5   :  { %3361 = vmatpush1.bf16.msra.mxu1 %v17149_v49  ;;  %3321 = vmatprep.subr.bf16.mxu0 %v17014_v50  ;;  %v20456_v2 = vpop.f32.mrf.mxu1  ;;  %v16973_v49 = vcombine.low %v445_v32, %v449_v33  ;;  %v17101_v50 = vcombine.low %v573_v34, %v577_v36  ;;  %v561_v53 = vld [vmem:[#allocation2 + $0xbf0] sm:$0xff]  ;;  %v17094_v55 = vcombine.high %v565_v45, %v569_v48  ;;  %v218_v32 = vld [vmem:[#allocation2 + $0x138] sm:$0xff] }
 0x1a6   :  { %3362 = vmatprep.subr.bf16.mxu1 %v17142_v54  ;;  %3392 = vmatprep.mubr.bf16.mxu1 %v20294_v38  ;;  %v238_v54 = vld [vmem:[#allocation2 + $0x1d8] sm:$0xff]  ;;  %v17086_v63 = vcombine.high %v557_v52, %v561_v53  ;;  %v549_v0 = vld [vmem:[#allocation2 + $0xb90] sm:$0xff] }
 0x1a7   :  { %3351 = vmatprep.mubr.bf16.mxu0 %v20411_v29  ;;  %v3070_v5 = vpop.f32.mrf.mxu1  ;;  %v553_v1 = vld [vmem:[#allocation2 + $0xbb0] sm:$0xff] }
 0x1a8   :  { %3322 = vmatpush1.bf16.msra.mxu0 %v17013_v57  ;;  %v242_v57 = vld [vmem:[#allocation2 + $0x1f8] sm:$0xff]  ;;  %v541_v10 = vld [vmem:[#allocation2 + $0xb50] sm:$0xff] }
 0x1a9   :  { %3363 = vmatpush1.bf16.msra.mxu1 %v17141_v61  ;;  %3323 = vmatprep.subr.bf16.mxu0 %v17006_v62  ;;  %v3071_v14 = vpop.f32.mrf.mxu1  ;;  %v16965_v61 = vcombine.low %v437_v43, %v441_v44  ;;  %v17093_v62 = vcombine.low %v565_v45, %v569_v48  ;;  %v16768_v4 = vcombine.high %v238_v54, %v242_v57  ;;  %v234_v5 = vld [vmem:[#allocation2 + $0x1b8] sm:$0xff]  ;;  %v545_v11 = vld [vmem:[#allocation2 + $0xb70] sm:$0xff] }
 0x1aa   :  { %3364 = vmatprep.subr.bf16.mxu1 %v17134_v3  ;;  %v230_v3 = vld [vmem:[#allocation2 + $0x198] sm:$0xff]  ;;  %v17070_v23 = vcombine.high %v541_v10, %v545_v11  ;;  %v17069_v34 = vcombine.low %v541_v10, %v545_v11  ;;  %v517_v45 = vld [vmem:[#allocation2 + $0xa90] sm:$0xff] }
 0x1ab   :  { %v16760_v14 = vcombine.high %v230_v3, %v234_v5  ;;  %v16759_v22 = vcombine.low %v230_v3, %v234_v5  ;;  %v210_v43 = vld [vmem:[#allocation2 + $0xf8] sm:$0xff]  ;;  %v501_v3 = vld [vmem:[#allocation2 + $0xa10] sm:$0xff] }
 0x1ac   :  { %3324 = vmatpush1.bf16.msra.mxu0 %v17005_v7  ;;  %v17085_v7 = vcombine.low %v557_v52, %v561_v53  ;;  %v198_v48 = vld [vmem:[#allocation2 + $0x98] sm:$0xff] }
 0x1ad   :  { %3365 = vmatpush1.bf16.msra.mxu1 %v17133_v8  ;;  %3325 = vmatprep.subr.bf16.mxu0 %v16998_v9  ;;  %v16767_v8 = vcombine.low %v238_v54, %v242_v57  ;;  %v17078_v9 = vcombine.high %v549_v0, %v553_v1  ;;  %v509_v54 = vld [vmem:[#allocation2 + $0xa50] sm:$0xff]  ;;  %v190_v57 = vld [vmem:[#allocation2 + $0x58] sm:$0xff] }
 0x1ae   :  { %3366 = vmatprep.subr.bf16.mxu1 %v17126_v15  ;;  %v226_v15 = vld [vmem:[#allocation2 + $0x178] sm:$0xff] }
 0x1af   :  { %v16752_v26 = vcombine.high %v222_v12, %v226_v15  ;;  %v182_v5 = vld [vmem:[#allocation2 + $0x18] sm:$0xff] }
 0x1b0   :  { %3326 = vmatpush1.bf16.msra.mxu0 %v16997_v18 }
 0x1b1   :  { %3367 = vmatpush1.bf16.msra.mxu1 %v17125_v20  ;;  %3327 = vmatprep.subr.bf16.mxu0 %v16990_v21  ;;  %v17077_v20 = vcombine.low %v549_v0, %v553_v1 }
 0x1b2   :  { %3368 = vmatprep.subr.bf16.mxu1 %v17118_v25 }
 0x1b4   :  { %3328 = vmatpush1.bf16.msra.mxu0 %v16989_v27  ;;  %v533_v27 = vld [vmem:[#allocation2 + $0xb10] sm:$0xff] }
 0x1b5   :  { %3369 = vmatpush1.bf16.msra.mxu1 %v17117_v28  ;;  %3329 = vmatprep.subr.bf16.mxu0 %v16982_v31  ;;  %v537_v28 = vld [vmem:[#allocation2 + $0xb30] sm:$0xff]  ;;  %v214_v31 = vld [vmem:[#allocation2 + $0x118] sm:$0xff] }
 0x1b6   :  { %3370 = vmatprep.subr.bf16.mxu1 %v17110_v35  ;;  %v17062_v36 = vcombine.high %v533_v27, %v537_v28  ;;  %v16743_v44 = vcombine.low %v214_v31, %v218_v32 }
 0x1b8   :  { %3330 = vmatpush1.bf16.msra.mxu0 %v16981_v37  ;;  %v529_v37 = vld [vmem:[#allocation2 + $0xaf0] sm:$0xff] }
 0x1b9   :  { %3371 = vmatpush1.bf16.msra.mxu1 %v17109_v40  ;;  %3331 = vmatprep.subr.bf16.mxu0 %v16974_v42  ;;  %v206_v40 = vld [vmem:[#allocation2 + $0xd8] sm:$0xff]  ;;  %v16744_v42 = vcombine.high %v214_v31, %v218_v32 }
 0x1ba   :  { %3372 = vmatprep.subr.bf16.mxu1 %v17102_v46  ;;  %v521_v46 = vld [vmem:[#allocation2 + $0xab0] sm:$0xff]  ;;  %v16735_v52 = vcombine.low %v206_v40, %v210_v43 }
 0x1bb   :  { %v17046_v53 = vcombine.high %v517_v45, %v521_v46 }
 0x1bc   :  { %3332 = vmatpush1.bf16.msra.mxu0 %v16973_v49  ;;  %v16736_v49 = vcombine.high %v206_v40, %v210_v43 }
 0x1bd   :  { %3373 = vmatpush1.bf16.msra.mxu1 %v17101_v50  ;;  %3333 = vmatprep.subr.bf16.mxu0 %v16966_v51  ;;  %v202_v50 = vld [vmem:[#allocation2 + $0xb8] sm:$0xff] }
 0x1be   :  { %3374 = vmatprep.subr.bf16.mxu1 %v17094_v55  ;;  %v513_v55 = vld [vmem:[#allocation2 + $0xa70] sm:$0xff]  ;;  %v16727_v0 = vcombine.low %v198_v48, %v202_v50 }
 0x1bf   :  { %v17038_v1 = vcombine.high %v509_v54, %v513_v55 }
 0x1c0   :  { %3334 = vmatpush1.bf16.msra.mxu0 %v16965_v61  ;;  %v16728_v61 = vcombine.high %v198_v48, %v202_v50  ;;  %v282_v48 = vld [vmem:[#allocation2 + $0x338] sm:$0xff] }
 0x1c1   :  { %3375 = vmatpush1.bf16.msra.mxu1 %v17093_v62  ;;  %3335 = vmatprep.subr.bf16.mxu0 %v17086_v63  ;;  %v194_v62 = vld [vmem:[#allocation2 + $0x78] sm:$0xff]  ;;  %v17045_v63 = vcombine.low %v517_v45, %v521_v46 }
 0x1c2   :  { %3401 = vmatprep.subr.bf16.mxu1 %v16768_v4  ;;  %v505_v4 = vld [vmem:[#allocation2 + $0xa30] sm:$0xff]  ;;  %v16719_v10 = vcombine.low %v190_v57, %v194_v62  ;;  %v342_v45 = vld [vmem:[#allocation2 + $0x518] sm:$0xff] }
 0x1c3   :  { %v3025_v17 = vpop.f32.mrf.mxu0  ;;  %v17030_v11 = vcombine.high %v501_v3, %v505_v4  ;;  %v346_v46 = vld [vmem:[#allocation2 + $0x538] sm:$0xff] }
 0x1c4   :  { %v3026_v18 = vadd.f32 %v3025_v17, %v20448_v41  ;;  %3393 = vmatmul.mubr.bf16.vlgmr.msra.gmra.mxu1 %v20419_v30  ;;  %3336 = vmatpush2.bf16.msra.mxu0 %v17085_v7  ;;  %v16720_v7 = vcombine.high %v190_v57, %v194_v62  ;;  %v338_v57 = vld [vmem:[#allocation2 + $0x4f8] sm:$0xff]  ;;  %v16871_v62 = vcombine.low %v342_v45, %v346_v46 }
 0x1c5   :  { %3402 = vmatpush1.bf16.msra.mxu1 %v16767_v8  ;;  %v3027_v21 = vpop.f32.mrf.mxu0  ;;  %3337 = vmatprep.subr.bf16.mxu0 %v17078_v9  ;;  %v186_v8 = vld [vmem:[#allocation2 + $0x38] sm:$0xff]  ;;  %v17037_v9 = vcombine.low %v509_v54, %v513_v55 }
 0x1c6   :  { %v20463_v24 = vadd.f32 %v20453_v56, %v3026_v18  ;;  %v3028_v25 = vadd.f32 %v3027_v21, %v20450_v47  ;;  %3403 = vmatprep.subr.bf16.mxu1 %v16760_v14  ;;  %3433 = vmatprep.mubr.bf16.mxu1 %v20391_v58  ;;  %v16751_v56 = vcombine.low %v222_v12, %v226_v15  ;;  %v525_v47 = vld [vmem:[#allocation2 + $0xad0] sm:$0xff]  ;;  %v302_v12 = vld [vmem:[#allocation2 + $0x3d8] sm:$0xff] }
 0x1c7   :  { %v3029_v41 = vpop.f32.mrf.mxu0  ;;  %v17061_v58 = vcombine.low %v533_v27, %v537_v28  ;;  %v17053_v51 = vcombine.low %v525_v47, %v529_v37  ;;  %v306_v14 = vld [vmem:[#allocation2 + $0x3f8] sm:$0xff]  ;;  %v16712_v17 = vcombine.high %v182_v5, %v186_v8  ;;  %v16711_v21 = vcombine.low %v182_v5, %v186_v8 }
 0x1c8   :  { %v20468_v33 = vadd.f32 %v20456_v2, %v3028_v25  ;;  %3338 = vmatpush2.bf16.msra.mxu0 %v17077_v20  ;;  %v17054_v2 = vcombine.high %v525_v47, %v529_v37  ;;  %v366_v15 = vld [vmem:[#allocation2 + $0x5d8] sm:$0xff]  ;;  %v17029_v20 = vcombine.low %v501_v3, %v505_v4  ;;  %v16832_v27 = vcombine.high %v302_v12, %v306_v14 }
 0x1c9   :  { %3404 = vmatpush1.bf16.msra.mxu1 %v16759_v22  ;;  %v3030_v35 = vpop.f32.mrf.mxu0  ;;  %3339 = vmatprep.subr.bf16.mxu0 %v17070_v23  ;;  %v370_v18 = vld [vmem:[#allocation2 + $0x5f8] sm:$0xff]  ;;  %v16831_v41 = vcombine.low %v302_v12, %v306_v14 }
 0x1ca   :  { %3405 = vmatprep.subr.bf16.mxu1 %v16752_v26  ;;  %v16896_v22 = vcombine.high %v366_v15, %v370_v18  ;;  %v294_v23 = vld [vmem:[#allocation2 + $0x398] sm:$0xff]  ;;  %v16895_v31 = vcombine.low %v366_v15, %v370_v18  ;;  %20008 = vtanh.f32 %v20468_v33 }
 0x1cb   :  { %v298_v25 = vld [vmem:[#allocation2 + $0x3b8] sm:$0xff] }
 0x1cc   :  { %3340 = vmatpush2.bf16.msra.mxu0 %v17069_v34  ;;  %v358_v26 = vld [vmem:[#allocation2 + $0x598] sm:$0xff]  ;;  %v16824_v34 = vcombine.high %v294_v23, %v298_v25 }
 0x1cd   :  { %3406 = vmatpush1.bf16.msra.mxu1 %v16751_v56  ;;  %3341 = vmatprep.subr.bf16.mxu0 %v17062_v36  ;;  %v362_v28 = vld [vmem:[#allocation2 + $0x5b8] sm:$0xff] }
 0x1ce   :  { %3407 = vmatprep.subr.bf16.mxu1 %v16744_v42  ;;  %v16888_v32 = vcombine.high %v358_v26, %v362_v28  ;;  %v286_v35 = vld [vmem:[#allocation2 + $0x358] sm:$0xff]  ;;  %v16887_v40 = vcombine.low %v358_v26, %v362_v28  ;;  %v16823_v42 = vcombine.low %v294_v23, %v298_v25 }
 0x1cf   :  { %v350_v56 = vld [vmem:[#allocation2 + $0x558] sm:$0xff] }
 0x1d0   :  { %3342 = vmatpush2.bf16.msra.mxu0 %v17061_v58  ;;  %v354_v36 = vld [vmem:[#allocation2 + $0x578] sm:$0xff] }
 0x1d1   :  { %3408 = vmatpush1.bf16.msra.mxu1 %v16743_v44  ;;  %3343 = vmatprep.subr.bf16.mxu0 %v17054_v2  ;;  %v290_v47 = vld [vmem:[#allocation2 + $0x378] sm:$0xff]  ;;  %v16880_v43 = vcombine.high %v350_v56, %v354_v36  ;;  %v16879_v50 = vcombine.low %v350_v56, %v354_v36  ;;  %v20477_v56 = vsub.s32 2, %v20438_v60 }
 0x1d2   :  { %3409 = vmatprep.subr.bf16.mxu1 %v16736_v49  ;;  %v16816_v44 = vcombine.high %v286_v35, %v290_v47  ;;  %v278_v2 = vld [vmem:[#allocation2 + $0x318] sm:$0xff] }
 0x1d3   :  { %v270_v54 = vld [vmem:[#allocation2 + $0x2d8] sm:$0xff] }
 0x1d4   :  { %3344 = vmatpush2.bf16.msra.mxu0 %v17053_v51  ;;  %v16815_v51 = vcombine.low %v286_v35, %v290_v47  ;;  %v334_v55 = vld [vmem:[#allocation2 + $0x4d8] sm:$0xff] }
 0x1d5   :  { %3410 = vmatpush1.bf16.msra.mxu1 %v16735_v52  ;;  %3345 = vmatprep.subr.bf16.mxu0 %v17046_v53  ;;  %v16872_v52 = vcombine.high %v342_v45, %v346_v46  ;;  %v16808_v53 = vcombine.high %v278_v2, %v282_v48  ;;  %v266_v3 = vld [vmem:[#allocation2 + $0x2b8] sm:$0xff]  ;;  %v16863_v8 = vcombine.low %v334_v55, %v338_v57  ;;  %v20479_v46 = vld [vmem:[#allocation4] sm:$0xff] }
 0x1d6   :  { %3411 = vmatprep.subr.bf16.mxu1 %v16728_v61  ;;  %v274_v61 = vld [vmem:[#allocation2 + $0x2f8] sm:$0xff] }
 0x1d7   :  { %v326_v4 = vld [vmem:[#allocation2 + $0x498] sm:$0xff]  ;;  %v16800_v5 = vcombine.high %v270_v54, %v274_v61 }
 0x1d8   :  { %3346 = vmatpush2.bf16.msra.mxu0 %v17045_v63  ;;  %v16807_v63 = vcombine.low %v278_v2, %v282_v48  ;;  %v258_v12 = vld [vmem:[#allocation2 + $0x278] sm:$0xff]  ;;  %v640_v48 = vrot.slane %v20479_v46, %v20477_v56 }
 0x1d9   :  { %3412 = vmatpush1.bf16.msra.mxu1 %v16727_v0  ;;  %3347 = vmatprep.subr.bf16.mxu0 %v17038_v1  ;;  %v16864_v0 = vcombine.high %v334_v55, %v338_v57  ;;  %v262_v1 = vld [vmem:[#allocation2 + $0x298] sm:$0xff] }
 0x1da   :  { %3413 = vmatprep.subr.bf16.mxu1 %v16720_v7  ;;  %v330_v7 = vld [vmem:[#allocation2 + $0x4b8] sm:$0xff]  ;;  %v16792_v15 = vcombine.high %v262_v1, %v266_v3 }
 0x1db   :  { %v318_v14 = vld [vmem:[#allocation2 + $0x458] sm:$0xff]  ;;  %v16855_v18 = vcombine.low %v326_v4, %v330_v7 }
 0x1dc   :  { %3348 = vmatpush2.bf16.msra.mxu0 %v17037_v9  ;;  %v16799_v9 = vcombine.low %v270_v54, %v274_v61  ;;  %v250_v23 = vld [vmem:[#allocation2 + $0x238] sm:$0xff] }
 0x1dd   :  { %3414 = vmatpush1.bf16.msra.mxu1 %v16719_v10  ;;  %3349 = vmatprep.subr.bf16.mxu0 %v17030_v11  ;;  %v16856_v10 = vcombine.high %v326_v4, %v330_v7  ;;  %v254_v11 = vld [vmem:[#allocation2 + $0x258] sm:$0xff] }
 0x1de   :  { %3415 = vmatprep.subr.bf16.mxu1 %v16712_v17  ;;  %v322_v17 = vld [vmem:[#allocation2 + $0x478] sm:$0xff]  ;;  %v16784_v26 = vcombine.high %v254_v11, %v258_v12 }
 0x1df   :  { %v310_v25 = vld [vmem:[#allocation2 + $0x418] sm:$0xff]  ;;  %v16847_v28 = vcombine.low %v318_v14, %v322_v17 }
 0x1e0   :  { %3350 = vmatpush2.bf16.msra.mxu0 %v17029_v20  ;;  %v16791_v20 = vcombine.low %v262_v1, %v266_v3  ;;  %v494_v35 = vld [vmem:[#allocation2 + $0x9d8] sm:$0xff] }
 0x1e1   :  { %3416 = vmatpush1.bf16.msra.mxu1 %v16711_v21  ;;  %3442 = vmatprep.subr.bf16.mxu0 %v16896_v22  ;;  %v16848_v21 = vcombine.high %v318_v14, %v322_v17  ;;  %v246_v22 = vld [vmem:[#allocation2 + $0x218] sm:$0xff] }
 0x1e2   :  { %3417 = vmatprep.subr.bf16.mxu1 %v16832_v27  ;;  %v314_v27 = vld [vmem:[#allocation2 + $0x438] sm:$0xff]  ;;  %v16776_v36 = vcombine.high %v246_v22, %v250_v23 }
 0x1e3   :  { %3352 = vmatmul.mubr.bf16.vlgmr.msra.gmra.mxu0 %v20426_v39  ;;  %v498_v47 = vld [vmem:[#allocation2 + $0x9f8] sm:$0xff] }
 0x1e4   :  { %v20471_v37 = vpop.f32.mrf.mxu1  ;;  %3443 = vmatpush1.bf16.msra.mxu0 %v16895_v31  ;;  %3474 = vmatprep.mubr.bf16.mxu0 %v20393_v59  ;;  %v16783_v31 = vcombine.low %v254_v11, %v258_v12  ;;  %v426_v2 = vld [vmem:[#allocation2 + $0x7b8] sm:$0xff] }
 0x1e5   :  { %3418 = vmatpush2.bf16.msra.mxu1 %v16831_v41  ;;  %3444 = vmatprep.subr.bf16.mxu0 %v16888_v32  ;;  %v16840_v41 = vcombine.high %v310_v25, %v314_v27  ;;  %v430_v32 = vld [vmem:[#allocation2 + $0x7d8] sm:$0xff]  ;;  %v3108_v55 = vadd.f32 %v20471_v37, %v640_v48 }
 0x1e6   :  { %v20474_v58 = vpop.f32.mrf.mxu1  ;;  %3419 = vmatprep.subr.bf16.mxu1 %v16824_v34  ;;  %v434_v34 = vld [vmem:[#allocation2 + $0x7f8] sm:$0xff] }
 0x1e7   :  { %v486_v45 = vld [vmem:[#allocation2 + $0x998] sm:$0xff] }
 0x1e8   :  { %v3111_v49 = vpop.f32.mrf.mxu1  ;;  %3445 = vmatpush1.bf16.msra.mxu0 %v16887_v40  ;;  %v16839_v40 = vcombine.low %v310_v25, %v314_v27  ;;  %v478_v61 = vld [vmem:[#allocation2 + $0x958] sm:$0xff] }
 0x1e9   :  { %3420 = vmatpush2.bf16.msra.mxu1 %v16823_v42  ;;  %3446 = vmatprep.subr.bf16.mxu0 %v16880_v43  ;;  %v16775_v42 = vcombine.low %v246_v22, %v250_v23  ;;  %v16960_v43 = vcombine.high %v430_v32, %v434_v34  ;;  %v17024_v49 = vcombine.high %v494_v35, %v498_v47  ;;  %v406_v3 = vld [vmem:[#allocation2 + $0x718] sm:$0xff] }
 0x1ea   :  { %v3112_v59 = vpop.f32.mrf.mxu1  ;;  %3421 = vmatprep.subr.bf16.mxu1 %v16816_v44  ;;  %v422_v44 = vld [vmem:[#allocation2 + $0x798] sm:$0xff] }
 0x1eb   :  { %v418_v59 = vld [vmem:[#allocation2 + $0x778] sm:$0xff]  ;;  %v16952_v54 = vcombine.high %v422_v44, %v426_v2  ;;  %v16951_v1 = vcombine.low %v422_v44, %v426_v2 }
 0x1ec   :  { %3447 = vmatpush1.bf16.msra.mxu0 %v16879_v50  ;;  %v490_v50 = vld [vmem:[#allocation2 + $0x9b8] sm:$0xff] }
 0x1ed   :  { %3422 = vmatpush2.bf16.msra.mxu1 %v16815_v51  ;;  %3448 = vmatprep.subr.bf16.mxu0 %v16872_v52  ;;  %v16959_v51 = vcombine.low %v430_v32, %v434_v34  ;;  %v414_v52 = vld [vmem:[#allocation2 + $0x758] sm:$0xff]  ;;  %v17016_v57 = vcombine.high %v486_v45, %v490_v50  ;;  %v17015_v7 = vcombine.low %v486_v45, %v490_v50 }
 0x1ee   :  { %3423 = vmatprep.subr.bf16.mxu1 %v16808_v53  ;;  %v17023_v53 = vcombine.low %v494_v35, %v498_v47  ;;  %v410_v4 = vld [vmem:[#allocation2 + $0x738] sm:$0xff]  ;;  %v16943_v12 = vcombine.low %v414_v52, %v418_v59 }
 0x1ef   :  { %v402_v14 = vld [vmem:[#allocation2 + $0x6f8] sm:$0xff]  ;;  %v16935_v23 = vcombine.low %v406_v3, %v410_v4 }
 0x1f0   :  { %3449 = vmatpush1.bf16.msra.mxu0 %v16871_v62  ;;  %v482_v62 = vld [vmem:[#allocation2 + $0x978] sm:$0xff] }
 0x1f1   :  { %3424 = vmatpush2.bf16.msra.mxu1 %v16807_v63  ;;  %3450 = vmatprep.subr.bf16.mxu0 %v16864_v0  ;;  %v17008_v37 = vcombine.high %v478_v61, %v482_v62  ;;  %v17007_v17 = vcombine.low %v478_v61, %v482_v62  ;;  %v466_v22 = vld [vmem:[#allocation2 + $0x8f8] sm:$0xff] }
 0x1f2   :  { %3425 = vmatprep.subr.bf16.mxu1 %v16800_v5  ;;  %v390_v25 = vld [vmem:[#allocation2 + $0x698] sm:$0xff] }
 0x1f3   :  { %v382_v34 = vld [vmem:[#allocation2 + $0x658] sm:$0xff] }
 0x1f4   :  { %3451 = vmatpush1.bf16.msra.mxu0 %v16863_v8  ;;  %v16944_v8 = vcombine.high %v414_v52, %v418_v59  ;;  %v386_v35 = vld [vmem:[#allocation2 + $0x678] sm:$0xff] }
 0x1f5   :  { %3426 = vmatpush2.bf16.msra.mxu1 %v16799_v9  ;;  %3452 = vmatprep.subr.bf16.mxu0 %v16856_v10  ;;  %v470_v9 = vld [vmem:[#allocation2 + $0x918] sm:$0xff]  ;;  %v16911_v59 = vcombine.low %v382_v34, %v386_v35 }
 0x1f6   :  { %3427 = vmatprep.subr.bf16.mxu1 %v16792_v15  ;;  %v474_v10 = vld [vmem:[#allocation2 + $0x938] sm:$0xff] }
 0x1f7   :  { %v374_v2 = vld [vmem:[#allocation2 + $0x618] sm:$0xff] }
 0x1f8   :  { %3453 = vmatpush1.bf16.msra.mxu0 %v16855_v18  ;;  %v16936_v18 = vcombine.high %v406_v3, %v410_v4  ;;  %v378_v45 = vld [vmem:[#allocation2 + $0x638] sm:$0xff] }
 0x1f9   :  { %3428 = vmatpush2.bf16.msra.mxu1 %v16791_v20  ;;  %3454 = vmatprep.subr.bf16.mxu0 %v16848_v21  ;;  %v17000_v20 = vcombine.high %v470_v9, %v474_v10  ;;  %v462_v21 = vld [vmem:[#allocation2 + $0x8d8] sm:$0xff] }
 0x1fa   :  { %3429 = vmatprep.subr.bf16.mxu1 %v16784_v26  ;;  %v394_v26 = vld [vmem:[#allocation2 + $0x6b8] sm:$0xff] }
 0x1fb   :  { %v16920_v47 = vcombine.high %v390_v25, %v394_v26  ;;  %v16919_v44 = vcombine.low %v390_v25, %v394_v26  ;;  %v438_v50 = vld [vmem:[#allocation2 + $0x818] sm:$0xff] }
 0x1fc   :  { %3455 = vmatpush1.bf16.msra.mxu0 %v16847_v28  ;;  %v454_v28 = vld [vmem:[#allocation2 + $0x898] sm:$0xff] }
 0x1fd   :  { %3430 = vmatpush2.bf16.msra.mxu1 %v16783_v31  ;;  %3456 = vmatprep.subr.bf16.mxu0 %v16840_v41  ;;  %v458_v31 = vld [vmem:[#allocation2 + $0x8b8] sm:$0xff]  ;;  %v16992_v41 = vcombine.high %v462_v21, %v466_v22 }
 0x1fe   :  { %3431 = vmatprep.subr.bf16.mxu1 %v16776_v36  ;;  %v16991_v36 = vcombine.low %v462_v21, %v466_v22  ;;  %v16983_v48 = vcombine.low %v454_v28, %v458_v31  ;;  %v558_v61 = vld [vmem:[#allocation2 + $0xbd8] sm:$0xff] }
 0x1ff   :  { %v562_v62 = vld [vmem:[#allocation2 + $0xbf8] sm:$0xff] }
 0x200   :  { %3457 = vmatpush1.bf16.msra.mxu0 %v16839_v40  ;;  %v446_v40 = vld [vmem:[#allocation2 + $0x858] sm:$0xff] }
 0x201   :  { %3432 = vmatpush2.bf16.msra.mxu1 %v16775_v42  ;;  %3458 = vmatprep.subr.bf16.mxu0 %v16960_v43  ;;  %v450_v42 = vld [vmem:[#allocation2 + $0x878] sm:$0xff]  ;;  %v16984_v43 = vcombine.high %v454_v28, %v458_v31 }
 0x202   :  { %3483 = vmatprep.subr.bf16.mxu1 %v17024_v49  ;;  %v16912_v49 = vcombine.high %v382_v34, %v386_v35  ;;  %v16976_v52 = vcombine.high %v446_v40, %v450_v42  ;;  %v614_v3 = vld [vmem:[#allocation2 + $0xd98] sm:$0xff] }
 0x203   :  { %v3148_v63 = vpop.f32.mrf.mxu0  ;;  %v618_v4 = vld [vmem:[#allocation2 + $0xdb8] sm:$0xff] }
 0x204   :  { %v20484_v0 = vadd.f32 %v3148_v63, %v3108_v55  ;;  %3434 = vmatmul.mubr.bf16.vlgmr.msra.gmra.mxu1 %v20403_v16  ;;  %3459 = vmatpush2.bf16.msra.mxu0 %v16959_v51  ;;  %v398_v16 = vld [vmem:[#allocation2 + $0x6d8] sm:$0xff]  ;;  %v16975_v55 = vcombine.low %v446_v40, %v450_v42  ;;  %v17143_v26 = vcombine.low %v614_v3, %v618_v4 }
 0x205   :  { %3484 = vmatpush1.bf16.msra.mxu1 %v17023_v53  ;;  %v20487_v5 = vpop.f32.mrf.mxu0  ;;  %3460 = vmatprep.subr.bf16.mxu0 %v16952_v54  ;;  %v16928_v27 = vcombine.high %v398_v16, %v402_v14  ;;  %v16927_v32 = vcombine.low %v398_v16, %v402_v14  ;;  %v442_v51 = vld [vmem:[#allocation2 + $0x838] sm:$0xff]  ;;  %v17087_v16 = vcombine.low %v558_v61, %v562_v62 }
 0x206   :  { %3485 = vmatprep.subr.bf16.mxu1 %v17016_v57  ;;  %3515 = vmatprep.mubr.bf16.mxu1 %v20411_v29  ;;  %v16999_v29 = vcombine.low %v470_v9, %v474_v10  ;;  %v622_v53 = vld [vmem:[#allocation2 + $0xdd8] sm:$0xff]  ;;  %v16904_v57 = vcombine.high %v374_v2, %v378_v45  ;;  %v16968_v63 = vcombine.high %v438_v50, %v442_v51 }
 0x207   :  { %v3152_v11 = vpop.f32.mrf.mxu0  ;;  %v626_v54 = vld [vmem:[#allocation2 + $0xdf8] sm:$0xff]  ;;  %v17144_v14 = vcombine.high %v614_v3, %v618_v4 }
 0x208   :  { %3461 = vmatpush2.bf16.msra.mxu0 %v16951_v1  ;;  %v16903_v1 = vcombine.low %v374_v2, %v378_v45  ;;  %v550_v9 = vld [vmem:[#allocation2 + $0xb98] sm:$0xff]  ;;  %v17088_v11 = vcombine.high %v558_v61, %v562_v62 }
 0x209   :  { %3486 = vmatpush1.bf16.msra.mxu1 %v17015_v7  ;;  %v3153_v15 = vpop.f32.mrf.mxu0  ;;  %3462 = vmatprep.subr.bf16.mxu0 %v16944_v8  ;;  %v20491_v7 = vsub.s32 3, %v20438_v60  ;;  %v16967_v8 = vcombine.low %v438_v50, %v442_v51  ;;  %v554_v10 = vld [vmem:[#allocation2 + $0xbb8] sm:$0xff] }
 0x20a   :  { %3487 = vmatprep.subr.bf16.mxu1 %v17008_v37  ;;  %v17152_v37 = vcombine.high %v622_v53, %v626_v54  ;;  %v542_v15 = vld [vmem:[#allocation2 + $0xb58] sm:$0xff]  ;;  %v17079_v28 = vcombine.low %v550_v9, %v554_v10 }
 0x20b   :  { %v610_v21 = vld [vmem:[#allocation2 + $0xd78] sm:$0xff] }
 0x20c   :  { %3463 = vmatpush2.bf16.msra.mxu0 %v16943_v12  ;;  %v17151_v12 = vcombine.low %v622_v53, %v626_v54  ;;  %v598_v35 = vld [vmem:[#allocation2 + $0xd18] sm:$0xff] }
 0x20d   :  { %3488 = vmatpush1.bf16.msra.mxu1 %v17007_v17  ;;  %3464 = vmatprep.subr.bf16.mxu0 %v16936_v18  ;;  %v546_v17 = vld [vmem:[#allocation2 + $0xb78] sm:$0xff]  ;;  %v17080_v18 = vcombine.high %v550_v9, %v554_v10 }
 0x20e   :  { %3489 = vmatprep.subr.bf16.mxu1 %v17000_v20  ;;  %v606_v20 = vld [vmem:[#allocation2 + $0xd58] sm:$0xff] }
 0x20f   :  { %v17136_v31 = vcombine.high %v606_v20, %v610_v21  ;;  %v590_v50 = vld [vmem:[#allocation2 + $0xcd8] sm:$0xff] }
 0x210   :  { %3465 = vmatpush2.bf16.msra.mxu0 %v16935_v23  ;;  %v644_v23 = vrot.slane %v20479_v46, %v20491_v7  ;;  %v594_v51 = vld [vmem:[#allocation2 + $0xcf8] sm:$0xff] }
 0x211   :  { %3490 = vmatpush1.bf16.msra.mxu1 %v16999_v29  ;;  %3466 = vmatprep.subr.bf16.mxu0 %v16928_v27  ;;  %v582_v61 = vld [vmem:[#allocation2 + $0xc98] sm:$0xff]  ;;  %v17119_v3 = vcombine.low %v590_v50, %v594_v51 }
 0x212   :  { %3491 = vmatprep.subr.bf16.mxu1 %v16992_v41  ;;  %v534_v41 = vld [vmem:[#allocation2 + $0xb18] sm:$0xff]  ;;  %v3110_v42 = vadd.f32 %v20474_v58, %v644_v23 }
 0x213   :  { %v586_v62 = vld [vmem:[#allocation2 + $0xcb8] sm:$0xff] }
 0x214   :  { %3467 = vmatpush2.bf16.msra.mxu0 %v16927_v32  ;;  %v538_v32 = vld [vmem:[#allocation2 + $0xb38] sm:$0xff]  ;;  %v3151_v45 = vadd.f32 %v20487_v5, %v3110_v42 }
 0x215   :  { %3492 = vmatpush1.bf16.msra.mxu1 %v16991_v36  ;;  %3468 = vmatprep.subr.bf16.mxu0 %v16920_v47  ;;  %v602_v36 = vld [vmem:[#allocation2 + $0xd38] sm:$0xff]  ;;  %v17063_v54 = vcombine.low %v534_v41, %v538_v32 }
 0x216   :  { %3493 = vmatprep.subr.bf16.mxu1 %v16984_v43  ;;  %v17128_v2 = vcombine.high %v598_v35, %v602_v36  ;;  %v17127_v58 = vcombine.low %v598_v35, %v602_v36  ;;  %v522_v5 = vld [vmem:[#allocation2 + $0xab8] sm:$0xff]  ;;  %v3629_v35 = vld [vmem:[#allocation6 + $0x180] sm:$0xff] }
 0x217   :  { %v574_v9 = vld [vmem:[#allocation2 + $0xc58] sm:$0xff]  ;;  %v3633_v36 = vld [vmem:[#allocation6 + $0x1a0] sm:$0xff] }
 0x218   :  { %3469 = vmatpush2.bf16.msra.mxu0 %v16919_v44  ;;  %v17071_v44 = vcombine.low %v542_v15, %v546_v17  ;;  %v578_v10 = vld [vmem:[#allocation2 + $0xc78] sm:$0xff] }
 0x219   :  { %3494 = vmatpush1.bf16.msra.mxu1 %v16983_v48  ;;  %3470 = vmatprep.subr.bf16.mxu0 %v16912_v49  ;;  %v17064_v49 = vcombine.high %v534_v41, %v538_v32  ;;  %v17103_v23 = vcombine.low %v574_v9, %v578_v10 }
 0x21a   :  { %3495 = vmatprep.subr.bf16.mxu1 %v16976_v52  ;;  %v526_v52 = vld [vmem:[#allocation2 + $0xad8] sm:$0xff] }
 0x21c   :  { %3471 = vmatpush2.bf16.msra.mxu0 %v16911_v59  ;;  %v530_v59 = vld [vmem:[#allocation2 + $0xaf8] sm:$0xff] }
 0x21d   :  { %3496 = vmatpush1.bf16.msra.mxu1 %v16975_v55  ;;  %3472 = vmatprep.subr.bf16.mxu0 %v16904_v57  ;;  %v17120_v55 = vcombine.high %v590_v50, %v594_v51  ;;  %v17056_v57 = vcombine.high %v526_v52, %v530_v59  ;;  %v17055_v4 = vcombine.low %v526_v52, %v530_v59  ;;  %v3749_v51 = vld [vmem:[#allocation6 + $0x540] sm:$0xff] }
 0x21e   :  { %3497 = vmatprep.subr.bf16.mxu1 %v16968_v63  ;;  %v518_v63 = vld [vmem:[#allocation2 + $0xa98] sm:$0xff]  ;;  %v3753_v52 = vld [vmem:[#allocation6 + $0x560] sm:$0xff] }
 0x220   :  { %3473 = vmatpush2.bf16.msra.mxu0 %v16903_v1 }
 0x221   :  { %3498 = vmatpush1.bf16.msra.mxu1 %v16967_v8  ;;  %3524 = vmatprep.subr.bf16.mxu0 %v17152_v37  ;;  %v17112_v8 = vcombine.high %v582_v61, %v586_v62  ;;  %v17048_v37 = vcombine.high %v518_v63, %v522_v5 }
 0x222   :  { %3499 = vmatprep.subr.bf16.mxu1 %v17088_v11  ;;  %v510_v11 = vld [vmem:[#allocation2 + $0xa58] sm:$0xff] }
 0x223   :  { %v3230_v22 = vpop.f32.mrf.mxu0  ;;  %3475 = vmatmul.mubr.bf16.vlgmr.msra.gmra.mxu0 %v20405_v19  ;;  %v17072_v19 = vcombine.high %v542_v15, %v546_v17  ;;  %v17104_v15 = vcombine.high %v574_v9, %v578_v10 }
 0x224   :  { %v3189_v25 = vpop.f32.mrf.mxu1  ;;  %3525 = vmatpush1.bf16.msra.mxu0 %v17151_v12  ;;  %3556 = vmatprep.mubr.bf16.mxu0 %v20294_v38  ;;  %v514_v12 = vld [vmem:[#allocation2 + $0xa78] sm:$0xff] }
 0x225   :  { %v3190_v29 = vadd.f32 %v3189_v25, %v20484_v0  ;;  %3500 = vmatpush2.bf16.msra.mxu1 %v17087_v16  ;;  %v3232_v27 = vpop.f32.mrf.mxu0  ;;  %3526 = vmatprep.subr.bf16.mxu0 %v17144_v14  ;;  %v17135_v0 = vcombine.low %v606_v20, %v610_v21  ;;  %v17111_v16 = vcombine.low %v582_v61, %v586_v62  ;;  %v570_v20 = vld [vmem:[#allocation2 + $0xc38] sm:$0xff]  ;;  %v3741_v61 = vld [vmem:[#allocation6 + $0x500] sm:$0xff] }
 0x226   :  { %v3191_v34 = vpop.f32.mrf.mxu1  ;;  %3501 = vmatprep.subr.bf16.mxu1 %v17080_v18  ;;  %v17047_v14 = vcombine.low %v518_v63, %v522_v5  ;;  %v17040_v17 = vcombine.high %v510_v11, %v514_v12  ;;  %v566_v18 = vld [vmem:[#allocation2 + $0xc18] sm:$0xff]  ;;  %v17039_v25 = vcombine.low %v510_v11, %v514_v12  ;;  %v3745_v62 = vld [vmem:[#allocation6 + $0x520] sm:$0xff] }
 0x227   :  { %v20498_v47 = vadd.f32 %v3230_v22, %v3190_v29  ;;  %v3234_v40 = vpop.f32.mrf.mxu0  ;;  %v3192_v53 = vadd.f32 %v3191_v34, %v3151_v45  ;;  %v502_v21 = vld [vmem:[#allocation2 + $0xa18] sm:$0xff]  ;;  %v17096_v33 = vcombine.high %v566_v18, %v570_v20  ;;  %v3637_v29 = vld [vmem:[#allocation6 + $0x1c0] sm:$0xff]  ;;  %v17095_v41 = vcombine.low %v566_v18, %v570_v20 }
 0x228   :  { %v3193_v38 = vpop.f32.mrf.mxu1  ;;  %3527 = vmatpush1.bf16.msra.mxu0 %v17143_v26  ;;  %v506_v22 = vld [vmem:[#allocation2 + $0xa38] sm:$0xff]  ;;  %v20009_v40 = vpop.eup %20008  ;;  %v3621_v45 = vld [vmem:[#allocation6 + $0x140] sm:$0xff]  ;;  %v17313_v10 = vcombine.low %v3741_v61, %v3745_v62 }
 0x229   :  { %3502 = vmatpush2.bf16.msra.mxu1 %v17079_v28  ;;  %v3235_v43 = vpop.f32.mrf.mxu0  ;;  %3528 = vmatprep.subr.bf16.mxu0 %v17136_v31  ;;  %v3233_v1 = vadd.f32 %v3232_v27, %v3192_v53  ;;  %v17032_v26 = vcombine.high %v502_v21, %v506_v22  ;;  %v3641_v27 = vld [vmem:[#allocation6 + $0x1e0] sm:$0xff]  ;;  %v17031_v32 = vcombine.low %v502_v21, %v506_v22 }
 0x22a   :  { %v3194_v48 = vpop.f32.mrf.mxu1  ;;  %3503 = vmatprep.subr.bf16.mxu1 %v17072_v19  ;;  %v3765_v28 = vld [vmem:[#allocation6 + $0x5c0] sm:$0xff]  ;;  %v17210_v34 = vcombine.high %v3637_v29, %v3641_v27  ;;  %v17209_v42 = vcombine.low %v3637_v29, %v3641_v27  ;;  %v17201_v53 = vcombine.low %v3629_v35, %v3633_v36 }
 0x22b   :  { %20010 = vtanh.f32 %v3233_v1  ;;  %v3769_v31 = vld [vmem:[#allocation6 + $0x5e0] sm:$0xff]  ;;  %v17314_v1 = vcombine.high %v3741_v61, %v3745_v62 }
 0x22c   :  { %3529 = vmatpush1.bf16.msra.mxu0 %v17135_v0  ;;  %v17338_v19 = vcombine.high %v3765_v28, %v3769_v31  ;;  %v3757_v38 = vld [vmem:[#allocation6 + $0x580] sm:$0xff]  ;;  %20012 = vtanh.f32 %v20463_v24 }
 0x22d   :  { %3504 = vmatpush2.bf16.msra.mxu1 %v17071_v44  ;;  %3530 = vmatprep.subr.bf16.mxu0 %v17128_v2  ;;  %v3761_v0 = vld [vmem:[#allocation6 + $0x5a0] sm:$0xff]  ;;  %v17337_v44 = vcombine.low %v3765_v28, %v3769_v31  ;;  %v17202_v2 = vcombine.high %v3629_v35, %v3633_v36  ;;  %20014 = vtanh.f32 %v20498_v47 }
 0x22e   :  { %3505 = vmatprep.subr.bf16.mxu1 %v17064_v49  ;;  %v3625_v48 = vld [vmem:[#allocation6 + $0x160] sm:$0xff]  ;;  %v20503_v49 = vpack.c.bf16 %v20009_v40, %v20009_v40  ;;  %v17330_v50 = vcombine.high %v3757_v38, %v3761_v0 }
 0x22f   :  { %v17193_v63 = vcombine.low %v3621_v45, %v3625_v48 }
 0x230   :  { %3531 = vmatpush1.bf16.msra.mxu0 %v17127_v58  ;;  %v17329_v58 = vcombine.low %v3757_v38, %v3761_v0  ;;  %v3701_v38 = vld [vmem:[#allocation6 + $0x3c0] sm:$0xff] }
 0x231   :  { %3506 = vmatpush2.bf16.msra.mxu1 %v17063_v54  ;;  %3532 = vmatprep.subr.bf16.mxu0 %v17120_v55  ;;  %v17194_v54 = vcombine.high %v3621_v45, %v3625_v48  ;;  %v17322_v55 = vcombine.high %v3749_v51, %v3753_v52  ;;  %v3705_v0 = vld [vmem:[#allocation6 + $0x3e0] sm:$0xff]  ;;  %v20512_v45 = vsub.s32 4, %v20438_v60 }
 0x232   :  { %3507 = vmatprep.subr.bf16.mxu1 %v17056_v57  ;;  %v3613_v57 = vld [vmem:[#allocation6 + $0x100] sm:$0xff] }
 0x234   :  { %3533 = vmatpush1.bf16.msra.mxu0 %v17119_v3  ;;  %v3605_v3 = vld [vmem:[#allocation6 + $0xc0] sm:$0xff] }
 0x235   :  { %3508 = vmatpush2.bf16.msra.mxu1 %v17055_v4  ;;  %3534 = vmatprep.subr.bf16.mxu0 %v17112_v8  ;;  %v3609_v4 = vld [vmem:[#allocation6 + $0xe0] sm:$0xff] }
 0x236   :  { %3509 = vmatprep.subr.bf16.mxu1 %v17048_v37  ;;  %v3733_v8 = vld [vmem:[#allocation6 + $0x4c0] sm:$0xff]  ;;  %v17178_v11 = vcombine.high %v3605_v3, %v3609_v4  ;;  %v17177_v18 = vcombine.low %v3605_v3, %v3609_v4 }
 0x237   :  { %v3737_v37 = vld [vmem:[#allocation6 + $0x4e0] sm:$0xff] }
 0x238   :  { %3535 = vmatpush1.bf16.msra.mxu0 %v17111_v16  ;;  %v20011_v43 = vpop.eup %20010  ;;  %v17306_v12 = vcombine.high %v3733_v8, %v3737_v37  ;;  %v3597_v16 = vld [vmem:[#allocation6 + $0x80] sm:$0xff]  ;;  %v17305_v20 = vcombine.low %v3733_v8, %v3737_v37 }
 0x239   :  { %3510 = vmatpush2.bf16.msra.mxu1 %v17047_v14  ;;  %3536 = vmatprep.subr.bf16.mxu0 %v17104_v15  ;;  %v20506_v59 = vpack.c.bf16 %v20011_v43, %v20011_v43  ;;  %v3601_v14 = vld [vmem:[#allocation6 + $0xa0] sm:$0xff] }
 0x23a   :  { %3511 = vmatprep.subr.bf16.mxu1 %v17040_v17  ;;  %v3725_v15 = vld [vmem:[#allocation6 + $0x480] sm:$0xff]  ;;  %v17170_v21 = vcombine.high %v3597_v16, %v3601_v14  ;;  %v17169_v29 = vcombine.low %v3597_v16, %v3601_v14 }
 0x23b   :  { %v3729_v17 = vld [vmem:[#allocation6 + $0x4a0] sm:$0xff] }
 0x23c   :  { %3537 = vmatpush1.bf16.msra.mxu0 %v17103_v23  ;;  %v17298_v22 = vcombine.high %v3725_v15, %v3729_v17  ;;  %v3589_v23 = vld [vmem:[#allocation6 + $0x40] sm:$0xff]  ;;  %v17297_v27 = vcombine.low %v3725_v15, %v3729_v17 }
 0x23d   :  { %3512 = vmatpush2.bf16.msra.mxu1 %v17039_v25  ;;  %3538 = vmatprep.subr.bf16.mxu0 %v17096_v33  ;;  %v3593_v25 = vld [vmem:[#allocation6 + $0x60] sm:$0xff] }
 0x23e   :  { %3513 = vmatprep.subr.bf16.mxu1 %v17032_v26  ;;  %v3717_v33 = vld [vmem:[#allocation6 + $0x440] sm:$0xff]  ;;  %v17162_v28 = vcombine.high %v3589_v23, %v3593_v25  ;;  %v17161_v35 = vcombine.low %v3589_v23, %v3593_v25 }
 0x23f   :  { %v3721_v26 = vld [vmem:[#allocation6 + $0x460] sm:$0xff] }
 0x240   :  { %3539 = vmatpush1.bf16.msra.mxu0 %v17095_v41  ;;  %v17290_v31 = vcombine.high %v3717_v33, %v3721_v26  ;;  %v3581_v41 = vld [vmem:[#allocation6] sm:$0xff]  ;;  %v17289_v36 = vcombine.low %v3717_v33, %v3721_v26 }
 0x241   :  { %3514 = vmatpush2.bf16.msra.mxu1 %v17031_v32  ;;  %6695 = vmatprep.subr.bf16.mxu0 %v17210_v34  ;;  %v3585_v32 = vld [vmem:[#allocation6 + $0x20] sm:$0xff] }
 0x242   :  { %6736 = vmatprep.subr.bf16.mxu1 %v17338_v19  ;;  %v3709_v34 = vld [vmem:[#allocation6 + $0x400] sm:$0xff]  ;;  %v17154_v40 = vcombine.high %v3581_v41, %v3585_v32 }
 0x243   :  { %3557 = vmatmul.mubr.bf16.vlgmr.msra.gmra.mxu0 %v20419_v30  ;;  %v3617_v30 = vld [vmem:[#allocation6 + $0x120] sm:$0xff] }
 0x244   :  { %3516 = vmatmul.mubr.bf16.vlgmr.msra.gmra.mxu1 %v20426_v39  ;;  %6696 = vmatpush1.bf16.msra.mxu0 %v17209_v42  ;;  %v17321_v39 = vcombine.low %v3749_v51, %v3753_v52  ;;  %v17186_v5 = vcombine.high %v3613_v57, %v3617_v30  ;;  %v17185_v9 = vcombine.low %v3613_v57, %v3617_v30  ;;  %v3713_v19 = vld [vmem:[#allocation6 + $0x420] sm:$0xff] }
 0x245   :  { %6727 = vmatprep.mubr.bf16.mxu0 %v20503_v49  ;;  %6737 = vmatpush1.bf16.msra.mxu1 %v17337_v44  ;;  %v17282_v42 = vcombine.high %v3709_v34, %v3713_v19  ;;  %v3829_v43 = vld [vmem:[#allocation6 + $0x7c0] sm:$0xff]  ;;  %v17281_v48 = vcombine.low %v3709_v34, %v3713_v19  ;;  %v17273_v57 = vcombine.low %v3701_v38, %v3705_v0 }
 0x246   :  { %6768 = vmatprep.mubr.bf16.mxu1 %v20506_v59  ;;  %6697 = vmatprep.subr.bf16.mxu0 %v17202_v2  ;;  %v3833_v44 = vld [vmem:[#allocation6 + $0x7e0] sm:$0xff]  ;;  %v17153_v2 = vcombine.low %v3581_v41, %v3585_v32 }
 0x247   :  { %6738 = vmatprep.subr.bf16.mxu1 %v17330_v50  ;;  %v17274_v50 = vcombine.high %v3701_v38, %v3705_v0  ;;  %v17402_v51 = vcombine.high %v3829_v43, %v3833_v44  ;;  %v3693_v52 = vld [vmem:[#allocation6 + $0x380] sm:$0xff]  ;;  %v17401_v30 = vcombine.low %v3829_v43, %v3833_v44 }
 0x248   :  { %6698 = vmatpush1.bf16.msra.mxu0 %v17201_v53  ;;  %v3697_v53 = vld [vmem:[#allocation6 + $0x3a0] sm:$0xff] }
 0x249   :  { %6739 = vmatpush1.bf16.msra.mxu1 %v17329_v58  ;;  %6699 = vmatprep.subr.bf16.mxu0 %v17194_v54  ;;  %v3821_v58 = vld [vmem:[#allocation6 + $0x780] sm:$0xff]  ;;  %v17266_v61 = vcombine.high %v3693_v52, %v3697_v53  ;;  %v17265_v37 = vcombine.low %v3693_v52, %v3697_v53 }
 0x24a   :  { %6740 = vmatprep.subr.bf16.mxu1 %v17322_v55  ;;  %v3825_v54 = vld [vmem:[#allocation6 + $0x7a0] sm:$0xff]  ;;  %v648_v55 = vrot.slane %v20479_v46, %v20512_v45 }
 0x24b   :  { %v17394_v62 = vcombine.high %v3821_v58, %v3825_v54  ;;  %v3817_v3 = vld [vmem:[#allocation6 + $0x760] sm:$0xff]  ;;  %v17393_v46 = vcombine.low %v3821_v58, %v3825_v54 }
 0x24c   :  { %6700 = vmatpush1.bf16.msra.mxu0 %v17193_v63  ;;  %v3685_v63 = vld [vmem:[#allocation6 + $0x340] sm:$0xff] }
 0x24d   :  { %6741 = vmatpush1.bf16.msra.mxu1 %v17321_v39  ;;  %6701 = vmatprep.subr.bf16.mxu0 %v17186_v5  ;;  %v3689_v39 = vld [vmem:[#allocation6 + $0x360] sm:$0xff] }
 0x24e   :  { %6742 = vmatprep.subr.bf16.mxu1 %v17314_v1  ;;  %v3813_v1 = vld [vmem:[#allocation6 + $0x740] sm:$0xff] }
 0x24f   :  { %v17386_v16 = vcombine.high %v3813_v1, %v3817_v3  ;;  %v3677_v14 = vld [vmem:[#allocation6 + $0x300] sm:$0xff]  ;;  %v17385_v25 = vcombine.low %v3813_v1, %v3817_v3 }
 0x250   :  { %6702 = vmatpush1.bf16.msra.mxu0 %v17185_v9  ;;  %v3681_v15 = vld [vmem:[#allocation6 + $0x320] sm:$0xff] }
 0x251   :  { %6743 = vmatpush1.bf16.msra.mxu1 %v17313_v10  ;;  %6703 = vmatprep.subr.bf16.mxu0 %v17178_v11  ;;  %v17258_v10 = vcombine.high %v3685_v63, %v3689_v39  ;;  %v17250_v33 = vcombine.high %v3677_v14, %v3681_v15  ;;  %v3801_v41 = vld [vmem:[#allocation6 + $0x6e0] sm:$0xff]  ;;  %v17249_v32 = vcombine.low %v3677_v14, %v3681_v15 }
 0x252   :  { %6744 = vmatprep.subr.bf16.mxu1 %v17306_v12  ;;  %v3793_v38 = vld [vmem:[#allocation6 + $0x6a0] sm:$0xff] }
 0x253   :  { %v3785_v52 = vld [vmem:[#allocation6 + $0x660] sm:$0xff] }
 0x254   :  { %6704 = vmatpush1.bf16.msra.mxu0 %v17177_v18  ;;  %v3805_v18 = vld [vmem:[#allocation6 + $0x700] sm:$0xff] }
 0x255   :  { %6745 = vmatpush1.bf16.msra.mxu1 %v17305_v20  ;;  %6705 = vmatprep.subr.bf16.mxu0 %v17170_v21  ;;  %v3809_v20 = vld [vmem:[#allocation6 + $0x720] sm:$0xff] }
 0x256   :  { %6746 = vmatprep.subr.bf16.mxu1 %v17298_v22  ;;  %v17257_v22 = vcombine.low %v3685_v63, %v3689_v39  ;;  %v17377_v34 = vcombine.low %v3805_v18, %v3809_v20  ;;  %v3897_v1 = vld [vmem:[#allocation6 + $0x9e0] sm:$0xff] }
 0x257   :  { %v4021_v3 = vld [vmem:[#allocation6 + $0xdc0] sm:$0xff] }
 0x258   :  { %6706 = vmatpush1.bf16.msra.mxu0 %v17169_v29  ;;  %v17378_v29 = vcombine.high %v3805_v18, %v3809_v20  ;;  %v3889_v14 = vld [vmem:[#allocation6 + $0x9a0] sm:$0xff] }
 0x259   :  { %6747 = vmatpush1.bf16.msra.mxu1 %v17297_v27  ;;  %6707 = vmatprep.subr.bf16.mxu0 %v17162_v28  ;;  %v3669_v27 = vld [vmem:[#allocation6 + $0x2c0] sm:$0xff] }
 0x25a   :  { %6748 = vmatprep.subr.bf16.mxu1 %v17290_v31  ;;  %v3673_v28 = vld [vmem:[#allocation6 + $0x2e0] sm:$0xff] }
 0x25b   :  { %v3797_v31 = vld [vmem:[#allocation6 + $0x6c0] sm:$0xff]  ;;  %v17242_v19 = vcombine.high %v3669_v27, %v3673_v28  ;;  %v17241_v0 = vcombine.low %v3669_v27, %v3673_v28 }
 0x25c   :  { %6708 = vmatpush1.bf16.msra.mxu0 %v17161_v35  ;;  %v17370_v35 = vcombine.high %v3797_v31, %v3801_v41  ;;  %v17369_v43 = vcombine.low %v3797_v31, %v3801_v41  ;;  %v4013_v18 = vld [vmem:[#allocation6 + $0xd80] sm:$0xff] }
 0x25d   :  { %6749 = vmatpush1.bf16.msra.mxu1 %v17289_v36  ;;  %6709 = vmatprep.subr.bf16.mxu0 %v17154_v40  ;;  %v3661_v36 = vld [vmem:[#allocation6 + $0x280] sm:$0xff] }
 0x25e   :  { %6750 = vmatprep.subr.bf16.mxu1 %v17282_v42  ;;  %v3665_v40 = vld [vmem:[#allocation6 + $0x2a0] sm:$0xff] }
 0x25f   :  { %v3789_v42 = vld [vmem:[#allocation6 + $0x680] sm:$0xff]  ;;  %v17234_v44 = vcombine.high %v3661_v36, %v3665_v40  ;;  %v17233_v53 = vcombine.low %v3661_v36, %v3665_v40 }
 0x260   :  { %6710 = vmatpush1.bf16.msra.mxu0 %v17153_v2  ;;  %v17362_v2 = vcombine.high %v3789_v42, %v3793_v38  ;;  %v17361_v58 = vcombine.low %v3789_v42, %v3793_v38  ;;  %v4017_v20 = vld [vmem:[#allocation6 + $0xda0] sm:$0xff] }
 0x261   :  { %6751 = vmatpush1.bf16.msra.mxu1 %v17281_v48  ;;  %6711 = vmatprep.subr.bf16.mxu0 %v17274_v50  ;;  %v3653_v48 = vld [vmem:[#allocation6 + $0x240] sm:$0xff]  ;;  %v17586_v27 = vcombine.high %v4013_v18, %v4017_v20 }
 0x262   :  { %6752 = vmatprep.subr.bf16.mxu1 %v17402_v51  ;;  %v3657_v50 = vld [vmem:[#allocation6 + $0x260] sm:$0xff] }
 0x263   :  { %v3271_v5 = vpop.f32.mrf.mxu0  ;;  %v3781_v51 = vld [vmem:[#allocation6 + $0x640] sm:$0xff]  ;;  %v17226_v54 = vcombine.high %v3653_v48, %v3657_v50  ;;  %v17225_v47 = vcombine.low %v3653_v48, %v3657_v50 }
 0x264   :  { %v3272_v4 = vadd.f32 %v3271_v5, %v648_v55  ;;  %v3312_v8 = vpop.f32.mrf.mxu1  ;;  %6712 = vmatpush2.bf16.msra.mxu0 %v17273_v57  ;;  %v17354_v24 = vcombine.high %v3781_v51, %v3785_v52  ;;  %v3645_v55 = vld [vmem:[#allocation6 + $0x200] sm:$0xff] }
 0x265   :  { %6753 = vmatpush2.bf16.msra.mxu1 %v17401_v30  ;;  %v20516_v9 = vpop.f32.mrf.mxu0  ;;  %6713 = vmatprep.subr.bf16.mxu0 %v17266_v61  ;;  %v3649_v57 = vld [vmem:[#allocation6 + $0x220] sm:$0xff] }
 0x266   :  { %v20518_v11 = vadd.f32 %v3312_v8, %v3272_v4  ;;  %v20520_v12 = vpop.f32.mrf.mxu1  ;;  %6754 = vmatprep.subr.bf16.mxu1 %v17394_v62  ;;  %v3773_v30 = vld [vmem:[#allocation6 + $0x600] sm:$0xff]  ;;  %v17353_v62 = vcombine.low %v3781_v51, %v3785_v52  ;;  %v17218_v63 = vcombine.high %v3645_v55, %v3649_v57  ;;  %v17217_v8 = vcombine.low %v3645_v55, %v3649_v57 }
 0x267   :  { %v3275_v17 = vpop.f32.mrf.mxu0  ;;  %v3777_v61 = vld [vmem:[#allocation6 + $0x620] sm:$0xff] }
 0x268   :  { %v3316_v21 = vpop.f32.mrf.mxu1  ;;  %6714 = vmatpush2.bf16.msra.mxu0 %v17265_v37  ;;  %v17346_v39 = vcombine.high %v3773_v30, %v3777_v61  ;;  %v3893_v5 = vld [vmem:[#allocation6 + $0x9c0] sm:$0xff]  ;;  %v17345_v37 = vcombine.low %v3773_v30, %v3777_v61 }
 0x269   :  { %6755 = vmatpush2.bf16.msra.mxu1 %v17393_v46  ;;  %v3276_v23 = vpop.f32.mrf.mxu0  ;;  %6715 = vmatprep.subr.bf16.mxu0 %v17258_v10  ;;  %v4025_v4 = vld [vmem:[#allocation6 + $0xde0] sm:$0xff]  ;;  %v17466_v46 = vcombine.high %v3893_v5, %v3897_v1  ;;  %v20013_v10 = vpop.eup %20012  ;;  %v17465_v21 = vcombine.low %v3893_v5, %v3897_v1 }
 0x26a   :  { %v3317_v26 = vpop.f32.mrf.mxu1  ;;  %6756 = vmatprep.subr.bf16.mxu1 %v17386_v16  ;;  %v3885_v16 = vld [vmem:[#allocation6 + $0x980] sm:$0xff]  ;;  %v17594_v15 = vcombine.high %v4021_v3, %v4025_v4  ;;  %v20015_v17 = vpop.eup %20014 }
 0x26b   :  { %v17458_v23 = vcombine.high %v3885_v16, %v3889_v14  ;;  %v3877_v26 = vld [vmem:[#allocation6 + $0x940] sm:$0xff] }
 0x26c   :  { %6716 = vmatpush2.bf16.msra.mxu0 %v17257_v22  ;;  %v20524_v22 = vpack.c.bf16 %v20013_v10, %v20013_v10  ;;  %v4005_v28 = vld [vmem:[#allocation6 + $0xd40] sm:$0xff] }
 0x26d   :  { %6757 = vmatpush2.bf16.msra.mxu1 %v17385_v25  ;;  %6717 = vmatprep.subr.bf16.mxu0 %v17250_v33  ;;  %v17593_v25 = vcombine.low %v4021_v3, %v4025_v4  ;;  %v20526_v33 = vpack.c.bf16 %v20015_v17, %v20015_v17  ;;  %v4009_v31 = vld [vmem:[#allocation6 + $0xd60] sm:$0xff] }
 0x26e   :  { %6758 = vmatprep.subr.bf16.mxu1 %v17378_v29  ;;  %v3881_v29 = vld [vmem:[#allocation6 + $0x960] sm:$0xff]  ;;  %v17578_v42 = vcombine.high %v4005_v28, %v4009_v31  ;;  %v17577_v48 = vcombine.low %v4005_v28, %v4009_v31  ;;  %v20539_v28 = vld [vmem:[#allocation6 + $0x5e8] sm:$0xff] }
 0x26f   :  { %v3869_v36 = vld [vmem:[#allocation6 + $0x900] sm:$0xff] }
 0x270   :  { %6718 = vmatpush2.bf16.msra.mxu0 %v17249_v32  ;;  %v17457_v32 = vcombine.low %v3885_v16, %v3889_v14  ;;  %v3873_v40 = vld [vmem:[#allocation6 + $0x920] sm:$0xff] }
 0x271   :  { %6759 = vmatpush2.bf16.msra.mxu1 %v17377_v34  ;;  %6719 = vmatprep.subr.bf16.mxu0 %v17242_v19  ;;  %v17450_v34 = vcombine.high %v3877_v26, %v3881_v29  ;;  %v17585_v19 = vcombine.low %v4013_v18, %v4017_v20  ;;  %v3997_v38 = vld [vmem:[#allocation6 + $0xd00] sm:$0xff] }
 0x272   :  { %6760 = vmatprep.subr.bf16.mxu1 %v17370_v35  ;;  %v3861_v51 = vld [vmem:[#allocation6 + $0x8c0] sm:$0xff] }
 0x273   :  { %v3865_v52 = vld [vmem:[#allocation6 + $0x8e0] sm:$0xff] }
 0x274   :  { %6720 = vmatpush2.bf16.msra.mxu0 %v17241_v0  ;;  %v4001_v0 = vld [vmem:[#allocation6 + $0xd20] sm:$0xff]  ;;  %v17434_v55 = vcombine.high %v3861_v51, %v3865_v52 }
 0x275   :  { %6761 = vmatpush2.bf16.msra.mxu1 %v17369_v43  ;;  %6721 = vmatprep.subr.bf16.mxu0 %v17234_v44  ;;  %v17449_v44 = vcombine.low %v3877_v26, %v3881_v29  ;;  %v17569_v57 = vcombine.low %v3997_v38, %v4001_v0  ;;  %v3853_v30 = vld [vmem:[#allocation6 + $0x880] sm:$0xff] }
 0x276   :  { %6762 = vmatprep.subr.bf16.mxu1 %v17362_v2  ;;  %v17442_v2 = vcombine.high %v3869_v36, %v3873_v40  ;;  %v3857_v61 = vld [vmem:[#allocation6 + $0x8a0] sm:$0xff] }
 0x277   :  { %v17426_v5 = vcombine.high %v3853_v30, %v3857_v61  ;;  %v3845_v3 = vld [vmem:[#allocation6 + $0x840] sm:$0xff]  ;;  %v17425_v10 = vcombine.low %v3853_v30, %v3857_v61 }
 0x278   :  { %6722 = vmatpush2.bf16.msra.mxu0 %v17233_v53  ;;  %v17570_v53 = vcombine.high %v3997_v38, %v4001_v0  ;;  %v3849_v4 = vld [vmem:[#allocation6 + $0x860] sm:$0xff] }
 0x279   :  { %6763 = vmatpush2.bf16.msra.mxu1 %v17361_v58  ;;  %6723 = vmatprep.subr.bf16.mxu0 %v17226_v54  ;;  %v3989_v58 = vld [vmem:[#allocation6 + $0xcc0] sm:$0xff]  ;;  %v17418_v16 = vcombine.high %v3845_v3, %v3849_v4 }
 0x27a   :  { %6764 = vmatprep.subr.bf16.mxu1 %v17354_v24  ;;  %v3993_v54 = vld [vmem:[#allocation6 + $0xce0] sm:$0xff]  ;;  %v17441_v24 = vcombine.low %v3869_v36, %v3873_v40 }
 0x27b   :  { %v17561_v1 = vcombine.low %v3989_v58, %v3993_v54  ;;  %v3841_v17 = vld [vmem:[#allocation6 + $0x820] sm:$0xff] }
 0x27c   :  { %6724 = vmatpush2.bf16.msra.mxu0 %v17225_v47  ;;  %v17562_v47 = vcombine.high %v3989_v58, %v3993_v54  ;;  %v3965_v20 = vld [vmem:[#allocation6 + $0xc00] sm:$0xff] }
 0x27d   :  { %6765 = vmatpush2.bf16.msra.mxu1 %v17353_v62  ;;  %6725 = vmatprep.subr.bf16.mxu0 %v17218_v63  ;;  %v3981_v62 = vld [vmem:[#allocation6 + $0xc80] sm:$0xff] }
 0x27e   :  { %6766 = vmatprep.subr.bf16.mxu1 %v17346_v39  ;;  %v3985_v63 = vld [vmem:[#allocation6 + $0xca0] sm:$0xff]  ;;  %v17433_v39 = vcombine.low %v3861_v51, %v3865_v52 }
 0x27f   :  { %v17553_v14 = vcombine.low %v3981_v62, %v3985_v63  ;;  %v3957_v31 = vld [vmem:[#allocation6 + $0xbc0] sm:$0xff] }
 0x280   :  { %6726 = vmatpush2.bf16.msra.mxu0 %v17217_v8  ;;  %v17554_v8 = vcombine.high %v3981_v62, %v3985_v63  ;;  %v4089_v36 = vld [vmem:[#allocation6 + $0xfe0] sm:$0xff] }
 0x281   :  { %6767 = vmatpush2.bf16.msra.mxu1 %v17345_v37  ;;  %6777 = vmatprep.subr.bf16.mxu0 %v17466_v46  ;;  %v3973_v37 = vld [vmem:[#allocation6 + $0xc40] sm:$0xff] }
 0x282   :  { %6818 = vmatprep.subr.bf16.mxu1 %v17594_v15  ;;  %v3977_v46 = vld [vmem:[#allocation6 + $0xc60] sm:$0xff] }
 0x283   :  { %6728 = vmatmul.mubr.bf16.vlgmr.msra.gmra.mxu0 %v20524_v22  ;;  %v3837_v15 = vld [vmem:[#allocation6 + $0x800] sm:$0xff]  ;;  %v17546_v18 = vcombine.high %v3973_v37, %v3977_v46  ;;  %v17545_v29 = vcombine.low %v3973_v37, %v3977_v46 }
 0x284   :  { %v20529_v41 = vpop.f32.mrf.mxu1  ;;  %6769 = vmatmul.mubr.bf16.vlgmr.msra.gmra.mxu1 %v20526_v33  ;;  %6778 = vmatpush1.bf16.msra.mxu0 %v17465_v21  ;;  %v3969_v21 = vld [vmem:[#allocation6 + $0xc20] sm:$0xff]  ;;  %v17410_v26 = vcombine.high %v3837_v15, %v3841_v17  ;;  %v17409_v0 = vcombine.low %v3837_v15, %v3841_v17 }
 0x285   :  { %6779 = vmatprep.subr.bf16.mxu0 %v17458_v23  ;;  %6819 = vmatpush1.bf16.msra.mxu1 %v17593_v25  ;;  %v20535_v23 = vsub.s32 5, %v20438_v60  ;;  %v17417_v25 = vcombine.low %v3845_v3, %v3849_v4  ;;  %v4077_v51 = vld [vmem:[#allocation6 + $0xf80] sm:$0xff] }
 0x286   :  { %v20532_v35 = vpop.f32.mrf.mxu1  ;;  %6820 = vmatprep.subr.bf16.mxu1 %v17586_v27  ;;  %v20537_v27 = vld [vmem:[#allocation6 + $0x5c8] sm:$0xff]  ;;  %v4081_v52 = vld [vmem:[#allocation6 + $0xfa0] sm:$0xff] }
 0x287   :  { %v17339_v40 = vcombine.low %v20537_v27, %v20539_v28  ;;  %v17650_v30 = vcombine.high %v4077_v51, %v4081_v52  ;;  %v4073_v62 = vld [vmem:[#allocation6 + $0xf60] sm:$0xff] }
 0x288   :  { %v3398_v43 = vpop.f32.mrf.mxu1  ;;  %6780 = vmatpush1.bf16.msra.mxu0 %v17457_v32  ;;  %v3961_v32 = vld [vmem:[#allocation6 + $0xbe0] sm:$0xff] }
 0x289   :  { %6781 = vmatprep.subr.bf16.mxu0 %v17450_v34  ;;  %6821 = vmatpush1.bf16.msra.mxu1 %v17585_v19  ;;  %v17538_v34 = vcombine.high %v3965_v20, %v3969_v21  ;;  %v4085_v19 = vld [vmem:[#allocation6 + $0xfc0] sm:$0xff]  ;;  %v17530_v43 = vcombine.high %v3957_v31, %v3961_v32  ;;  %v17529_v58 = vcombine.low %v3957_v31, %v3961_v32 }
 0x28a   :  { %v3399_v50 = vpop.f32.mrf.mxu1  ;;  %6822 = vmatprep.subr.bf16.mxu1 %v17578_v42  ;;  %v20543_v42 = vld [vmem:[#allocation4] sm:$0xff]  ;;  %v3933_v4 = vld [vmem:[#allocation6 + $0xb00] sm:$0xff] }
 0x28b   :  { %v652_v38 = vrot.slane %v20543_v42, %v20535_v23  ;;  %v17658_v50 = vcombine.high %v4085_v19, %v4089_v36  ;;  %v4057_v31 = vld [vmem:[#allocation6 + $0xee0] sm:$0xff] }
 0x28c   :  { %6782 = vmatpush1.bf16.msra.mxu0 %v17449_v44  ;;  %v17537_v44 = vcombine.low %v3965_v20, %v3969_v21  ;;  %v3925_v21 = vld [vmem:[#allocation6 + $0xac0] sm:$0xff] }
 0x28d   :  { %6783 = vmatprep.subr.bf16.mxu0 %v17442_v2  ;;  %6823 = vmatpush1.bf16.msra.mxu1 %v17577_v48  ;;  %v3949_v2 = vld [vmem:[#allocation6 + $0xb80] sm:$0xff] }
 0x28e   :  { %6824 = vmatprep.subr.bf16.mxu1 %v17570_v53  ;;  %v3953_v48 = vld [vmem:[#allocation6 + $0xba0] sm:$0xff]  ;;  %v3274_v53 = vadd.f32 %v20516_v9, %v652_v38 }
 0x28f   :  { %v17522_v54 = vcombine.high %v3949_v2, %v3953_v48 }
 0x290   :  { %6784 = vmatpush1.bf16.msra.mxu0 %v17441_v24  ;;  %v17657_v24 = vcombine.low %v4085_v19, %v4089_v36  ;;  %v3315_v63 = vadd.f32 %v20520_v12, %v3274_v53  ;;  %v3917_v19 = vld [vmem:[#allocation6 + $0xa80] sm:$0xff] }
 0x291   :  { %6785 = vmatprep.subr.bf16.mxu0 %v17434_v55  ;;  %6825 = vmatpush1.bf16.msra.mxu1 %v17569_v57  ;;  %v3941_v55 = vld [vmem:[#allocation6 + $0xb40] sm:$0xff] }
 0x292   :  { %6826 = vmatprep.subr.bf16.mxu1 %v17562_v47  ;;  %v3945_v57 = vld [vmem:[#allocation6 + $0xb60] sm:$0xff] }
 0x293   :  { %v4069_v47 = vld [vmem:[#allocation6 + $0xf40] sm:$0xff]  ;;  %v17514_v9 = vcombine.high %v3941_v55, %v3945_v57  ;;  %v17513_v15 = vcombine.low %v3941_v55, %v3945_v57 }
 0x294   :  { %6786 = vmatpush1.bf16.msra.mxu0 %v17433_v39  ;;  %v17521_v39 = vcombine.low %v3949_v2, %v3953_v48  ;;  %v17642_v37 = vcombine.high %v4069_v47, %v4073_v62  ;;  %v17641_v20 = vcombine.low %v4069_v47, %v4073_v62  ;;  %v3921_v36 = vld [vmem:[#allocation6 + $0xaa0] sm:$0xff] }
 0x295   :  { %6787 = vmatprep.subr.bf16.mxu0 %v17426_v5  ;;  %6827 = vmatpush1.bf16.msra.mxu1 %v17561_v1  ;;  %v17649_v1 = vcombine.low %v4077_v51, %v4081_v52  ;;  %v17490_v2 = vcombine.high %v3917_v19, %v3921_v36  ;;  %v3913_v51 = vld [vmem:[#allocation6 + $0xa60] sm:$0xff] }
 0x296   :  { %6828 = vmatprep.subr.bf16.mxu1 %v17554_v8  ;;  %v3937_v8 = vld [vmem:[#allocation6 + $0xb20] sm:$0xff] }
 0x297   :  { %v17505_v32 = vcombine.low %v3933_v4, %v3937_v8  ;;  %v4037_v52 = vld [vmem:[#allocation6 + $0xe40] sm:$0xff] }
 0x298   :  { %6788 = vmatpush1.bf16.msra.mxu0 %v17425_v10  ;;  %v4061_v10 = vld [vmem:[#allocation6 + $0xf00] sm:$0xff] }
 0x299   :  { %6789 = vmatprep.subr.bf16.mxu0 %v17418_v16  ;;  %6829 = vmatpush1.bf16.msra.mxu1 %v17553_v14  ;;  %v4065_v16 = vld [vmem:[#allocation6 + $0xf20] sm:$0xff] }
 0x29a   :  { %6830 = vmatprep.subr.bf16.mxu1 %v17546_v18  ;;  %v17506_v18 = vcombine.high %v3933_v4, %v3937_v8  ;;  %v4041_v53 = vld [vmem:[#allocation6 + $0xe60] sm:$0xff] }
 0x29b   :  { %v3901_v55 = vld [vmem:[#allocation6 + $0xa00] sm:$0xff] }
 0x29c   :  { %6790 = vmatpush1.bf16.msra.mxu0 %v17417_v25  ;;  %v3929_v25 = vld [vmem:[#allocation6 + $0xae0] sm:$0xff] }
 0x29d   :  { %6791 = vmatprep.subr.bf16.mxu0 %v17410_v26  ;;  %6831 = vmatpush1.bf16.msra.mxu1 %v17545_v29  ;;  %v17634_v26 = vcombine.high %v4061_v10, %v4065_v16  ;;  %v4053_v29 = vld [vmem:[#allocation6 + $0xec0] sm:$0xff] }
 0x29e   :  { %6832 = vmatprep.subr.bf16.mxu1 %v17538_v34  ;;  %v17498_v34 = vcombine.high %v3925_v21, %v3929_v25  ;;  %v17626_v38 = vcombine.high %v4053_v29, %v4057_v31  ;;  %v17625_v48 = vcombine.low %v4053_v29, %v4057_v31  ;;  %v3905_v57 = vld [vmem:[#allocation6 + $0xa20] sm:$0xff] }
 0x29f   :  { %v4029_v47 = vld [vmem:[#allocation6 + $0xe00] sm:$0xff]  ;;  %v17473_v8 = vcombine.low %v3901_v55, %v3905_v57 }
 0x2a0   :  { %6792 = vmatpush1.bf16.msra.mxu0 %v17409_v0  ;;  %v4045_v0 = vld [vmem:[#allocation6 + $0xe80] sm:$0xff] }
 0x2a1   :  { %6793 = vmatprep.subr.bf16.mxu0 %v17530_v43  ;;  %6833 = vmatpush1.bf16.msra.mxu1 %v17537_v44  ;;  %v4049_v43 = vld [vmem:[#allocation6 + $0xea0] sm:$0xff]  ;;  %v17497_v44 = vcombine.low %v3925_v21, %v3929_v25  ;;  %v3626_v21 = vld [vmem:[#allocation6 + $0x168] sm:$0xff] }
 0x2a2   :  { %6834 = vmatprep.subr.bf16.mxu1 %v17658_v50  ;;  %v3909_v50 = vld [vmem:[#allocation6 + $0xa40] sm:$0xff] }
 0x2a3   :  { %v3353_v61 = vpop.f32.mrf.mxu0  ;;  %v4033_v62 = vld [vmem:[#allocation6 + $0xe20] sm:$0xff] }
 0x2a4   :  { %6794 = vmatpush2.bf16.msra.mxu0 %v17529_v58  ;;  %v3354_v12 = vadd.f32 %v3353_v61, %v20518_v11  ;;  %v17633_v11 = vcombine.low %v4061_v10, %v4065_v16  ;;  %v17489_v58 = vcombine.low %v3917_v19, %v3921_v36  ;;  %v17602_v4 = vcombine.high %v4029_v47, %v4033_v62  ;;  %v3630_v16 = vld [vmem:[#allocation6 + $0x188] sm:$0xff] }
 0x2a5   :  { %v3355_v5 = vpop.f32.mrf.mxu0  ;;  %6795 = vmatprep.subr.bf16.mxu0 %v17522_v54  ;;  %6835 = vmatpush2.bf16.msra.mxu1 %v17657_v24  ;;  %v17482_v54 = vcombine.high %v3909_v50, %v3913_v51  ;;  %v17617_v24 = vcombine.low %v4045_v0, %v4049_v43 }
 0x2a6   :  { %v3356_v3 = vadd.f32 %v3355_v5, %v3315_v63  ;;  %6836 = vmatprep.subr.bf16.mxu1 %v17650_v30  ;;  %v17610_v30 = vcombine.high %v4037_v52, %v4041_v53  ;;  %v17474_v5 = vcombine.high %v3901_v55, %v3905_v57 }
 0x2a7   :  { %v3357_v46 = vpop.f32.mrf.mxu0 }
 0x2a8   :  { %v3397_v14 = vadd.f32 %v20532_v35, %v3356_v3  ;;  %6796 = vmatpush2.bf16.msra.mxu0 %v17521_v39  ;;  %v3395_v35 = vadd.f32 %v20529_v41, %v3354_v12  ;;  %v17618_v41 = vcombine.high %v4045_v0, %v4049_v43  ;;  %v17481_v39 = vcombine.low %v3909_v50, %v3913_v51  ;;  %v3642_v3 = vld [vmem:[#allocation6 + $0x1e8] sm:$0xff] }
 0x2a9   :  { %v3358_v17 = vpop.f32.mrf.mxu0  ;;  %6797 = vmatprep.subr.bf16.mxu0 %v17514_v9  ;;  %6837 = vmatpush2.bf16.msra.mxu1 %v17649_v1  ;;  %v17609_v9 = vcombine.low %v4037_v52, %v4041_v53  ;;  %v3638_v1 = vld [vmem:[#allocation6 + $0x1c8] sm:$0xff]  ;;  %v17601_v46 = vcombine.low %v4029_v47, %v4033_v62 }
 0x2aa   :  { %20016 = vtanh.f32 %v3397_v14  ;;  %6838 = vmatprep.subr.bf16.mxu1 %v17642_v37  ;;  %v17212_v37 = vcombine.high %v3638_v1, %v3642_v3  ;;  %v3634_v14 = vld [vmem:[#allocation6 + $0x1a8] sm:$0xff]  ;;  %v17211_v12 = vcombine.low %v3638_v1, %v3642_v3 }
 0x2ab   :  { %20018 = vtanh.f32 %v3395_v35  ;;  %v3618_v35 = vld [vmem:[#allocation6 + $0x128] sm:$0xff] }
 0x2ac   :  { %6798 = vmatpush2.bf16.msra.mxu0 %v17513_v15  ;;  %v17340_v15 = vcombine.high %v20537_v27, %v20539_v28  ;;  %v3610_v0 = vld [vmem:[#allocation6 + $0xe8] sm:$0xff] }
 0x2ad   :  { %6799 = vmatprep.subr.bf16.mxu0 %v17506_v18  ;;  %6839 = vmatpush2.bf16.msra.mxu1 %v17641_v20  ;;  %v17204_v18 = vcombine.high %v3630_v16, %v3634_v14  ;;  %v3622_v20 = vld [vmem:[#allocation6 + $0x148] sm:$0xff] }
 0x2ae   :  { %6840 = vmatprep.subr.bf16.mxu1 %v17634_v26  ;;  %v17203_v26 = vcombine.low %v3630_v16, %v3634_v14  ;;  %v17196_v29 = vcombine.high %v3622_v20, %v3626_v21  ;;  %v3594_v52 = vld [vmem:[#allocation6 + $0x68] sm:$0xff] }
 0x2af   :  { %v3686_v3 = vld [vmem:[#allocation6 + $0x348] sm:$0xff] }
 0x2b0   :  { %6800 = vmatpush2.bf16.msra.mxu0 %v17505_v32  ;;  %v3614_v32 = vld [vmem:[#allocation6 + $0x108] sm:$0xff] }
 0x2b1   :  { %6801 = vmatprep.subr.bf16.mxu0 %v17498_v34  ;;  %6841 = vmatpush2.bf16.msra.mxu1 %v17633_v11  ;;  %v17195_v11 = vcombine.low %v3622_v20, %v3626_v21  ;;  %v17188_v19 = vcombine.high %v3614_v32, %v3618_v35  ;;  %v17187_v43 = vcombine.low %v3614_v32, %v3618_v35  ;;  %v3678_v16 = vld [vmem:[#allocation6 + $0x308] sm:$0xff] }
 0x2b2   :  { %6842 = vmatprep.subr.bf16.mxu1 %v17626_v38  ;;  %v3606_v38 = vld [vmem:[#allocation6 + $0xc8] sm:$0xff] }
 0x2b3   :  { %v17179_v50 = vcombine.low %v3606_v38, %v3610_v0  ;;  %v3682_v14 = vld [vmem:[#allocation6 + $0x328] sm:$0xff] }
 0x2b4   :  { %6802 = vmatpush2.bf16.msra.mxu0 %v17497_v44  ;;  %v17180_v44 = vcombine.high %v3606_v38, %v3610_v0  ;;  %v17252_v20 = vcombine.high %v3678_v16, %v3682_v14  ;;  %v3670_v21 = vld [vmem:[#allocation6 + $0x2c8] sm:$0xff] }
 0x2b5   :  { %6803 = vmatprep.subr.bf16.mxu0 %v17490_v2  ;;  %6843 = vmatpush2.bf16.msra.mxu1 %v17625_v48  ;;  %v3598_v2 = vld [vmem:[#allocation6 + $0x88] sm:$0xff] }
 0x2b6   :  { %6844 = vmatprep.subr.bf16.mxu1 %v17618_v41  ;;  %v3602_v48 = vld [vmem:[#allocation6 + $0xa8] sm:$0xff] }
 0x2b7   :  { %v20017_v61 = vpop.eup %20016  ;;  %v17172_v51 = vcombine.high %v3598_v2, %v3602_v48  ;;  %v3590_v41 = vld [vmem:[#allocation6 + $0x48] sm:$0xff]  ;;  %v17171_v53 = vcombine.low %v3598_v2, %v3602_v48 }
 0x2b8   :  { %v20552_v63 = vpack.c.bf16 %v20017_v61, %v20017_v61  ;;  %6804 = vmatpush2.bf16.msra.mxu0 %v17489_v58  ;;  %v20019_v10 = vpop.eup %20018  ;;  %v17164_v58 = vcombine.high %v3590_v41, %v3594_v52  ;;  %v17163_v55 = vcombine.low %v3590_v41, %v3594_v52  ;;  %v3706_v61 = vld [vmem:[#allocation6 + $0x3e8] sm:$0xff] }
 0x2b9   :  { %6805 = vmatprep.subr.bf16.mxu0 %v17482_v54  ;;  %6845 = vmatpush2.bf16.msra.mxu1 %v17617_v24  ;;  %v20557_v17 = vpack.c.bf16 %v20019_v10, %v20019_v10  ;;  %v3582_v54 = vld [vmem:[#allocation6 + $0x8] sm:$0xff] }
 0x2ba   :  { %6809 = vmatprep.mubr.bf16.mxu0 %v20552_v63  ;;  %6846 = vmatprep.subr.bf16.mxu1 %v17610_v30  ;;  %v3586_v24 = vld [vmem:[#allocation6 + $0x28] sm:$0xff] }
 0x2bb   :  { %v17156_v57 = vcombine.high %v3582_v54, %v3586_v24  ;;  %v3702_v30 = vld [vmem:[#allocation6 + $0x3c8] sm:$0xff]  ;;  %v17155_v47 = vcombine.low %v3582_v54, %v3586_v24 }
 0x2bc   :  { %6806 = vmatpush2.bf16.msra.mxu0 %v17481_v39  ;;  %v17276_v62 = vcombine.high %v3702_v30, %v3706_v61  ;;  %v3694_v39 = vld [vmem:[#allocation6 + $0x388] sm:$0xff] }
 0x2bd   :  { %6807 = vmatprep.subr.bf16.mxu0 %v17474_v5  ;;  %6847 = vmatpush2.bf16.msra.mxu1 %v17609_v9  ;;  %v3698_v5 = vld [vmem:[#allocation6 + $0x3a8] sm:$0xff]  ;;  %v17275_v9 = vcombine.low %v3702_v30, %v3706_v61 }
 0x2be   :  { %6848 = vmatprep.subr.bf16.mxu1 %v17602_v4  ;;  %v17268_v1 = vcombine.high %v3694_v39, %v3698_v5  ;;  %v3690_v4 = vld [vmem:[#allocation6 + $0x368] sm:$0xff] }
 0x2bf   :  { %v17260_v10 = vcombine.high %v3686_v3, %v3690_v4  ;;  %v3662_v35 = vld [vmem:[#allocation6 + $0x288] sm:$0xff] }
 0x2c0   :  { %6808 = vmatpush2.bf16.msra.mxu0 %v17473_v8  ;;  %v3658_v38 = vld [vmem:[#allocation6 + $0x268] sm:$0xff] }
 0x2c1   :  { %6859 = vmatprep.subr.bf16.mxu0 %v17212_v37  ;;  %6849 = vmatpush2.bf16.msra.mxu1 %v17601_v46  ;;  %v17267_v37 = vcombine.low %v3694_v39, %v3698_v5  ;;  %v3650_v2 = vld [vmem:[#allocation6 + $0x228] sm:$0xff] }
 0x2c2   :  { %6900 = vmatprep.subr.bf16.mxu1 %v17340_v15  ;;  %v3894_v41 = vld [vmem:[#allocation6 + $0x9c8] sm:$0xff] }
 0x2c3   :  { %6810 = vmatmul.mubr.bf16.vlgmr.msra.gmra.mxu0 %v20557_v17  ;;  %v3898_v52 = vld [vmem:[#allocation6 + $0x9e8] sm:$0xff] }
 0x2c4   :  { %v20560_v25 = vpop.f32.mrf.mxu1  ;;  %6860 = vmatpush1.bf16.msra.mxu0 %v17211_v12  ;;  %6891 = vmatprep.mubr.bf16.mxu0 %v20503_v49  ;;  %v17259_v12 = vcombine.low %v3686_v3, %v3690_v4  ;;  %v17468_v24 = vcombine.high %v3894_v41, %v3898_v52  ;;  %v17467_v61 = vcombine.low %v3894_v41, %v3898_v52  ;;  %v3882_v39 = vld [vmem:[#allocation6 + $0x968] sm:$0xff] }
 0x2c5   :  { %6861 = vmatprep.subr.bf16.mxu0 %v17204_v18  ;;  %v3762_v52 = vld [vmem:[#allocation6 + $0x5a8] sm:$0xff] }
 0x2c6   :  { %v20563_v31 = vpop.f32.mrf.mxu1  ;;  %v3942_v28 = vld [vmem:[#allocation6 + $0xb48] sm:$0xff] }
 0x2c8   :  { %v3439_v34 = vpop.f32.mrf.mxu1  ;;  %6862 = vmatpush1.bf16.msra.mxu0 %v17203_v26  ;;  %v3674_v26 = vld [vmem:[#allocation6 + $0x2e8] sm:$0xff] }
 0x2c9   :  { %6863 = vmatprep.subr.bf16.mxu0 %v17196_v29  ;;  %v17251_v29 = vcombine.low %v3678_v16, %v3682_v14  ;;  %v17244_v32 = vcombine.high %v3670_v21, %v3674_v26  ;;  %v3666_v34 = vld [vmem:[#allocation6 + $0x2a8] sm:$0xff] }
 0x2ca   :  { %v3440_v36 = vpop.f32.mrf.mxu1  ;;  %v17235_v0 = vcombine.low %v3662_v35, %v3666_v34  ;;  %v3870_v14 = vld [vmem:[#allocation6 + $0x908] sm:$0xff] }
 0x2cb   :  { %v3654_v36 = vld [vmem:[#allocation6 + $0x248] sm:$0xff] }
 0x2cc   :  { %6864 = vmatpush1.bf16.msra.mxu0 %v17195_v11  ;;  %v17243_v11 = vcombine.low %v3670_v21, %v3674_v26  ;;  %v17227_v48 = vcombine.low %v3654_v36, %v3658_v38 }
 0x2cd   :  { %6865 = vmatprep.subr.bf16.mxu0 %v17188_v19  ;;  %v17236_v19 = vcombine.high %v3662_v35, %v3666_v34  ;;  %v3866_v35 = vld [vmem:[#allocation6 + $0x8e8] sm:$0xff] }
 0x2d0   :  { %6866 = vmatpush1.bf16.msra.mxu0 %v17187_v43  ;;  %v17228_v43 = vcombine.high %v3654_v36, %v3658_v38  ;;  %v3858_v36 = vld [vmem:[#allocation6 + $0x8a8] sm:$0xff] }
 0x2d1   :  { %6867 = vmatprep.subr.bf16.mxu0 %v17180_v44  ;;  %v3646_v44 = vld [vmem:[#allocation6 + $0x208] sm:$0xff] }
 0x2d4   :  { %6868 = vmatpush1.bf16.msra.mxu0 %v17179_v50  ;;  %v20566_v50 = vsub.s32 6, %v20438_v60 }
 0x2d5   :  { %6869 = vmatprep.subr.bf16.mxu0 %v17172_v51  ;;  %v17220_v51 = vcombine.high %v3646_v44, %v3650_v2 }
 0x2d6   :  { %v656_v54 = vrot.slane %v20543_v42, %v20566_v50 }
 0x2d8   :  { %6870 = vmatpush1.bf16.msra.mxu0 %v17171_v53  ;;  %v20569_v53 = vsub.s32 7, %v20438_v60  ;;  %v3878_v60 = vld [vmem:[#allocation6 + $0x948] sm:$0xff] }
 0x2d9   :  { %6871 = vmatprep.subr.bf16.mxu0 %v17164_v58  ;;  %v17219_v58 = vcombine.low %v3646_v44, %v3650_v2  ;;  %v3850_v44 = vld [vmem:[#allocation6 + $0x868] sm:$0xff] }
 0x2da   :  { %v660_v30 = vrot.slane %v20543_v42, %v20569_v53 }
 0x2dc   :  { %6872 = vmatpush1.bf16.msra.mxu0 %v17163_v55  ;;  %v3886_v55 = vld [vmem:[#allocation6 + $0x988] sm:$0xff]  ;;  %v3438_v5 = vadd.f32 %v20563_v31, %v660_v30 }
 0x2dd   :  { %6873 = vmatprep.subr.bf16.mxu0 %v17156_v57  ;;  %v3890_v57 = vld [vmem:[#allocation6 + $0x9a8] sm:$0xff] }
 0x2de   :  { %v17459_v4 = vcombine.low %v3886_v55, %v3890_v57 }
 0x2e0   :  { %6874 = vmatpush1.bf16.msra.mxu0 %v17155_v47  ;;  %v3436_v47 = vadd.f32 %v20560_v25, %v656_v54  ;;  %v17452_v25 = vcombine.high %v3878_v60, %v3882_v39  ;;  %v3842_v54 = vld [vmem:[#allocation6 + $0x828] sm:$0xff] }
 0x2e1   :  { %6875 = vmatprep.subr.bf16.mxu0 %v17276_v62  ;;  %v17460_v62 = vcombine.high %v3886_v55, %v3890_v57 }
 0x2e3   :  { %v3476_v8 = vpop.f32.mrf.mxu0 }
 0x2e4   :  { %6876 = vmatpush2.bf16.msra.mxu0 %v17275_v9  ;;  %v3477_v9 = vadd.f32 %v3476_v8, %v3436_v47 }
 0x2e5   :  { %v3478_v46 = vpop.f32.mrf.mxu0  ;;  %6877 = vmatprep.subr.bf16.mxu0 %v17268_v1 }
 0x2e6   :  { %v3479_v42 = vadd.f32 %v3478_v46, %v3438_v5  ;;  %v3862_v46 = vld [vmem:[#allocation6 + $0x8c8] sm:$0xff] }
 0x2e7   :  { %v3480_v15 = vpop.f32.mrf.mxu0  ;;  %v17435_v38 = vcombine.low %v3862_v46, %v3866_v35  ;;  %v3754_v5 = vld [vmem:[#allocation6 + $0x568] sm:$0xff] }
 0x2e8   :  { %6878 = vmatpush2.bf16.msra.mxu0 %v17267_v37  ;;  %v3874_v15 = vld [vmem:[#allocation6 + $0x928] sm:$0xff] }
 0x2e9   :  { %v3481_v18 = vpop.f32.mrf.mxu0  ;;  %6879 = vmatprep.subr.bf16.mxu0 %v17260_v10  ;;  %v17443_v34 = vcombine.low %v3870_v14, %v3874_v15 }
 0x2ec   :  { %6880 = vmatpush2.bf16.msra.mxu0 %v17259_v12 }
 0x2ed   :  { %6881 = vmatprep.subr.bf16.mxu0 %v17252_v20  ;;  %v17451_v20 = vcombine.low %v3878_v60, %v3882_v39  ;;  %v3962_v60 = vld [vmem:[#allocation6 + $0xbe8] sm:$0xff] }
 0x2ee   :  { %v3750_v39 = vld [vmem:[#allocation6 + $0x548] sm:$0xff] }
 0x2f0   :  { %6882 = vmatpush2.bf16.msra.mxu0 %v17251_v29  ;;  %v17444_v29 = vcombine.high %v3870_v14, %v3874_v15  ;;  %v17323_v14 = vcombine.low %v3750_v39, %v3754_v5 }
 0x2f1   :  { %6883 = vmatprep.subr.bf16.mxu0 %v17244_v32 }
 0x2f4   :  { %6884 = vmatpush2.bf16.msra.mxu0 %v17243_v11  ;;  %v17436_v11 = vcombine.high %v3862_v46, %v3866_v35  ;;  %v3730_v46 = vld [vmem:[#allocation6 + $0x4a8] sm:$0xff] }
 0x2f5   :  { %6885 = vmatprep.subr.bf16.mxu0 %v17236_v19  ;;  %v3854_v19 = vld [vmem:[#allocation6 + $0x888] sm:$0xff] }
 0x2f6   :  { %v17427_v2 = vcombine.low %v3854_v19, %v3858_v36 }
 0x2f8   :  { %6886 = vmatpush2.bf16.msra.mxu0 %v17235_v0  ;;  %v17428_v0 = vcombine.high %v3854_v19, %v3858_v36  ;;  %v3926_v36 = vld [vmem:[#allocation6 + $0xac8] sm:$0xff] }
 0x2f9   :  { %6887 = vmatprep.subr.bf16.mxu0 %v17228_v43  ;;  %v3846_v43 = vld [vmem:[#allocation6 + $0x848] sm:$0xff] }
 0x2fa   :  { %v17419_v55 = vcombine.low %v3846_v43, %v3850_v44 }
 0x2fc   :  { %6888 = vmatpush2.bf16.msra.mxu0 %v17227_v48  ;;  %v17420_v48 = vcombine.high %v3846_v43, %v3850_v44  ;;  %v3722_v43 = vld [vmem:[#allocation6 + $0x468] sm:$0xff] }
 0x2fd   :  { %6889 = vmatprep.subr.bf16.mxu0 %v17220_v51  ;;  %v3758_v51 = vld [vmem:[#allocation6 + $0x588] sm:$0xff] }
 0x300   :  { %6890 = vmatpush2.bf16.msra.mxu0 %v17219_v58  ;;  %v3838_v58 = vld [vmem:[#allocation6 + $0x808] sm:$0xff] }
 0x301   :  { %6941 = vmatprep.subr.bf16.mxu0 %v17468_v24  ;;  %v17412_v47 = vcombine.high %v3838_v58, %v3842_v54 }
 0x303   :  { %v3558_v1 = vpop.f32.mrf.mxu0  ;;  %6892 = vmatmul.mubr.bf16.vlgmr.msra.gmra.mxu0 %v20524_v22 }
 0x304   :  { %v3517_v3 = vpop.f32.mrf.mxu1  ;;  %6942 = vmatpush1.bf16.msra.mxu0 %v17467_v61  ;;  %6973 = vmatprep.mubr.bf16.mxu0 %v20552_v63  ;;  %v17332_v61 = vcombine.high %v3758_v51, %v3762_v52 }
 0x305   :  { %v3518_v37 = vadd.f32 %v3517_v3, %v3477_v9  ;;  %v3560_v10 = vpop.f32.mrf.mxu0  ;;  %6943 = vmatprep.subr.bf16.mxu0 %v17460_v62  ;;  %v3958_v62 = vld [vmem:[#allocation6 + $0xbc8] sm:$0xff]  ;;  %v17411_v9 = vcombine.low %v3838_v58, %v3842_v54 }
 0x306   :  { %v3519_v16 = vpop.f32.mrf.mxu1  ;;  %v17532_v3 = vcombine.high %v3958_v62, %v3962_v60  ;;  %v3710_v58 = vld [vmem:[#allocation6 + $0x408] sm:$0xff] }
 0x307   :  { %v3559_v12 = vadd.f32 %v3558_v1, %v3518_v37  ;;  %v3520_v18 = vadd.f32 %v3519_v16, %v3479_v42  ;;  %v3562_v31 = vpop.f32.mrf.mxu0  ;;  %v17331_v1 = vcombine.low %v3758_v51, %v3762_v52  ;;  %v3950_v42 = vld [vmem:[#allocation6 + $0xb88] sm:$0xff]  ;;  %v17531_v16 = vcombine.low %v3958_v62, %v3962_v60 }
 0x308   :  { %v3521_v8 = vpop.f32.mrf.mxu1  ;;  %6944 = vmatpush1.bf16.msra.mxu0 %v17459_v4  ;;  %v17324_v4 = vcombine.high %v3750_v39, %v3754_v5  ;;  %v3954_v37 = vld [vmem:[#allocation6 + $0xba8] sm:$0xff] }
 0x309   :  { %v3561_v21 = vadd.f32 %v3560_v10, %v3520_v18  ;;  %v3563_v26 = vpop.f32.mrf.mxu0  ;;  %6945 = vmatprep.subr.bf16.mxu0 %v17452_v25  ;;  %20020 = vtanh.f32 %v3559_v12  ;;  %v3742_v10 = vld [vmem:[#allocation6 + $0x508] sm:$0xff]  ;;  %v17524_v15 = vcombine.high %v3950_v42, %v3954_v37  ;;  %v17523_v31 = vcombine.low %v3950_v42, %v3954_v37 }
 0x30a   :  { %v3522_v32 = vpop.f32.mrf.mxu1  ;;  %v3746_v25 = vld [vmem:[#allocation6 + $0x528] sm:$0xff] }
 0x30b   :  { %20022 = vtanh.f32 %v3561_v21  ;;  %v17316_v27 = vcombine.high %v3742_v10, %v3746_v25  ;;  %v3734_v12 = vld [vmem:[#allocation6 + $0x4c8] sm:$0xff]  ;;  %v17315_v8 = vcombine.low %v3742_v10, %v3746_v25 }
 0x30c   :  { %6946 = vmatpush1.bf16.msra.mxu0 %v17451_v20  ;;  %v3738_v18 = vld [vmem:[#allocation6 + $0x4e8] sm:$0xff] }
 0x30d   :  { %6947 = vmatprep.subr.bf16.mxu0 %v17444_v29  ;;  %v17308_v21 = vcombine.high %v3734_v12, %v3738_v18  ;;  %v3934_v26 = vld [vmem:[#allocation6 + $0xb08] sm:$0xff] }
 0x30e   :  { %v3938_v29 = vld [vmem:[#allocation6 + $0xb28] sm:$0xff] }
 0x30f   :  { %v3726_v32 = vld [vmem:[#allocation6 + $0x488] sm:$0xff]  ;;  %v17507_v44 = vcombine.low %v3934_v26, %v3938_v29 }
 0x310   :  { %6948 = vmatpush1.bf16.msra.mxu0 %v17443_v34  ;;  %v17307_v34 = vcombine.low %v3734_v12, %v3738_v18  ;;  %v17300_v19 = vcombine.high %v3726_v32, %v3730_v46  ;;  %v3922_v52 = vld [vmem:[#allocation6 + $0xaa8] sm:$0xff] }
 0x311   :  { %6949 = vmatprep.subr.bf16.mxu0 %v17436_v11  ;;  %v17508_v11 = vcombine.high %v3934_v26, %v3938_v29  ;;  %v3714_v54 = vld [vmem:[#allocation6 + $0x428] sm:$0xff]  ;;  %v3631_v29 = vld [vmem:[#allocation6 + $0x190] sm:$0xff] }
 0x312   :  { %v3910_v62 = vld [vmem:[#allocation6 + $0xa48] sm:$0xff] }
 0x313   :  { %v3914_v60 = vld [vmem:[#allocation6 + $0xa68] sm:$0xff] }
 0x314   :  { %6950 = vmatpush1.bf16.msra.mxu0 %v17435_v38  ;;  %v3930_v38 = vld [vmem:[#allocation6 + $0xae8] sm:$0xff] }
 0x315   :  { %6951 = vmatprep.subr.bf16.mxu0 %v17428_v0  ;;  %v3718_v0 = vld [vmem:[#allocation6 + $0x448] sm:$0xff] }
 0x316   :  { %v20021_v41 = vpop.eup %20020  ;;  %v17292_v51 = vcombine.high %v3718_v0, %v3722_v43  ;;  %v3830_v39 = vld [vmem:[#allocation6 + $0x7c8] sm:$0xff] }
 0x317   :  { %v20581_v30 = vpack.c.bf16 %v20021_v41, %v20021_v41  ;;  %v3918_v41 = vld [vmem:[#allocation6 + $0xa88] sm:$0xff] }
 0x318   :  { %v20023_v24 = vpop.eup %20022  ;;  %6952 = vmatpush1.bf16.msra.mxu0 %v17427_v2  ;;  %v17299_v2 = vcombine.low %v3726_v32, %v3730_v46  ;;  %v3834_v5 = vld [vmem:[#allocation6 + $0x7e8] sm:$0xff]  ;;  %v3635_v32 = vld [vmem:[#allocation6 + $0x1b0] sm:$0xff] }
 0x319   :  { %v20579_v57 = vpack.c.bf16 %v20023_v24, %v20023_v24  ;;  %6953 = vmatprep.subr.bf16.mxu0 %v17420_v48  ;;  %v17500_v48 = vcombine.high %v3926_v36, %v3930_v38  ;;  %v17499_v24 = vcombine.low %v3926_v36, %v3930_v38  ;;  %v3902_v42 = vld [vmem:[#allocation6 + $0xa08] sm:$0xff]  ;;  %v17206_v36 = vcombine.high %v3631_v29, %v3635_v32 }
 0x31a   :  { %v3906_v37 = vld [vmem:[#allocation6 + $0xa28] sm:$0xff] }
 0x31b   :  { %6850 = vmatprep.mubr.bf16.mxu1 %v20579_v57  ;;  %v3822_v10 = vld [vmem:[#allocation6 + $0x788] sm:$0xff] }
 0x31c   :  { %6851 = vmatmul.mubr.bf16.vlgmr.msra.gmra.mxu1 %v20581_v30  ;;  %6954 = vmatpush1.bf16.msra.mxu0 %v17419_v55  ;;  %v17291_v55 = vcombine.low %v3718_v0, %v3722_v43  ;;  %v3826_v25 = vld [vmem:[#allocation6 + $0x7a8] sm:$0xff]  ;;  %v3623_v43 = vld [vmem:[#allocation6 + $0x150] sm:$0xff] }
 0x31d   :  { %6901 = vmatpush1.bf16.msra.mxu1 %v17339_v40  ;;  %6932 = vmatprep.mubr.bf16.mxu1 %v20506_v59  ;;  %v3946_v40 = vld [vmem:[#allocation6 + $0xb68] sm:$0xff] }
 0x31e   :  { %6902 = vmatprep.subr.bf16.mxu1 %v17332_v61  ;;  %6955 = vmatprep.subr.bf16.mxu0 %v17412_v47  ;;  %v17516_v20 = vcombine.high %v3942_v28, %v3946_v40  ;;  %v17515_v35 = vcombine.low %v3942_v28, %v3946_v40  ;;  %v17492_v61 = vcombine.high %v3918_v41, %v3922_v52  ;;  %v3639_v28 = vld [vmem:[#allocation6 + $0x1d0] sm:$0xff]  ;;  %v3814_v12 = vld [vmem:[#allocation6 + $0x748] sm:$0xff] }
 0x31f   :  { %v17284_v47 = vcombine.high %v3710_v58, %v3714_v54  ;;  %v3643_v40 = vld [vmem:[#allocation6 + $0x1f0] sm:$0xff]  ;;  %v3818_v18 = vld [vmem:[#allocation6 + $0x768] sm:$0xff] }
 0x320   :  { %6956 = vmatpush1.bf16.msra.mxu0 %v17411_v9  ;;  %v17491_v9 = vcombine.low %v3918_v41, %v3922_v52  ;;  %v17388_v26 = vcombine.high %v3814_v12, %v3818_v18  ;;  %v3806_v46 = vld [vmem:[#allocation6 + $0x708] sm:$0xff] }
 0x321   :  { %6903 = vmatpush1.bf16.msra.mxu1 %v17331_v1  ;;  %6957 = vmatprep.subr.bf16.mxu0 %v17532_v3  ;;  %v17283_v1 = vcombine.low %v3710_v58, %v3714_v54  ;;  %v17484_v3 = vcombine.high %v3910_v62, %v3914_v60  ;;  %v17205_v58 = vcombine.low %v3631_v29, %v3635_v32  ;;  %v3774_v29 = vld [vmem:[#allocation6 + $0x608] sm:$0xff] }
 0x322   :  { %6904 = vmatprep.subr.bf16.mxu1 %v17324_v4  ;;  %v17404_v4 = vcombine.high %v3830_v39, %v3834_v5  ;;  %v3778_v32 = vld [vmem:[#allocation6 + $0x628] sm:$0xff] }
 0x324   :  { %6958 = vmatpush2.bf16.msra.mxu0 %v17531_v16  ;;  %v17483_v16 = vcombine.low %v3910_v62, %v3914_v60 }
 0x325   :  { %6905 = vmatpush1.bf16.msra.mxu1 %v17323_v14  ;;  %6959 = vmatprep.subr.bf16.mxu0 %v17524_v15  ;;  %v17403_v14 = vcombine.low %v3830_v39, %v3834_v5  ;;  %v17476_v15 = vcombine.high %v3902_v42, %v3906_v37  ;;  %v3615_v39 = vld [vmem:[#allocation6 + $0x110] sm:$0xff] }
 0x326   :  { %6906 = vmatprep.subr.bf16.mxu1 %v17316_v27  ;;  %v17396_v27 = vcombine.high %v3822_v10, %v3826_v25  ;;  %v3619_v5 = vld [vmem:[#allocation6 + $0x130] sm:$0xff] }
 0x328   :  { %6960 = vmatpush2.bf16.msra.mxu0 %v17523_v31  ;;  %v17475_v31 = vcombine.low %v3902_v42, %v3906_v37 }
 0x329   :  { %6907 = vmatpush1.bf16.msra.mxu1 %v17315_v8  ;;  %6961 = vmatprep.subr.bf16.mxu0 %v17516_v20  ;;  %v17395_v8 = vcombine.low %v3822_v10, %v3826_v25  ;;  %v4093_v20 = vld [vmem:[#allocation7] sm:$0xff] }
 0x32a   :  { %6908 = vmatprep.subr.bf16.mxu1 %v17308_v21  ;;  %v17214_v21 = vcombine.high %v3639_v28, %v3643_v40  ;;  %v4102_v38 = vrot.slane %v4093_v20, %v20444_v13 }
 0x32c   :  { %6962 = vmatpush2.bf16.msra.mxu0 %v17515_v35  ;;  %v3810_v35 = vld [vmem:[#allocation6 + $0x728] sm:$0xff] }
 0x32d   :  { %6909 = vmatpush1.bf16.msra.mxu1 %v17307_v34  ;;  %6963 = vmatprep.subr.bf16.mxu0 %v17508_v11  ;;  %v4098_v34 = vrot.slane %v4093_v20, %v20441_v6  ;;  %v17213_v11 = vcombine.low %v3639_v28, %v3643_v40  ;;  %v17380_v0 = vcombine.high %v3806_v46, %v3810_v35  ;;  %v3611_v28 = vld [vmem:[#allocation6 + $0xf0] sm:$0xff]  ;;  %v3782_v40 = vld [vmem:[#allocation6 + $0x648] sm:$0xff] }
 0x32e   :  { %6910 = vmatprep.subr.bf16.mxu1 %v17300_v19  ;;  %v17387_v19 = vcombine.low %v3814_v12, %v3818_v18  ;;  %v3786_v12 = vld [vmem:[#allocation6 + $0x668] sm:$0xff]  ;;  %v17189_v18 = vcombine.low %v3615_v39, %v3619_v5 }
 0x32f   :  { %v17356_v20 = vcombine.high %v3782_v40, %v3786_v12 }
 0x330   :  { %6964 = vmatpush2.bf16.msra.mxu0 %v17507_v44  ;;  %v3627_v44 = vld [vmem:[#allocation6 + $0x170] sm:$0xff] }
 0x331   :  { %6911 = vmatpush1.bf16.msra.mxu1 %v17299_v2  ;;  %6965 = vmatprep.subr.bf16.mxu0 %v17500_v48  ;;  %v3798_v48 = vld [vmem:[#allocation6 + $0x6c8] sm:$0xff]  ;;  %v17197_v37 = vcombine.low %v3623_v43, %v3627_v44 }
 0x332   :  { %6912 = vmatprep.subr.bf16.mxu1 %v17292_v51  ;;  %v3802_v51 = vld [vmem:[#allocation6 + $0x6e8] sm:$0xff] }
 0x333   :  { %v17372_v60 = vcombine.high %v3798_v48, %v3802_v51  ;;  %v17371_v25 = vcombine.low %v3798_v48, %v3802_v51  ;;  %v4014_v51 = vld [vmem:[#allocation6 + $0xd88] sm:$0xff] }
 0x334   :  { %6966 = vmatpush2.bf16.msra.mxu0 %v17499_v24  ;;  %v17379_v24 = vcombine.low %v3806_v46, %v3810_v35  ;;  %v17355_v35 = vcombine.low %v3782_v40, %v3786_v12  ;;  %v3687_v40 = vld [vmem:[#allocation6 + $0x350] sm:$0xff] }
 0x335   :  { %6913 = vmatpush1.bf16.msra.mxu1 %v17291_v55  ;;  %6967 = vmatprep.subr.bf16.mxu0 %v17492_v61  ;;  %v17198_v55 = vcombine.high %v3623_v43, %v3627_v44  ;;  %v17347_v44 = vcombine.low %v3774_v29, %v3778_v32  ;;  %v3691_v12 = vld [vmem:[#allocation6 + $0x370] sm:$0xff] }
 0x336   :  { %6914 = vmatprep.subr.bf16.mxu1 %v17284_v47 }
 0x338   :  { %6968 = vmatpush2.bf16.msra.mxu0 %v17491_v9 }
 0x339   :  { %6915 = vmatpush1.bf16.msra.mxu1 %v17283_v1  ;;  %6969 = vmatprep.subr.bf16.mxu0 %v17484_v3  ;;  %v3790_v1 = vld [vmem:[#allocation6 + $0x688] sm:$0xff] }
 0x33a   :  { %6916 = vmatprep.subr.bf16.mxu1 %v17404_v4  ;;  %v3794_v3 = vld [vmem:[#allocation6 + $0x6a8] sm:$0xff] }
 0x33c   :  { %6970 = vmatpush2.bf16.msra.mxu0 %v17483_v16  ;;  %v17190_v16 = vcombine.high %v3615_v39, %v3619_v5  ;;  %v4006_v39 = vld [vmem:[#allocation6 + $0xd48] sm:$0xff] }
 0x33d   :  { %6917 = vmatpush2.bf16.msra.mxu1 %v17403_v14  ;;  %6971 = vmatprep.subr.bf16.mxu0 %v17476_v15  ;;  %v17364_v15 = vcombine.high %v3790_v1, %v3794_v3  ;;  %v4010_v5 = vld [vmem:[#allocation6 + $0xd68] sm:$0xff] }
 0x33e   :  { %6918 = vmatprep.subr.bf16.mxu1 %v17396_v27  ;;  %v3607_v27 = vld [vmem:[#allocation6 + $0xd0] sm:$0xff] }
 0x33f   :  { %v17181_v46 = vcombine.low %v3607_v27, %v3611_v28 }
 0x340   :  { %6972 = vmatpush2.bf16.msra.mxu0 %v17475_v31  ;;  %v17363_v31 = vcombine.low %v3790_v1, %v3794_v3 }
 0x341   :  { %6919 = vmatpush2.bf16.msra.mxu1 %v17395_v8  ;;  %7023 = vmatprep.subr.bf16.mxu0 %v17214_v21  ;;  %v17182_v8 = vcombine.high %v3607_v27, %v3611_v28  ;;  %v3599_v21 = vld [vmem:[#allocation6 + $0x90] sm:$0xff] }
 0x342   :  { %6920 = vmatprep.subr.bf16.mxu1 %v17388_v26  ;;  %v3603_v26 = vld [vmem:[#allocation6 + $0xb0] sm:$0xff] }
 0x343   :  { %v6729_v2 = vpop.f32.mrf.mxu0  ;;  %6974 = vmatmul.mubr.bf16.vlgmr.msra.gmra.mxu0 %v20557_v17  ;;  %v17173_v43 = vcombine.low %v3599_v21, %v3603_v26 }
 0x344   :  { %v6730_v41 = vadd.f32 %v6729_v2, %v4098_v34  ;;  %v6770_v52 = vpop.f32.mrf.mxu1  ;;  %7024 = vmatpush1.bf16.msra.mxu0 %v17213_v11  ;;  %7055 = vmatprep.mubr.bf16.mxu0 %v20503_v49  ;;  %v17174_v34 = vcombine.high %v3599_v21, %v3603_v26  ;;  %v17348_v11 = vcombine.high %v3774_v29, %v3778_v32  ;;  %v3679_v29 = vld [vmem:[#allocation6 + $0x310] sm:$0xff] }
 0x345   :  { %6921 = vmatpush2.bf16.msra.mxu1 %v17387_v19  ;;  %v6731_v54 = vpop.f32.mrf.mxu0  ;;  %7025 = vmatprep.subr.bf16.mxu0 %v17206_v36  ;;  %v3591_v19 = vld [vmem:[#allocation6 + $0x50] sm:$0xff]  ;;  %v17262_v21 = vcombine.high %v3687_v40, %v3691_v12 }
 0x346   :  { %v20593_v61 = vadd.f32 %v6770_v52, %v6730_v41  ;;  %v6732_v47 = vadd.f32 %v6731_v54, %v4102_v38  ;;  %v6772_v62 = vpop.f32.mrf.mxu1  ;;  %6922 = vmatprep.subr.bf16.mxu1 %v17380_v0  ;;  %v3595_v36 = vld [vmem:[#allocation6 + $0x70] sm:$0xff]  ;;  %v4022_v38 = vld [vmem:[#allocation6 + $0xdc8] sm:$0xff] }
 0x347   :  { %v6733_v9 = vpop.f32.mrf.mxu0  ;;  %v4026_v0 = vld [vmem:[#allocation6 + $0xde8] sm:$0xff]  ;;  %v17166_v2 = vcombine.high %v3591_v19, %v3595_v36  ;;  %v3583_v52 = vld [vmem:[#allocation6 + $0x10] sm:$0xff]  ;;  %v17165_v54 = vcombine.low %v3591_v19, %v3595_v36 }
 0x348   :  { %v20595_v4 = vadd.f32 %v6772_v62, %v6732_v47  ;;  %v6774_v42 = vpop.f32.mrf.mxu1  ;;  %7026 = vmatpush1.bf16.msra.mxu0 %v17205_v58  ;;  %v17596_v48 = vcombine.high %v4022_v38, %v4026_v0  ;;  %v4018_v41 = vld [vmem:[#allocation6 + $0xda8] sm:$0xff]  ;;  %v3587_v58 = vld [vmem:[#allocation6 + $0x30] sm:$0xff] }
 0x349   :  { %6923 = vmatpush2.bf16.msra.mxu1 %v17379_v24  ;;  %v6734_v10 = vpop.f32.mrf.mxu0  ;;  %7027 = vmatprep.subr.bf16.mxu0 %v17198_v55  ;;  %v17595_v24 = vcombine.low %v4022_v38, %v4026_v0  ;;  %v17588_v55 = vcombine.high %v4014_v51, %v4018_v41  ;;  %v17158_v47 = vcombine.high %v3583_v52, %v3587_v58  ;;  %v3703_v62 = vld [vmem:[#allocation6 + $0x3d0] sm:$0xff] }
 0x34a   :  { %v6775_v14 = vpop.f32.mrf.mxu1  ;;  %6924 = vmatprep.subr.bf16.mxu1 %v17372_v60  ;;  %v3707_v60 = vld [vmem:[#allocation6 + $0x3f0] sm:$0xff]  ;;  %v17157_v9 = vcombine.low %v3583_v52, %v3587_v58  ;;  %v17587_v1 = vcombine.low %v4014_v51, %v4018_v41  ;;  %v17580_v42 = vcombine.high %v4006_v39, %v4010_v5 }
 0x34b   :  { %v17278_v3 = vcombine.high %v3703_v62, %v3707_v60  ;;  %v3699_v10 = vld [vmem:[#allocation6 + $0x3b0] sm:$0xff]  ;;  %v17277_v14 = vcombine.low %v3703_v62, %v3707_v60 }
 0x34c   :  { %7028 = vmatpush1.bf16.msra.mxu0 %v17197_v37  ;;  %v3695_v37 = vld [vmem:[#allocation6 + $0x390] sm:$0xff] }
 0x34d   :  { %6925 = vmatpush2.bf16.msra.mxu1 %v17371_v25  ;;  %7029 = vmatprep.subr.bf16.mxu0 %v17190_v16  ;;  %v3998_v25 = vld [vmem:[#allocation6 + $0xd08] sm:$0xff]  ;;  %v17270_v27 = vcombine.high %v3695_v37, %v3699_v10  ;;  %v3683_v32 = vld [vmem:[#allocation6 + $0x330] sm:$0xff] }
 0x34e   :  { %6926 = vmatprep.subr.bf16.mxu1 %v17364_v15  ;;  %v4002_v16 = vld [vmem:[#allocation6 + $0xd28] sm:$0xff]  ;;  %v17579_v15 = vcombine.low %v4006_v39, %v4010_v5  ;;  %v17254_v19 = vcombine.high %v3679_v29, %v3683_v32  ;;  %v3671_v38 = vld [vmem:[#allocation6 + $0x2d0] sm:$0xff] }
 0x34f   :  { %v17572_v28 = vcombine.high %v3998_v25, %v4002_v16  ;;  %v3675_v0 = vld [vmem:[#allocation6 + $0x2f0] sm:$0xff] }
 0x350   :  { %7030 = vmatpush1.bf16.msra.mxu0 %v17189_v18  ;;  %v3990_v18 = vld [vmem:[#allocation6 + $0xcc8] sm:$0xff]  ;;  %v17246_v51 = vcombine.high %v3671_v38, %v3675_v0  ;;  %v3663_v52 = vld [vmem:[#allocation6 + $0x290] sm:$0xff] }
 0x351   :  { %6927 = vmatpush2.bf16.msra.mxu1 %v17363_v31  ;;  %7031 = vmatprep.subr.bf16.mxu0 %v17182_v8  ;;  %v3994_v31 = vld [vmem:[#allocation6 + $0xce8] sm:$0xff]  ;;  %v17269_v8 = vcombine.low %v3695_v37, %v3699_v10  ;;  %v3667_v58 = vld [vmem:[#allocation6 + $0x2b0] sm:$0xff] }
 0x352   :  { %6928 = vmatprep.subr.bf16.mxu1 %v17356_v20  ;;  %v17571_v20 = vcombine.low %v3998_v25, %v4002_v16  ;;  %v17564_v26 = vcombine.high %v3990_v18, %v3994_v31  ;;  %v17238_v62 = vcombine.high %v3663_v52, %v3667_v58  ;;  %v3655_v39 = vld [vmem:[#allocation6 + $0x250] sm:$0xff] }
 0x353   :  { %v3659_v5 = vld [vmem:[#allocation6 + $0x270] sm:$0xff] }
 0x354   :  { %7032 = vmatpush1.bf16.msra.mxu0 %v17181_v46  ;;  %v3982_v46 = vld [vmem:[#allocation6 + $0xc88] sm:$0xff]  ;;  %v17230_v37 = vcombine.high %v3655_v39, %v3659_v5  ;;  %v3647_v25 = vld [vmem:[#allocation6 + $0x210] sm:$0xff] }
 0x355   :  { %6929 = vmatpush2.bf16.msra.mxu1 %v17355_v35  ;;  %7033 = vmatprep.subr.bf16.mxu0 %v17174_v34  ;;  %v3986_v35 = vld [vmem:[#allocation6 + $0xca8] sm:$0xff]  ;;  %v17261_v34 = vcombine.low %v3687_v40, %v3691_v12  ;;  %v3651_v16 = vld [vmem:[#allocation6 + $0x230] sm:$0xff] }
 0x356   :  { %6930 = vmatprep.subr.bf16.mxu1 %v17348_v11  ;;  %v17563_v11 = vcombine.low %v3990_v18, %v3994_v31  ;;  %v17556_v36 = vcombine.high %v3982_v46, %v3986_v35  ;;  %v17222_v40 = vcombine.high %v3647_v25, %v3651_v16  ;;  %v3895_v18 = vld [vmem:[#allocation6 + $0x9d0] sm:$0xff] }
 0x357   :  { %v3899_v31 = vld [vmem:[#allocation6 + $0x9f0] sm:$0xff] }
 0x358   :  { %7034 = vmatpush1.bf16.msra.mxu0 %v17173_v43  ;;  %v3974_v43 = vld [vmem:[#allocation6 + $0xc48] sm:$0xff] }
 0x359   :  { %6931 = vmatpush2.bf16.msra.mxu1 %v17347_v44  ;;  %7035 = vmatprep.subr.bf16.mxu0 %v17166_v2  ;;  %v3978_v44 = vld [vmem:[#allocation6 + $0xc68] sm:$0xff]  ;;  %v17253_v2 = vcombine.low %v3679_v29, %v3683_v32  ;;  %v17470_v29 = vcombine.high %v3895_v18, %v3899_v31 }
 0x35a   :  { %6982 = vmatprep.subr.bf16.mxu1 %v17596_v48  ;;  %v17555_v48 = vcombine.low %v3982_v46, %v3986_v35  ;;  %v17548_v41 = vcombine.high %v3974_v43, %v3978_v44  ;;  %v3887_v46 = vld [vmem:[#allocation6 + $0x990] sm:$0xff] }
 0x35b   :  { %v3891_v35 = vld [vmem:[#allocation6 + $0x9b0] sm:$0xff] }
 0x35c   :  { %6933 = vmatmul.mubr.bf16.vlgmr.msra.gmra.mxu1 %v20526_v33  ;;  %7036 = vmatpush1.bf16.msra.mxu0 %v17165_v54  ;;  %v3966_v54 = vld [vmem:[#allocation6 + $0xc08] sm:$0xff] }
 0x35d   :  { %6983 = vmatpush1.bf16.msra.mxu1 %v17595_v24  ;;  %7014 = vmatprep.mubr.bf16.mxu1 %v20579_v57  ;;  %v3970_v24 = vld [vmem:[#allocation6 + $0xc28] sm:$0xff] }
 0x35e   :  { %6984 = vmatprep.subr.bf16.mxu1 %v17588_v55  ;;  %7037 = vmatprep.subr.bf16.mxu0 %v17158_v47  ;;  %v17245_v55 = vcombine.low %v3671_v38, %v3675_v0  ;;  %v17547_v47 = vcombine.low %v3974_v43, %v3978_v44  ;;  %v17540_v60 = vcombine.high %v3966_v54, %v3970_v24  ;;  %v3879_v43 = vld [vmem:[#allocation6 + $0x950] sm:$0xff] }
 0x35f   :  { %v17462_v38 = vcombine.high %v3887_v46, %v3891_v35  ;;  %v3883_v44 = vld [vmem:[#allocation6 + $0x970] sm:$0xff] }
 0x360   :  { %7038 = vmatpush1.bf16.msra.mxu0 %v17157_v9  ;;  %v4086_v9 = vld [vmem:[#allocation6 + $0xfc8] sm:$0xff] }
 0x361   :  { %6985 = vmatpush1.bf16.msra.mxu1 %v17587_v1  ;;  %7039 = vmatprep.subr.bf16.mxu0 %v17278_v3  ;;  %v4090_v1 = vld [vmem:[#allocation6 + $0xfe8] sm:$0xff]  ;;  %v17237_v3 = vcombine.low %v3663_v52, %v3667_v58  ;;  %v17461_v52 = vcombine.low %v3887_v46, %v3891_v35  ;;  %v3767_v46 = vld [vmem:[#allocation6 + $0x5d0] sm:$0xff] }
 0x362   :  { %6986 = vmatprep.subr.bf16.mxu1 %v17580_v42  ;;  %v17539_v42 = vcombine.low %v3966_v54, %v3970_v24  ;;  %v17660_v10 = vcombine.high %v4086_v9, %v4090_v1  ;;  %v17454_v24 = vcombine.high %v3879_v43, %v3883_v44  ;;  %v3771_v35 = vld [vmem:[#allocation6 + $0x5f0] sm:$0xff] }
 0x364   :  { %7040 = vmatpush2.bf16.msra.mxu0 %v17277_v14  ;;  %v4078_v14 = vld [vmem:[#allocation6 + $0xf88] sm:$0xff] }
 0x365   :  { %6987 = vmatpush1.bf16.msra.mxu1 %v17579_v15  ;;  %7041 = vmatprep.subr.bf16.mxu0 %v17270_v27  ;;  %v4082_v15 = vld [vmem:[#allocation6 + $0xfa8] sm:$0xff]  ;;  %v17229_v27 = vcombine.low %v3655_v39, %v3659_v5 }
 0x366   :  { %6988 = vmatprep.subr.bf16.mxu1 %v17572_v28  ;;  %v17659_v28 = vcombine.low %v4086_v9, %v4090_v1  ;;  %v17652_v12 = vcombine.high %v4078_v14, %v4082_v15  ;;  %v4046_v5 = vld [vmem:[#allocation6 + $0xe88] sm:$0xff]  ;;  %v17453_v9 = vcombine.low %v3879_v43, %v3883_v44  ;;  %v3839_v43 = vld [vmem:[#allocation6 + $0x810] sm:$0xff] }
 0x367   :  { %v3843_v44 = vld [vmem:[#allocation6 + $0x830] sm:$0xff] }
 0x368   :  { %7042 = vmatpush2.bf16.msra.mxu0 %v17269_v8  ;;  %v4070_v8 = vld [vmem:[#allocation6 + $0xf48] sm:$0xff] }
 0x369   :  { %6989 = vmatpush1.bf16.msra.mxu1 %v17571_v20  ;;  %7043 = vmatprep.subr.bf16.mxu0 %v17262_v21  ;;  %v4074_v20 = vld [vmem:[#allocation6 + $0xf68] sm:$0xff]  ;;  %v17221_v21 = vcombine.low %v3647_v25, %v3651_v16  ;;  %v3867_v25 = vld [vmem:[#allocation6 + $0x8f0] sm:$0xff] }
 0x36a   :  { %6990 = vmatprep.subr.bf16.mxu1 %v17564_v26  ;;  %v17651_v26 = vcombine.low %v4078_v14, %v4082_v15  ;;  %v17644_v32 = vcombine.high %v4070_v8, %v4074_v20  ;;  %v4042_v16 = vld [vmem:[#allocation6 + $0xe68] sm:$0xff] }
 0x36c   :  { %7044 = vmatpush2.bf16.msra.mxu0 %v17261_v34  ;;  %v4062_v34 = vld [vmem:[#allocation6 + $0xf08] sm:$0xff] }
 0x36d   :  { %6991 = vmatpush1.bf16.msra.mxu1 %v17563_v11  ;;  %7045 = vmatprep.subr.bf16.mxu0 %v17254_v19  ;;  %v4066_v11 = vld [vmem:[#allocation6 + $0xf28] sm:$0xff]  ;;  %v17469_v19 = vcombine.low %v3895_v18, %v3899_v31 }
 0x36e   :  { %6992 = vmatprep.subr.bf16.mxu1 %v17556_v36  ;;  %v17643_v36 = vcombine.low %v4070_v8, %v4074_v20  ;;  %v17636_v0 = vcombine.high %v4062_v34, %v4066_v11  ;;  %v17635_v54 = vcombine.low %v4062_v34, %v4066_v11  ;;  %v4030_v18 = vld [vmem:[#allocation6 + $0xe08] sm:$0xff] }
 0x36f   :  { %v4034_v31 = vld [vmem:[#allocation6 + $0xe28] sm:$0xff] }
 0x370   :  { %7046 = vmatpush2.bf16.msra.mxu0 %v17253_v2  ;;  %v17603_v11 = vcombine.low %v4030_v18, %v4034_v31 }
 0x371   :  { %6993 = vmatpush1.bf16.msra.mxu1 %v17555_v48  ;;  %7047 = vmatprep.subr.bf16.mxu0 %v17246_v51  ;;  %v4054_v48 = vld [vmem:[#allocation6 + $0xec8] sm:$0xff] }
 0x372   :  { %6994 = vmatprep.subr.bf16.mxu1 %v17548_v41  ;;  %v4058_v51 = vld [vmem:[#allocation6 + $0xee8] sm:$0xff] }
 0x374   :  { %7048 = vmatpush2.bf16.msra.mxu0 %v17245_v55 }
 0x375   :  { %6995 = vmatpush1.bf16.msra.mxu1 %v17547_v47  ;;  %7049 = vmatprep.subr.bf16.mxu0 %v17238_v62  ;;  %v17628_v47 = vcombine.high %v4054_v48, %v4058_v51  ;;  %v3871_v62 = vld [vmem:[#allocation6 + $0x910] sm:$0xff] }
 0x376   :  { %6996 = vmatprep.subr.bf16.mxu1 %v17540_v60  ;;  %v3875_v60 = vld [vmem:[#allocation6 + $0x930] sm:$0xff] }
 0x377   :  { %v17445_v14 = vcombine.low %v3871_v62, %v3875_v60 }
 0x378   :  { %7050 = vmatpush2.bf16.msra.mxu0 %v17237_v3  ;;  %v17627_v3 = vcombine.low %v4054_v48, %v4058_v51  ;;  %v17341_v48 = vcombine.low %v3767_v46, %v3771_v35 }
 0x379   :  { %6997 = vmatpush1.bf16.msra.mxu1 %v17539_v42  ;;  %7051 = vmatprep.subr.bf16.mxu0 %v17230_v37  ;;  %v17446_v42 = vcombine.high %v3871_v62, %v3875_v60  ;;  %v17413_v62 = vcombine.low %v3839_v43, %v3843_v44 }
 0x37a   :  { %6998 = vmatprep.subr.bf16.mxu1 %v17660_v10  ;;  %v3863_v10 = vld [vmem:[#allocation6 + $0x8d0] sm:$0xff] }
 0x37b   :  { %v17437_v8 = vcombine.low %v3863_v10, %v3867_v25 }
 0x37c   :  { %7052 = vmatpush2.bf16.msra.mxu0 %v17229_v27  ;;  %v17438_v27 = vcombine.high %v3863_v10, %v3867_v25 }
 0x37d   :  { %6999 = vmatpush2.bf16.msra.mxu1 %v17659_v28  ;;  %7053 = vmatprep.subr.bf16.mxu0 %v17222_v40  ;;  %v3855_v40 = vld [vmem:[#allocation6 + $0x890] sm:$0xff] }
 0x37e   :  { %7000 = vmatprep.subr.bf16.mxu1 %v17652_v12  ;;  %v3859_v12 = vld [vmem:[#allocation6 + $0x8b0] sm:$0xff] }
 0x37f   :  { %v17429_v34 = vcombine.low %v3855_v40, %v3859_v12 }
 0x380   :  { %7054 = vmatpush2.bf16.msra.mxu0 %v17221_v21  ;;  %v17430_v21 = vcombine.high %v3855_v40, %v3859_v12 }
 0x381   :  { %7001 = vmatpush2.bf16.msra.mxu1 %v17651_v26  ;;  %7105 = vmatprep.subr.bf16.mxu0 %v17470_v29  ;;  %v17604_v26 = vcombine.high %v4030_v18, %v4034_v31  ;;  %v3847_v29 = vld [vmem:[#allocation6 + $0x850] sm:$0xff] }
 0x382   :  { %7002 = vmatprep.subr.bf16.mxu1 %v17644_v32  ;;  %v3851_v32 = vld [vmem:[#allocation6 + $0x870] sm:$0xff] }
 0x383   :  { %v6811_v2 = vpop.f32.mrf.mxu0  ;;  %7056 = vmatmul.mubr.bf16.vlgmr.msra.gmra.mxu0 %v20524_v22  ;;  %v3935_v18 = vld [vmem:[#allocation6 + $0xb10] sm:$0xff] }
 0x384   :  { %v20601_v41 = vadd.f32 %v6811_v2, %v20593_v61  ;;  %7106 = vmatpush1.bf16.msra.mxu0 %v17469_v19  ;;  %7137 = vmatprep.mubr.bf16.mxu0 %v20552_v63  ;;  %v4050_v61 = vld [vmem:[#allocation6 + $0xea8] sm:$0xff]  ;;  %v17422_v19 = vcombine.high %v3847_v29, %v3851_v32  ;;  %v17421_v2 = vcombine.low %v3847_v29, %v3851_v32  ;;  %v3939_v31 = vld [vmem:[#allocation6 + $0xb30] sm:$0xff] }
 0x385   :  { %7003 = vmatpush2.bf16.msra.mxu1 %v17643_v36  ;;  %v6813_v58 = vpop.f32.mrf.mxu0  ;;  %7107 = vmatprep.subr.bf16.mxu0 %v17462_v38  ;;  %v17620_v37 = vcombine.high %v4046_v5, %v4050_v61  ;;  %v17619_v15 = vcombine.low %v4046_v5, %v4050_v61  ;;  %v17342_v36 = vcombine.high %v3767_v46, %v3771_v35  ;;  %v3759_v38 = vld [vmem:[#allocation6 + $0x590] sm:$0xff] }
 0x386   :  { %v20605_v55 = vadd.f32 %v6813_v58, %v20595_v4  ;;  %7004 = vmatprep.subr.bf16.mxu1 %v17636_v0  ;;  %v4038_v4 = vld [vmem:[#allocation6 + $0xe48] sm:$0xff]  ;;  %v3763_v0 = vld [vmem:[#allocation6 + $0x5b0] sm:$0xff]  ;;  %v17510_v29 = vcombine.high %v3935_v18, %v3939_v31 }
 0x387   :  { %v6815_v39 = vpop.f32.mrf.mxu0  ;;  %v17612_v28 = vcombine.high %v4038_v4, %v4042_v16  ;;  %v17611_v20 = vcombine.low %v4038_v4, %v4042_v16  ;;  %v17334_v51 = vcombine.high %v3759_v38, %v3763_v0  ;;  %v3959_v58 = vld [vmem:[#allocation6 + $0xbd0] sm:$0xff]  ;;  %v17333_v60 = vcombine.low %v3759_v38, %v3763_v0 }
 0x388   :  { %7108 = vmatpush1.bf16.msra.mxu0 %v17461_v52  ;;  %v17414_v52 = vcombine.high %v3839_v43, %v3843_v44  ;;  %v3951_v61 = vld [vmem:[#allocation6 + $0xb90] sm:$0xff] }
 0x389   :  { %7005 = vmatpush2.bf16.msra.mxu1 %v17635_v54  ;;  %v6816_v1 = vpop.f32.mrf.mxu0  ;;  %7109 = vmatprep.subr.bf16.mxu0 %v17454_v24  ;;  %v3963_v54 = vld [vmem:[#allocation6 + $0xbf0] sm:$0xff] }
 0x38a   :  { %7006 = vmatprep.subr.bf16.mxu1 %v17628_v47  ;;  %v3751_v24 = vld [vmem:[#allocation6 + $0x550] sm:$0xff]  ;;  %v17534_v39 = vcombine.high %v3959_v58, %v3963_v54 }
 0x38b   :  { %v3755_v47 = vld [vmem:[#allocation6 + $0x570] sm:$0xff] }
 0x38c   :  { %7110 = vmatpush1.bf16.msra.mxu0 %v17453_v9  ;;  %v17326_v5 = vcombine.high %v3751_v24, %v3755_v47  ;;  %v3955_v9 = vld [vmem:[#allocation6 + $0xbb0] sm:$0xff] }
 0x38d   :  { %7007 = vmatpush2.bf16.msra.mxu1 %v17627_v3  ;;  %7111 = vmatprep.subr.bf16.mxu0 %v17446_v42  ;;  %v3743_v1 = vld [vmem:[#allocation6 + $0x510] sm:$0xff]  ;;  %v17533_v42 = vcombine.low %v3959_v58, %v3963_v54  ;;  %v17526_v10 = vcombine.high %v3951_v61, %v3955_v9 }
 0x38e   :  { %7008 = vmatprep.subr.bf16.mxu1 %v17620_v37  ;;  %v3747_v3 = vld [vmem:[#allocation6 + $0x530] sm:$0xff]  ;;  %v17325_v37 = vcombine.low %v3751_v24, %v3755_v47 }
 0x38f   :  { %v17318_v25 = vcombine.high %v3743_v1, %v3747_v3  ;;  %v3943_v4 = vld [vmem:[#allocation6 + $0xb50] sm:$0xff] }
 0x390   :  { %7112 = vmatpush1.bf16.msra.mxu0 %v17445_v14  ;;  %v3947_v16 = vld [vmem:[#allocation6 + $0xb70] sm:$0xff] }
 0x391   :  { %7009 = vmatpush2.bf16.msra.mxu1 %v17619_v15  ;;  %7113 = vmatprep.subr.bf16.mxu0 %v17438_v27  ;;  %v3735_v14 = vld [vmem:[#allocation6 + $0x4d0] sm:$0xff]  ;;  %v17525_v27 = vcombine.low %v3951_v61, %v3955_v9  ;;  %v17518_v40 = vcombine.high %v3943_v4, %v3947_v16 }
 0x392   :  { %7010 = vmatprep.subr.bf16.mxu1 %v17612_v28  ;;  %v3739_v15 = vld [vmem:[#allocation6 + $0x4f0] sm:$0xff]  ;;  %v17317_v28 = vcombine.low %v3743_v1, %v3747_v3 }
 0x393   :  { %v17310_v12 = vcombine.high %v3735_v14, %v3739_v15  ;;  %v3927_v46 = vld [vmem:[#allocation6 + $0xad0] sm:$0xff] }
 0x394   :  { %7114 = vmatpush1.bf16.msra.mxu0 %v17437_v8  ;;  %v3727_v8 = vld [vmem:[#allocation6 + $0x490] sm:$0xff] }
 0x395   :  { %7011 = vmatpush2.bf16.msra.mxu1 %v17611_v20  ;;  %7115 = vmatprep.subr.bf16.mxu0 %v17430_v21  ;;  %v3731_v20 = vld [vmem:[#allocation6 + $0x4b0] sm:$0xff]  ;;  %v17517_v21 = vcombine.low %v3943_v4, %v3947_v16 }
 0x396   :  { %7012 = vmatprep.subr.bf16.mxu1 %v17604_v26  ;;  %v17309_v26 = vcombine.low %v3735_v14, %v3739_v15  ;;  %v17302_v32 = vcombine.high %v3727_v8, %v3731_v20  ;;  %v3931_v35 = vld [vmem:[#allocation6 + $0xaf0] sm:$0xff]  ;;  %v3640_v14 = vld [vmem:[#allocation6 + $0x1d8] sm:$0xff] }
 0x397   :  { %v17502_v38 = vcombine.high %v3927_v46, %v3931_v35  ;;  %v3919_v43 = vld [vmem:[#allocation6 + $0xa90] sm:$0xff]  ;;  %v3644_v15 = vld [vmem:[#allocation6 + $0x1f8] sm:$0xff] }
 0x398   :  { %7116 = vmatpush1.bf16.msra.mxu0 %v17429_v34  ;;  %v3719_v34 = vld [vmem:[#allocation6 + $0x450] sm:$0xff] }
 0x399   :  { %7013 = vmatpush2.bf16.msra.mxu1 %v17603_v11  ;;  %7117 = vmatprep.subr.bf16.mxu0 %v17422_v19  ;;  %v3723_v11 = vld [vmem:[#allocation6 + $0x470] sm:$0xff]  ;;  %v17509_v19 = vcombine.low %v3935_v18, %v3939_v31  ;;  %v17216_v18 = vcombine.high %v3640_v14, %v3644_v15 }
 0x39a   :  { %7064 = vmatprep.subr.bf16.mxu1 %v17342_v36  ;;  %v17301_v36 = vcombine.low %v3727_v8, %v3731_v20  ;;  %v17294_v0 = vcombine.high %v3719_v34, %v3723_v11  ;;  %v3923_v44 = vld [vmem:[#allocation6 + $0xab0] sm:$0xff]  ;;  %v3632_v8 = vld [vmem:[#allocation6 + $0x198] sm:$0xff] }
 0x39b   :  { %v17494_v58 = vcombine.high %v3919_v43, %v3923_v44  ;;  %v3911_v24 = vld [vmem:[#allocation6 + $0xa50] sm:$0xff]  ;;  %v3636_v20 = vld [vmem:[#allocation6 + $0x1b8] sm:$0xff] }
 0x39c   :  { %7015 = vmatmul.mubr.bf16.vlgmr.msra.gmra.mxu1 %v20581_v30  ;;  %7118 = vmatpush1.bf16.msra.mxu0 %v17421_v2  ;;  %v3711_v2 = vld [vmem:[#allocation6 + $0x410] sm:$0xff] }
 0x39d   :  { %7065 = vmatpush1.bf16.msra.mxu1 %v17341_v48  ;;  %7096 = vmatprep.mubr.bf16.mxu1 %v20506_v59  ;;  %v3715_v48 = vld [vmem:[#allocation6 + $0x430] sm:$0xff] }
 0x39e   :  { %7066 = vmatprep.subr.bf16.mxu1 %v17334_v51  ;;  %7119 = vmatprep.subr.bf16.mxu0 %v17414_v52  ;;  %v17501_v51 = vcombine.low %v3927_v46, %v3931_v35  ;;  %v17293_v52 = vcombine.low %v3719_v34, %v3723_v11  ;;  %v17286_v54 = vcombine.high %v3711_v2, %v3715_v48  ;;  %v3915_v47 = vld [vmem:[#allocation6 + $0xa70] sm:$0xff]  ;;  %v3624_v34 = vld [vmem:[#allocation6 + $0x158] sm:$0xff] }
 0x39f   :  { %v17486_v61 = vcombine.high %v3911_v24, %v3915_v47  ;;  %v3903_v1 = vld [vmem:[#allocation6 + $0xa10] sm:$0xff]  ;;  %v17208_v46 = vcombine.high %v3632_v8, %v3636_v20  ;;  %v3628_v11 = vld [vmem:[#allocation6 + $0x178] sm:$0xff] }
 0x3a0   :  { %7120 = vmatpush1.bf16.msra.mxu0 %v17413_v62  ;;  %v3831_v62 = vld [vmem:[#allocation6 + $0x7d0] sm:$0xff] }
 0x3a1   :  { %7067 = vmatpush1.bf16.msra.mxu1 %v17333_v60  ;;  %7121 = vmatprep.subr.bf16.mxu0 %v17534_v39  ;;  %v3835_v60 = vld [vmem:[#allocation6 + $0x7f0] sm:$0xff]  ;;  %v17493_v39 = vcombine.low %v3919_v43, %v3923_v44 }
 0x3a2   :  { %7068 = vmatprep.subr.bf16.mxu1 %v17326_v5  ;;  %v17285_v5 = vcombine.low %v3711_v2, %v3715_v48  ;;  %v17406_v9 = vcombine.high %v3831_v62, %v3835_v60  ;;  %v3907_v3 = vld [vmem:[#allocation6 + $0xa30] sm:$0xff]  ;;  %v17200_v2 = vcombine.high %v3624_v34, %v3628_v11 }
 0x3a3   :  { %v17478_v4 = vcombine.high %v3903_v1, %v3907_v3 }
 0x3a4   :  { %7122 = vmatpush2.bf16.msra.mxu0 %v17533_v42  ;;  %v3823_v42 = vld [vmem:[#allocation6 + $0x790] sm:$0xff] }
 0x3a5   :  { %7069 = vmatpush1.bf16.msra.mxu1 %v17325_v37  ;;  %7123 = vmatprep.subr.bf16.mxu0 %v17526_v10  ;;  %v3827_v37 = vld [vmem:[#allocation6 + $0x7b0] sm:$0xff]  ;;  %v17485_v10 = vcombine.low %v3911_v24, %v3915_v47  ;;  %v17199_v47 = vcombine.low %v3624_v34, %v3628_v11  ;;  %v3588_v34 = vld [vmem:[#allocation6 + $0x38] sm:$0xff] }
 0x3a6   :  { %7070 = vmatprep.subr.bf16.mxu1 %v17318_v25  ;;  %v17405_v25 = vcombine.low %v3831_v62, %v3835_v60  ;;  %v17398_v16 = vcombine.high %v3823_v42, %v3827_v37  ;;  %v3795_v24 = vld [vmem:[#allocation6 + $0x6b0] sm:$0xff] }
 0x3a8   :  { %7124 = vmatpush2.bf16.msra.mxu0 %v17525_v27  ;;  %v3815_v27 = vld [vmem:[#allocation6 + $0x750] sm:$0xff] }
 0x3a9   :  { %7071 = vmatpush1.bf16.msra.mxu1 %v17317_v28  ;;  %7125 = vmatprep.subr.bf16.mxu0 %v17518_v40  ;;  %v3819_v28 = vld [vmem:[#allocation6 + $0x770] sm:$0xff]  ;;  %v17477_v40 = vcombine.low %v3903_v1, %v3907_v3 }
 0x3aa   :  { %7072 = vmatprep.subr.bf16.mxu1 %v17310_v12  ;;  %v17397_v12 = vcombine.low %v3823_v42, %v3827_v37  ;;  %v17390_v31 = vcombine.high %v3815_v27, %v3819_v28  ;;  %v3787_v1 = vld [vmem:[#allocation6 + $0x670] sm:$0xff] }
 0x3ac   :  { %7126 = vmatpush2.bf16.msra.mxu0 %v17517_v21  ;;  %v3807_v21 = vld [vmem:[#allocation6 + $0x710] sm:$0xff] }
 0x3ad   :  { %7073 = vmatpush1.bf16.msra.mxu1 %v17309_v26  ;;  %7127 = vmatprep.subr.bf16.mxu0 %v17510_v29  ;;  %v3811_v26 = vld [vmem:[#allocation6 + $0x730] sm:$0xff]  ;;  %v17215_v29 = vcombine.low %v3640_v14, %v3644_v15 }
 0x3ae   :  { %7074 = vmatprep.subr.bf16.mxu1 %v17302_v32  ;;  %v17389_v32 = vcombine.low %v3815_v27, %v3819_v28  ;;  %v17382_v35 = vcombine.high %v3807_v21, %v3811_v26  ;;  %v17381_v44 = vcombine.low %v3807_v21, %v3811_v26  ;;  %v3779_v14 = vld [vmem:[#allocation6 + $0x630] sm:$0xff] }
 0x3b0   :  { %7128 = vmatpush2.bf16.msra.mxu0 %v17509_v19 }
 0x3b1   :  { %7075 = vmatpush1.bf16.msra.mxu1 %v17301_v36  ;;  %7129 = vmatprep.subr.bf16.mxu0 %v17502_v38  ;;  %v3799_v36 = vld [vmem:[#allocation6 + $0x6d0] sm:$0xff] }
 0x3b2   :  { %7076 = vmatprep.subr.bf16.mxu1 %v17294_v0  ;;  %v3803_v38 = vld [vmem:[#allocation6 + $0x6f0] sm:$0xff]  ;;  %v17207_v0 = vcombine.low %v3632_v8, %v3636_v20 }
 0x3b3   :  { %v17374_v48 = vcombine.high %v3799_v36, %v3803_v38  ;;  %v17373_v60 = vcombine.low %v3799_v36, %v3803_v38  ;;  %v4027_v8 = vld [vmem:[#allocation6 + $0xdf0] sm:$0xff] }
 0x3b4   :  { %7130 = vmatpush2.bf16.msra.mxu0 %v17501_v51  ;;  %v3616_v51 = vld [vmem:[#allocation6 + $0x118] sm:$0xff] }
 0x3b5   :  { %7077 = vmatpush1.bf16.msra.mxu1 %v17293_v52  ;;  %7131 = vmatprep.subr.bf16.mxu0 %v17494_v58  ;;  %v3620_v52 = vld [vmem:[#allocation6 + $0x138] sm:$0xff] }
 0x3b6   :  { %7078 = vmatprep.subr.bf16.mxu1 %v17286_v54  ;;  %v3791_v54 = vld [vmem:[#allocation6 + $0x690] sm:$0xff]  ;;  %v17191_v3 = vcombine.low %v3616_v51, %v3620_v52 }
 0x3b7   :  { %v17365_v42 = vcombine.low %v3791_v54, %v3795_v24 }
 0x3b8   :  { %7132 = vmatpush2.bf16.msra.mxu0 %v17493_v39  ;;  %v17366_v39 = vcombine.high %v3791_v54, %v3795_v24 }
 0x3b9   :  { %7079 = vmatpush1.bf16.msra.mxu1 %v17285_v5  ;;  %7133 = vmatprep.subr.bf16.mxu0 %v17486_v61  ;;  %v3608_v5 = vld [vmem:[#allocation6 + $0xd8] sm:$0xff] }
 0x3ba   :  { %7080 = vmatprep.subr.bf16.mxu1 %v17406_v9  ;;  %v3612_v61 = vld [vmem:[#allocation6 + $0xf8] sm:$0xff]  ;;  %v3783_v9 = vld [vmem:[#allocation6 + $0x650] sm:$0xff] }
 0x3bb   :  { %v17184_v37 = vcombine.high %v3608_v5, %v3612_v61  ;;  %v17183_v15 = vcombine.low %v3608_v5, %v3612_v61  ;;  %v17357_v27 = vcombine.low %v3783_v9, %v3787_v1  ;;  %v3999_v61 = vld [vmem:[#allocation6 + $0xd10] sm:$0xff] }
 0x3bc   :  { %7134 = vmatpush2.bf16.msra.mxu0 %v17485_v10  ;;  %v17358_v10 = vcombine.high %v3783_v9, %v3787_v1  ;;  %v4003_v9 = vld [vmem:[#allocation6 + $0xd30] sm:$0xff] }
 0x3bd   :  { %7081 = vmatpush2.bf16.msra.mxu1 %v17405_v25  ;;  %7135 = vmatprep.subr.bf16.mxu0 %v17478_v4  ;;  %v3600_v25 = vld [vmem:[#allocation6 + $0x98] sm:$0xff] }
 0x3be   :  { %7082 = vmatprep.subr.bf16.mxu1 %v17398_v16  ;;  %v3604_v4 = vld [vmem:[#allocation6 + $0xb8] sm:$0xff]  ;;  %v3775_v16 = vld [vmem:[#allocation6 + $0x610] sm:$0xff] }
 0x3bf   :  { %v17176_v28 = vcombine.high %v3600_v25, %v3604_v4  ;;  %v17175_v20 = vcombine.low %v3600_v25, %v3604_v4  ;;  %v17349_v21 = vcombine.low %v3775_v16, %v3779_v14  ;;  %v3688_v25 = vld [vmem:[#allocation6 + $0x358] sm:$0xff] }
 0x3c0   :  { %7136 = vmatpush2.bf16.msra.mxu0 %v17477_v40  ;;  %v17350_v40 = vcombine.high %v3775_v16, %v3779_v14  ;;  %v3692_v4 = vld [vmem:[#allocation6 + $0x378] sm:$0xff]  ;;  %v3991_v16 = vld [vmem:[#allocation6 + $0xcd0] sm:$0xff] }
 0x3c1   :  { %7083 = vmatpush2.bf16.msra.mxu1 %v17397_v12  ;;  %7187 = vmatprep.subr.bf16.mxu0 %v17216_v18  ;;  %v3592_v12 = vld [vmem:[#allocation6 + $0x58] sm:$0xff]  ;;  %v3995_v14 = vld [vmem:[#allocation6 + $0xcf0] sm:$0xff] }
 0x3c2   :  { %7084 = vmatprep.subr.bf16.mxu1 %v17390_v31  ;;  %v3596_v18 = vld [vmem:[#allocation6 + $0x78] sm:$0xff]  ;;  %v4023_v31 = vld [vmem:[#allocation6 + $0xdd0] sm:$0xff] }
 0x3c3   :  { %v20609_v19 = vpop.f32.mrf.mxu0  ;;  %7138 = vmatmul.mubr.bf16.vlgmr.msra.gmra.mxu0 %v20557_v17  ;;  %v17168_v26 = vcombine.high %v3592_v12, %v3596_v18  ;;  %v17167_v11 = vcombine.low %v3592_v12, %v3596_v18  ;;  %v17597_v36 = vcombine.low %v4023_v31, %v4027_v8  ;;  %v3684_v12 = vld [vmem:[#allocation6 + $0x338] sm:$0xff]  ;;  %v3983_v18 = vld [vmem:[#allocation6 + $0xc90] sm:$0xff] }
 0x3c4   :  { %7188 = vmatpush1.bf16.msra.mxu0 %v17215_v29  ;;  %7219 = vmatprep.mubr.bf16.mxu0 %v20503_v49  ;;  %v17192_v49 = vcombine.high %v3616_v51, %v3620_v52  ;;  %v17598_v29 = vcombine.high %v4023_v31, %v4027_v8  ;;  %v4011_v51 = vld [vmem:[#allocation6 + $0xd70] sm:$0xff]  ;;  %v17263_v8 = vcombine.low %v3688_v25, %v3692_v4 }
 0x3c5   :  { %7085 = vmatpush2.bf16.msra.mxu1 %v17389_v32  ;;  %v20613_v43 = vpop.f32.mrf.mxu0  ;;  %7189 = vmatprep.subr.bf16.mxu0 %v17208_v46  ;;  %v4015_v32 = vld [vmem:[#allocation6 + $0xd90] sm:$0xff] }
 0x3c6   :  { %7086 = vmatprep.subr.bf16.mxu1 %v17382_v35  ;;  %v4019_v46 = vld [vmem:[#allocation6 + $0xdb0] sm:$0xff]  ;;  %v3584_v35 = vld [vmem:[#allocation6 + $0x18] sm:$0xff] }
 0x3c7   :  { %v6897_v58 = vpop.f32.mrf.mxu0  ;;  %v17590_v38 = vcombine.high %v4015_v32, %v4019_v46  ;;  %v17589_v24 = vcombine.low %v4015_v32, %v4019_v46  ;;  %v3987_v31 = vld [vmem:[#allocation6 + $0xcb0] sm:$0xff]  ;;  %v3676_v32 = vld [vmem:[#allocation6 + $0x2f8] sm:$0xff] }
 0x3c8   :  { %7190 = vmatpush1.bf16.msra.mxu0 %v17207_v0  ;;  %v17160_v0 = vcombine.high %v3584_v35, %v3588_v34  ;;  %v17159_v58 = vcombine.low %v3584_v35, %v3588_v34  ;;  %v3975_v46 = vld [vmem:[#allocation6 + $0xc50] sm:$0xff] }
 0x3c9   :  { %7087 = vmatpush2.bf16.msra.mxu1 %v17381_v44  ;;  %v6898_v62 = vpop.f32.mrf.mxu0  ;;  %7191 = vmatprep.subr.bf16.mxu0 %v17200_v2  ;;  %v3704_v44 = vld [vmem:[#allocation6 + $0x3d8] sm:$0xff]  ;;  %v3979_v35 = vld [vmem:[#allocation6 + $0xc70] sm:$0xff] }
 0x3ca   :  { %7088 = vmatprep.subr.bf16.mxu1 %v17374_v48  ;;  %v3708_v2 = vld [vmem:[#allocation6 + $0x3f8] sm:$0xff]  ;;  %v4007_v48 = vld [vmem:[#allocation6 + $0xd50] sm:$0xff] }
 0x3cc   :  { %7192 = vmatpush1.bf16.msra.mxu0 %v17199_v47  ;;  %v17280_v47 = vcombine.high %v3704_v44, %v3708_v2 }
 0x3cd   :  { %7089 = vmatpush2.bf16.msra.mxu1 %v17373_v60  ;;  %7193 = vmatprep.subr.bf16.mxu0 %v17192_v49  ;;  %v17582_v60 = vcombine.high %v4007_v48, %v4011_v51  ;;  %v3696_v49 = vld [vmem:[#allocation6 + $0x398] sm:$0xff] }
 0x3ce   :  { %7090 = vmatprep.subr.bf16.mxu1 %v17366_v39  ;;  %v3700_v39 = vld [vmem:[#allocation6 + $0x3b8] sm:$0xff] }
 0x3d0   :  { %7194 = vmatpush1.bf16.msra.mxu0 %v17191_v3  ;;  %v17581_v3 = vcombine.low %v4007_v48, %v4011_v51  ;;  %v3971_v48 = vld [vmem:[#allocation6 + $0xc30] sm:$0xff] }
 0x3d1   :  { %7091 = vmatpush2.bf16.msra.mxu1 %v17365_v42  ;;  %7195 = vmatprep.subr.bf16.mxu0 %v17184_v37  ;;  %v17272_v42 = vcombine.high %v3696_v49, %v3700_v39 }
 0x3d2   :  { %7092 = vmatprep.subr.bf16.mxu1 %v17358_v10  ;;  %v17574_v10 = vcombine.high %v3999_v61, %v4003_v9 }
 0x3d4   :  { %7196 = vmatpush1.bf16.msra.mxu0 %v17183_v15  ;;  %v17271_v15 = vcombine.low %v3696_v49, %v3700_v39  ;;  %v4091_v49 = vld [vmem:[#allocation6 + $0xff0] sm:$0xff] }
 0x3d5   :  { %7093 = vmatpush2.bf16.msra.mxu1 %v17357_v27  ;;  %7197 = vmatprep.subr.bf16.mxu0 %v17176_v28  ;;  %v17264_v27 = vcombine.high %v3688_v25, %v3692_v4  ;;  %v17566_v28 = vcombine.high %v3991_v16, %v3995_v14 }
 0x3d6   :  { %7094 = vmatprep.subr.bf16.mxu1 %v17350_v40  ;;  %v3680_v40 = vld [vmem:[#allocation6 + $0x318] sm:$0xff] }
 0x3d7   :  { %v17255_v34 = vcombine.low %v3680_v40, %v3684_v12 }
 0x3d8   :  { %7198 = vmatpush1.bf16.msra.mxu0 %v17175_v20  ;;  %v17565_v20 = vcombine.low %v3991_v16, %v3995_v14  ;;  %v3896_v14 = vld [vmem:[#allocation6 + $0x9d8] sm:$0xff] }
 0x3d9   :  { %7095 = vmatpush2.bf16.msra.mxu1 %v17349_v21  ;;  %7199 = vmatprep.subr.bf16.mxu0 %v17168_v26  ;;  %v17256_v21 = vcombine.high %v3680_v40, %v3684_v12  ;;  %v17558_v26 = vcombine.high %v3983_v18, %v3987_v31 }
 0x3da   :  { %7146 = vmatprep.subr.bf16.mxu1 %v17598_v29  ;;  %v3672_v29 = vld [vmem:[#allocation6 + $0x2d8] sm:$0xff] }
 0x3db   :  { %v17247_v51 = vcombine.low %v3672_v29, %v3676_v32 }
 0x3dc   :  { %7097 = vmatmul.mubr.bf16.vlgmr.msra.gmra.mxu1 %v20526_v33  ;;  %v6852_v52 = vpop.f32.mrf.mxu1  ;;  %7200 = vmatpush1.bf16.msra.mxu0 %v17167_v11  ;;  %v17557_v11 = vcombine.low %v3983_v18, %v3987_v31  ;;  %v3888_v31 = vld [vmem:[#allocation6 + $0x998] sm:$0xff] }
 0x3dd   :  { %v20617_v54 = vadd.f32 %v6852_v52, %v20601_v41  ;;  %7147 = vmatpush1.bf16.msra.mxu1 %v17597_v36  ;;  %7178 = vmatprep.mubr.bf16.mxu1 %v20579_v57  ;;  %v17279_v41 = vcombine.low %v3704_v44, %v3708_v2  ;;  %v17248_v36 = vcombine.high %v3672_v29, %v3676_v32  ;;  %v3668_v44 = vld [vmem:[#allocation6 + $0x2b8] sm:$0xff]  ;;  %v3967_v2 = vld [vmem:[#allocation6 + $0xc10] sm:$0xff] }
 0x3de   :  { %v6854_v62 = vpop.f32.mrf.mxu1  ;;  %7148 = vmatprep.subr.bf16.mxu1 %v17590_v38  ;;  %7201 = vmatprep.subr.bf16.mxu0 %v17160_v0  ;;  %v17550_v38 = vcombine.high %v3975_v46, %v3979_v35  ;;  %v3664_v0 = vld [vmem:[#allocation6 + $0x298] sm:$0xff]  ;;  %v17549_v52 = vcombine.low %v3975_v46, %v3979_v35 }
 0x3df   :  { %v20621_v5 = vadd.f32 %v6854_v62, %v20605_v55  ;;  %v17573_v55 = vcombine.low %v3999_v61, %v4003_v9  ;;  %v3660_v62 = vld [vmem:[#allocation6 + $0x278] sm:$0xff]  ;;  %v17239_v39 = vcombine.low %v3664_v0, %v3668_v44  ;;  %v17541_v61 = vcombine.low %v3967_v2, %v3971_v48 }
 0x3e0   :  { %v6856_v1 = vpop.f32.mrf.mxu1  ;;  %7202 = vmatpush1.bf16.msra.mxu0 %v17159_v58  ;;  %v17240_v58 = vcombine.high %v3664_v0, %v3668_v44  ;;  %v3880_v35 = vld [vmem:[#allocation6 + $0x958] sm:$0xff] }
 0x3e1   :  { %7149 = vmatpush1.bf16.msra.mxu1 %v17589_v24  ;;  %7203 = vmatprep.subr.bf16.mxu0 %v17280_v47  ;;  %v17542_v24 = vcombine.high %v3967_v2, %v3971_v48  ;;  %v3656_v47 = vld [vmem:[#allocation6 + $0x258] sm:$0xff]  ;;  %20024 = vtanh.f32 %v20621_v5 }
 0x3e2   :  { %v6857_v37 = vpop.f32.mrf.mxu1  ;;  %7150 = vmatprep.subr.bf16.mxu1 %v17582_v60  ;;  %v4087_v60 = vld [vmem:[#allocation6 + $0xfd0] sm:$0xff]  ;;  %v17232_v9 = vcombine.high %v3656_v47, %v3660_v62  ;;  %20026 = vtanh.f32 %v20617_v54  ;;  %v7435_v54 = vld [vmem:[#allocation9 + $0x220] sm:$0xff] }
 0x3e3   :  { %v17662_v1 = vcombine.high %v4087_v60, %v4091_v49  ;;  %v4083_v37 = vld [vmem:[#allocation6 + $0xfb0] sm:$0xff]  ;;  %v17661_v25 = vcombine.low %v4087_v60, %v4091_v49 }
 0x3e4   :  { %7204 = vmatpush2.bf16.msra.mxu0 %v17279_v41  ;;  %v3648_v41 = vld [vmem:[#allocation6 + $0x218] sm:$0xff] }
 0x3e5   :  { %7151 = vmatpush1.bf16.msra.mxu1 %v17581_v3  ;;  %7205 = vmatprep.subr.bf16.mxu0 %v17272_v42  ;;  %v3652_v3 = vld [vmem:[#allocation6 + $0x238] sm:$0xff]  ;;  %v4079_v42 = vld [vmem:[#allocation6 + $0xf90] sm:$0xff] }
 0x3e6   :  { %7152 = vmatprep.subr.bf16.mxu1 %v17574_v10  ;;  %v17231_v10 = vcombine.low %v3656_v47, %v3660_v62  ;;  %v17224_v4 = vcombine.high %v3648_v41, %v3652_v3  ;;  %v17654_v16 = vcombine.high %v4079_v42, %v4083_v37  ;;  %v17653_v40 = vcombine.low %v4079_v42, %v4083_v37  ;;  %v4047_v47 = vld [vmem:[#allocation6 + $0xe90] sm:$0xff] }
 0x3e7   :  { %v4051_v62 = vld [vmem:[#allocation6 + $0xeb0] sm:$0xff] }
 0x3e8   :  { %7206 = vmatpush2.bf16.msra.mxu0 %v17271_v15  ;;  %v3900_v15 = vld [vmem:[#allocation6 + $0x9f8] sm:$0xff]  ;;  %v17621_v42 = vcombine.low %v4047_v47, %v4051_v62 }
 0x3e9   :  { %7153 = vmatpush1.bf16.msra.mxu1 %v17573_v55  ;;  %7207 = vmatprep.subr.bf16.mxu0 %v17264_v27  ;;  %v4071_v55 = vld [vmem:[#allocation6 + $0xf50] sm:$0xff]  ;;  %v17472_v12 = vcombine.high %v3896_v14, %v3900_v15 }
 0x3ea   :  { %7154 = vmatprep.subr.bf16.mxu1 %v17566_v28  ;;  %v4075_v27 = vld [vmem:[#allocation6 + $0xf70] sm:$0xff]  ;;  %v17223_v28 = vcombine.low %v3648_v41, %v3652_v3 }
 0x3eb   :  { %v17646_v18 = vcombine.high %v4071_v55, %v4075_v27  ;;  %v17645_v29 = vcombine.low %v4071_v55, %v4075_v27  ;;  %v4043_v41 = vld [vmem:[#allocation6 + $0xe70] sm:$0xff] }
 0x3ec   :  { %7208 = vmatpush2.bf16.msra.mxu0 %v17263_v8  ;;  %v3892_v8 = vld [vmem:[#allocation6 + $0x9b8] sm:$0xff] }
 0x3ed   :  { %7155 = vmatpush1.bf16.msra.mxu1 %v17565_v20  ;;  %7209 = vmatprep.subr.bf16.mxu0 %v17256_v21  ;;  %v4063_v20 = vld [vmem:[#allocation6 + $0xf10] sm:$0xff]  ;;  %v17464_v32 = vcombine.high %v3888_v31, %v3892_v8  ;;  %v17463_v0 = vcombine.low %v3888_v31, %v3892_v8  ;;  %v3772_v31 = vld [vmem:[#allocation6 + $0x5f8] sm:$0xff] }
 0x3ee   :  { %7156 = vmatprep.subr.bf16.mxu1 %v17558_v26  ;;  %v4067_v21 = vld [vmem:[#allocation6 + $0xf30] sm:$0xff]  ;;  %v17471_v26 = vcombine.low %v3896_v14, %v3900_v15 }
 0x3ef   :  { %v17638_v46 = vcombine.high %v4063_v20, %v4067_v21  ;;  %v17637_v2 = vcombine.low %v4063_v20, %v4067_v21  ;;  %v4035_v14 = vld [vmem:[#allocation6 + $0xe30] sm:$0xff] }
 0x3f0   :  { %7210 = vmatpush2.bf16.msra.mxu0 %v17255_v34  ;;  %v3884_v34 = vld [vmem:[#allocation6 + $0x978] sm:$0xff] }
 0x3f1   :  { %7157 = vmatpush1.bf16.msra.mxu1 %v17557_v11  ;;  %7211 = vmatprep.subr.bf16.mxu0 %v17248_v36  ;;  %v4055_v36 = vld [vmem:[#allocation6 + $0xed0] sm:$0xff]  ;;  %v17456_v48 = vcombine.high %v3880_v35, %v3884_v34 }
 0x3f2   :  { %7158 = vmatprep.subr.bf16.mxu1 %v17550_v38  ;;  %v4059_v38 = vld [vmem:[#allocation6 + $0xef0] sm:$0xff] }
 0x3f3   :  { %v17629_v49 = vcombine.low %v4055_v36, %v4059_v38 }
 0x3f4   :  { %7212 = vmatpush2.bf16.msra.mxu0 %v17247_v51  ;;  %v17630_v51 = vcombine.high %v4055_v36, %v4059_v38  ;;  %v3844_v36 = vld [vmem:[#allocation6 + $0x838] sm:$0xff] }
 0x3f5   :  { %7159 = vmatpush1.bf16.msra.mxu1 %v17549_v52  ;;  %7213 = vmatprep.subr.bf16.mxu0 %v17240_v58  ;;  %v3872_v52 = vld [vmem:[#allocation6 + $0x918] sm:$0xff] }
 0x3f6   :  { %7160 = vmatprep.subr.bf16.mxu1 %v17542_v24  ;;  %v3876_v58 = vld [vmem:[#allocation6 + $0x938] sm:$0xff] }
 0x3f7   :  { %v17447_v3 = vcombine.low %v3872_v52, %v3876_v58 }
 0x3f8   :  { %7214 = vmatpush2.bf16.msra.mxu0 %v17239_v39  ;;  %v17622_v39 = vcombine.high %v4047_v47, %v4051_v62  ;;  %v3752_v47 = vld [vmem:[#allocation6 + $0x558] sm:$0xff] }
 0x3f9   :  { %7161 = vmatpush1.bf16.msra.mxu1 %v17541_v61  ;;  %7215 = vmatprep.subr.bf16.mxu0 %v17232_v9  ;;  %v3864_v61 = vld [vmem:[#allocation6 + $0x8d8] sm:$0xff] }
 0x3fa   :  { %7162 = vmatprep.subr.bf16.mxu1 %v17662_v1  ;;  %v3868_v9 = vld [vmem:[#allocation6 + $0x8f8] sm:$0xff]  ;;  %v4039_v1 = vld [vmem:[#allocation6 + $0xe50] sm:$0xff] }
 0x3fb   :  { %v17440_v37 = vcombine.high %v3864_v61, %v3868_v9  ;;  %v17439_v15 = vcombine.low %v3864_v61, %v3868_v9  ;;  %v17613_v55 = vcombine.low %v4039_v1, %v4043_v41  ;;  %v3756_v62 = vld [vmem:[#allocation6 + $0x578] sm:$0xff] }
 0x3fc   :  { %7216 = vmatpush2.bf16.msra.mxu0 %v17231_v10  ;;  %v17614_v10 = vcombine.high %v4039_v1, %v4043_v41  ;;  %v17328_v1 = vcombine.high %v3752_v47, %v3756_v62  ;;  %v3956_v41 = vld [vmem:[#allocation6 + $0xbb8] sm:$0xff] }
 0x3fd   :  { %7163 = vmatpush2.bf16.msra.mxu1 %v17661_v25  ;;  %7217 = vmatprep.subr.bf16.mxu0 %v17224_v4  ;;  %v3856_v25 = vld [vmem:[#allocation6 + $0x898] sm:$0xff] }
 0x3fe   :  { %7164 = vmatprep.subr.bf16.mxu1 %v17654_v16  ;;  %v3860_v4 = vld [vmem:[#allocation6 + $0x8b8] sm:$0xff]  ;;  %v4031_v16 = vld [vmem:[#allocation6 + $0xe10] sm:$0xff] }
 0x3ff   :  { %v17432_v27 = vcombine.high %v3856_v25, %v3860_v4  ;;  %v17431_v8 = vcombine.low %v3856_v25, %v3860_v4  ;;  %v17605_v20 = vcombine.low %v4031_v16, %v4035_v14  ;;  %v17327_v4 = vcombine.low %v3752_v47, %v3756_v62  ;;  %v3712_v47 = vld [vmem:[#allocation6 + $0x418] sm:$0xff] }
 0x400   :  { %7218 = vmatpush2.bf16.msra.mxu0 %v17223_v28  ;;  %v17606_v28 = vcombine.high %v4031_v16, %v4035_v14  ;;  %v3716_v62 = vld [vmem:[#allocation6 + $0x438] sm:$0xff] }
 0x401   :  { %7165 = vmatpush2.bf16.msra.mxu1 %v17653_v40  ;;  %7269 = vmatprep.subr.bf16.mxu0 %v17472_v12  ;;  %v3848_v40 = vld [vmem:[#allocation6 + $0x858] sm:$0xff] }
 0x402   :  { %7166 = vmatprep.subr.bf16.mxu1 %v17646_v18  ;;  %v3852_v12 = vld [vmem:[#allocation6 + $0x878] sm:$0xff] }
 0x403   :  { %v20623_v11 = vpop.f32.mrf.mxu0  ;;  %7220 = vmatmul.mubr.bf16.vlgmr.msra.gmra.mxu0 %v20524_v22  ;;  %v17455_v22 = vcombine.low %v3880_v35, %v3884_v34  ;;  %v3768_v18 = vld [vmem:[#allocation6 + $0x5d8] sm:$0xff]  ;;  %v17424_v21 = vcombine.high %v3848_v40, %v3852_v12  ;;  %v17423_v38 = vcombine.low %v3848_v40, %v3852_v12 }
 0x404   :  { %7270 = vmatpush1.bf16.msra.mxu0 %v17471_v26  ;;  %7301 = vmatprep.mubr.bf16.mxu0 %v20552_v63  ;;  %v17448_v63 = vcombine.high %v3872_v52, %v3876_v58  ;;  %v17344_v26 = vcombine.high %v3768_v18, %v3772_v31  ;;  %v3764_v35 = vld [vmem:[#allocation6 + $0x5b8] sm:$0xff] }
 0x405   :  { %7167 = vmatpush2.bf16.msra.mxu1 %v17645_v29  ;;  %v20627_v44 = vpop.f32.mrf.mxu0  ;;  %7271 = vmatprep.subr.bf16.mxu0 %v17464_v32  ;;  %v3760_v29 = vld [vmem:[#allocation6 + $0x598] sm:$0xff]  ;;  %v20629_v32 = vld [vmem:[#allocation7] sm:$0xff] }
 0x406   :  { %7168 = vmatprep.subr.bf16.mxu1 %v17638_v46  ;;  %v4106_v46 = vrot.slane %v20629_v32, %v20477_v56  ;;  %v3840_v34 = vld [vmem:[#allocation6 + $0x818] sm:$0xff] }
 0x407   :  { %v6979_v24 = vpop.f32.mrf.mxu0  ;;  %v3960_v52 = vld [vmem:[#allocation6 + $0xbd8] sm:$0xff] }
 0x408   :  { %7272 = vmatpush1.bf16.msra.mxu0 %v17463_v0  ;;  %v4110_v0 = vrot.slane %v20629_v32, %v20491_v7  ;;  %v3964_v58 = vld [vmem:[#allocation6 + $0xbf8] sm:$0xff]  ;;  %v6894_v24 = vadd.f32 %v20609_v19, %v4106_v46 }
 0x409   :  { %7169 = vmatpush2.bf16.msra.mxu1 %v17637_v2  ;;  %v6980_v60 = vpop.f32.mrf.mxu0  ;;  %7273 = vmatprep.subr.bf16.mxu0 %v17456_v48  ;;  %v17343_v2 = vcombine.low %v3768_v18, %v3772_v31  ;;  %v17336_v48 = vcombine.high %v3760_v29, %v3764_v35  ;;  %v17536_v61 = vcombine.high %v3960_v52, %v3964_v58  ;;  %v3952_v19 = vld [vmem:[#allocation6 + $0xb98] sm:$0xff] }
 0x40a   :  { %7170 = vmatprep.subr.bf16.mxu1 %v17630_v51  ;;  %v17416_v51 = vcombine.high %v3840_v34, %v3844_v36  ;;  %v17335_v60 = vcombine.low %v3760_v29, %v3764_v35  ;;  %v3740_v40 = vld [vmem:[#allocation6 + $0x4f8] sm:$0xff] }
 0x40c   :  { %7274 = vmatpush1.bf16.msra.mxu0 %v17455_v22 }
 0x40d   :  { %7171 = vmatpush2.bf16.msra.mxu1 %v17629_v49  ;;  %7275 = vmatprep.subr.bf16.mxu0 %v17448_v63  ;;  %v17415_v49 = vcombine.low %v3840_v34, %v3844_v36  ;;  %v6896_v63 = vadd.f32 %v20613_v43, %v4110_v0  ;;  %v17535_v43 = vcombine.low %v3960_v52, %v3964_v58  ;;  %v3928_v34 = vld [vmem:[#allocation6 + $0xad8] sm:$0xff] }
 0x40e   :  { %7172 = vmatprep.subr.bf16.mxu1 %v17622_v39  ;;  %v3932_v36 = vld [vmem:[#allocation6 + $0xaf8] sm:$0xff] }
 0x40f   :  { %v3724_v0 = vld [vmem:[#allocation6 + $0x478] sm:$0xff] }
 0x410   :  { %7276 = vmatpush1.bf16.msra.mxu0 %v17447_v3  ;;  %v3920_v58 = vld [vmem:[#allocation6 + $0xa98] sm:$0xff] }
 0x411   :  { %7173 = vmatpush2.bf16.msra.mxu1 %v17621_v42  ;;  %7277 = vmatprep.subr.bf16.mxu0 %v17440_v37  ;;  %v3744_v42 = vld [vmem:[#allocation6 + $0x518] sm:$0xff] }
 0x412   :  { %7174 = vmatprep.subr.bf16.mxu1 %v17614_v10  ;;  %v3748_v37 = vld [vmem:[#allocation6 + $0x538] sm:$0xff] }
 0x413   :  { %v17319_v12 = vcombine.low %v3744_v42, %v3748_v37 }
 0x414   :  { %7278 = vmatpush1.bf16.msra.mxu0 %v17439_v15  ;;  %v17320_v15 = vcombine.high %v3744_v42, %v3748_v37  ;;  %v3904_v37 = vld [vmem:[#allocation6 + $0xa18] sm:$0xff] }
 0x415   :  { %7175 = vmatpush2.bf16.msra.mxu1 %v17613_v55  ;;  %7279 = vmatprep.subr.bf16.mxu0 %v17432_v27  ;;  %v3944_v55 = vld [vmem:[#allocation6 + $0xb58] sm:$0xff] }
 0x416   :  { %7176 = vmatprep.subr.bf16.mxu1 %v17606_v28  ;;  %v3948_v27 = vld [vmem:[#allocation6 + $0xb78] sm:$0xff] }
 0x417   :  { %v3736_v28 = vld [vmem:[#allocation6 + $0x4d8] sm:$0xff]  ;;  %v17520_v18 = vcombine.high %v3944_v55, %v3948_v27 }
 0x418   :  { %7280 = vmatpush1.bf16.msra.mxu0 %v17431_v8  ;;  %v17312_v31 = vcombine.high %v3736_v28, %v3740_v40  ;;  %v3936_v8 = vld [vmem:[#allocation6 + $0xb18] sm:$0xff]  ;;  %v17311_v29 = vcombine.low %v3736_v28, %v3740_v40 }
 0x419   :  { %7177 = vmatpush2.bf16.msra.mxu1 %v17605_v20  ;;  %7281 = vmatprep.subr.bf16.mxu0 %v17424_v21  ;;  %v3940_v20 = vld [vmem:[#allocation6 + $0xb38] sm:$0xff] }
 0x41a   :  { %7228 = vmatprep.subr.bf16.mxu1 %v17344_v26  ;;  %v3728_v21 = vld [vmem:[#allocation6 + $0x498] sm:$0xff]  ;;  %v17519_v26 = vcombine.low %v3944_v55, %v3948_v27  ;;  %v17512_v46 = vcombine.high %v3936_v8, %v3940_v20  ;;  %v7423_v55 = vld [vmem:[#allocation9 + $0x1c0] sm:$0xff] }
 0x41b   :  { %v7427_v27 = vld [vmem:[#allocation9 + $0x1e0] sm:$0xff]  ;;  %v3816_v28 = vld [vmem:[#allocation6 + $0x758] sm:$0xff] }
 0x41c   :  { %v6934_v22 = vpop.f32.mrf.mxu1  ;;  %7179 = vmatmul.mubr.bf16.vlgmr.msra.gmra.mxu1 %v20581_v30  ;;  %7282 = vmatpush1.bf16.msra.mxu0 %v17423_v38  ;;  %v3720_v38 = vld [vmem:[#allocation6 + $0x458] sm:$0xff] }
 0x41d   :  { %v6935_v39 = vadd.f32 %v6934_v22, %v6894_v24  ;;  %7229 = vmatpush1.bf16.msra.mxu1 %v17343_v2  ;;  %7260 = vmatprep.mubr.bf16.mxu1 %v20506_v59  ;;  %v17528_v59 = vcombine.high %v3952_v19, %v3956_v41  ;;  %v17511_v2 = vcombine.low %v3936_v8, %v3940_v20  ;;  %v3924_v24 = vld [vmem:[#allocation6 + $0xab8] sm:$0xff]  ;;  %v7415_v8 = vld [vmem:[#allocation9 + $0x180] sm:$0xff] }
 0x41e   :  { %v6936_v9 = vpop.f32.mrf.mxu1  ;;  %7230 = vmatprep.subr.bf16.mxu1 %v17336_v48  ;;  %7283 = vmatprep.subr.bf16.mxu0 %v17416_v51  ;;  %v17504_v51 = vcombine.high %v3928_v34, %v3932_v36  ;;  %v17296_v52 = vcombine.high %v3720_v38, %v3724_v0  ;;  %v17503_v22 = vcombine.low %v3928_v34, %v3932_v36  ;;  %v3820_v40 = vld [vmem:[#allocation6 + $0x778] sm:$0xff]  ;;  %v7419_v20 = vld [vmem:[#allocation9 + $0x1a0] sm:$0xff] }
 0x41f   :  { %v6937_v3 = vadd.f32 %v6936_v9, %v6896_v63  ;;  %v20640_v10 = vadd.f32 %v20623_v11, %v6935_v39  ;;  %v17527_v11 = vcombine.low %v3952_v19, %v3956_v41  ;;  %v17288_v63 = vcombine.high %v3712_v47, %v3716_v62  ;;  %v3912_v39 = vld [vmem:[#allocation6 + $0xa58] sm:$0xff] }
 0x420   :  { %v6938_v25 = vpop.f32.mrf.mxu1  ;;  %7284 = vmatpush1.bf16.msra.mxu0 %v17415_v49  ;;  %v17496_v49 = vcombine.high %v3920_v58, %v3924_v24  ;;  %v3832_v9 = vld [vmem:[#allocation6 + $0x7d8] sm:$0xff]  ;;  %v17495_v19 = vcombine.low %v3920_v58, %v3924_v24  ;;  %v17287_v41 = vcombine.low %v3712_v47, %v3716_v62 }
 0x421   :  { %7231 = vmatpush1.bf16.msra.mxu1 %v17335_v60  ;;  %7285 = vmatprep.subr.bf16.mxu0 %v17536_v61  ;;  %v20643_v16 = vadd.f32 %v20627_v44, %v6937_v3  ;;  %v3732_v44 = vld [vmem:[#allocation6 + $0x4b8] sm:$0xff]  ;;  %v17295_v60 = vcombine.low %v3720_v38, %v3724_v0  ;;  %v7407_v38 = vld [vmem:[#allocation9 + $0x140] sm:$0xff] }
 0x422   :  { %v6939_v14 = vpop.f32.mrf.mxu1  ;;  %7232 = vmatprep.subr.bf16.mxu1 %v17328_v1  ;;  %v17304_v35 = vcombine.high %v3728_v21, %v3732_v44  ;;  %v17303_v48 = vcombine.low %v3728_v21, %v3732_v44  ;;  %v3916_v61 = vld [vmem:[#allocation6 + $0xa78] sm:$0xff]  ;;  %v20025_v21 = vpop.eup %20024  ;;  %v7411_v0 = vld [vmem:[#allocation9 + $0x160] sm:$0xff] }
 0x423   :  { %v3836_v1 = vld [vmem:[#allocation6 + $0x7f8] sm:$0xff]  ;;  %v17488_v3 = vcombine.high %v3912_v39, %v3916_v61  ;;  %v17487_v5 = vcombine.low %v3912_v39, %v3916_v61  ;;  %v20646_v34 = vpack.c.bf16 %v20025_v21, %v20025_v21  ;;  %v17706_v47 = vcombine.high %v7407_v38, %v7411_v0 }
 0x424   :  { %7286 = vmatpush2.bf16.msra.mxu0 %v17535_v43  ;;  %v17408_v42 = vcombine.high %v3832_v9, %v3836_v1  ;;  %v3908_v25 = vld [vmem:[#allocation6 + $0xa38] sm:$0xff] }
 0x425   :  { %7233 = vmatpush1.bf16.msra.mxu1 %v17327_v4  ;;  %7287 = vmatprep.subr.bf16.mxu0 %v17528_v59  ;;  %v3824_v43 = vld [vmem:[#allocation6 + $0x798] sm:$0xff]  ;;  %v17407_v59 = vcombine.low %v3832_v9, %v3836_v1  ;;  %v17480_v14 = vcombine.high %v3904_v37, %v3908_v25 }
 0x426   :  { %7234 = vmatprep.subr.bf16.mxu1 %v17320_v15  ;;  %v3828_v4 = vld [vmem:[#allocation6 + $0x7b8] sm:$0xff] }
 0x427   :  { %v17400_v15 = vcombine.high %v3824_v43, %v3828_v4  ;;  %v3808_v44 = vld [vmem:[#allocation6 + $0x718] sm:$0xff] }
 0x428   :  { %7288 = vmatpush2.bf16.msra.mxu0 %v17527_v11  ;;  %v17479_v11 = vcombine.low %v3904_v37, %v3908_v25  ;;  %v3796_v39 = vld [vmem:[#allocation6 + $0x6b8] sm:$0xff] }
 0x429   :  { %7235 = vmatpush1.bf16.msra.mxu1 %v17319_v12  ;;  %7289 = vmatprep.subr.bf16.mxu0 %v17520_v18  ;;  %v17399_v12 = vcombine.low %v3824_v43, %v3828_v4  ;;  %v17722_v18 = vcombine.high %v7423_v55, %v7427_v27  ;;  %v3788_v37 = vld [vmem:[#allocation6 + $0x678] sm:$0xff] }
 0x42a   :  { %7236 = vmatprep.subr.bf16.mxu1 %v17312_v31  ;;  %v17392_v31 = vcombine.high %v3816_v28, %v3820_v40 }
 0x42c   :  { %7290 = vmatpush2.bf16.msra.mxu0 %v17519_v26  ;;  %v3812_v26 = vld [vmem:[#allocation6 + $0x738] sm:$0xff] }
 0x42d   :  { %7237 = vmatpush1.bf16.msra.mxu1 %v17311_v29  ;;  %7291 = vmatprep.subr.bf16.mxu0 %v17512_v46  ;;  %v17721_v29 = vcombine.low %v7423_v55, %v7427_v27  ;;  %v17391_v46 = vcombine.low %v3816_v28, %v3820_v40  ;;  %v17384_v36 = vcombine.high %v3808_v44, %v3812_v26  ;;  %v3780_v55 = vld [vmem:[#allocation6 + $0x638] sm:$0xff] }
 0x42e   :  { %7238 = vmatprep.subr.bf16.mxu1 %v17304_v35  ;;  %v17714_v35 = vcombine.high %v7415_v8, %v7419_v20  ;;  %v17383_v24 = vcombine.low %v3808_v44, %v3812_v26 }
 0x430   :  { %7292 = vmatpush2.bf16.msra.mxu0 %v17511_v2 }
 0x431   :  { %7239 = vmatpush1.bf16.msra.mxu1 %v17303_v48  ;;  %7293 = vmatprep.subr.bf16.mxu0 %v17504_v51  ;;  %v3800_v48 = vld [vmem:[#allocation6 + $0x6d8] sm:$0xff] }
 0x432   :  { %7240 = vmatprep.subr.bf16.mxu1 %v17296_v52  ;;  %v3804_v51 = vld [vmem:[#allocation6 + $0x6f8] sm:$0xff]  ;;  %v17713_v52 = vcombine.low %v7415_v8, %v7419_v20 }
 0x433   :  { %v17376_v62 = vcombine.high %v3800_v48, %v3804_v51  ;;  %v17375_v9 = vcombine.low %v3800_v48, %v3804_v51  ;;  %v4028_v8 = vld [vmem:[#allocation6 + $0xdf8] sm:$0xff] }
 0x434   :  { %7294 = vmatpush2.bf16.msra.mxu0 %v17503_v22  ;;  %v7399_v22 = vld [vmem:[#allocation9 + $0x100] sm:$0xff] }
 0x435   :  { %7241 = vmatpush1.bf16.msra.mxu1 %v17295_v60  ;;  %7295 = vmatprep.subr.bf16.mxu0 %v17496_v49  ;;  %v7403_v60 = vld [vmem:[#allocation9 + $0x120] sm:$0xff] }
 0x436   :  { %7242 = vmatprep.subr.bf16.mxu1 %v17288_v63  ;;  %v3792_v63 = vld [vmem:[#allocation6 + $0x698] sm:$0xff]  ;;  %v17698_v1 = vcombine.high %v7399_v22, %v7403_v60  ;;  %v17697_v25 = vcombine.low %v7399_v22, %v7403_v60 }
 0x437   :  { %v17367_v43 = vcombine.low %v3792_v63, %v3796_v39 }
 0x438   :  { %7296 = vmatpush2.bf16.msra.mxu0 %v17495_v19  ;;  %v17368_v19 = vcombine.high %v3792_v63, %v3796_v39 }
 0x439   :  { %7243 = vmatpush1.bf16.msra.mxu1 %v17287_v41  ;;  %7297 = vmatprep.subr.bf16.mxu0 %v17488_v3  ;;  %v7391_v41 = vld [vmem:[#allocation9 + $0xc0] sm:$0xff] }
 0x43a   :  { %7244 = vmatprep.subr.bf16.mxu1 %v17408_v42  ;;  %v7395_v3 = vld [vmem:[#allocation9 + $0xe0] sm:$0xff]  ;;  %v3784_v42 = vld [vmem:[#allocation6 + $0x658] sm:$0xff] }
 0x43b   :  { %v17690_v4 = vcombine.high %v7391_v41, %v7395_v3  ;;  %v17689_v27 = vcombine.low %v7391_v41, %v7395_v3  ;;  %v17359_v28 = vcombine.low %v3784_v42, %v3788_v37  ;;  %v4004_v41 = vld [vmem:[#allocation6 + $0xd38] sm:$0xff] }
 0x43c   :  { %7298 = vmatpush2.bf16.msra.mxu0 %v17487_v5  ;;  %v17360_v5 = vcombine.high %v3784_v42, %v3788_v37 }
 0x43d   :  { %7245 = vmatpush2.bf16.msra.mxu1 %v17407_v59  ;;  %7299 = vmatprep.subr.bf16.mxu0 %v17480_v14  ;;  %v7383_v59 = vld [vmem:[#allocation9 + $0x80] sm:$0xff] }
 0x43e   :  { %7246 = vmatprep.subr.bf16.mxu1 %v17400_v15  ;;  %v7387_v14 = vld [vmem:[#allocation9 + $0xa0] sm:$0xff]  ;;  %v3776_v15 = vld [vmem:[#allocation6 + $0x618] sm:$0xff] }
 0x43f   :  { %v17682_v40 = vcombine.high %v7383_v59, %v7387_v14  ;;  %v17681_v20 = vcombine.low %v7383_v59, %v7387_v14  ;;  %v17351_v21 = vcombine.low %v3776_v15, %v3780_v55 }
 0x440   :  { %7300 = vmatpush2.bf16.msra.mxu0 %v17479_v11  ;;  %v17352_v11 = vcombine.high %v3776_v15, %v3780_v55 }
 0x441   :  { %7247 = vmatpush2.bf16.msra.mxu1 %v17399_v12  ;;  %10481 = vmatprep.subr.bf16.mxu0 %v17722_v18  ;;  %v7375_v12 = vld [vmem:[#allocation9 + $0x40] sm:$0xff] }
 0x442   :  { %7248 = vmatprep.subr.bf16.mxu1 %v17392_v31  ;;  %v7379_v18 = vld [vmem:[#allocation9 + $0x60] sm:$0xff]  ;;  %v4024_v31 = vld [vmem:[#allocation6 + $0xdd8] sm:$0xff] }
 0x443   :  { %v20648_v2 = vpop.f32.mrf.mxu0  ;;  %7302 = vmatmul.mubr.bf16.vlgmr.msra.gmra.mxu0 %v20557_v17  ;;  %v17705_v17 = vcombine.low %v7407_v38, %v7411_v0  ;;  %v17674_v44 = vcombine.high %v7375_v12, %v7379_v18  ;;  %v17600_v26 = vcombine.high %v4024_v31, %v4028_v8  ;;  %v17673_v38 = vcombine.low %v7375_v12, %v7379_v18 }
 0x444   :  { %10482 = vmatpush1.bf16.msra.mxu0 %v17721_v29  ;;  %10513 = vmatprep.mubr.bf16.mxu0 %v20646_v34  ;;  %v4016_v29 = vld [vmem:[#allocation6 + $0xd98] sm:$0xff]  ;;  %v17599_v0 = vcombine.low %v4024_v31, %v4028_v8 }
 0x445   :  { %7249 = vmatpush2.bf16.msra.mxu1 %v17391_v46  ;;  %v20652_v58 = vpop.f32.mrf.mxu0  ;;  %10483 = vmatprep.subr.bf16.mxu0 %v17714_v35  ;;  %v4020_v46 = vld [vmem:[#allocation6 + $0xdb8] sm:$0xff]  ;;  %v7367_v35 = vld [vmem:[#allocation9] sm:$0xff] }
 0x446   :  { %7250 = vmatprep.subr.bf16.mxu1 %v17384_v36  ;;  %v7371_v36 = vld [vmem:[#allocation9 + $0x20] sm:$0xff]  ;;  %v17592_v48 = vcombine.high %v4016_v29, %v4020_v46  ;;  %v17591_v63 = vcombine.low %v4016_v29, %v4020_v46 }
 0x447   :  { %v7061_v49 = vpop.f32.mrf.mxu0  ;;  %v17666_v51 = vcombine.high %v7367_v35, %v7371_v36  ;;  %v17665_v60 = vcombine.low %v7367_v35, %v7371_v36 }
 0x448   :  { %10484 = vmatpush1.bf16.msra.mxu0 %v17713_v52  ;;  %v7487_v52 = vld [vmem:[#allocation9 + $0x3c0] sm:$0xff] }
 0x449   :  { %7251 = vmatpush2.bf16.msra.mxu1 %v17383_v24  ;;  %v7062_v61 = vpop.f32.mrf.mxu0  ;;  %10485 = vmatprep.subr.bf16.mxu0 %v17706_v47  ;;  %v7491_v24 = vld [vmem:[#allocation9 + $0x3e0] sm:$0xff]  ;;  %v4008_v47 = vld [vmem:[#allocation6 + $0xd58] sm:$0xff] }
 0x44a   :  { %7252 = vmatprep.subr.bf16.mxu1 %v17376_v62  ;;  %v4012_v62 = vld [vmem:[#allocation6 + $0xd78] sm:$0xff]  ;;  %v17786_v39 = vcombine.high %v7487_v52, %v7491_v24  ;;  %v17785_v3 = vcombine.low %v7487_v52, %v7491_v24 }
 0x44b   :  { %v17584_v61 = vcombine.high %v4008_v47, %v4012_v62 }
 0x44c   :  { %10486 = vmatpush1.bf16.msra.mxu0 %v17705_v17 }
 0x44d   :  { %7253 = vmatpush2.bf16.msra.mxu1 %v17375_v9  ;;  %10487 = vmatprep.subr.bf16.mxu0 %v17698_v1  ;;  %v7479_v9 = vld [vmem:[#allocation9 + $0x380] sm:$0xff] }
 0x44e   :  { %7254 = vmatprep.subr.bf16.mxu1 %v17368_v19  ;;  %v7483_v1 = vld [vmem:[#allocation9 + $0x3a0] sm:$0xff]  ;;  %v4000_v19 = vld [vmem:[#allocation6 + $0xd18] sm:$0xff] }
 0x44f   :  { %v17778_v42 = vcombine.high %v7479_v9, %v7483_v1  ;;  %v17777_v59 = vcombine.low %v7479_v9, %v7483_v1  ;;  %v17575_v14 = vcombine.low %v4000_v19, %v4004_v41 }
 0x450   :  { %10488 = vmatpush1.bf16.msra.mxu0 %v17697_v25  ;;  %v7471_v25 = vld [vmem:[#allocation9 + $0x340] sm:$0xff] }
 0x451   :  { %7255 = vmatpush2.bf16.msra.mxu1 %v17367_v43  ;;  %10489 = vmatprep.subr.bf16.mxu0 %v17690_v4  ;;  %v7475_v43 = vld [vmem:[#allocation9 + $0x360] sm:$0xff]  ;;  %v3992_v4 = vld [vmem:[#allocation6 + $0xcd8] sm:$0xff] }
 0x452   :  { %7256 = vmatprep.subr.bf16.mxu1 %v17360_v5  ;;  %v3996_v5 = vld [vmem:[#allocation6 + $0xcf8] sm:$0xff]  ;;  %v17770_v15 = vcombine.high %v7471_v25, %v7475_v43  ;;  %v17769_v12 = vcombine.low %v7471_v25, %v7475_v43  ;;  %v7679_v25 = vld [vmem:[#allocation9 + $0x9c0] sm:$0xff] }
 0x453   :  { %v17568_v55 = vcombine.high %v3992_v4, %v3996_v5  ;;  %v17567_v18 = vcombine.low %v3992_v4, %v3996_v5  ;;  %v7683_v43 = vld [vmem:[#allocation9 + $0x9e0] sm:$0xff]  ;;  %v4072_v4 = vld [vmem:[#allocation6 + $0xf58] sm:$0xff] }
 0x454   :  { %10490 = vmatpush1.bf16.msra.mxu0 %v17689_v27  ;;  %v7463_v27 = vld [vmem:[#allocation9 + $0x300] sm:$0xff]  ;;  %v4076_v5 = vld [vmem:[#allocation6 + $0xf78] sm:$0xff] }
 0x455   :  { %7257 = vmatpush2.bf16.msra.mxu1 %v17359_v28  ;;  %10491 = vmatprep.subr.bf16.mxu0 %v17682_v40  ;;  %v7467_v28 = vld [vmem:[#allocation9 + $0x320] sm:$0xff]  ;;  %v3984_v40 = vld [vmem:[#allocation6 + $0xc98] sm:$0xff] }
 0x456   :  { %7258 = vmatprep.subr.bf16.mxu1 %v17352_v11  ;;  %v3988_v11 = vld [vmem:[#allocation6 + $0xcb8] sm:$0xff]  ;;  %v17762_v31 = vcombine.high %v7463_v27, %v7467_v28  ;;  %v17761_v29 = vcombine.low %v7463_v27, %v7467_v28  ;;  %v17648_v27 = vcombine.high %v4072_v4, %v4076_v5  ;;  %v7671_v28 = vld [vmem:[#allocation9 + $0x980] sm:$0xff] }
 0x457   :  { %v17560_v8 = vcombine.high %v3984_v40, %v3988_v11  ;;  %v17559_v46 = vcombine.low %v3984_v40, %v3988_v11  ;;  %v7675_v40 = vld [vmem:[#allocation9 + $0x9a0] sm:$0xff]  ;;  %v4064_v11 = vld [vmem:[#allocation6 + $0xf18] sm:$0xff] }
 0x458   :  { %10492 = vmatpush1.bf16.msra.mxu0 %v17681_v20  ;;  %v7455_v20 = vld [vmem:[#allocation9 + $0x2c0] sm:$0xff] }
 0x459   :  { %7259 = vmatpush2.bf16.msra.mxu1 %v17351_v21  ;;  %10493 = vmatprep.subr.bf16.mxu0 %v17674_v44  ;;  %v7459_v21 = vld [vmem:[#allocation9 + $0x2e0] sm:$0xff]  ;;  %v3976_v44 = vld [vmem:[#allocation6 + $0xc58] sm:$0xff] }
 0x45a   :  { %7310 = vmatprep.subr.bf16.mxu1 %v17600_v26  ;;  %v3980_v26 = vld [vmem:[#allocation6 + $0xc78] sm:$0xff]  ;;  %v17754_v35 = vcombine.high %v7455_v20, %v7459_v21  ;;  %v17753_v52 = vcombine.low %v7455_v20, %v7459_v21  ;;  %v17970_v20 = vcombine.high %v7671_v28, %v7675_v40 }
 0x45b   :  { %v17552_v36 = vcombine.high %v3976_v44, %v3980_v26  ;;  %v17551_v24 = vcombine.low %v3976_v44, %v3980_v26  ;;  %v7663_v44 = vld [vmem:[#allocation9 + $0x940] sm:$0xff] }
 0x45c   :  { %v7016_v22 = vpop.f32.mrf.mxu1  ;;  %7261 = vmatmul.mubr.bf16.vlgmr.msra.gmra.mxu1 %v20526_v33  ;;  %10494 = vmatpush1.bf16.msra.mxu0 %v17673_v38  ;;  %v7447_v38 = vld [vmem:[#allocation9 + $0x280] sm:$0xff] }
 0x45d   :  { %v20656_v49 = vadd.f32 %v7016_v22, %v20640_v10  ;;  %7311 = vmatpush1.bf16.msra.mxu1 %v17599_v0  ;;  %7342 = vmatprep.mubr.bf16.mxu1 %v20579_v57  ;;  %v17583_v10 = vcombine.low %v4008_v47, %v4012_v62  ;;  %v17576_v57 = vcombine.high %v4000_v19, %v4004_v41  ;;  %v7451_v0 = vld [vmem:[#allocation9 + $0x2a0] sm:$0xff] }
 0x45e   :  { %v20659_v17 = vpop.f32.mrf.mxu1  ;;  %7312 = vmatprep.subr.bf16.mxu1 %v17592_v48  ;;  %10495 = vmatprep.subr.bf16.mxu0 %v17666_v51  ;;  %v3968_v48 = vld [vmem:[#allocation6 + $0xc18] sm:$0xff]  ;;  %v17746_v47 = vcombine.high %v7447_v38, %v7451_v0  ;;  %v7439_v22 = vld [vmem:[#allocation9 + $0x240] sm:$0xff] }
 0x45f   :  { %v3972_v51 = vld [vmem:[#allocation6 + $0xc38] sm:$0xff]  ;;  %v7431_v41 = vld [vmem:[#allocation9 + $0x200] sm:$0xff] }
 0x460   :  { %v7020_v33 = vpop.f32.mrf.mxu1  ;;  %10496 = vmatpush1.bf16.msra.mxu0 %v17665_v60  ;;  %v17544_v62 = vcombine.high %v3968_v48, %v3972_v51  ;;  %v7443_v60 = vld [vmem:[#allocation9 + $0x260] sm:$0xff]  ;;  %v17543_v9 = vcombine.low %v3968_v48, %v3972_v51 }
 0x461   :  { %7313 = vmatpush1.bf16.msra.mxu1 %v17591_v63  ;;  %10497 = vmatprep.subr.bf16.mxu0 %v17786_v39  ;;  %v4088_v63 = vld [vmem:[#allocation6 + $0xfd8] sm:$0xff]  ;;  %v17738_v1 = vcombine.high %v7439_v22, %v7443_v60  ;;  %v7667_v26 = vld [vmem:[#allocation9 + $0x960] sm:$0xff] }
 0x462   :  { %v7021_v37 = vpop.f32.mrf.mxu1  ;;  %7314 = vmatprep.subr.bf16.mxu1 %v17584_v61  ;;  %v4092_v39 = vld [vmem:[#allocation6 + $0xff8] sm:$0xff]  ;;  %v17745_v61 = vcombine.low %v7447_v38, %v7451_v0  ;;  %v17962_v48 = vcombine.high %v7663_v44, %v7667_v26 }
 0x463   :  { %v17664_v19 = vcombine.high %v4088_v63, %v4092_v39  ;;  %v4080_v33 = vld [vmem:[#allocation6 + $0xf98] sm:$0xff]  ;;  %v17730_v37 = vcombine.high %v7431_v41, %v7435_v54 }
 0x464   :  { %10498 = vmatpush2.bf16.msra.mxu0 %v17785_v3  ;;  %v4084_v3 = vld [vmem:[#allocation6 + $0xfb8] sm:$0xff] }
 0x465   :  { %7315 = vmatpush1.bf16.msra.mxu1 %v17583_v10  ;;  %10499 = vmatprep.subr.bf16.mxu0 %v17778_v42  ;;  %v17737_v10 = vcombine.low %v7439_v22, %v7443_v60  ;;  %v17663_v42 = vcombine.low %v4088_v63, %v4092_v39  ;;  %v4048_v22 = vld [vmem:[#allocation6 + $0xe98] sm:$0xff]  ;;  %v17961_v63 = vcombine.low %v7663_v44, %v7667_v26  ;;  %v7627_v44 = vld [vmem:[#allocation9 + $0x820] sm:$0xff] }
 0x466   :  { %7316 = vmatprep.subr.bf16.mxu1 %v17576_v57  ;;  %v17656_v57 = vcombine.high %v4080_v33, %v4084_v3  ;;  %v4052_v60 = vld [vmem:[#allocation6 + $0xeb8] sm:$0xff] }
 0x468   :  { %10500 = vmatpush2.bf16.msra.mxu0 %v17777_v59  ;;  %v17729_v59 = vcombine.low %v7431_v41, %v7435_v54  ;;  %v7651_v41 = vld [vmem:[#allocation9 + $0x8e0] sm:$0xff]  ;;  %v4040_v54 = vld [vmem:[#allocation6 + $0xe58] sm:$0xff] }
 0x469   :  { %7317 = vmatpush1.bf16.msra.mxu1 %v17575_v14  ;;  %10501 = vmatprep.subr.bf16.mxu0 %v17770_v15  ;;  %v17655_v14 = vcombine.low %v4080_v33, %v4084_v3  ;;  %v17978_v15 = vcombine.high %v7679_v25, %v7683_v43  ;;  %v4044_v33 = vld [vmem:[#allocation6 + $0xe78] sm:$0xff] }
 0x46a   :  { %7318 = vmatprep.subr.bf16.mxu1 %v17568_v55  ;;  %v20027_v55 = vpop.eup %20026 }
 0x46c   :  { %10502 = vmatpush2.bf16.msra.mxu0 %v17769_v12  ;;  %v4068_v12 = vld [vmem:[#allocation6 + $0xf38] sm:$0xff] }
 0x46d   :  { %7319 = vmatpush1.bf16.msra.mxu1 %v17567_v18  ;;  %10503 = vmatprep.subr.bf16.mxu0 %v17762_v31  ;;  %v17977_v18 = vcombine.low %v7679_v25, %v7683_v43  ;;  %v20662_v31 = vpack.c.bf16 %v20027_v55, %v20027_v55  ;;  %v17640_v21 = vcombine.high %v4064_v11, %v4068_v12  ;;  %v4036_v25 = vld [vmem:[#allocation6 + $0xe38] sm:$0xff]  ;;  %v7551_v55 = vld [vmem:[#allocation9 + $0x5c0] sm:$0xff] }
 0x46e   :  { %7320 = vmatprep.subr.bf16.mxu1 %v17560_v8  ;;  %v17647_v8 = vcombine.low %v4072_v4, %v4076_v5  ;;  %v17639_v0 = vcombine.low %v4064_v11, %v4068_v12  ;;  %v17615_v4 = vcombine.low %v4040_v54, %v4044_v33 }
 0x470   :  { %10504 = vmatpush2.bf16.msra.mxu0 %v17761_v29 }
 0x471   :  { %7321 = vmatpush1.bf16.msra.mxu1 %v17559_v46  ;;  %10505 = vmatprep.subr.bf16.mxu0 %v17754_v35  ;;  %v4056_v46 = vld [vmem:[#allocation6 + $0xed8] sm:$0xff] }
 0x472   :  { %7322 = vmatprep.subr.bf16.mxu1 %v17552_v36  ;;  %v4060_v35 = vld [vmem:[#allocation6 + $0xef8] sm:$0xff]  ;;  %v17969_v36 = vcombine.low %v7671_v28, %v7675_v40 }
 0x473   :  { %v17632_v51 = vcombine.high %v4056_v46, %v4060_v35 }
 0x474   :  { %10506 = vmatpush2.bf16.msra.mxu0 %v17753_v52  ;;  %v7655_v52 = vld [vmem:[#allocation9 + $0x900] sm:$0xff] }
 0x475   :  { %7323 = vmatpush1.bf16.msra.mxu1 %v17551_v24  ;;  %10507 = vmatprep.subr.bf16.mxu0 %v17746_v47  ;;  %v7659_v24 = vld [vmem:[#allocation9 + $0x920] sm:$0xff]  ;;  %v7019_v47 = vadd.f32 %v20659_v17, %v20643_v16  ;;  %v17623_v16 = vcombine.low %v4048_v22, %v4052_v60 }
 0x476   :  { %7324 = vmatprep.subr.bf16.mxu1 %v17544_v62  ;;  %v17953_v3 = vcombine.low %v7655_v52, %v7659_v24 }
 0x477   :  { %20028 = vtanh.f32 %v7019_v47 }
 0x478   :  { %10508 = vmatpush2.bf16.msra.mxu0 %v17745_v61  ;;  %v17631_v61 = vcombine.low %v4056_v46, %v4060_v35  ;;  %v4118_v35 = vrot.slane %v20629_v32, %v20535_v23  ;;  %20030 = vtanh.f32 %v20656_v49 }
 0x479   :  { %7325 = vmatpush1.bf16.msra.mxu1 %v17543_v9  ;;  %10509 = vmatprep.subr.bf16.mxu0 %v17738_v1  ;;  %v17954_v9 = vcombine.high %v7655_v52, %v7659_v24  ;;  %v17624_v1 = vcombine.high %v4048_v22, %v4052_v60  ;;  %v7747_v52 = vld [vmem:[#allocation9 + $0xbe0] sm:$0xff] }
 0x47a   :  { %7326 = vmatprep.subr.bf16.mxu1 %v17664_v19  ;;  %v7647_v19 = vld [vmem:[#allocation9 + $0x8c0] sm:$0xff] }
 0x47b   :  { %v17946_v17 = vcombine.high %v7647_v19, %v7651_v41  ;;  %v17945_v43 = vcombine.low %v7647_v19, %v7651_v41  ;;  %v7539_v22 = vld [vmem:[#allocation9 + $0x560] sm:$0xff] }
 0x47c   :  { %10510 = vmatpush2.bf16.msra.mxu0 %v17737_v10  ;;  %v17616_v10 = vcombine.high %v4040_v54, %v4044_v33  ;;  %v7735_v19 = vld [vmem:[#allocation9 + $0xb80] sm:$0xff] }
 0x47d   :  { %7327 = vmatpush2.bf16.msra.mxu1 %v17663_v42  ;;  %10511 = vmatprep.subr.bf16.mxu0 %v17730_v37  ;;  %v7639_v42 = vld [vmem:[#allocation9 + $0x880] sm:$0xff] }
 0x47e   :  { %7328 = vmatprep.subr.bf16.mxu1 %v17656_v57  ;;  %v7643_v37 = vld [vmem:[#allocation9 + $0x8a0] sm:$0xff]  ;;  %v4032_v57 = vld [vmem:[#allocation6 + $0xe18] sm:$0xff] }
 0x47f   :  { %v17938_v5 = vcombine.high %v7639_v42, %v7643_v37  ;;  %v17937_v28 = vcombine.low %v7639_v42, %v7643_v37  ;;  %v17607_v40 = vcombine.low %v4032_v57, %v4036_v25  ;;  %v7739_v41 = vld [vmem:[#allocation9 + $0xba0] sm:$0xff] }
 0x480   :  { %10512 = vmatpush2.bf16.msra.mxu0 %v17729_v59  ;;  %v17608_v59 = vcombine.high %v4032_v57, %v4036_v25  ;;  %v7527_v33 = vld [vmem:[#allocation9 + $0x500] sm:$0xff] }
 0x481   :  { %7329 = vmatpush2.bf16.msra.mxu1 %v17655_v14  ;;  %10563 = vmatprep.subr.bf16.mxu0 %v17978_v15  ;;  %v7631_v14 = vld [vmem:[#allocation9 + $0x840] sm:$0xff] }
 0x482   :  { %7330 = vmatprep.subr.bf16.mxu1 %v17648_v27  ;;  %v7635_v15 = vld [vmem:[#allocation9 + $0x860] sm:$0xff] }
 0x483   :  { %v20664_v29 = vpop.f32.mrf.mxu0  ;;  %10514 = vmatmul.mubr.bf16.vlgmr.msra.gmra.mxu0 %v20662_v31  ;;  %v7555_v27 = vld [vmem:[#allocation9 + $0x5e0] sm:$0xff]  ;;  %v17930_v11 = vcombine.high %v7631_v14, %v7635_v15  ;;  %v17929_v46 = vcombine.low %v7631_v14, %v7635_v15 }
 0x484   :  { %10564 = vmatpush1.bf16.msra.mxu0 %v17977_v18  ;;  %v17850_v12 = vcombine.high %v7551_v55, %v7555_v27  ;;  %v7543_v18 = vld [vmem:[#allocation9 + $0x580] sm:$0xff]  ;;  %v20029_v26 = vpop.eup %20028 }
 0x485   :  { %7331 = vmatpush2.bf16.msra.mxu1 %v17647_v8  ;;  %v20667_v38 = vpop.f32.mrf.mxu0  ;;  %10565 = vmatprep.subr.bf16.mxu0 %v17970_v20  ;;  %v4114_v8 = vrot.slane %v20629_v32, %v20512_v45  ;;  %v7547_v20 = vld [vmem:[#allocation9 + $0x5a0] sm:$0xff]  ;;  %v20676_v47 = vpack.c.bf16 %v20029_v26, %v20029_v26 }
 0x486   :  { %7332 = vmatprep.subr.bf16.mxu1 %v17640_v21  ;;  %v7623_v21 = vld [vmem:[#allocation9 + $0x800] sm:$0xff] }
 0x487   :  { %v7143_v62 = vpop.f32.mrf.mxu0  ;;  %v7058_v24 = vadd.f32 %v20648_v2, %v4114_v8  ;;  %v17921_v32 = vcombine.low %v7623_v21, %v7627_v44  ;;  %v7727_v25 = vld [vmem:[#allocation9 + $0xb40] sm:$0xff] }
 0x488   :  { %10566 = vmatpush1.bf16.msra.mxu0 %v17969_v36  ;;  %v17849_v36 = vcombine.low %v7551_v55, %v7555_v27  ;;  %v7535_v62 = vld [vmem:[#allocation9 + $0x540] sm:$0xff] }
 0x489   :  { %7333 = vmatpush2.bf16.msra.mxu1 %v17639_v0  ;;  %v7144_v39 = vpop.f32.mrf.mxu0  ;;  %10567 = vmatprep.subr.bf16.mxu0 %v17962_v48  ;;  %v17842_v0 = vcombine.high %v7543_v18, %v7547_v20  ;;  %v17922_v48 = vcombine.high %v7623_v21, %v7627_v44  ;;  %v17834_v2 = vcombine.high %v7535_v62, %v7539_v22  ;;  %v7719_v55 = vld [vmem:[#allocation9 + $0xb00] sm:$0xff] }
 0x48a   :  { %7334 = vmatprep.subr.bf16.mxu1 %v17632_v51  ;;  %v7743_v51 = vld [vmem:[#allocation9 + $0xbc0] sm:$0xff]  ;;  %v7060_v39 = vadd.f32 %v20652_v58, %v4118_v35 }
 0x48b   :  { %v18041_v58 = vcombine.low %v7743_v51, %v7747_v52  ;;  %v7723_v27 = vld [vmem:[#allocation9 + $0xb20] sm:$0xff] }
 0x48c   :  { %10568 = vmatpush1.bf16.msra.mxu0 %v17961_v63  ;;  %v17841_v63 = vcombine.low %v7543_v18, %v7547_v20  ;;  %v7711_v8 = vld [vmem:[#allocation9 + $0xac0] sm:$0xff]  ;;  %v18017_v26 = vcombine.low %v7719_v55, %v7723_v27 }
 0x48d   :  { %7335 = vmatpush2.bf16.msra.mxu1 %v17631_v61  ;;  %10569 = vmatprep.subr.bf16.mxu0 %v17954_v9  ;;  %v18042_v9 = vcombine.high %v7743_v51, %v7747_v52  ;;  %v7715_v20 = vld [vmem:[#allocation9 + $0xae0] sm:$0xff] }
 0x48e   :  { %7336 = vmatprep.subr.bf16.mxu1 %v17624_v1  ;;  %v7503_v21 = vld [vmem:[#allocation9 + $0x440] sm:$0xff]  ;;  %v18010_v35 = vcombine.high %v7711_v8, %v7715_v20 }
 0x48f   :  { %v7507_v44 = vld [vmem:[#allocation9 + $0x460] sm:$0xff] }
 0x490   :  { %10570 = vmatpush1.bf16.msra.mxu0 %v17953_v3  ;;  %v7531_v3 = vld [vmem:[#allocation9 + $0x520] sm:$0xff] }
 0x491   :  { %7337 = vmatpush2.bf16.msra.mxu1 %v17623_v16  ;;  %10571 = vmatprep.subr.bf16.mxu0 %v17946_v17  ;;  %v17833_v17 = vcombine.low %v7535_v62, %v7539_v22  ;;  %v17826_v57 = vcombine.high %v7527_v33, %v7531_v3  ;;  %v7495_v51 = vld [vmem:[#allocation9 + $0x400] sm:$0xff]  ;;  %v17801_v62 = vcombine.low %v7503_v21, %v7507_v44 }
 0x492   :  { %7338 = vmatprep.subr.bf16.mxu1 %v17616_v10  ;;  %v18034_v10 = vcombine.high %v7735_v19, %v7739_v41  ;;  %v7499_v52 = vld [vmem:[#allocation9 + $0x420] sm:$0xff] }
 0x494   :  { %10572 = vmatpush1.bf16.msra.mxu0 %v17945_v43  ;;  %v7731_v43 = vld [vmem:[#allocation9 + $0xb60] sm:$0xff] }
 0x495   :  { %7339 = vmatpush2.bf16.msra.mxu1 %v17615_v4  ;;  %10573 = vmatprep.subr.bf16.mxu0 %v17938_v5  ;;  %v7519_v4 = vld [vmem:[#allocation9 + $0x4c0] sm:$0xff]  ;;  %v18026_v14 = vcombine.high %v7727_v25, %v7731_v43 }
 0x496   :  { %7340 = vmatprep.subr.bf16.mxu1 %v17608_v59  ;;  %v7523_v5 = vld [vmem:[#allocation9 + $0x4e0] sm:$0xff]  ;;  %v17825_v59 = vcombine.low %v7527_v33, %v7531_v3 }
 0x497   :  { %v17818_v15 = vcombine.high %v7519_v4, %v7523_v5  ;;  %v7607_v33 = vld [vmem:[#allocation9 + $0x780] sm:$0xff] }
 0x498   :  { %10574 = vmatpush1.bf16.msra.mxu0 %v17937_v28  ;;  %v7511_v28 = vld [vmem:[#allocation9 + $0x480] sm:$0xff] }
 0x499   :  { %7341 = vmatpush2.bf16.msra.mxu1 %v17607_v40  ;;  %10575 = vmatprep.subr.bf16.mxu0 %v17930_v11  ;;  %v18025_v40 = vcombine.low %v7727_v25, %v7731_v43  ;;  %v17817_v11 = vcombine.low %v7519_v4, %v7523_v5  ;;  %v7611_v3 = vld [vmem:[#allocation9 + $0x7a0] sm:$0xff] }
 0x49a   :  { %10522 = vmatprep.subr.bf16.mxu1 %v17850_v12  ;;  %v18018_v12 = vcombine.high %v7719_v55, %v7723_v27  ;;  %v7599_v25 = vld [vmem:[#allocation9 + $0x740] sm:$0xff]  ;;  %v17905_v5 = vcombine.low %v7607_v33, %v7611_v3 }
 0x49b   :  { %v7603_v43 = vld [vmem:[#allocation9 + $0x760] sm:$0xff] }
 0x49c   :  { %v7098_v60 = vpop.f32.mrf.mxu1  ;;  %7343 = vmatmul.mubr.bf16.vlgmr.msra.gmra.mxu1 %v20581_v30  ;;  %10576 = vmatpush1.bf16.msra.mxu0 %v17929_v46  ;;  %v17897_v55 = vcombine.low %v7599_v25, %v7603_v43 }
 0x49d   :  { %v7099_v61 = vadd.f32 %v7098_v60, %v7058_v24  ;;  %10523 = vmatpush1.bf16.msra.mxu1 %v17849_v36  ;;  %10554 = vmatprep.mubr.bf16.mxu1 %v20676_v47  ;;  %v17802_v36 = vcombine.high %v7503_v21, %v7507_v44  ;;  %v18009_v24 = vcombine.low %v7711_v8, %v7715_v20  ;;  %v7575_v20 = vld [vmem:[#allocation9 + $0x680] sm:$0xff] }
 0x49e   :  { %v7100_v1 = vpop.f32.mrf.mxu1  ;;  %10524 = vmatprep.subr.bf16.mxu1 %v17842_v0  ;;  %10577 = vmatprep.subr.bf16.mxu0 %v17922_v48  ;;  %v7703_v0 = vld [vmem:[#allocation9 + $0xa80] sm:$0xff]  ;;  %v17794_v60 = vcombine.high %v7495_v51, %v7499_v52 }
 0x49f   :  { %v7101_v54 = vadd.f32 %v7100_v1, %v7060_v39  ;;  %v20682_v30 = vadd.f32 %v20664_v29, %v7099_v61  ;;  %v18033_v29 = vcombine.low %v7735_v19, %v7739_v41  ;;  %v7707_v48 = vld [vmem:[#allocation9 + $0xaa0] sm:$0xff]  ;;  %v17793_v1 = vcombine.low %v7495_v51, %v7499_v52 }
 0x4a0   :  { %v7102_v16 = vpop.f32.mrf.mxu1  ;;  %10578 = vmatpush1.bf16.msra.mxu0 %v17921_v32  ;;  %v18002_v22 = vcombine.high %v7703_v0, %v7707_v48  ;;  %v7699_v32 = vld [vmem:[#allocation9 + $0xa60] sm:$0xff] }
 0x4a1   :  { %10525 = vmatpush1.bf16.msra.mxu1 %v17841_v63  ;;  %10579 = vmatprep.subr.bf16.mxu0 %v18042_v9  ;;  %v20685_v42 = vadd.f32 %v20667_v38, %v7101_v54  ;;  %v7515_v38 = vld [vmem:[#allocation9 + $0x4a0] sm:$0xff]  ;;  %v18001_v9 = vcombine.low %v7703_v0, %v7707_v48 }
 0x4a2   :  { %v7103_v37 = vpop.f32.mrf.mxu1  ;;  %10526 = vmatprep.subr.bf16.mxu1 %v17834_v2  ;;  %v17810_v18 = vcombine.high %v7511_v28, %v7515_v38  ;;  %v17809_v46 = vcombine.low %v7511_v28, %v7515_v38  ;;  %v7695_v63 = vld [vmem:[#allocation9 + $0xa40] sm:$0xff] }
 0x4a3   :  { %v7615_v39 = vld [vmem:[#allocation9 + $0x7c0] sm:$0xff]  ;;  %v17994_v2 = vcombine.high %v7695_v63, %v7699_v32  ;;  %v17993_v16 = vcombine.low %v7695_v63, %v7699_v32  ;;  %v20687_v37 = vld [vmem:[#allocation9 + $0x1c8] sm:$0xff]  ;;  %v20031_v32 = vpop.eup %20030 }
 0x4a4   :  { %10580 = vmatpush2.bf16.msra.mxu0 %v18041_v58  ;;  %v7619_v61 = vld [vmem:[#allocation9 + $0x7e0] sm:$0xff] }
 0x4a5   :  { %10527 = vmatpush1.bf16.msra.mxu1 %v17833_v17  ;;  %10581 = vmatprep.subr.bf16.mxu0 %v18034_v10  ;;  %v17914_v19 = vcombine.high %v7615_v39, %v7619_v61  ;;  %v7687_v41 = vld [vmem:[#allocation9 + $0xa00] sm:$0xff]  ;;  %v17913_v58 = vcombine.low %v7615_v39, %v7619_v61  ;;  %v17906_v10 = vcombine.high %v7607_v33, %v7611_v3 }
 0x4a6   :  { %10528 = vmatprep.subr.bf16.mxu1 %v17826_v57  ;;  %v7691_v54 = vld [vmem:[#allocation9 + $0xa20] sm:$0xff]  ;;  %v20689_v57 = vld [vmem:[#allocation9 + $0x1e8] sm:$0xff] }
 0x4a7   :  { %v17986_v17 = vcombine.high %v7687_v41, %v7691_v54  ;;  %v17985_v4 = vcombine.low %v7687_v41, %v7691_v54  ;;  %v7583_v38 = vld [vmem:[#allocation9 + $0x6c0] sm:$0xff] }
 0x4a8   :  { %10582 = vmatpush2.bf16.msra.mxu0 %v18033_v29  ;;  %v17724_v29 = vcombine.high %v20687_v37, %v20689_v57  ;;  %v7579_v21 = vld [vmem:[#allocation9 + $0x6a0] sm:$0xff] }
 0x4a9   :  { %10529 = vmatpush1.bf16.msra.mxu1 %v17825_v59  ;;  %10583 = vmatprep.subr.bf16.mxu0 %v18026_v14  ;;  %v17898_v59 = vcombine.high %v7599_v25, %v7603_v43  ;;  %v7591_v14 = vld [vmem:[#allocation9 + $0x700] sm:$0xff]  ;;  %v17873_v0 = vcombine.low %v7575_v20, %v7579_v21 }
 0x4aa   :  { %10530 = vmatprep.subr.bf16.mxu1 %v17818_v15  ;;  %v7595_v15 = vld [vmem:[#allocation9 + $0x720] sm:$0xff] }
 0x4ab   :  { %v17890_v27 = vcombine.high %v7591_v14, %v7595_v15  ;;  %v7559_v51 = vld [vmem:[#allocation9 + $0x600] sm:$0xff] }
 0x4ac   :  { %10584 = vmatpush2.bf16.msra.mxu0 %v18025_v40  ;;  %v7587_v40 = vld [vmem:[#allocation9 + $0x6e0] sm:$0xff] }
 0x4ad   :  { %10531 = vmatpush1.bf16.msra.mxu1 %v17817_v11  ;;  %10585 = vmatprep.subr.bf16.mxu0 %v18018_v12  ;;  %v17889_v12 = vcombine.low %v7591_v14, %v7595_v15  ;;  %v7563_v52 = vld [vmem:[#allocation9 + $0x620] sm:$0xff] }
 0x4ae   :  { %10532 = vmatprep.subr.bf16.mxu1 %v17810_v18  ;;  %v17882_v18 = vcombine.high %v7583_v38, %v7587_v40  ;;  %v17857_v63 = vcombine.low %v7559_v51, %v7563_v52  ;;  %v7799_v39 = vld [vmem:[#allocation9 + $0xd80] sm:$0xff] }
 0x4af   :  { %v7803_v61 = vld [vmem:[#allocation9 + $0xda0] sm:$0xff] }
 0x4b0   :  { %10586 = vmatpush2.bf16.msra.mxu0 %v18017_v26  ;;  %v17881_v26 = vcombine.low %v7583_v38, %v7587_v40  ;;  %v7795_v41 = vld [vmem:[#allocation9 + $0xd60] sm:$0xff]  ;;  %v18097_v3 = vcombine.low %v7799_v39, %v7803_v61 }
 0x4b1   :  { %10533 = vmatpush1.bf16.msra.mxu1 %v17809_v46  ;;  %10587 = vmatprep.subr.bf16.mxu0 %v18010_v35  ;;  %v17874_v46 = vcombine.high %v7575_v20, %v7579_v21  ;;  %v7567_v35 = vld [vmem:[#allocation9 + $0x640] sm:$0xff]  ;;  %v7420_v20 = vld [vmem:[#allocation9 + $0x1a8] sm:$0xff] }
 0x4b2   :  { %10534 = vmatprep.subr.bf16.mxu1 %v17802_v36  ;;  %v7571_v36 = vld [vmem:[#allocation9 + $0x660] sm:$0xff] }
 0x4b3   :  { %v17866_v48 = vcombine.high %v7567_v35, %v7571_v36  ;;  %v7787_v25 = vld [vmem:[#allocation9 + $0xd20] sm:$0xff] }
 0x4b4   :  { %10588 = vmatpush2.bf16.msra.mxu0 %v18009_v24  ;;  %v17865_v24 = vcombine.low %v7567_v35, %v7571_v36  ;;  %v7779_v14 = vld [vmem:[#allocation9 + $0xce0] sm:$0xff]  ;;  %v17723_v36 = vcombine.low %v20687_v37, %v20689_v57 }
 0x4b5   :  { %10535 = vmatpush1.bf16.msra.mxu1 %v17801_v62  ;;  %10589 = vmatprep.subr.bf16.mxu0 %v18002_v22  ;;  %v17858_v62 = vcombine.high %v7559_v51, %v7563_v52  ;;  %v7807_v22 = vld [vmem:[#allocation9 + $0xdc0] sm:$0xff]  ;;  %v20709_v51 = vld [vmem:[#allocation9 + $0x5e8] sm:$0xff] }
 0x4b6   :  { %10536 = vmatprep.subr.bf16.mxu1 %v17794_v60  ;;  %v7811_v60 = vld [vmem:[#allocation9 + $0xde0] sm:$0xff] }
 0x4b7   :  { %v18106_v49 = vcombine.high %v7807_v22, %v7811_v60  ;;  %v7759_v40 = vld [vmem:[#allocation9 + $0xc40] sm:$0xff] }
 0x4b8   :  { %10590 = vmatpush2.bf16.msra.mxu0 %v18001_v9  ;;  %v18105_v9 = vcombine.low %v7807_v22, %v7811_v60  ;;  %v7412_v22 = vld [vmem:[#allocation9 + $0x168] sm:$0xff] }
 0x4b9   :  { %10537 = vmatpush1.bf16.msra.mxu1 %v17793_v1  ;;  %10591 = vmatprep.subr.bf16.mxu0 %v17994_v2  ;;  %v20698_v1 = vpack.c.bf16 %v20031_v32, %v20031_v32  ;;  %v18098_v2 = vcombine.high %v7799_v39, %v7803_v61  ;;  %v7875_v32 = vld [vmem:[#allocation9 + $0xfe0] sm:$0xff]  ;;  %v7400_v61 = vld [vmem:[#allocation9 + $0x108] sm:$0xff] }
 0x4ba   :  { %10538 = vmatprep.subr.bf16.mxu1 %v17914_v19  ;;  %v7791_v19 = vld [vmem:[#allocation9 + $0xd40] sm:$0xff] }
 0x4bc   :  { %10592 = vmatpush2.bf16.msra.mxu0 %v17993_v16 }
 0x4bd   :  { %10539 = vmatpush2.bf16.msra.mxu1 %v17913_v58  ;;  %10593 = vmatprep.subr.bf16.mxu0 %v17986_v17  ;;  %v18090_v58 = vcombine.high %v7791_v19, %v7795_v41 }
 0x4be   :  { %10540 = vmatprep.subr.bf16.mxu1 %v17906_v10  ;;  %v7783_v10 = vld [vmem:[#allocation9 + $0xd00] sm:$0xff] }
 0x4c0   :  { %10594 = vmatpush2.bf16.msra.mxu0 %v17985_v4  ;;  %v18089_v4 = vcombine.low %v7791_v19, %v7795_v41 }
 0x4c1   :  { %10541 = vmatpush2.bf16.msra.mxu1 %v17905_v5  ;;  %10645 = vmatprep.subr.bf16.mxu0 %v17724_v29  ;;  %v18082_v29 = vcombine.high %v7783_v10, %v7787_v25 }
 0x4c2   :  { %10542 = vmatprep.subr.bf16.mxu1 %v17898_v59  ;;  %v7775_v59 = vld [vmem:[#allocation9 + $0xcc0] sm:$0xff] }
 0x4c3   :  { %v20693_v28 = vpop.f32.mrf.mxu0  ;;  %v18074_v15 = vcombine.high %v7775_v59, %v7779_v14 }
 0x4c5   :  { %10543 = vmatpush2.bf16.msra.mxu1 %v17897_v55  ;;  %v20695_v11 = vpop.f32.mrf.mxu0  ;;  %v7767_v55 = vld [vmem:[#allocation9 + $0xc80] sm:$0xff] }
 0x4c6   :  { %10544 = vmatprep.subr.bf16.mxu1 %v17890_v27  ;;  %v7771_v27 = vld [vmem:[#allocation9 + $0xca0] sm:$0xff] }
 0x4c7   :  { %v7225_v8 = vpop.f32.mrf.mxu0  ;;  %v18066_v38 = vcombine.high %v7767_v55, %v7771_v27  ;;  %v18065_v21 = vcombine.low %v7767_v55, %v7771_v27  ;;  %v7847_v55 = vld [vmem:[#allocation9 + $0xf00] sm:$0xff] }
 0x4c8   :  { %v7416_v8 = vld [vmem:[#allocation9 + $0x188] sm:$0xff]  ;;  %v7851_v27 = vld [vmem:[#allocation9 + $0xf20] sm:$0xff] }
 0x4c9   :  { %10545 = vmatpush2.bf16.msra.mxu1 %v17889_v12  ;;  %v7226_v44 = vpop.f32.mrf.mxu0  ;;  %v7763_v12 = vld [vmem:[#allocation9 + $0xc60] sm:$0xff]  ;;  %v17715_v57 = vcombine.low %v7416_v8, %v7420_v20 }
 0x4ca   :  { %10546 = vmatprep.subr.bf16.mxu1 %v17882_v18  ;;  %v18057_v60 = vcombine.low %v7759_v40, %v7763_v12 }
 0x4cd   :  { %10547 = vmatpush2.bf16.msra.mxu1 %v17881_v26  ;;  %v18058_v26 = vcombine.high %v7759_v40, %v7763_v12  ;;  %v7380_v40 = vld [vmem:[#allocation9 + $0x68] sm:$0xff] }
 0x4ce   :  { %10548 = vmatprep.subr.bf16.mxu1 %v17874_v46  ;;  %v7751_v46 = vld [vmem:[#allocation9 + $0xc00] sm:$0xff] }
 0x4d1   :  { %10549 = vmatpush2.bf16.msra.mxu1 %v17873_v0  ;;  %v7755_v0 = vld [vmem:[#allocation9 + $0xc20] sm:$0xff] }
 0x4d2   :  { %10550 = vmatprep.subr.bf16.mxu1 %v17866_v48  ;;  %v20707_v48 = vld [vmem:[#allocation9 + $0x5c8] sm:$0xff]  ;;  %v18050_v37 = vcombine.high %v7751_v46, %v7755_v0 }
 0x4d5   :  { %10551 = vmatpush2.bf16.msra.mxu1 %v17865_v24  ;;  %v17716_v24 = vcombine.high %v7416_v8, %v7420_v20 }
 0x4d6   :  { %10552 = vmatprep.subr.bf16.mxu1 %v17858_v62  ;;  %v7408_v62 = vld [vmem:[#allocation9 + $0x148] sm:$0xff] }
 0x4d7   :  { %v17708_v39 = vcombine.high %v7408_v62, %v7412_v22  ;;  %v17707_v41 = vcombine.low %v7408_v62, %v7412_v22 }
 0x4d9   :  { %10553 = vmatpush2.bf16.msra.mxu1 %v17857_v63  ;;  %v17851_v63 = vcombine.low %v20707_v48, %v20709_v51 }
 0x4da   :  { %10604 = vmatprep.subr.bf16.mxu1 %v18106_v49  ;;  %v7871_v49 = vld [vmem:[#allocation9 + $0xfc0] sm:$0xff] }
 0x4db   :  { %v18170_v19 = vcombine.high %v7871_v49, %v7875_v32 }
 0x4dc   :  { %v7180_v54 = vpop.f32.mrf.mxu1  ;;  %10555 = vmatmul.mubr.bf16.vlgmr.msra.gmra.mxu1 %v20698_v1 }
 0x4dd   :  { %v7181_v33 = vadd.f32 %v7180_v54, %v20682_v30  ;;  %10605 = vmatpush1.bf16.msra.mxu1 %v18105_v9  ;;  %v18081_v30 = vcombine.low %v7783_v10, %v7787_v25  ;;  %v7404_v9 = vld [vmem:[#allocation9 + $0x128] sm:$0xff]  ;;  %v7863_v54 = vld [vmem:[#allocation9 + $0xf80] sm:$0xff] }
 0x4de   :  { %v7182_v16 = vpop.f32.mrf.mxu1  ;;  %10606 = vmatprep.subr.bf16.mxu1 %v18098_v2  ;;  %v18049_v2 = vcombine.low %v7751_v46, %v7755_v0  ;;  %v17699_v25 = vcombine.low %v7400_v61, %v7404_v9  ;;  %v7372_v0 = vld [vmem:[#allocation9 + $0x28] sm:$0xff] }
 0x4df   :  { %v7183_v17 = vadd.f32 %v7182_v16, %v20685_v42  ;;  %20032 = vtanh.f32 %v7181_v33  ;;  %v18073_v42 = vcombine.low %v7775_v59, %v7779_v14  ;;  %v7867_v33 = vld [vmem:[#allocation9 + $0xfa0] sm:$0xff]  ;;  %v7392_v16 = vld [vmem:[#allocation9 + $0xc8] sm:$0xff] }
 0x4e0   :  { %v7184_v43 = vpop.f32.mrf.mxu1  ;;  %v18162_v10 = vcombine.high %v7863_v54, %v7867_v33  ;;  %v7388_v59 = vld [vmem:[#allocation9 + $0xa8] sm:$0xff]  ;;  %v18161_v14 = vcombine.low %v7863_v54, %v7867_v33  ;;  %v7827_v54 = vld [vmem:[#allocation9 + $0xe60] sm:$0xff] }
 0x4e1   :  { %20034 = vtanh.f32 %v7183_v17  ;;  %10607 = vmatpush1.bf16.msra.mxu1 %v18097_v3  ;;  %v17700_v3 = vcombine.high %v7400_v61, %v7404_v9  ;;  %v18169_v17 = vcombine.low %v7871_v49, %v7875_v32  ;;  %v7855_v43 = vld [vmem:[#allocation9 + $0xf40] sm:$0xff]  ;;  %v7492_v61 = vld [vmem:[#allocation9 + $0x3e8] sm:$0xff] }
 0x4e2   :  { %v7185_v5 = vpop.f32.mrf.mxu1  ;;  %10608 = vmatprep.subr.bf16.mxu1 %v18090_v58  ;;  %v7396_v58 = vld [vmem:[#allocation9 + $0xe8] sm:$0xff] }
 0x4e3   :  { %v17692_v5 = vcombine.high %v7392_v16, %v7396_v58 }
 0x4e5   :  { %10609 = vmatpush1.bf16.msra.mxu1 %v18089_v4  ;;  %v7859_v4 = vld [vmem:[#allocation9 + $0xf60] sm:$0xff] }
 0x4e6   :  { %10610 = vmatprep.subr.bf16.mxu1 %v18082_v29  ;;  %v7384_v29 = vld [vmem:[#allocation9 + $0x88] sm:$0xff]  ;;  %v18153_v12 = vcombine.low %v7855_v43, %v7859_v4 }
 0x4e7   :  { %v17683_v20 = vcombine.low %v7384_v29, %v7388_v59 }
 0x4e9   :  { %10611 = vmatpush1.bf16.msra.mxu1 %v18081_v30  ;;  %v18154_v30 = vcombine.high %v7855_v43, %v7859_v4  ;;  %v7819_v43 = vld [vmem:[#allocation9 + $0xe20] sm:$0xff] }
 0x4ea   :  { %10612 = vmatprep.subr.bf16.mxu1 %v18074_v15  ;;  %v17691_v15 = vcombine.low %v7392_v16, %v7396_v58  ;;  %v7484_v16 = vld [vmem:[#allocation9 + $0x3a8] sm:$0xff] }
 0x4ec   :  { %v20033_v18 = vpop.eup %20032 }
 0x4ed   :  { %10613 = vmatpush1.bf16.msra.mxu1 %v18073_v42  ;;  %v20711_v52 = vpack.c.bf16 %v20033_v18, %v20033_v18  ;;  %v17684_v42 = vcombine.high %v7384_v29, %v7388_v59  ;;  %v18146_v18 = vcombine.high %v7847_v55, %v7851_v27  ;;  %v7476_v29 = vld [vmem:[#allocation9 + $0x368] sm:$0xff] }
 0x4ee   :  { %v20035_v44 = vpop.eup %20034  ;;  %10614 = vmatprep.subr.bf16.mxu1 %v18066_v38  ;;  %v7376_v38 = vld [vmem:[#allocation9 + $0x48] sm:$0xff] }
 0x4ef   :  { %v20703_v35 = vpack.c.bf16 %v20035_v44, %v20035_v44  ;;  %v7843_v44 = vld [vmem:[#allocation9 + $0xee0] sm:$0xff] }
 0x4f1   :  { %10595 = vmatprep.mubr.bf16.mxu0 %v20703_v35  ;;  %10615 = vmatpush1.bf16.msra.mxu1 %v18065_v21  ;;  %v7839_v21 = vld [vmem:[#allocation9 + $0xec0] sm:$0xff] }
 0x4f2   :  { %10596 = vmatmul.mubr.bf16.vlgmr.msra.gmra.mxu0 %v20711_v52  ;;  %10616 = vmatprep.subr.bf16.mxu1 %v18058_v26  ;;  %v17676_v26 = vcombine.high %v7376_v38, %v7380_v40  ;;  %v18138_v62 = vcombine.high %v7839_v21, %v7843_v44  ;;  %v18137_v9 = vcombine.low %v7839_v21, %v7843_v44  ;;  %v7456_v44 = vld [vmem:[#allocation9 + $0x2c8] sm:$0xff] }
 0x4f3   :  { %10646 = vmatpush1.bf16.msra.mxu0 %v17723_v36  ;;  %10677 = vmatprep.mubr.bf16.mxu0 %v20646_v34  ;;  %v7368_v36 = vld [vmem:[#allocation9 + $0x8] sm:$0xff] }
 0x4f4   :  { %10647 = vmatprep.subr.bf16.mxu0 %v17716_v24  ;;  %v18145_v24 = vcombine.low %v7847_v55, %v7851_v27  ;;  %v17668_v49 = vcombine.high %v7368_v36, %v7372_v0  ;;  %v7464_v55 = vld [vmem:[#allocation9 + $0x308] sm:$0xff] }
 0x4f5   :  { %10617 = vmatpush1.bf16.msra.mxu1 %v18057_v60  ;;  %v17675_v60 = vcombine.low %v7376_v38, %v7380_v40  ;;  %v7468_v27 = vld [vmem:[#allocation9 + $0x328] sm:$0xff]  ;;  %v17852_v38 = vcombine.high %v20707_v48, %v20709_v51  ;;  %v20063_v40 = vld [vmem:[#allocation7] sm:$0xff] }
 0x4f6   :  { %10618 = vmatprep.subr.bf16.mxu1 %v18050_v37  ;;  %v7831_v37 = vld [vmem:[#allocation9 + $0xe80] sm:$0xff]  ;;  %v4126_v21 = vrot.slane %v20063_v40, %v20569_v53 }
 0x4f7   :  { %10648 = vmatpush1.bf16.msra.mxu0 %v17715_v57  ;;  %v7835_v57 = vld [vmem:[#allocation9 + $0xea0] sm:$0xff] }
 0x4f8   :  { %10649 = vmatprep.subr.bf16.mxu0 %v17708_v39  ;;  %v7488_v39 = vld [vmem:[#allocation9 + $0x3c8] sm:$0xff]  ;;  %v18129_v58 = vcombine.low %v7831_v37, %v7835_v57 }
 0x4f9   :  { %10619 = vmatpush1.bf16.msra.mxu1 %v18049_v2  ;;  %v18130_v2 = vcombine.high %v7831_v37, %v7835_v57  ;;  %v17788_v33 = vcombine.high %v7488_v39, %v7492_v61  ;;  %v7448_v37 = vld [vmem:[#allocation9 + $0x288] sm:$0xff] }
 0x4fa   :  { %10620 = vmatprep.subr.bf16.mxu1 %v18170_v19  ;;  %v17667_v19 = vcombine.low %v7368_v36, %v7372_v0  ;;  %v17763_v0 = vcombine.low %v7464_v55, %v7468_v27  ;;  %v7452_v57 = vld [vmem:[#allocation9 + $0x2a8] sm:$0xff] }
 0x4fb   :  { %10650 = vmatpush1.bf16.msra.mxu0 %v17707_v41  ;;  %v7823_v41 = vld [vmem:[#allocation9 + $0xe40] sm:$0xff] }
 0x4fc   :  { %10651 = vmatprep.subr.bf16.mxu0 %v17700_v3  ;;  %v7480_v3 = vld [vmem:[#allocation9 + $0x388] sm:$0xff]  ;;  %v18121_v59 = vcombine.low %v7823_v41, %v7827_v54 }
 0x4fd   :  { %10621 = vmatpush2.bf16.msra.mxu1 %v18169_v17  ;;  %v18122_v17 = vcombine.high %v7823_v41, %v7827_v54  ;;  %v17780_v4 = vcombine.high %v7480_v3, %v7484_v16 }
 0x4fe   :  { %10622 = vmatprep.subr.bf16.mxu1 %v18162_v10  ;;  %v17787_v10 = vcombine.low %v7488_v39, %v7492_v61 }
 0x4ff   :  { %10652 = vmatpush1.bf16.msra.mxu0 %v17699_v25  ;;  %v7815_v25 = vld [vmem:[#allocation9 + $0xe00] sm:$0xff] }
 0x500   :  { %10653 = vmatprep.subr.bf16.mxu0 %v17692_v5  ;;  %v7472_v5 = vld [vmem:[#allocation9 + $0x348] sm:$0xff] }
 0x501   :  { %10623 = vmatpush2.bf16.msra.mxu1 %v18161_v14  ;;  %v18114_v14 = vcombine.high %v7815_v25, %v7819_v43 }
 0x502   :  { %10624 = vmatprep.subr.bf16.mxu1 %v18154_v30  ;;  %v17779_v30 = vcombine.low %v7480_v3, %v7484_v16  ;;  %v7432_v3 = vld [vmem:[#allocation9 + $0x208] sm:$0xff] }
 0x503   :  { %10654 = vmatpush1.bf16.msra.mxu0 %v17691_v15  ;;  %v20718_v8 = vpop.f32.mrf.mxu0  ;;  %v17772_v15 = vcombine.high %v7472_v5, %v7476_v29  ;;  %v7436_v16 = vld [vmem:[#allocation9 + $0x228] sm:$0xff] }
 0x504   :  { %10655 = vmatprep.subr.bf16.mxu0 %v17684_v42  ;;  %v18113_v42 = vcombine.low %v7815_v25, %v7819_v43  ;;  %v17731_v25 = vcombine.low %v7432_v3, %v7436_v16 }
 0x505   :  { %v20720_v46 = vpop.f32.mrf.mxu0  ;;  %10625 = vmatpush2.bf16.msra.mxu1 %v18153_v12  ;;  %v4122_v12 = vrot.slane %v20063_v40, %v20566_v50  ;;  %v7648_v40 = vld [vmem:[#allocation9 + $0x8c8] sm:$0xff] }
 0x506   :  { %10626 = vmatprep.subr.bf16.mxu1 %v18146_v18  ;;  %v17771_v18 = vcombine.low %v7472_v5, %v7476_v29 }
 0x507   :  { %10656 = vmatpush1.bf16.msra.mxu0 %v17683_v20  ;;  %v7307_v22 = vpop.f32.mrf.mxu0  ;;  %v17764_v20 = vcombine.high %v7464_v55, %v7468_v27  ;;  %v7222_v36 = vadd.f32 %v20693_v28, %v4122_v12  ;;  %v17748_v28 = vcombine.high %v7448_v37, %v7452_v57  ;;  %v7656_v55 = vld [vmem:[#allocation9 + $0x908] sm:$0xff] }
 0x508   :  { %10657 = vmatprep.subr.bf16.mxu0 %v17676_v26  ;;  %v7460_v26 = vld [vmem:[#allocation9 + $0x2e8] sm:$0xff]  ;;  %v7224_v22 = vadd.f32 %v20695_v11, %v4126_v21  ;;  %v17747_v11 = vcombine.low %v7448_v37, %v7452_v57 }
 0x509   :  { %v7308_v32 = vpop.f32.mrf.mxu0  ;;  %10627 = vmatpush2.bf16.msra.mxu1 %v18145_v24  ;;  %v17755_v39 = vcombine.low %v7456_v44, %v7460_v26  ;;  %v7660_v27 = vld [vmem:[#allocation9 + $0x928] sm:$0xff] }
 0x50a   :  { %10628 = vmatprep.subr.bf16.mxu1 %v18138_v62  ;;  %v17756_v62 = vcombine.high %v7456_v44, %v7460_v26  ;;  %v7652_v12 = vld [vmem:[#allocation9 + $0x8e8] sm:$0xff] }
 0x50b   :  { %10658 = vmatpush1.bf16.msra.mxu0 %v17675_v60  ;;  %v7640_v21 = vld [vmem:[#allocation9 + $0x888] sm:$0xff]  ;;  %v17947_v26 = vcombine.low %v7648_v40, %v7652_v12 }
 0x50c   :  { %10659 = vmatprep.subr.bf16.mxu0 %v17668_v49  ;;  %v7644_v44 = vld [vmem:[#allocation9 + $0x8a8] sm:$0xff] }
 0x50d   :  { %10629 = vmatpush2.bf16.msra.mxu1 %v18137_v9  ;;  %v7624_v57 = vld [vmem:[#allocation9 + $0x808] sm:$0xff] }
 0x50e   :  { %10630 = vmatprep.subr.bf16.mxu1 %v18130_v2  ;;  %v7440_v2 = vld [vmem:[#allocation9 + $0x248] sm:$0xff] }
 0x50f   :  { %10660 = vmatpush1.bf16.msra.mxu0 %v17667_v19  ;;  %v7444_v19 = vld [vmem:[#allocation9 + $0x268] sm:$0xff] }
 0x510   :  { %10661 = vmatprep.subr.bf16.mxu0 %v17788_v33  ;;  %v17740_v33 = vcombine.high %v7440_v2, %v7444_v19 }
 0x511   :  { %10631 = vmatpush2.bf16.msra.mxu1 %v18129_v58  ;;  %v17739_v58 = vcombine.low %v7440_v2, %v7444_v19  ;;  %v7744_v2 = vld [vmem:[#allocation9 + $0xbc8] sm:$0xff] }
 0x512   :  { %10632 = vmatprep.subr.bf16.mxu1 %v18122_v17  ;;  %v7680_v17 = vld [vmem:[#allocation9 + $0x9c8] sm:$0xff] }
 0x513   :  { %10662 = vmatpush2.bf16.msra.mxu0 %v17787_v10  ;;  %v7684_v10 = vld [vmem:[#allocation9 + $0x9e8] sm:$0xff] }
 0x514   :  { %10663 = vmatprep.subr.bf16.mxu0 %v17780_v4  ;;  %v17980_v43 = vcombine.high %v7680_v17, %v7684_v10  ;;  %v7672_v4 = vld [vmem:[#allocation9 + $0x988] sm:$0xff]  ;;  %v17979_v5 = vcombine.low %v7680_v17, %v7684_v10 }
 0x515   :  { %10633 = vmatpush2.bf16.msra.mxu1 %v18121_v59  ;;  %v7664_v59 = vld [vmem:[#allocation9 + $0x948] sm:$0xff] }
 0x516   :  { %10634 = vmatprep.subr.bf16.mxu1 %v18114_v14  ;;  %v7668_v14 = vld [vmem:[#allocation9 + $0x968] sm:$0xff] }
 0x517   :  { %10664 = vmatpush2.bf16.msra.mxu0 %v17779_v30  ;;  %v7748_v19 = vld [vmem:[#allocation9 + $0xbe8] sm:$0xff] }
 0x518   :  { %10665 = vmatprep.subr.bf16.mxu0 %v17772_v15  ;;  %v17964_v15 = vcombine.high %v7664_v59, %v7668_v14  ;;  %v7732_v17 = vld [vmem:[#allocation9 + $0xb68] sm:$0xff] }
 0x519   :  { %10635 = vmatpush2.bf16.msra.mxu1 %v18113_v42  ;;  %v17963_v42 = vcombine.low %v7664_v59, %v7668_v14  ;;  %v7716_v59 = vld [vmem:[#allocation9 + $0xae8] sm:$0xff] }
 0x51a   :  { %10686 = vmatprep.subr.bf16.mxu1 %v17852_v38  ;;  %v17956_v38 = vcombine.high %v7656_v55, %v7660_v27 }
 0x51b   :  { %10666 = vmatpush2.bf16.msra.mxu0 %v17771_v18  ;;  %v17955_v18 = vcombine.low %v7656_v55, %v7660_v27  ;;  %v7704_v27 = vld [vmem:[#allocation9 + $0xa88] sm:$0xff] }
 0x51c   :  { %v7262_v24 = vpop.f32.mrf.mxu1  ;;  %10667 = vmatprep.subr.bf16.mxu0 %v17764_v20  ;;  %v17948_v20 = vcombine.high %v7648_v40, %v7652_v12 }
 0x51d   :  { %v7263_v60 = vadd.f32 %v7262_v24, %v7222_v36  ;;  %v17940_v36 = vcombine.high %v7640_v21, %v7644_v44  ;;  %v7636_v24 = vld [vmem:[#allocation9 + $0x868] sm:$0xff] }
 0x51e   :  { %v7264_v49 = vpop.f32.mrf.mxu1 }
 0x51f   :  { %v7265_v32 = vadd.f32 %v7264_v49, %v7224_v22  ;;  %10668 = vmatpush2.bf16.msra.mxu0 %v17763_v0  ;;  %v20729_v61 = vadd.f32 %v20718_v8, %v7263_v60  ;;  %v17732_v8 = vcombine.high %v7432_v3, %v7436_v16  ;;  %v7632_v0 = vld [vmem:[#allocation9 + $0x848] sm:$0xff]  ;;  %v17939_v22 = vcombine.low %v7640_v21, %v7644_v44 }
 0x520   :  { %v7266_v9 = vpop.f32.mrf.mxu1  ;;  %10669 = vmatprep.subr.bf16.mxu0 %v17756_v62  ;;  %v17932_v60 = vcombine.high %v7632_v0, %v7636_v24  ;;  %v7628_v49 = vld [vmem:[#allocation9 + $0x828] sm:$0xff]  ;;  %v18043_v16 = vcombine.low %v7744_v2, %v7748_v19 }
 0x521   :  { %v20732_v41 = vadd.f32 %v20720_v46, %v7265_v32  ;;  %v7676_v46 = vld [vmem:[#allocation9 + $0x9a8] sm:$0xff]  ;;  %v17924_v9 = vcombine.high %v7624_v57, %v7628_v49 }
 0x522   :  { %v7267_v54 = vpop.f32.mrf.mxu1  ;;  %v17972_v29 = vcombine.high %v7672_v4, %v7676_v46  ;;  %v17971_v30 = vcombine.low %v7672_v4, %v7676_v46  ;;  %v7740_v3 = vld [vmem:[#allocation9 + $0xba8] sm:$0xff] }
 0x523   :  { %10670 = vmatpush2.bf16.msra.mxu0 %v17755_v39  ;;  %v17931_v39 = vcombine.low %v7632_v0, %v7636_v24  ;;  %v17923_v54 = vcombine.low %v7624_v57, %v7628_v49  ;;  %v7724_v4 = vld [vmem:[#allocation9 + $0xb28] sm:$0xff]  ;;  %v7429_v57 = vld [vmem:[#allocation9 + $0x1f0] sm:$0xff] }
 0x524   :  { %10671 = vmatprep.subr.bf16.mxu0 %v17748_v28  ;;  %v7696_v21 = vld [vmem:[#allocation9 + $0xa48] sm:$0xff] }
 0x525   :  { %v7700_v44 = vld [vmem:[#allocation9 + $0xa68] sm:$0xff] }
 0x526   :  { %v17996_v0 = vcombine.high %v7696_v21, %v7700_v44  ;;  %v7692_v24 = vld [vmem:[#allocation9 + $0xa28] sm:$0xff] }
 0x527   :  { %10672 = vmatpush2.bf16.msra.mxu0 %v17747_v11  ;;  %v18044_v11 = vcombine.high %v7744_v2, %v7748_v19  ;;  %v7548_v2 = vld [vmem:[#allocation9 + $0x5a8] sm:$0xff]  ;;  %v7417_v19 = vld [vmem:[#allocation9 + $0x190] sm:$0xff] }
 0x528   :  { %10673 = vmatprep.subr.bf16.mxu0 %v17740_v33  ;;  %v7736_v33 = vld [vmem:[#allocation9 + $0xb88] sm:$0xff] }
 0x529   :  { %v18035_v10 = vcombine.low %v7736_v33, %v7740_v3 }
 0x52b   :  { %10674 = vmatpush2.bf16.msra.mxu0 %v17739_v58  ;;  %v18036_v58 = vcombine.high %v7736_v33, %v7740_v3 }
 0x52c   :  { %10675 = vmatprep.subr.bf16.mxu0 %v17732_v8  ;;  %v7728_v8 = vld [vmem:[#allocation9 + $0xb48] sm:$0xff] }
 0x52d   :  { %v18027_v46 = vcombine.low %v7728_v8, %v7732_v17 }
 0x52f   :  { %10676 = vmatpush2.bf16.msra.mxu0 %v17731_v25  ;;  %v18028_v25 = vcombine.high %v7728_v8, %v7732_v17  ;;  %v7540_v17 = vld [vmem:[#allocation9 + $0x568] sm:$0xff] }
 0x530   :  { %10727 = vmatprep.subr.bf16.mxu0 %v17980_v43  ;;  %v7720_v43 = vld [vmem:[#allocation9 + $0xb08] sm:$0xff] }
 0x531   :  { %v18019_v14 = vcombine.low %v7720_v43, %v7724_v4 }
 0x532   :  { %10678 = vmatmul.mubr.bf16.vlgmr.msra.gmra.mxu0 %v20662_v31 }
 0x533   :  { %10728 = vmatpush1.bf16.msra.mxu0 %v17979_v5  ;;  %10759 = vmatprep.mubr.bf16.mxu0 %v20703_v35  ;;  %v18020_v5 = vcombine.high %v7720_v43, %v7724_v4 }
 0x534   :  { %10729 = vmatprep.subr.bf16.mxu0 %v17972_v29  ;;  %v7712_v29 = vld [vmem:[#allocation9 + $0xac8] sm:$0xff] }
 0x535   :  { %v18011_v12 = vcombine.low %v7712_v29, %v7716_v59 }
 0x537   :  { %10730 = vmatpush1.bf16.msra.mxu0 %v17971_v30 }
 0x538   :  { %10731 = vmatprep.subr.bf16.mxu0 %v17964_v15  ;;  %v18012_v15 = vcombine.high %v7712_v29, %v7716_v59  ;;  %v7528_v29 = vld [vmem:[#allocation9 + $0x508] sm:$0xff] }
 0x539   :  { %v7532_v59 = vld [vmem:[#allocation9 + $0x528] sm:$0xff] }
 0x53a   :  { %v17828_v51 = vcombine.high %v7528_v29, %v7532_v59 }
 0x53b   :  { %10732 = vmatpush1.bf16.msra.mxu0 %v17963_v42  ;;  %v7708_v42 = vld [vmem:[#allocation9 + $0xaa8] sm:$0xff] }
 0x53c   :  { %10733 = vmatprep.subr.bf16.mxu0 %v17956_v38 }
 0x53f   :  { %10734 = vmatpush1.bf16.msra.mxu0 %v17955_v18 }
 0x540   :  { %10735 = vmatprep.subr.bf16.mxu0 %v17948_v20  ;;  %v18004_v20 = vcombine.high %v7704_v27, %v7708_v42 }
 0x543   :  { %10736 = vmatpush1.bf16.msra.mxu0 %v17947_v26  ;;  %v20736_v62 = vpop.f32.mrf.mxu0 }
 0x544   :  { %10737 = vmatprep.subr.bf16.mxu0 %v17940_v36  ;;  %v18003_v36 = vcombine.low %v7704_v27, %v7708_v42  ;;  %v7524_v27 = vld [vmem:[#allocation9 + $0x4e8] sm:$0xff]  ;;  %v7393_v42 = vld [vmem:[#allocation9 + $0xd0] sm:$0xff] }
 0x545   :  { %v20738_v37 = vpop.f32.mrf.mxu0 }
 0x547   :  { %10738 = vmatpush1.bf16.msra.mxu0 %v17939_v22  ;;  %v10519_v32 = vpop.f32.mrf.mxu0  ;;  %v17995_v22 = vcombine.low %v7696_v21, %v7700_v44  ;;  %v7512_v21 = vld [vmem:[#allocation9 + $0x488] sm:$0xff] }
 0x548   :  { %10739 = vmatprep.subr.bf16.mxu0 %v17932_v60  ;;  %v7425_v60 = vld [vmem:[#allocation9 + $0x1d0] sm:$0xff]  ;;  %v7516_v44 = vld [vmem:[#allocation9 + $0x4a8] sm:$0xff] }
 0x549   :  { %v10520_v28 = vpop.f32.mrf.mxu0  ;;  %v17726_v32 = vcombine.high %v7425_v60, %v7429_v57  ;;  %v17725_v33 = vcombine.low %v7425_v60, %v7429_v57  ;;  %v7508_v60 = vld [vmem:[#allocation9 + $0x468] sm:$0xff]  ;;  %v7377_v57 = vld [vmem:[#allocation9 + $0x50] sm:$0xff] }
 0x54b   :  { %10740 = vmatpush1.bf16.msra.mxu0 %v17931_v39 }
 0x54c   :  { %10741 = vmatprep.subr.bf16.mxu0 %v17924_v9  ;;  %v7544_v9 = vld [vmem:[#allocation9 + $0x588] sm:$0xff] }
 0x54d   :  { %v17843_v43 = vcombine.low %v7544_v9, %v7548_v2 }
 0x54f   :  { %10742 = vmatpush1.bf16.msra.mxu0 %v17923_v54  ;;  %v7421_v54 = vld [vmem:[#allocation9 + $0x1b0] sm:$0xff] }
 0x550   :  { %10743 = vmatprep.subr.bf16.mxu0 %v18044_v11  ;;  %v17718_v8 = vcombine.high %v7417_v19, %v7421_v54  ;;  %v17717_v4 = vcombine.low %v7417_v19, %v7421_v54  ;;  %v7500_v19 = vld [vmem:[#allocation9 + $0x428] sm:$0xff]  ;;  %v7369_v54 = vld [vmem:[#allocation9 + $0x10] sm:$0xff] }
 0x553   :  { %10744 = vmatpush2.bf16.msra.mxu0 %v18043_v16  ;;  %v7536_v16 = vld [vmem:[#allocation9 + $0x548] sm:$0xff] }
 0x554   :  { %10745 = vmatprep.subr.bf16.mxu0 %v18036_v58  ;;  %v17844_v58 = vcombine.high %v7544_v9, %v7548_v2  ;;  %v7496_v2 = vld [vmem:[#allocation9 + $0x408] sm:$0xff] }
 0x557   :  { %10746 = vmatpush2.bf16.msra.mxu0 %v18035_v10  ;;  %v7409_v10 = vld [vmem:[#allocation9 + $0x150] sm:$0xff] }
 0x558   :  { %10747 = vmatprep.subr.bf16.mxu0 %v18028_v25  ;;  %v7413_v25 = vld [vmem:[#allocation9 + $0x170] sm:$0xff] }
 0x559   :  { %v17709_v48 = vcombine.low %v7409_v10, %v7413_v25 }
 0x55b   :  { %10748 = vmatpush2.bf16.msra.mxu0 %v18027_v46  ;;  %v17836_v46 = vcombine.high %v7536_v16, %v7540_v17 }
 0x55c   :  { %v7344_v30 = vpop.f32.mrf.mxu1  ;;  %10749 = vmatprep.subr.bf16.mxu0 %v18020_v5  ;;  %v17710_v5 = vcombine.high %v7409_v10, %v7413_v25  ;;  %v7616_v10 = vld [vmem:[#allocation9 + $0x7c8] sm:$0xff] }
 0x55d   :  { %v7345_v55 = vadd.f32 %v7344_v30, %v20729_v61  ;;  %v7688_v61 = vld [vmem:[#allocation9 + $0xa08] sm:$0xff]  ;;  %v7405_v30 = vld [vmem:[#allocation9 + $0x130] sm:$0xff] }
 0x55e   :  { %v7346_v38 = vpop.f32.mrf.mxu1  ;;  %v17987_v49 = vcombine.low %v7688_v61, %v7692_v24  ;;  %v7620_v25 = vld [vmem:[#allocation9 + $0x7e8] sm:$0xff] }
 0x55f   :  { %v7347_v40 = vadd.f32 %v7346_v38, %v20732_v41  ;;  %10750 = vmatpush2.bf16.msra.mxu0 %v18019_v14  ;;  %20036 = vtanh.f32 %v7345_v55  ;;  %v17988_v41 = vcombine.high %v7688_v61, %v7692_v24  ;;  %v7401_v14 = vld [vmem:[#allocation9 + $0x110] sm:$0xff]  ;;  %v7520_v55 = vld [vmem:[#allocation9 + $0x4c8] sm:$0xff]  ;;  %v17812_v24 = vcombine.high %v7512_v21, %v7516_v44 }
 0x560   :  { %v7348_v18 = vpop.f32.mrf.mxu1  ;;  %10751 = vmatprep.subr.bf16.mxu0 %v18012_v15  ;;  %v17835_v15 = vcombine.low %v7536_v16, %v7540_v17  ;;  %v7397_v38 = vld [vmem:[#allocation9 + $0xf0] sm:$0xff] }
 0x561   :  { %20038 = vtanh.f32 %v7347_v40  ;;  %v17827_v40 = vcombine.low %v7528_v29, %v7532_v59  ;;  %v17820_v18 = vcombine.high %v7520_v55, %v7524_v27  ;;  %v17693_v61 = vcombine.low %v7393_v42, %v7397_v38 }
 0x562   :  { %v7349_v26 = vpop.f32.mrf.mxu1  ;;  %v17916_v29 = vcombine.high %v7616_v10, %v7620_v25 }
 0x563   :  { %10752 = vmatpush2.bf16.msra.mxu0 %v18011_v12  ;;  %v17701_v12 = vcombine.low %v7401_v14, %v7405_v30  ;;  %v7385_v26 = vld [vmem:[#allocation9 + $0x90] sm:$0xff] }
 0x564   :  { %10753 = vmatprep.subr.bf16.mxu0 %v18004_v20  ;;  %v17694_v20 = vcombine.high %v7393_v42, %v7397_v38  ;;  %v7600_v42 = vld [vmem:[#allocation9 + $0x748] sm:$0xff] }
 0x565   :  { %v7604_v38 = vld [vmem:[#allocation9 + $0x768] sm:$0xff] }
 0x567   :  { %10754 = vmatpush2.bf16.msra.mxu0 %v18003_v36  ;;  %v7389_v36 = vld [vmem:[#allocation9 + $0xb0] sm:$0xff] }
 0x568   :  { %10755 = vmatprep.subr.bf16.mxu0 %v17996_v0  ;;  %v17819_v0 = vcombine.low %v7520_v55, %v7524_v27 }
 0x56b   :  { %10756 = vmatpush2.bf16.msra.mxu0 %v17995_v22  ;;  %v17686_v22 = vcombine.high %v7385_v26, %v7389_v36 }
 0x56c   :  { %10757 = vmatprep.subr.bf16.mxu0 %v17988_v41  ;;  %v20037_v39 = vpop.eup %20036  ;;  %v7504_v41 = vld [vmem:[#allocation9 + $0x448] sm:$0xff] }
 0x56d   :  { %v20744_v3 = vpack.c.bf16 %v20037_v39, %v20037_v39  ;;  %v17685_v39 = vcombine.low %v7385_v26, %v7389_v36  ;;  %v17804_v9 = vcombine.high %v7504_v41, %v7508_v60  ;;  %v17803_v16 = vcombine.low %v7504_v41, %v7508_v60  ;;  %v7592_v36 = vld [vmem:[#allocation9 + $0x708] sm:$0xff] }
 0x56e   :  { %v20039_v28 = vpop.eup %20038  ;;  %v17899_v41 = vcombine.low %v7600_v42, %v7604_v38 }
 0x56f   :  { %v20742_v11 = vpack.c.bf16 %v20039_v28, %v20039_v28  ;;  %10758 = vmatpush2.bf16.msra.mxu0 %v17987_v49  ;;  %v7381_v49 = vld [vmem:[#allocation9 + $0x70] sm:$0xff] }
 0x570   :  { %10809 = vmatprep.subr.bf16.mxu0 %v17726_v32  ;;  %v17811_v32 = vcombine.low %v7512_v21, %v7516_v44  ;;  %v17678_v28 = vcombine.high %v7377_v57, %v7381_v49  ;;  %v7879_v21 = vld [vmem:[#allocation10] sm:$0xff]  ;;  %v17900_v44 = vcombine.high %v7600_v42, %v7604_v38 }
 0x571   :  { %10636 = vmatprep.mubr.bf16.mxu1 %v20742_v11 }
 0x572   :  { %10760 = vmatmul.mubr.bf16.vlgmr.msra.gmra.mxu0 %v20711_v52  ;;  %10637 = vmatmul.mubr.bf16.vlgmr.msra.gmra.mxu1 %v20744_v3 }
 0x573   :  { %10687 = vmatpush1.bf16.msra.mxu1 %v17851_v63  ;;  %10810 = vmatpush1.bf16.msra.mxu0 %v17725_v33  ;;  %v17702_v63 = vcombine.high %v7401_v14, %v7405_v30  ;;  %v7373_v33 = vld [vmem:[#allocation9 + $0x30] sm:$0xff]  ;;  %v7608_v14 = vld [vmem:[#allocation9 + $0x788] sm:$0xff] }
 0x574   :  { %10841 = vmatprep.mubr.bf16.mxu0 %v20646_v34  ;;  %10718 = vmatprep.mubr.bf16.mxu1 %v20676_v47  ;;  %v17670_v17 = vcombine.high %v7369_v54, %v7373_v33  ;;  %v7612_v30 = vld [vmem:[#allocation9 + $0x7a8] sm:$0xff] }
 0x575   :  { %10688 = vmatprep.subr.bf16.mxu1 %v17844_v58  ;;  %10811 = vmatprep.subr.bf16.mxu0 %v17718_v8  ;;  %v17677_v58 = vcombine.low %v7377_v57, %v7381_v49  ;;  %v17796_v8 = vcombine.high %v7496_v2, %v7500_v19  ;;  %v17908_v55 = vcombine.high %v7608_v14, %v7612_v30 }
 0x577   :  { %10689 = vmatpush1.bf16.msra.mxu1 %v17843_v43  ;;  %10812 = vmatpush1.bf16.msra.mxu0 %v17717_v4  ;;  %v7489_v43 = vld [vmem:[#allocation9 + $0x3d0] sm:$0xff] }
 0x578   :  { %10690 = vmatprep.subr.bf16.mxu1 %v17836_v46  ;;  %10813 = vmatprep.subr.bf16.mxu0 %v17710_v5  ;;  %v7493_v4 = vld [vmem:[#allocation9 + $0x3f0] sm:$0xff]  ;;  %v17795_v46 = vcombine.low %v7496_v2, %v7500_v19  ;;  %v17669_v5 = vcombine.low %v7369_v54, %v7373_v33 }
 0x579   :  { %v17790_v59 = vcombine.high %v7489_v43, %v7493_v4  ;;  %v7461_v2 = vld [vmem:[#allocation9 + $0x2f0] sm:$0xff] }
 0x57b   :  { %10691 = vmatpush1.bf16.msra.mxu1 %v17835_v15  ;;  %10814 = vmatpush1.bf16.msra.mxu0 %v17709_v48  ;;  %v7481_v15 = vld [vmem:[#allocation9 + $0x390] sm:$0xff] }
 0x57c   :  { %10692 = vmatprep.subr.bf16.mxu1 %v17828_v51  ;;  %10815 = vmatprep.subr.bf16.mxu0 %v17702_v63  ;;  %v7485_v48 = vld [vmem:[#allocation9 + $0x3b0] sm:$0xff]  ;;  %v17915_v51 = vcombine.low %v7616_v10, %v7620_v25  ;;  %v17789_v63 = vcombine.low %v7489_v43, %v7493_v4  ;;  %v7580_v43 = vld [vmem:[#allocation9 + $0x6a8] sm:$0xff] }
 0x57d   :  { %v17782_v27 = vcombine.high %v7481_v15, %v7485_v48  ;;  %v7449_v4 = vld [vmem:[#allocation9 + $0x290] sm:$0xff] }
 0x57f   :  { %10693 = vmatpush1.bf16.msra.mxu1 %v17827_v40  ;;  %10816 = vmatpush1.bf16.msra.mxu0 %v17701_v12  ;;  %v7473_v40 = vld [vmem:[#allocation9 + $0x350] sm:$0xff] }
 0x580   :  { %10694 = vmatprep.subr.bf16.mxu1 %v17820_v18  ;;  %10817 = vmatprep.subr.bf16.mxu0 %v17694_v20  ;;  %v7477_v12 = vld [vmem:[#allocation9 + $0x370] sm:$0xff]  ;;  %v17907_v18 = vcombine.low %v7608_v14, %v7612_v30  ;;  %v17781_v20 = vcombine.low %v7481_v15, %v7485_v48  ;;  %v7568_v48 = vld [vmem:[#allocation9 + $0x648] sm:$0xff] }
 0x581   :  { %v17774_v26 = vcombine.high %v7473_v40, %v7477_v12  ;;  %v17773_v60 = vcombine.low %v7473_v40, %v7477_v12  ;;  %v7560_v12 = vld [vmem:[#allocation9 + $0x608] sm:$0xff] }
 0x583   :  { %10695 = vmatpush1.bf16.msra.mxu1 %v17819_v0  ;;  %10818 = vmatpush1.bf16.msra.mxu0 %v17693_v61  ;;  %v7596_v0 = vld [vmem:[#allocation9 + $0x728] sm:$0xff]  ;;  %v7465_v61 = vld [vmem:[#allocation9 + $0x310] sm:$0xff] }
 0x584   :  { %10696 = vmatprep.subr.bf16.mxu1 %v17812_v24  ;;  %10819 = vmatprep.subr.bf16.mxu0 %v17686_v22  ;;  %v7469_v24 = vld [vmem:[#allocation9 + $0x330] sm:$0xff]  ;;  %v7884_v22 = vrot.slane %v7879_v21, %v20441_v6  ;;  %v17892_v57 = vcombine.high %v7592_v36, %v7596_v0  ;;  %v17891_v54 = vcombine.low %v7592_v36, %v7596_v0 }
 0x585   :  { %v17766_v49 = vcombine.high %v7465_v61, %v7469_v24  ;;  %v17765_v33 = vcombine.low %v7465_v61, %v7469_v24  ;;  %v7808_v61 = vld [vmem:[#allocation9 + $0xdc8] sm:$0xff] }
 0x586   :  { %v10516_v19 = vadd.f32 %v20736_v62, %v7884_v22  ;;  %v7812_v24 = vld [vmem:[#allocation9 + $0xde8] sm:$0xff]  ;;  %v7681_v22 = vld [vmem:[#allocation9 + $0x9d0] sm:$0xff] }
 0x587   :  { %10697 = vmatpush1.bf16.msra.mxu1 %v17811_v32  ;;  %10820 = vmatpush1.bf16.msra.mxu0 %v17685_v39  ;;  %v7584_v32 = vld [vmem:[#allocation9 + $0x6c8] sm:$0xff]  ;;  %v7888_v39 = vrot.slane %v7879_v21, %v20444_v13  ;;  %v7437_v21 = vld [vmem:[#allocation9 + $0x230] sm:$0xff] }
 0x588   :  { %10698 = vmatprep.subr.bf16.mxu1 %v17804_v9  ;;  %10821 = vmatprep.subr.bf16.mxu0 %v17678_v28  ;;  %v7588_v9 = vld [vmem:[#allocation9 + $0x6e8] sm:$0xff]  ;;  %v7457_v28 = vld [vmem:[#allocation9 + $0x2d0] sm:$0xff] }
 0x589   :  { %v10518_v10 = vadd.f32 %v20738_v37, %v7888_v39  ;;  %v17883_v62 = vcombine.low %v7584_v32, %v7588_v9  ;;  %v7441_v37 = vld [vmem:[#allocation9 + $0x250] sm:$0xff]  ;;  %v7800_v39 = vld [vmem:[#allocation9 + $0xd88] sm:$0xff] }
 0x58b   :  { %10699 = vmatpush1.bf16.msra.mxu1 %v17803_v16  ;;  %10822 = vmatpush1.bf16.msra.mxu0 %v17677_v58  ;;  %v17884_v58 = vcombine.high %v7584_v32, %v7588_v9  ;;  %v7804_v9 = vld [vmem:[#allocation9 + $0xda8] sm:$0xff] }
 0x58c   :  { %10700 = vmatprep.subr.bf16.mxu1 %v17796_v8  ;;  %10823 = vmatprep.subr.bf16.mxu0 %v17670_v17  ;;  %v17758_v8 = vcombine.high %v7457_v28, %v7461_v2  ;;  %v7576_v17 = vld [vmem:[#allocation9 + $0x688] sm:$0xff] }
 0x58d   :  { %v17876_v30 = vcombine.high %v7576_v17, %v7580_v43 }
 0x58f   :  { %10701 = vmatpush1.bf16.msra.mxu1 %v17795_v46  ;;  %10824 = vmatpush1.bf16.msra.mxu0 %v17669_v5  ;;  %v7453_v46 = vld [vmem:[#allocation9 + $0x2b0] sm:$0xff] }
 0x590   :  { %10702 = vmatprep.subr.bf16.mxu1 %v17916_v29  ;;  %10825 = vmatprep.subr.bf16.mxu0 %v17790_v59  ;;  %v17757_v59 = vcombine.low %v7457_v28, %v7461_v2  ;;  %v17750_v15 = vcombine.high %v7449_v4, %v7453_v46  ;;  %v17749_v42 = vcombine.low %v7449_v4, %v7453_v46  ;;  %v7673_v28 = vld [vmem:[#allocation9 + $0x990] sm:$0xff] }
 0x591   :  { %v7677_v2 = vld [vmem:[#allocation9 + $0x9b0] sm:$0xff]  ;;  %v18099_v46 = vcombine.low %v7800_v39, %v7804_v9 }
 0x593   :  { %10703 = vmatpush2.bf16.msra.mxu1 %v17915_v51  ;;  %10826 = vmatpush2.bf16.msra.mxu0 %v17789_v63  ;;  %v7572_v51 = vld [vmem:[#allocation9 + $0x668] sm:$0xff]  ;;  %v7445_v63 = vld [vmem:[#allocation9 + $0x270] sm:$0xff] }
 0x594   :  { %10704 = vmatprep.subr.bf16.mxu1 %v17908_v55  ;;  %10827 = vmatprep.subr.bf16.mxu0 %v17782_v27  ;;  %v17875_v27 = vcombine.low %v7576_v17, %v7580_v43  ;;  %v17868_v38 = vcombine.high %v7568_v48, %v7572_v51  ;;  %v17742_v40 = vcombine.high %v7441_v37, %v7445_v63  ;;  %v7669_v43 = vld [vmem:[#allocation9 + $0x970] sm:$0xff] }
 0x597   :  { %10705 = vmatpush2.bf16.msra.mxu1 %v17907_v18  ;;  %10828 = vmatpush2.bf16.msra.mxu0 %v17781_v20  ;;  %v7564_v18 = vld [vmem:[#allocation9 + $0x628] sm:$0xff]  ;;  %v7433_v20 = vld [vmem:[#allocation9 + $0x210] sm:$0xff] }
 0x598   :  { %10706 = vmatprep.subr.bf16.mxu1 %v17900_v44  ;;  %10829 = vmatprep.subr.bf16.mxu0 %v17774_v26  ;;  %v17867_v44 = vcombine.low %v7568_v48, %v7572_v51  ;;  %v17741_v26 = vcombine.low %v7441_v37, %v7445_v63  ;;  %v17860_v36 = vcombine.high %v7560_v12, %v7564_v18  ;;  %v7788_v48 = vld [vmem:[#allocation9 + $0xd28] sm:$0xff]  ;;  %v7657_v51 = vld [vmem:[#allocation9 + $0x910] sm:$0xff] }
 0x599   :  { %v17734_v0 = vcombine.high %v7433_v20, %v7437_v21  ;;  %v7661_v37 = vld [vmem:[#allocation9 + $0x930] sm:$0xff] }
 0x59b   :  { %10707 = vmatpush2.bf16.msra.mxu1 %v17899_v41  ;;  %10830 = vmatpush2.bf16.msra.mxu0 %v17773_v60  ;;  %v7685_v41 = vld [vmem:[#allocation9 + $0x9f0] sm:$0xff]  ;;  %v17859_v60 = vcombine.low %v7560_v12, %v7564_v18 }
 0x59c   :  { %v10556_v16 = vpop.f32.mrf.mxu1  ;;  %10708 = vmatprep.subr.bf16.mxu1 %v17892_v57  ;;  %10831 = vmatprep.subr.bf16.mxu0 %v17766_v49  ;;  %v17733_v57 = vcombine.low %v7433_v20, %v7437_v21  ;;  %v18108_v49 = vcombine.high %v7808_v61, %v7812_v24  ;;  %v17982_v32 = vcombine.high %v7681_v22, %v7685_v41  ;;  %v7649_v12 = vld [vmem:[#allocation9 + $0x8d0] sm:$0xff] }
 0x59d   :  { %v20758_v25 = vadd.f32 %v10556_v16, %v10516_v19  ;;  %v18107_v19 = vcombine.low %v7808_v61, %v7812_v24  ;;  %v17974_v16 = vcombine.high %v7673_v28, %v7677_v2  ;;  %v7653_v18 = vld [vmem:[#allocation9 + $0x8f0] sm:$0xff]  ;;  %v17957_v21 = vcombine.low %v7657_v51, %v7661_v37 }
 0x59e   :  { %v10558_v5 = vpop.f32.mrf.mxu1  ;;  %v7641_v61 = vld [vmem:[#allocation9 + $0x890] sm:$0xff] }
 0x59f   :  { %v20760_v29 = vadd.f32 %v10558_v5, %v10518_v10  ;;  %10709 = vmatpush2.bf16.msra.mxu1 %v17891_v54  ;;  %10832 = vmatpush2.bf16.msra.mxu0 %v17765_v33  ;;  %v17981_v54 = vcombine.low %v7681_v22, %v7685_v41  ;;  %v18100_v33 = vcombine.high %v7800_v39, %v7804_v9  ;;  %v7665_v10 = vld [vmem:[#allocation9 + $0x950] sm:$0xff] }
 0x5a0   :  { %v10560_v14 = vpop.f32.mrf.mxu1  ;;  %10710 = vmatprep.subr.bf16.mxu1 %v17884_v58  ;;  %10833 = vmatprep.subr.bf16.mxu0 %v17758_v8  ;;  %v7792_v58 = vld [vmem:[#allocation9 + $0xd48] sm:$0xff]  ;;  %v7645_v24 = vld [vmem:[#allocation9 + $0x8b0] sm:$0xff]  ;;  %v17949_v41 = vcombine.low %v7649_v12, %v7653_v18 }
 0x5a1   :  { %v7796_v8 = vld [vmem:[#allocation9 + $0xd68] sm:$0xff]  ;;  %v7633_v39 = vld [vmem:[#allocation9 + $0x850] sm:$0xff] }
 0x5a2   :  { %v10561_v55 = vpop.f32.mrf.mxu1  ;;  %v18091_v63 = vcombine.low %v7792_v58, %v7796_v8  ;;  %v7637_v9 = vld [vmem:[#allocation9 + $0x870] sm:$0xff] }
 0x5a3   :  { %10711 = vmatpush2.bf16.msra.mxu1 %v17883_v62  ;;  %10834 = vmatpush2.bf16.msra.mxu0 %v17757_v59  ;;  %v17973_v62 = vcombine.low %v7673_v28, %v7677_v2  ;;  %v18092_v59 = vcombine.high %v7792_v58, %v7796_v8  ;;  %v17941_v2 = vcombine.low %v7641_v61, %v7645_v24  ;;  %v7625_v58 = vld [vmem:[#allocation9 + $0x810] sm:$0xff] }
 0x5a4   :  { %10712 = vmatprep.subr.bf16.mxu1 %v17876_v30  ;;  %10835 = vmatprep.subr.bf16.mxu0 %v17750_v15  ;;  %v17966_v30 = vcombine.high %v7665_v10, %v7669_v43  ;;  %v7784_v15 = vld [vmem:[#allocation9 + $0xd08] sm:$0xff]  ;;  %v7629_v8 = vld [vmem:[#allocation9 + $0x830] sm:$0xff] }
 0x5a5   :  { %v18083_v20 = vcombine.low %v7784_v15, %v7788_v48 }
 0x5a7   :  { %10713 = vmatpush2.bf16.msra.mxu1 %v17875_v27  ;;  %10836 = vmatpush2.bf16.msra.mxu0 %v17749_v42  ;;  %v17965_v27 = vcombine.low %v7665_v10, %v7669_v43  ;;  %v18084_v42 = vcombine.high %v7784_v15, %v7788_v48  ;;  %v17933_v10 = vcombine.low %v7633_v39, %v7637_v9 }
 0x5a8   :  { %10714 = vmatprep.subr.bf16.mxu1 %v17868_v38  ;;  %10837 = vmatprep.subr.bf16.mxu0 %v17742_v40  ;;  %v17958_v38 = vcombine.high %v7657_v51, %v7661_v37  ;;  %v7776_v40 = vld [vmem:[#allocation9 + $0xcc8] sm:$0xff]  ;;  %v17925_v48 = vcombine.low %v7625_v58, %v7629_v8 }
 0x5a9   :  { %v7864_v37 = vld [vmem:[#allocation9 + $0xf88] sm:$0xff] }
 0x5ab   :  { %10715 = vmatpush2.bf16.msra.mxu1 %v17867_v44  ;;  %10838 = vmatpush2.bf16.msra.mxu0 %v17741_v26  ;;  %v17950_v26 = vcombine.high %v7649_v12, %v7653_v18  ;;  %v7856_v12 = vld [vmem:[#allocation9 + $0xf48] sm:$0xff] }
 0x5ac   :  { %10716 = vmatprep.subr.bf16.mxu1 %v17860_v36  ;;  %10839 = vmatprep.subr.bf16.mxu0 %v17734_v0  ;;  %v7768_v36 = vld [vmem:[#allocation9 + $0xc88] sm:$0xff] }
 0x5ad   :  { %v7772_v0 = vld [vmem:[#allocation9 + $0xca8] sm:$0xff] }
 0x5ae   :  { %v18067_v28 = vcombine.low %v7768_v36, %v7772_v0  ;;  %v7860_v18 = vld [vmem:[#allocation9 + $0xf68] sm:$0xff] }
 0x5af   :  { %10717 = vmatpush2.bf16.msra.mxu1 %v17859_v60  ;;  %10840 = vmatpush2.bf16.msra.mxu0 %v17733_v57  ;;  %v18068_v60 = vcombine.high %v7768_v36, %v7772_v0  ;;  %v17942_v57 = vcombine.high %v7641_v61, %v7645_v24  ;;  %v18156_v36 = vcombine.high %v7856_v12, %v7860_v18  ;;  %v7848_v61 = vld [vmem:[#allocation9 + $0xf08] sm:$0xff] }
 0x5b0   :  { %10768 = vmatprep.subr.bf16.mxu1 %v18108_v49  ;;  %10891 = vmatprep.subr.bf16.mxu0 %v17982_v32  ;;  %v7760_v49 = vld [vmem:[#allocation9 + $0xc48] sm:$0xff] }
 0x5b1   :  { %v7764_v32 = vld [vmem:[#allocation9 + $0xc68] sm:$0xff] }
 0x5b2   :  { %10719 = vmatmul.mubr.bf16.vlgmr.msra.gmra.mxu1 %v20698_v1  ;;  %10842 = vmatmul.mubr.bf16.vlgmr.msra.gmra.mxu0 %v20662_v31  ;;  %v10597_v17 = vpop.f32.mrf.mxu0  ;;  %v7852_v24 = vld [vmem:[#allocation9 + $0xf28] sm:$0xff] }
 0x5b3   :  { %v20765_v4 = vadd.f32 %v10597_v17, %v20758_v25  ;;  %10769 = vmatpush1.bf16.msra.mxu1 %v18107_v19  ;;  %10800 = vmatprep.mubr.bf16.mxu1 %v20742_v11  ;;  %v18060_v19 = vcombine.high %v7760_v49, %v7764_v32  ;;  %v18059_v17 = vcombine.low %v7760_v49, %v7764_v32 }
 0x5b4   :  { %10892 = vmatpush1.bf16.msra.mxu0 %v17981_v54  ;;  %10923 = vmatprep.mubr.bf16.mxu0 %v20703_v35  ;;  %v10599_v5 = vpop.f32.mrf.mxu0  ;;  %v17934_v54 = vcombine.high %v7633_v39, %v7637_v9  ;;  %v18148_v49 = vcombine.high %v7848_v61, %v7852_v24  ;;  %v7840_v39 = vld [vmem:[#allocation9 + $0xec8] sm:$0xff] }
 0x5b5   :  { %v20770_v14 = vadd.f32 %v10599_v5, %v20760_v29  ;;  %10770 = vmatprep.subr.bf16.mxu1 %v18100_v33  ;;  %10893 = vmatprep.subr.bf16.mxu0 %v17974_v16  ;;  %v7780_v29 = vld [vmem:[#allocation9 + $0xce8] sm:$0xff] }
 0x5b6   :  { %v10601_v25 = vpop.f32.mrf.mxu0  ;;  %v18076_v44 = vcombine.high %v7776_v40, %v7780_v29  ;;  %v18075_v22 = vcombine.low %v7776_v40, %v7780_v29  ;;  %v7752_v33 = vld [vmem:[#allocation9 + $0xc08] sm:$0xff] }
 0x5b7   :  { %10771 = vmatpush1.bf16.msra.mxu1 %v18099_v46  ;;  %v7756_v16 = vld [vmem:[#allocation9 + $0xc28] sm:$0xff]  ;;  %v17926_v46 = vcombine.high %v7625_v58, %v7629_v8 }
 0x5b8   :  { %10894 = vmatpush1.bf16.msra.mxu0 %v17973_v62  ;;  %v10602_v55 = vpop.f32.mrf.mxu0  ;;  %10772 = vmatprep.subr.bf16.mxu1 %v18092_v59  ;;  %v18052_v43 = vcombine.high %v7752_v33, %v7756_v16  ;;  %v7872_v5 = vld [vmem:[#allocation9 + $0xfc8] sm:$0xff]  ;;  %v7745_v59 = vld [vmem:[#allocation9 + $0xbd0] sm:$0xff]  ;;  %v18051_v15 = vcombine.low %v7752_v33, %v7756_v16 }
 0x5b9   :  { %10895 = vmatprep.subr.bf16.mxu0 %v17966_v30  ;;  %v7876_v62 = vld [vmem:[#allocation9 + $0xfe8] sm:$0xff]  ;;  %v7749_v30 = vld [vmem:[#allocation9 + $0xbf0] sm:$0xff] }
 0x5ba   :  { %v18172_v25 = vcombine.high %v7872_v5, %v7876_v62  ;;  %v18046_v51 = vcombine.high %v7745_v59, %v7749_v30  ;;  %v7737_v55 = vld [vmem:[#allocation9 + $0xb90] sm:$0xff]  ;;  %v7844_v9 = vld [vmem:[#allocation9 + $0xee8] sm:$0xff] }
 0x5bb   :  { %10773 = vmatpush1.bf16.msra.mxu1 %v18091_v63  ;;  %v7868_v63 = vld [vmem:[#allocation9 + $0xfa8] sm:$0xff]  ;;  %v18140_v33 = vcombine.high %v7840_v39, %v7844_v9 }
 0x5bc   :  { %10896 = vmatpush1.bf16.msra.mxu0 %v17965_v27  ;;  %10774 = vmatprep.subr.bf16.mxu1 %v18084_v42  ;;  %v7741_v27 = vld [vmem:[#allocation9 + $0xbb0] sm:$0xff]  ;;  %v18171_v42 = vcombine.low %v7872_v5, %v7876_v62  ;;  %v18164_v40 = vcombine.high %v7864_v37, %v7868_v63  ;;  %v7832_v58 = vld [vmem:[#allocation9 + $0xe88] sm:$0xff] }
 0x5bd   :  { %10897 = vmatprep.subr.bf16.mxu0 %v17958_v38  ;;  %v18045_v38 = vcombine.low %v7745_v59, %v7749_v30  ;;  %v18038_v29 = vcombine.high %v7737_v55, %v7741_v27  ;;  %v7836_v8 = vld [vmem:[#allocation9 + $0xea8] sm:$0xff] }
 0x5be   :  { %v18132_v5 = vcombine.high %v7832_v58, %v7836_v8  ;;  %v7824_v59 = vld [vmem:[#allocation9 + $0xe48] sm:$0xff] }
 0x5bf   :  { %10775 = vmatpush1.bf16.msra.mxu1 %v18083_v20  ;;  %v7729_v20 = vld [vmem:[#allocation9 + $0xb50] sm:$0xff]  ;;  %v7828_v30 = vld [vmem:[#allocation9 + $0xe68] sm:$0xff] }
 0x5c0   :  { %10898 = vmatpush1.bf16.msra.mxu0 %v17957_v21  ;;  %10776 = vmatprep.subr.bf16.mxu1 %v18076_v44  ;;  %v7733_v21 = vld [vmem:[#allocation9 + $0xb70] sm:$0xff]  ;;  %v18163_v44 = vcombine.low %v7864_v37, %v7868_v63  ;;  %v18124_v37 = vcombine.high %v7824_v59, %v7828_v30 }
 0x5c1   :  { %10899 = vmatprep.subr.bf16.mxu0 %v17950_v26  ;;  %v18037_v26 = vcombine.low %v7737_v55, %v7741_v27  ;;  %v18030_v0 = vcombine.high %v7729_v20, %v7733_v21  ;;  %v7816_v55 = vld [vmem:[#allocation9 + $0xe08] sm:$0xff] }
 0x5c2   :  { %v7820_v27 = vld [vmem:[#allocation9 + $0xe28] sm:$0xff] }
 0x5c3   :  { %10777 = vmatpush1.bf16.msra.mxu1 %v18075_v22  ;;  %v7721_v22 = vld [vmem:[#allocation9 + $0xb10] sm:$0xff] }
 0x5c4   :  { %10900 = vmatpush1.bf16.msra.mxu0 %v17949_v41  ;;  %10778 = vmatprep.subr.bf16.mxu1 %v18068_v60  ;;  %v7725_v41 = vld [vmem:[#allocation9 + $0xb30] sm:$0xff]  ;;  %v18155_v60 = vcombine.low %v7856_v12, %v7860_v18  ;;  %v18116_v12 = vcombine.high %v7816_v55, %v7820_v27 }
 0x5c5   :  { %10901 = vmatprep.subr.bf16.mxu0 %v17942_v57  ;;  %v18029_v57 = vcombine.low %v7729_v20, %v7733_v21  ;;  %v18022_v32 = vcombine.high %v7721_v22, %v7725_v41  ;;  %v7553_v20 = vld [vmem:[#allocation9 + $0x5d0] sm:$0xff] }
 0x5c6   :  { %v7557_v21 = vld [vmem:[#allocation9 + $0x5f0] sm:$0xff] }
 0x5c7   :  { %10779 = vmatpush1.bf16.msra.mxu1 %v18067_v28  ;;  %v7713_v28 = vld [vmem:[#allocation9 + $0xad0] sm:$0xff] }
 0x5c8   :  { %10902 = vmatpush1.bf16.msra.mxu0 %v17941_v2  ;;  %10780 = vmatprep.subr.bf16.mxu1 %v18060_v19  ;;  %v7717_v2 = vld [vmem:[#allocation9 + $0xaf0] sm:$0xff]  ;;  %v18147_v19 = vcombine.low %v7848_v61, %v7852_v24  ;;  %v17854_v61 = vcombine.high %v7553_v20, %v7557_v21 }
 0x5c9   :  { %10903 = vmatprep.subr.bf16.mxu0 %v17934_v54  ;;  %v18021_v54 = vcombine.low %v7721_v22, %v7725_v41  ;;  %v18014_v16 = vcombine.high %v7713_v28, %v7717_v2  ;;  %v7545_v22 = vld [vmem:[#allocation9 + $0x590] sm:$0xff] }
 0x5ca   :  { %v7549_v41 = vld [vmem:[#allocation9 + $0x5b0] sm:$0xff] }
 0x5cb   :  { %10781 = vmatpush1.bf16.msra.mxu1 %v18059_v17  ;;  %v7705_v17 = vld [vmem:[#allocation9 + $0xa90] sm:$0xff] }
 0x5cc   :  { %10904 = vmatpush1.bf16.msra.mxu0 %v17933_v10  ;;  %10782 = vmatprep.subr.bf16.mxu1 %v18052_v43  ;;  %v7709_v10 = vld [vmem:[#allocation9 + $0xab0] sm:$0xff]  ;;  %v18139_v43 = vcombine.low %v7840_v39, %v7844_v9  ;;  %v17846_v39 = vcombine.high %v7545_v22, %v7549_v41 }
 0x5cd   :  { %10905 = vmatprep.subr.bf16.mxu0 %v17926_v46  ;;  %v18013_v46 = vcombine.low %v7713_v28, %v7717_v2  ;;  %v18006_v62 = vcombine.high %v7705_v17, %v7709_v10  ;;  %v7537_v9 = vld [vmem:[#allocation9 + $0x550] sm:$0xff] }
 0x5ce   :  { %v7541_v28 = vld [vmem:[#allocation9 + $0x570] sm:$0xff] }
 0x5cf   :  { %10783 = vmatpush1.bf16.msra.mxu1 %v18051_v15  ;;  %v7697_v15 = vld [vmem:[#allocation9 + $0xa50] sm:$0xff] }
 0x5d0   :  { %10906 = vmatpush1.bf16.msra.mxu0 %v17925_v48  ;;  %10784 = vmatprep.subr.bf16.mxu1 %v18172_v25  ;;  %v7701_v48 = vld [vmem:[#allocation9 + $0xa70] sm:$0xff]  ;;  %v18131_v25 = vcombine.low %v7832_v58, %v7836_v8 }
 0x5d1   :  { %10907 = vmatprep.subr.bf16.mxu0 %v18046_v51  ;;  %v18005_v51 = vcombine.low %v7705_v17, %v7709_v10  ;;  %v17998_v63 = vcombine.high %v7697_v15, %v7701_v48  ;;  %v17838_v17 = vcombine.high %v7537_v9, %v7541_v28 }
 0x5d3   :  { %10785 = vmatpush2.bf16.msra.mxu1 %v18171_v42  ;;  %v7689_v42 = vld [vmem:[#allocation9 + $0xa10] sm:$0xff] }
 0x5d4   :  { %10908 = vmatpush2.bf16.msra.mxu0 %v18045_v38  ;;  %10786 = vmatprep.subr.bf16.mxu1 %v18164_v40  ;;  %v7693_v38 = vld [vmem:[#allocation9 + $0xa30] sm:$0xff]  ;;  %v18123_v40 = vcombine.low %v7824_v59, %v7828_v30  ;;  %v7406_v59 = vld [vmem:[#allocation9 + $0x138] sm:$0xff]  ;;  %v17837_v30 = vcombine.low %v7537_v9, %v7541_v28 }
 0x5d5   :  { %10909 = vmatprep.subr.bf16.mxu0 %v18038_v29  ;;  %v17997_v29 = vcombine.low %v7697_v15, %v7701_v48  ;;  %v17990_v18 = vcombine.high %v7689_v42, %v7693_v38  ;;  %v7370_v9 = vld [vmem:[#allocation9 + $0x18] sm:$0xff] }
 0x5d6   :  { %v7374_v28 = vld [vmem:[#allocation9 + $0x38] sm:$0xff] }
 0x5d7   :  { %10787 = vmatpush2.bf16.msra.mxu1 %v18163_v44  ;;  %v7426_v44 = vld [vmem:[#allocation9 + $0x1d8] sm:$0xff] }
 0x5d8   :  { %10910 = vmatpush2.bf16.msra.mxu0 %v18037_v26  ;;  %10788 = vmatprep.subr.bf16.mxu1 %v18156_v36  ;;  %v7430_v26 = vld [vmem:[#allocation9 + $0x1f8] sm:$0xff]  ;;  %v18115_v36 = vcombine.low %v7816_v55, %v7820_v27 }
 0x5d9   :  { %10911 = vmatprep.subr.bf16.mxu0 %v18030_v0  ;;  %v17989_v0 = vcombine.low %v7689_v42, %v7693_v38  ;;  %v17728_v24 = vcombine.high %v7426_v44, %v7430_v26  ;;  %v7398_v55 = vld [vmem:[#allocation9 + $0xf8] sm:$0xff] }
 0x5db   :  { %10789 = vmatpush2.bf16.msra.mxu1 %v18155_v60  ;;  %v17853_v60 = vcombine.low %v7553_v20, %v7557_v21  ;;  %v7390_v20 = vld [vmem:[#allocation9 + $0xb8] sm:$0xff] }
 0x5dc   :  { %10912 = vmatpush2.bf16.msra.mxu0 %v18029_v57  ;;  %10790 = vmatprep.subr.bf16.mxu1 %v18148_v49  ;;  %v7418_v57 = vld [vmem:[#allocation9 + $0x198] sm:$0xff] }
 0x5dd   :  { %10913 = vmatprep.subr.bf16.mxu0 %v18022_v32  ;;  %v7422_v49 = vld [vmem:[#allocation9 + $0x1b8] sm:$0xff]  ;;  %v17727_v32 = vcombine.low %v7426_v44, %v7430_v26 }
 0x5de   :  { %v17719_v8 = vcombine.low %v7418_v57, %v7422_v49 }
 0x5df   :  { %10791 = vmatpush2.bf16.msra.mxu1 %v18147_v19  ;;  %v17720_v19 = vcombine.high %v7418_v57, %v7422_v49 }
 0x5e0   :  { %10914 = vmatpush2.bf16.msra.mxu0 %v18021_v54  ;;  %10792 = vmatprep.subr.bf16.mxu1 %v18140_v33  ;;  %v7410_v54 = vld [vmem:[#allocation9 + $0x158] sm:$0xff] }
 0x5e1   :  { %10915 = vmatprep.subr.bf16.mxu0 %v18014_v16  ;;  %v7414_v33 = vld [vmem:[#allocation9 + $0x178] sm:$0xff]  ;;  %v17845_v16 = vcombine.low %v7545_v22, %v7549_v41 }
 0x5e2   :  { %v17712_v10 = vcombine.high %v7410_v54, %v7414_v33  ;;  %v17711_v48 = vcombine.low %v7410_v54, %v7414_v33  ;;  %v7382_v22 = vld [vmem:[#allocation9 + $0x78] sm:$0xff] }
 0x5e3   :  { %10793 = vmatpush2.bf16.msra.mxu1 %v18139_v43  ;;  %v7529_v43 = vld [vmem:[#allocation9 + $0x510] sm:$0xff] }
 0x5e4   :  { %10916 = vmatpush2.bf16.msra.mxu0 %v18013_v46  ;;  %10794 = vmatprep.subr.bf16.mxu1 %v18132_v5  ;;  %v7533_v46 = vld [vmem:[#allocation9 + $0x530] sm:$0xff] }
 0x5e5   :  { %10917 = vmatprep.subr.bf16.mxu0 %v18006_v62  ;;  %v7402_v62 = vld [vmem:[#allocation9 + $0x118] sm:$0xff]  ;;  %v17829_v27 = vcombine.low %v7529_v43, %v7533_v46 }
 0x5e6   :  { %v17703_v42 = vcombine.low %v7402_v62, %v7406_v59 }
 0x5e7   :  { %10795 = vmatpush2.bf16.msra.mxu1 %v18131_v25  ;;  %v17830_v25 = vcombine.high %v7529_v43, %v7533_v46  ;;  %v7494_v43 = vld [vmem:[#allocation9 + $0x3f8] sm:$0xff] }
 0x5e8   :  { %10918 = vmatpush2.bf16.msra.mxu0 %v18005_v51  ;;  %10796 = vmatprep.subr.bf16.mxu1 %v18124_v37  ;;  %v17704_v51 = vcombine.high %v7402_v62, %v7406_v59  ;;  %v7521_v37 = vld [vmem:[#allocation9 + $0x4d0] sm:$0xff] }
 0x5e9   :  { %10919 = vmatprep.subr.bf16.mxu0 %v17998_v63  ;;  %v7525_v63 = vld [vmem:[#allocation9 + $0x4f0] sm:$0xff] }
 0x5ea   :  { %v17822_v38 = vcombine.high %v7521_v37, %v7525_v63  ;;  %v17821_v21 = vcombine.low %v7521_v37, %v7525_v63 }
 0x5eb   :  { %10797 = vmatpush2.bf16.msra.mxu1 %v18123_v40 }
 0x5ec   :  { %10920 = vmatpush2.bf16.msra.mxu0 %v17997_v29  ;;  %10798 = vmatprep.subr.bf16.mxu1 %v18116_v12  ;;  %v7513_v29 = vld [vmem:[#allocation9 + $0x490] sm:$0xff] }
 0x5ed   :  { %10921 = vmatprep.subr.bf16.mxu0 %v17990_v18  ;;  %v7517_v12 = vld [vmem:[#allocation9 + $0x4b0] sm:$0xff]  ;;  %v7386_v18 = vld [vmem:[#allocation9 + $0x98] sm:$0xff] }
 0x5ee   :  { %v17814_v26 = vcombine.high %v7513_v29, %v7517_v12  ;;  %v17813_v41 = vcombine.low %v7513_v29, %v7517_v12 }
 0x5ef   :  { %10799 = vmatpush2.bf16.msra.mxu1 %v18115_v36  ;;  %v17688_v36 = vcombine.high %v7386_v18, %v7390_v20 }
 0x5f0   :  { %10922 = vmatpush2.bf16.msra.mxu0 %v17989_v0  ;;  %10850 = vmatprep.subr.bf16.mxu1 %v17854_v61  ;;  %v7505_v0 = vld [vmem:[#allocation9 + $0x450] sm:$0xff] }
 0x5f1   :  { %10973 = vmatprep.subr.bf16.mxu0 %v17728_v24  ;;  %v7509_v61 = vld [vmem:[#allocation9 + $0x470] sm:$0xff]  ;;  %v7378_v24 = vld [vmem:[#allocation9 + $0x58] sm:$0xff] }
 0x5f2   :  { %v20772_v2 = vpop.f32.mrf.mxu0  ;;  %10801 = vmatmul.mubr.bf16.vlgmr.msra.gmra.mxu1 %v20744_v3  ;;  %v17806_v57 = vcombine.high %v7505_v0, %v7509_v61  ;;  %v17680_v49 = vcombine.high %v7378_v24, %v7382_v22  ;;  %v17679_v54 = vcombine.low %v7378_v24, %v7382_v22  ;;  %v7585_v22 = vld [vmem:[#allocation9 + $0x6d0] sm:$0xff] }
 0x5f3   :  { %10924 = vmatmul.mubr.bf16.vlgmr.msra.gmra.mxu0 %v20711_v52  ;;  %10851 = vmatpush1.bf16.msra.mxu1 %v17853_v60  ;;  %v17687_v60 = vcombine.low %v7386_v18, %v7390_v20  ;;  %v7593_v20 = vld [vmem:[#allocation9 + $0x710] sm:$0xff] }
 0x5f4   :  { %10882 = vmatprep.mubr.bf16.mxu1 %v20676_v47  ;;  %10974 = vmatpush1.bf16.msra.mxu0 %v17727_v32  ;;  %v20777_v58 = vpop.f32.mrf.mxu0  ;;  %v7497_v32 = vld [vmem:[#allocation9 + $0x410] sm:$0xff] }
 0x5f5   :  { %11005 = vmatprep.mubr.bf16.mxu0 %v20646_v34  ;;  %10852 = vmatprep.subr.bf16.mxu1 %v17846_v39  ;;  %v7394_v34 = vld [vmem:[#allocation9 + $0xd8] sm:$0xff]  ;;  %v7501_v39 = vld [vmem:[#allocation9 + $0x430] sm:$0xff] }
 0x5f6   :  { %v10683_v5 = vpop.f32.mrf.mxu0  ;;  %10975 = vmatprep.subr.bf16.mxu0 %v17720_v19  ;;  %v17696_v40 = vcombine.high %v7394_v34, %v7398_v55  ;;  %v17695_v44 = vcombine.low %v7394_v34, %v7398_v55  ;;  %v17805_v19 = vcombine.low %v7505_v0, %v7509_v61  ;;  %v17798_v33 = vcombine.high %v7497_v32, %v7501_v39  ;;  %v7601_v55 = vld [vmem:[#allocation9 + $0x750] sm:$0xff] }
 0x5f7   :  { %10853 = vmatpush1.bf16.msra.mxu1 %v17845_v16  ;;  %v17672_v16 = vcombine.high %v7370_v9, %v7374_v28  ;;  %v17797_v46 = vcombine.low %v7497_v32, %v7501_v39  ;;  %v17671_v5 = vcombine.low %v7370_v9, %v7374_v28  ;;  %v7577_v28 = vld [vmem:[#allocation9 + $0x690] sm:$0xff] }
 0x5f8   :  { %10976 = vmatpush1.bf16.msra.mxu0 %v17719_v8  ;;  %v10684_v15 = vpop.f32.mrf.mxu0  ;;  %10854 = vmatprep.subr.bf16.mxu1 %v17838_v17  ;;  %v7617_v8 = vld [vmem:[#allocation9 + $0x7d0] sm:$0xff] }
 0x5f9   :  { %10977 = vmatprep.subr.bf16.mxu0 %v17712_v10  ;;  %v7621_v17 = vld [vmem:[#allocation9 + $0x7f0] sm:$0xff]  ;;  %v7490_v10 = vld [vmem:[#allocation9 + $0x3d8] sm:$0xff] }
 0x5fa   :  { %v17918_v62 = vcombine.high %v7617_v8, %v7621_v17  ;;  %v17792_v59 = vcombine.high %v7490_v10, %v7494_v43  ;;  %v7613_v15 = vld [vmem:[#allocation9 + $0x7b0] sm:$0xff]  ;;  %v17791_v37 = vcombine.low %v7490_v10, %v7494_v43 }
 0x5fb   :  { %10855 = vmatpush1.bf16.msra.mxu1 %v17837_v30  ;;  %v7609_v30 = vld [vmem:[#allocation9 + $0x790] sm:$0xff] }
 0x5fc   :  { %10978 = vmatpush1.bf16.msra.mxu0 %v17711_v48  ;;  %10856 = vmatprep.subr.bf16.mxu1 %v17830_v25  ;;  %v7482_v48 = vld [vmem:[#allocation9 + $0x398] sm:$0xff]  ;;  %v17910_v63 = vcombine.high %v7609_v30, %v7613_v15  ;;  %v7569_v43 = vld [vmem:[#allocation9 + $0x650] sm:$0xff] }
 0x5fd   :  { %10979 = vmatprep.subr.bf16.mxu0 %v17704_v51  ;;  %v7486_v25 = vld [vmem:[#allocation9 + $0x3b8] sm:$0xff]  ;;  %v17917_v51 = vcombine.low %v7617_v8, %v7621_v17 }
 0x5fe   :  { %v17784_v34 = vcombine.high %v7482_v48, %v7486_v25  ;;  %v17783_v29 = vcombine.low %v7482_v48, %v7486_v25  ;;  %v7561_v25 = vld [vmem:[#allocation9 + $0x610] sm:$0xff] }
 0x5ff   :  { %10857 = vmatpush1.bf16.msra.mxu1 %v17829_v27  ;;  %v7605_v27 = vld [vmem:[#allocation9 + $0x770] sm:$0xff] }
 0x600   :  { %10980 = vmatpush1.bf16.msra.mxu0 %v17703_v42  ;;  %10858 = vmatprep.subr.bf16.mxu1 %v17822_v38  ;;  %v7474_v42 = vld [vmem:[#allocation9 + $0x358] sm:$0xff]  ;;  %v17902_v12 = vcombine.high %v7601_v55, %v7605_v27 }
 0x601   :  { %10981 = vmatprep.subr.bf16.mxu0 %v17696_v40  ;;  %v7478_v38 = vld [vmem:[#allocation9 + $0x378] sm:$0xff]  ;;  %v17909_v40 = vcombine.low %v7609_v30, %v7613_v15 }
 0x602   :  { %v17776_v18 = vcombine.high %v7474_v42, %v7478_v38  ;;  %v17775_v0 = vcombine.low %v7474_v42, %v7478_v38  ;;  %v7809_v38 = vld [vmem:[#allocation9 + $0xdd0] sm:$0xff] }
 0x603   :  { %10859 = vmatpush1.bf16.msra.mxu1 %v17821_v21  ;;  %v7597_v21 = vld [vmem:[#allocation9 + $0x730] sm:$0xff] }
 0x604   :  { %10982 = vmatpush1.bf16.msra.mxu0 %v17695_v44  ;;  %10860 = vmatprep.subr.bf16.mxu1 %v17814_v26  ;;  %v7466_v44 = vld [vmem:[#allocation9 + $0x318] sm:$0xff]  ;;  %v17894_v61 = vcombine.high %v7593_v20, %v7597_v21 }
 0x605   :  { %10983 = vmatprep.subr.bf16.mxu0 %v17688_v36  ;;  %v7470_v26 = vld [vmem:[#allocation9 + $0x338] sm:$0xff]  ;;  %v17901_v36 = vcombine.low %v7601_v55, %v7605_v27 }
 0x606   :  { %v17768_v24 = vcombine.high %v7466_v44, %v7470_v26  ;;  %v17767_v32 = vcombine.low %v7466_v44, %v7470_v26  ;;  %v7801_v26 = vld [vmem:[#allocation9 + $0xd90] sm:$0xff] }
 0x607   :  { %10861 = vmatpush1.bf16.msra.mxu1 %v17813_v41  ;;  %v7589_v41 = vld [vmem:[#allocation9 + $0x6f0] sm:$0xff] }
 0x608   :  { %10984 = vmatpush1.bf16.msra.mxu0 %v17687_v60  ;;  %10862 = vmatprep.subr.bf16.mxu1 %v17806_v57  ;;  %v7458_v60 = vld [vmem:[#allocation9 + $0x2d8] sm:$0xff]  ;;  %v17886_v39 = vcombine.high %v7585_v22, %v7589_v41 }
 0x609   :  { %10985 = vmatprep.subr.bf16.mxu0 %v17680_v49  ;;  %v7462_v57 = vld [vmem:[#allocation9 + $0x2f8] sm:$0xff]  ;;  %v17893_v49 = vcombine.low %v7593_v20, %v7597_v21 }
 0x60a   :  { %v17760_v9 = vcombine.high %v7458_v60, %v7462_v57  ;;  %v17759_v8 = vcombine.low %v7458_v60, %v7462_v57  ;;  %v7793_v60 = vld [vmem:[#allocation9 + $0xd50] sm:$0xff] }
 0x60b   :  { %10863 = vmatpush1.bf16.msra.mxu1 %v17805_v19  ;;  %v7581_v19 = vld [vmem:[#allocation9 + $0x6b0] sm:$0xff] }
 0x60c   :  { %10986 = vmatpush1.bf16.msra.mxu0 %v17679_v54  ;;  %10864 = vmatprep.subr.bf16.mxu1 %v17798_v33  ;;  %v7450_v54 = vld [vmem:[#allocation9 + $0x298] sm:$0xff]  ;;  %v17878_v17 = vcombine.high %v7577_v28, %v7581_v19  ;;  %v7797_v57 = vld [vmem:[#allocation9 + $0xd70] sm:$0xff] }
 0x60d   :  { %10987 = vmatprep.subr.bf16.mxu0 %v17672_v16  ;;  %v7454_v33 = vld [vmem:[#allocation9 + $0x2b8] sm:$0xff]  ;;  %v17885_v16 = vcombine.low %v7585_v22, %v7589_v41 }
 0x60e   :  { %v17752_v10 = vcombine.high %v7450_v54, %v7454_v33  ;;  %v17751_v30 = vcombine.low %v7450_v54, %v7454_v33 }
 0x60f   :  { %10865 = vmatpush1.bf16.msra.mxu1 %v17797_v46  ;;  %v7573_v46 = vld [vmem:[#allocation9 + $0x670] sm:$0xff] }
 0x610   :  { %10988 = vmatpush1.bf16.msra.mxu0 %v17671_v5  ;;  %10866 = vmatprep.subr.bf16.mxu1 %v17918_v62  ;;  %v7442_v5 = vld [vmem:[#allocation9 + $0x258] sm:$0xff]  ;;  %v17870_v15 = vcombine.high %v7569_v43, %v7573_v46 }
 0x611   :  { %10989 = vmatprep.subr.bf16.mxu0 %v17792_v59  ;;  %v7446_v62 = vld [vmem:[#allocation9 + $0x278] sm:$0xff]  ;;  %v17877_v59 = vcombine.low %v7577_v28, %v7581_v19 }
 0x612   :  { %v17744_v48 = vcombine.high %v7442_v5, %v7446_v62  ;;  %v17743_v55 = vcombine.low %v7442_v5, %v7446_v62  ;;  %v7670_v28 = vld [vmem:[#allocation9 + $0x978] sm:$0xff] }
 0x613   :  { %10867 = vmatpush2.bf16.msra.mxu1 %v17917_v51  ;;  %v7565_v51 = vld [vmem:[#allocation9 + $0x630] sm:$0xff]  ;;  %v7658_v5 = vld [vmem:[#allocation9 + $0x918] sm:$0xff] }
 0x614   :  { %10990 = vmatpush2.bf16.msra.mxu0 %v17791_v37  ;;  %10868 = vmatprep.subr.bf16.mxu1 %v17910_v63  ;;  %v7434_v37 = vld [vmem:[#allocation9 + $0x218] sm:$0xff]  ;;  %v17862_v27 = vcombine.high %v7561_v25, %v7565_v51 }
 0x615   :  { %10991 = vmatprep.subr.bf16.mxu0 %v17784_v34  ;;  %v7438_v63 = vld [vmem:[#allocation9 + $0x238] sm:$0xff]  ;;  %v17869_v34 = vcombine.low %v7569_v43, %v7573_v46  ;;  %v7785_v43 = vld [vmem:[#allocation9 + $0xd10] sm:$0xff] }
 0x616   :  { %v17736_v42 = vcombine.high %v7434_v37, %v7438_v63  ;;  %v17735_v20 = vcombine.low %v7434_v37, %v7438_v63  ;;  %v7662_v62 = vld [vmem:[#allocation9 + $0x938] sm:$0xff]  ;;  %v7781_v37 = vld [vmem:[#allocation9 + $0xcf0] sm:$0xff] }
 0x617   :  { %10869 = vmatpush2.bf16.msra.mxu1 %v17909_v40  ;;  %v7813_v40 = vld [vmem:[#allocation9 + $0xdf0] sm:$0xff]  ;;  %v7650_v63 = vld [vmem:[#allocation9 + $0x8d8] sm:$0xff] }
 0x618   :  { %10992 = vmatpush2.bf16.msra.mxu0 %v17783_v29  ;;  %10870 = vmatprep.subr.bf16.mxu1 %v17902_v12  ;;  %v7682_v29 = vld [vmem:[#allocation9 + $0x9d8] sm:$0xff]  ;;  %v18110_v21 = vcombine.high %v7809_v38, %v7813_v40 }
 0x619   :  { %10993 = vmatprep.subr.bf16.mxu0 %v17776_v18  ;;  %v7686_v12 = vld [vmem:[#allocation9 + $0x9f8] sm:$0xff]  ;;  %v17861_v18 = vcombine.low %v7561_v25, %v7565_v51  ;;  %v17960_v51 = vcombine.high %v7658_v5, %v7662_v62 }
 0x61a   :  { %v17984_v44 = vcombine.high %v7682_v29, %v7686_v12  ;;  %v17983_v22 = vcombine.low %v7682_v29, %v7686_v12  ;;  %v7773_v29 = vld [vmem:[#allocation9 + $0xcb0] sm:$0xff]  ;;  %v7642_v12 = vld [vmem:[#allocation9 + $0x898] sm:$0xff] }
 0x61b   :  { %10871 = vmatpush2.bf16.msra.mxu1 %v17901_v36  ;;  %v7805_v36 = vld [vmem:[#allocation9 + $0xdb0] sm:$0xff] }
 0x61c   :  { %10994 = vmatpush2.bf16.msra.mxu0 %v17775_v0  ;;  %10872 = vmatprep.subr.bf16.mxu1 %v17894_v61  ;;  %v18109_v0 = vcombine.low %v7809_v38, %v7813_v40  ;;  %v7674_v61 = vld [vmem:[#allocation9 + $0x998] sm:$0xff]  ;;  %v18102_v41 = vcombine.high %v7801_v26, %v7805_v36  ;;  %v18101_v54 = vcombine.low %v7801_v26, %v7805_v36  ;;  %v7769_v40 = vld [vmem:[#allocation9 + $0xc90] sm:$0xff] }
 0x61d   :  { %10995 = vmatprep.subr.bf16.mxu0 %v17768_v24  ;;  %v7678_v24 = vld [vmem:[#allocation9 + $0x9b8] sm:$0xff]  ;;  %v7761_v36 = vld [vmem:[#allocation9 + $0xc50] sm:$0xff] }
 0x61f   :  { %10873 = vmatpush2.bf16.msra.mxu1 %v17893_v49 }
 0x620   :  { %10996 = vmatpush2.bf16.msra.mxu0 %v17767_v32  ;;  %10874 = vmatprep.subr.bf16.mxu1 %v17886_v39  ;;  %v17976_v39 = vcombine.high %v7674_v61, %v7678_v24 }
 0x621   :  { %10997 = vmatprep.subr.bf16.mxu0 %v17760_v9  ;;  %v7666_v9 = vld [vmem:[#allocation9 + $0x958] sm:$0xff] }
 0x623   :  { %10875 = vmatpush2.bf16.msra.mxu1 %v17885_v16 }
 0x624   :  { %10998 = vmatpush2.bf16.msra.mxu0 %v17759_v8  ;;  %10876 = vmatprep.subr.bf16.mxu1 %v17878_v17  ;;  %v17975_v8 = vcombine.low %v7674_v61, %v7678_v24  ;;  %v18094_v17 = vcombine.high %v7793_v60, %v7797_v57  ;;  %v7634_v61 = vld [vmem:[#allocation9 + $0x858] sm:$0xff] }
 0x625   :  { %10999 = vmatprep.subr.bf16.mxu0 %v17752_v10  ;;  %v17968_v10 = vcombine.high %v7666_v9, %v7670_v28  ;;  %v7638_v24 = vld [vmem:[#allocation9 + $0x878] sm:$0xff] }
 0x627   :  { %10877 = vmatpush2.bf16.msra.mxu1 %v17877_v59  ;;  %v18093_v59 = vcombine.low %v7793_v60, %v7797_v57  ;;  %v17936_v57 = vcombine.high %v7634_v61, %v7638_v24 }
 0x628   :  { %11000 = vmatpush2.bf16.msra.mxu0 %v17751_v30  ;;  %10878 = vmatprep.subr.bf16.mxu1 %v17870_v15 }
 0x629   :  { %11001 = vmatprep.subr.bf16.mxu0 %v17744_v48  ;;  %v17967_v48 = vcombine.low %v7666_v9, %v7670_v28  ;;  %v7626_v9 = vld [vmem:[#allocation9 + $0x818] sm:$0xff] }
 0x62a   :  { %v7630_v28 = vld [vmem:[#allocation9 + $0x838] sm:$0xff] }
 0x62b   :  { %10879 = vmatpush2.bf16.msra.mxu1 %v17869_v34  ;;  %v7654_v34 = vld [vmem:[#allocation9 + $0x8f8] sm:$0xff] }
 0x62c   :  { %11002 = vmatpush2.bf16.msra.mxu0 %v17743_v55  ;;  %10880 = vmatprep.subr.bf16.mxu1 %v17862_v27  ;;  %v17959_v27 = vcombine.low %v7658_v5, %v7662_v62  ;;  %v17952_v38 = vcombine.high %v7650_v63, %v7654_v34  ;;  %v17927_v62 = vcombine.low %v7626_v9, %v7630_v28 }
 0x62d   :  { %11003 = vmatprep.subr.bf16.mxu0 %v17736_v42 }
 0x62f   :  { %10881 = vmatpush2.bf16.msra.mxu1 %v17861_v18  ;;  %v7646_v18 = vld [vmem:[#allocation9 + $0x8b8] sm:$0xff] }
 0x630   :  { %11004 = vmatpush2.bf16.msra.mxu0 %v17735_v20  ;;  %10932 = vmatprep.subr.bf16.mxu1 %v18110_v21  ;;  %v17951_v21 = vcombine.low %v7650_v63, %v7654_v34  ;;  %v17944_v26 = vcombine.high %v7642_v12, %v7646_v18 }
 0x631   :  { %11055 = vmatprep.subr.bf16.mxu0 %v17984_v44  ;;  %v18070_v44 = vcombine.high %v7769_v40, %v7773_v29 }
 0x632   :  { %v20780_v49 = vpop.f32.mrf.mxu0  ;;  %10883 = vmatmul.mubr.bf16.vlgmr.msra.gmra.mxu1 %v20698_v1  ;;  %v10638_v32 = vpop.f32.mrf.mxu1 }
 0x633   :  { %11006 = vmatmul.mubr.bf16.vlgmr.msra.gmra.mxu0 %v20662_v31  ;;  %v20785_v19 = vadd.f32 %v10638_v32, %v20765_v4  ;;  %10933 = vmatpush1.bf16.msra.mxu1 %v18109_v0  ;;  %v7789_v31 = vld [vmem:[#allocation9 + $0xd30] sm:$0xff] }
 0x634   :  { %10964 = vmatprep.mubr.bf16.mxu1 %v20742_v11  ;;  %11056 = vmatpush1.bf16.msra.mxu0 %v17983_v22  ;;  %v20788_v33 = vpop.f32.mrf.mxu0  ;;  %v20790_v16 = vpop.f32.mrf.mxu1  ;;  %v18086_v25 = vcombine.high %v7785_v43, %v7789_v31  ;;  %v18085_v55 = vcombine.low %v7785_v43, %v7789_v31  ;;  %v7765_v0 = vld [vmem:[#allocation9 + $0xc70] sm:$0xff]  ;;  %v18069_v22 = vcombine.low %v7769_v40, %v7773_v29 }
 0x635   :  { %11087 = vmatprep.mubr.bf16.mxu0 %v20703_v35  ;;  %10934 = vmatprep.subr.bf16.mxu1 %v18102_v41  ;;  %v7777_v35 = vld [vmem:[#allocation9 + $0xcd0] sm:$0xff]  ;;  %v17943_v41 = vcombine.low %v7642_v12, %v7646_v18  ;;  %v18062_v60 = vcombine.high %v7761_v36, %v7765_v0 }
 0x636   :  { %v10765_v46 = vpop.f32.mrf.mxu0  ;;  %11057 = vmatprep.subr.bf16.mxu0 %v17976_v39  ;;  %v10642_v4 = vpop.f32.mrf.mxu1  ;;  %v18078_v42 = vcombine.high %v7777_v35, %v7781_v37  ;;  %v18077_v20 = vcombine.low %v7777_v35, %v7781_v37  ;;  %v7753_v32 = vld [vmem:[#allocation9 + $0xc10] sm:$0xff] }
 0x637   :  { %10935 = vmatpush1.bf16.msra.mxu1 %v18101_v54  ;;  %v7757_v39 = vld [vmem:[#allocation9 + $0xc30] sm:$0xff]  ;;  %v18061_v54 = vcombine.low %v7761_v36, %v7765_v0  ;;  %v7746_v46 = vld [vmem:[#allocation9 + $0xbd8] sm:$0xff] }
 0x638   :  { %11058 = vmatpush1.bf16.msra.mxu0 %v17975_v8  ;;  %v10766_v30 = vpop.f32.mrf.mxu0  ;;  %v10643_v15 = vpop.f32.mrf.mxu1  ;;  %10936 = vmatprep.subr.bf16.mxu1 %v18094_v17  ;;  %v17935_v8 = vcombine.low %v7634_v61, %v7638_v24  ;;  %v18054_v17 = vcombine.high %v7753_v32, %v7757_v39  ;;  %v7873_v43 = vld [vmem:[#allocation9 + $0xfd0] sm:$0xff]  ;;  %v7750_v4 = vld [vmem:[#allocation9 + $0xbf8] sm:$0xff]  ;;  %v18053_v5 = vcombine.low %v7753_v32, %v7757_v39 }
 0x639   :  { %11059 = vmatprep.subr.bf16.mxu0 %v17968_v10  ;;  %v17928_v10 = vcombine.high %v7626_v9, %v7630_v28  ;;  %v7877_v31 = vld [vmem:[#allocation9 + $0xff0] sm:$0xff]  ;;  %v18048_v30 = vcombine.high %v7746_v46, %v7750_v4  ;;  %v18047_v37 = vcombine.low %v7746_v46, %v7750_v4 }
 0x63a   :  { %v7865_v15 = vld [vmem:[#allocation9 + $0xf90] sm:$0xff]  ;;  %v18173_v35 = vcombine.low %v7873_v43, %v7877_v31 }
 0x63b   :  { %10937 = vmatpush1.bf16.msra.mxu1 %v18093_v59  ;;  %v18174_v59 = vcombine.high %v7873_v43, %v7877_v31  ;;  %v10641_v43 = vadd.f32 %v20790_v16, %v20770_v14  ;;  %v7817_v16 = vld [vmem:[#allocation9 + $0xe10] sm:$0xff] }
 0x63c   :  { %11060 = vmatpush1.bf16.msra.mxu0 %v17967_v48  ;;  %10938 = vmatprep.subr.bf16.mxu1 %v18086_v25  ;;  %v7869_v48 = vld [vmem:[#allocation9 + $0xfb0] sm:$0xff]  ;;  %v7738_v25 = vld [vmem:[#allocation9 + $0xb98] sm:$0xff] }
 0x63d   :  { %11061 = vmatprep.subr.bf16.mxu0 %v17960_v51  ;;  %v7742_v51 = vld [vmem:[#allocation9 + $0xbb8] sm:$0xff]  ;;  %v18166_v63 = vcombine.high %v7865_v15, %v7869_v48  ;;  %v18165_v40 = vcombine.low %v7865_v15, %v7869_v48  ;;  %20040 = vtanh.f32 %v10641_v43 }
 0x63e   :  { %v18040_v34 = vcombine.high %v7738_v25, %v7742_v51  ;;  %v18039_v29 = vcombine.low %v7738_v25, %v7742_v51  ;;  %v7702_v15 = vld [vmem:[#allocation9 + $0xa78] sm:$0xff]  ;;  %20042 = vtanh.f32 %v20785_v19 }
 0x63f   :  { %10939 = vmatpush1.bf16.msra.mxu1 %v18085_v55  ;;  %v7857_v55 = vld [vmem:[#allocation9 + $0xf50] sm:$0xff] }
 0x640   :  { %11062 = vmatpush1.bf16.msra.mxu0 %v17959_v27  ;;  %10940 = vmatprep.subr.bf16.mxu1 %v18078_v42  ;;  %v7861_v27 = vld [vmem:[#allocation9 + $0xf70] sm:$0xff]  ;;  %v7730_v42 = vld [vmem:[#allocation9 + $0xb58] sm:$0xff] }
 0x641   :  { %11063 = vmatprep.subr.bf16.mxu0 %v17952_v38  ;;  %v7734_v38 = vld [vmem:[#allocation9 + $0xb78] sm:$0xff]  ;;  %v18158_v12 = vcombine.high %v7857_v55, %v7861_v27  ;;  %v18157_v36 = vcombine.low %v7857_v55, %v7861_v27 }
 0x642   :  { %v18032_v18 = vcombine.high %v7730_v42, %v7734_v38  ;;  %v18031_v0 = vcombine.low %v7730_v42, %v7734_v38  ;;  %v7554_v38 = vld [vmem:[#allocation9 + $0x5d8] sm:$0xff] }
 0x643   :  { %10941 = vmatpush1.bf16.msra.mxu1 %v18077_v20  ;;  %v7849_v20 = vld [vmem:[#allocation9 + $0xf10] sm:$0xff] }
 0x644   :  { %11064 = vmatpush1.bf16.msra.mxu0 %v17951_v21  ;;  %10942 = vmatprep.subr.bf16.mxu1 %v18070_v44  ;;  %v7853_v21 = vld [vmem:[#allocation9 + $0xf30] sm:$0xff]  ;;  %v7722_v44 = vld [vmem:[#allocation9 + $0xb18] sm:$0xff] }
 0x645   :  { %11065 = vmatprep.subr.bf16.mxu0 %v17944_v26  ;;  %v7726_v26 = vld [vmem:[#allocation9 + $0xb38] sm:$0xff]  ;;  %v18150_v61 = vcombine.high %v7849_v20, %v7853_v21  ;;  %v18149_v32 = vcombine.low %v7849_v20, %v7853_v21  ;;  %v20795_v20 = vld [vmem:[#allocation10] sm:$0xff] }
 0x646   :  { %v18024_v24 = vcombine.high %v7722_v44, %v7726_v26  ;;  %v18023_v39 = vcombine.low %v7722_v44, %v7726_v26  ;;  %v7892_v21 = vrot.slane %v20795_v20, %v20477_v56  ;;  %v18938_v44 = vld [vmem:[#allocation12 + $0x74] ss:$8 sps:$4 sm:$0xff]   ;;  %v7896_v26 = vrot.slane %v20795_v20, %v20491_v7 }
 0x647   :  { %10943 = vmatpush1.bf16.msra.mxu1 %v18069_v22  ;;  %v7841_v22 = vld [vmem:[#allocation9 + $0xed0] sm:$0xff] }
 0x648   :  { %11066 = vmatpush1.bf16.msra.mxu0 %v17943_v41  ;;  %10944 = vmatprep.subr.bf16.mxu1 %v18062_v60  ;;  %v7845_v41 = vld [vmem:[#allocation9 + $0xef0] sm:$0xff]  ;;  %v7714_v60 = vld [vmem:[#allocation9 + $0xad8] sm:$0xff] }
 0x649   :  { %11067 = vmatprep.subr.bf16.mxu0 %v17936_v57  ;;  %v7718_v57 = vld [vmem:[#allocation9 + $0xaf8] sm:$0xff]  ;;  %v18142_v9 = vcombine.high %v7841_v22, %v7845_v41  ;;  %v18141_v31 = vcombine.low %v7841_v22, %v7845_v41  ;;  %v10680_v41 = vadd.f32 %v20772_v2, %v7892_v21 }
 0x64a   :  { %v18016_v28 = vcombine.high %v7714_v60, %v7718_v57  ;;  %v18015_v46 = vcombine.low %v7714_v60, %v7718_v57  ;;  %v18936_v22 = vld [vmem:[#allocation12 + $0x70] ss:$8 sps:$4 sm:$0xff]  }
 0x64b   :  { %10945 = vmatpush1.bf16.msra.mxu1 %v18061_v54  ;;  %v7833_v54 = vld [vmem:[#allocation9 + $0xe90] sm:$0xff]  ;;  %v7538_v57 = vld [vmem:[#allocation9 + $0x558] sm:$0xff] }
 0x64c   :  { %11068 = vmatpush1.bf16.msra.mxu0 %v17935_v8  ;;  %10946 = vmatprep.subr.bf16.mxu1 %v18054_v17  ;;  %v7837_v8 = vld [vmem:[#allocation9 + $0xeb0] sm:$0xff]  ;;  %v7706_v17 = vld [vmem:[#allocation9 + $0xa98] sm:$0xff] }
 0x64d   :  { %11069 = vmatprep.subr.bf16.mxu0 %v17928_v10  ;;  %v7710_v10 = vld [vmem:[#allocation9 + $0xab8] sm:$0xff]  ;;  %v18134_v4 = vcombine.high %v7833_v54, %v7837_v8  ;;  %v18133_v48 = vcombine.low %v7833_v54, %v7837_v8  ;;  %v18941_v54 = vld [vmem:[#allocation12 + $0x64] ss:$8 sps:$4 sm:$0xff]  }
 0x64e   :  { %v18007_v25 = vcombine.low %v7706_v17, %v7710_v10 }
 0x64f   :  { %10947 = vmatpush1.bf16.msra.mxu1 %v18053_v5  ;;  %v18008_v5 = vcombine.high %v7706_v17, %v7710_v10 }
 0x650   :  { %11070 = vmatpush1.bf16.msra.mxu0 %v17927_v62  ;;  %10948 = vmatprep.subr.bf16.mxu1 %v18174_v59  ;;  %v7825_v62 = vld [vmem:[#allocation9 + $0xe50] sm:$0xff] }
 0x651   :  { %11071 = vmatprep.subr.bf16.mxu0 %v18048_v30  ;;  %v7829_v59 = vld [vmem:[#allocation9 + $0xe70] sm:$0xff]  ;;  %v7698_v30 = vld [vmem:[#allocation9 + $0xa58] sm:$0xff] }
 0x652   :  { %v18126_v51 = vcombine.high %v7825_v62, %v7829_v59  ;;  %v18000_v14 = vcombine.high %v7698_v30, %v7702_v15  ;;  %v17999_v55 = vcombine.low %v7698_v30, %v7702_v15 }
 0x653   :  { %10949 = vmatpush2.bf16.msra.mxu1 %v18173_v35  ;;  %v7821_v35 = vld [vmem:[#allocation9 + $0xe30] sm:$0xff] }
 0x654   :  { %11072 = vmatpush2.bf16.msra.mxu0 %v18047_v37  ;;  %10950 = vmatprep.subr.bf16.mxu1 %v18166_v63  ;;  %v7690_v37 = vld [vmem:[#allocation9 + $0xa18] sm:$0xff]  ;;  %v18118_v27 = vcombine.high %v7817_v16, %v7821_v35 }
 0x655   :  { %11073 = vmatprep.subr.bf16.mxu0 %v18040_v34  ;;  %v7694_v63 = vld [vmem:[#allocation9 + $0xa38] sm:$0xff]  ;;  %v18125_v34 = vcombine.low %v7825_v62, %v7829_v59 }
 0x656   :  { %v17992_v42 = vcombine.high %v7690_v37, %v7694_v63  ;;  %v7534_v62 = vld [vmem:[#allocation9 + $0x538] sm:$0xff] }
 0x657   :  { %10951 = vmatpush2.bf16.msra.mxu1 %v18165_v40  ;;  %v7558_v40 = vld [vmem:[#allocation9 + $0x5f8] sm:$0xff] }
 0x658   :  { %11074 = vmatpush2.bf16.msra.mxu0 %v18039_v29  ;;  %10952 = vmatprep.subr.bf16.mxu1 %v18158_v12  ;;  %v18117_v29 = vcombine.low %v7817_v16, %v7821_v35  ;;  %v17991_v12 = vcombine.low %v7690_v37, %v7694_v63  ;;  %v7526_v16 = vld [vmem:[#allocation9 + $0x4f8] sm:$0xff]  ;;  %v18945_v37 = vld [vmem:[#allocation12 + $0x40] ss:$8 sps:$4 sm:$0xff]  }
 0x659   :  { %11075 = vmatprep.subr.bf16.mxu0 %v18032_v18  ;;  %v17856_v18 = vcombine.high %v7554_v38, %v7558_v40 }
 0x65b   :  { %10953 = vmatpush2.bf16.msra.mxu1 %v18157_v36  ;;  %v7546_v36 = vld [vmem:[#allocation9 + $0x598] sm:$0xff] }
 0x65c   :  { %11076 = vmatpush2.bf16.msra.mxu0 %v18031_v0  ;;  %10954 = vmatprep.subr.bf16.mxu1 %v18150_v61  ;;  %v7550_v0 = vld [vmem:[#allocation9 + $0x5b8] sm:$0xff]  ;;  %v17855_v61 = vcombine.low %v7554_v38, %v7558_v40 }
 0x65d   :  { %11077 = vmatprep.subr.bf16.mxu0 %v18024_v24  ;;  %v20041_v24 = vpop.eup %20040  ;;  %v17848_v60 = vcombine.high %v7546_v36, %v7550_v0  ;;  %v17847_v10 = vcombine.low %v7546_v36, %v7550_v0  ;;  %v18948_v38 = vld [vmem:[#allocation12 + $0x30] ss:$8 sps:$4 sm:$0xff]   ;;  %v18956_v36 = vld [vmem:[#allocation12 + $0x14] ss:$8 sps:$4 sm:$0xff]  }
 0x65e   :  { %v11146_v17 = vpack.c.bf16 %v20041_v24, %v20041_v24  ;;  %v7498_v0 = vld [vmem:[#allocation9 + $0x418] sm:$0xff] }
 0x65f   :  { %10955 = vmatpush2.bf16.msra.mxu1 %v18149_v32  ;;  %v7542_v32 = vld [vmem:[#allocation9 + $0x578] sm:$0xff] }
 0x660   :  { %11078 = vmatpush2.bf16.msra.mxu0 %v18023_v39  ;;  %10956 = vmatprep.subr.bf16.mxu1 %v18142_v9  ;;  %v10682_v39 = vadd.f32 %v20777_v58, %v7896_v26  ;;  %v18939_v58 = vld [vmem:[#allocation12 + $0x60] ss:$8 sps:$4 sm:$0xff]   ;;  %v17839_v30 = vcombine.low %v7538_v57, %v7542_v32 }
 0x661   :  { %11079 = vmatprep.subr.bf16.mxu0 %v18016_v28 }
 0x663   :  { %10957 = vmatpush2.bf16.msra.mxu1 %v18141_v31  ;;  %v17840_v31 = vcombine.high %v7538_v57, %v7542_v32  ;;  %v7618_v57 = vld [vmem:[#allocation9 + $0x7d8] sm:$0xff] }
 0x664   :  { %11080 = vmatpush2.bf16.msra.mxu0 %v18015_v46  ;;  %10958 = vmatprep.subr.bf16.mxu1 %v18134_v4  ;;  %v18944_v4 = vld [vmem:[#allocation12 + $0x54] ss:$8 sps:$4 sm:$0xff]  }
 0x665   :  { %11081 = vmatprep.subr.bf16.mxu0 %v18008_v5  ;;  %v7530_v5 = vld [vmem:[#allocation9 + $0x518] sm:$0xff] }
 0x666   :  { %v17831_v35 = vcombine.low %v7530_v5, %v7534_v62  ;;  %v7622_v32 = vld [vmem:[#allocation9 + $0x7f8] sm:$0xff] }
 0x667   :  { %10959 = vmatpush2.bf16.msra.mxu1 %v18133_v48  ;;  %v18942_v48 = vld [vmem:[#allocation12 + $0x50] ss:$8 sps:$4 sm:$0xff]  }
 0x668   :  { %11082 = vmatpush2.bf16.msra.mxu0 %v18007_v25  ;;  %10960 = vmatprep.subr.bf16.mxu1 %v18126_v51  ;;  %v17832_v25 = vcombine.high %v7530_v5, %v7534_v62  ;;  %v18947_v51 = vld [vmem:[#allocation12 + $0x44] ss:$8 sps:$4 sm:$0xff]   ;;  %v7602_v62 = vld [vmem:[#allocation9 + $0x758] sm:$0xff] }
 0x669   :  { %11083 = vmatprep.subr.bf16.mxu0 %v18000_v14  ;;  %v7522_v14 = vld [vmem:[#allocation9 + $0x4d8] sm:$0xff]  ;;  %v18965_v5 = vld [vmem:[#allocation12 + $0xe4] ss:$8 sps:$4 sm:$0xff]  }
 0x66a   :  { %v17824_v63 = vcombine.high %v7522_v14, %v7526_v16 }
 0x66b   :  { %10961 = vmatpush2.bf16.msra.mxu1 %v18125_v34  ;;  %v18950_v34 = vld [vmem:[#allocation12 + $0x34] ss:$8 sps:$4 sm:$0xff]  }
 0x66c   :  { %11084 = vmatpush2.bf16.msra.mxu0 %v17999_v55  ;;  %10962 = vmatprep.subr.bf16.mxu1 %v18118_v27  ;;  %v7514_v55 = vld [vmem:[#allocation9 + $0x498] sm:$0xff] }
 0x66d   :  { %11085 = vmatprep.subr.bf16.mxu0 %v17992_v42  ;;  %v7518_v27 = vld [vmem:[#allocation9 + $0x4b8] sm:$0xff]  ;;  %v17823_v42 = vcombine.low %v7522_v14, %v7526_v16 }
 0x66e   :  { %v17816_v40 = vcombine.high %v7514_v55, %v7518_v27  ;;  %v17815_v21 = vcombine.low %v7514_v55, %v7518_v27  ;;  %v18966_v14 = vld [vmem:[#allocation12 + $0xd0] ss:$8 sps:$4 sm:$0xff]   ;;  %v18969_v55 = vld [vmem:[#allocation12 + $0xc0] ss:$8 sps:$4 sm:$0xff]  }
 0x66f   :  { %10963 = vmatpush2.bf16.msra.mxu1 %v18117_v29  ;;  %v18953_v29 = vld [vmem:[#allocation12 + $0x24] ss:$8 sps:$4 sm:$0xff]  }
 0x670   :  { %11086 = vmatpush2.bf16.msra.mxu0 %v17991_v12  ;;  %11014 = vmatprep.subr.bf16.mxu1 %v17856_v18  ;;  %v7506_v12 = vld [vmem:[#allocation9 + $0x458] sm:$0xff] }
 0x671   :  { %11933 = vmatprep.subr.bf16.mxu0 %v18938_v44  ;;  %v7510_v18 = vld [vmem:[#allocation9 + $0x478] sm:$0xff]  ;;  %v18951_v44 = vld [vmem:[#allocation12 + $0x20] ss:$8 sps:$4 sm:$0xff]  }
 0x672   :  { %v10720_v9 = vpop.f32.mrf.mxu1  ;;  %v20803_v28 = vpop.f32.mrf.mxu0  ;;  %10965 = vmatmul.mubr.bf16.vlgmr.msra.gmra.mxu1 %v20744_v3  ;;  %v17808_v26 = vcombine.high %v7506_v12, %v7510_v18  ;;  %v17807_v24 = vcombine.low %v7506_v12, %v7510_v18  ;;  %v18972_v12 = vld [vmem:[#allocation12 + $0xb0] ss:$8 sps:$4 sm:$0xff]  }
 0x673   :  { %v20806_v8 = vadd.f32 %v10720_v9, %v10680_v41  ;;  %11088 = vmatmul.mubr.bf16.vlgmr.msra.gmra.mxu0 %v20711_v52  ;;  %11015 = vmatpush1.bf16.msra.mxu1 %v17855_v61  ;;  %v7502_v61 = vld [vmem:[#allocation9 + $0x438] sm:$0xff]  ;;  %v18957_v9 = vld [vmem:[#allocation12] ss:$8 sps:$4 sm:$0xff]  }
 0x674   :  { %11046 = vmatprep.mubr.bf16.mxu1 %v20676_v47  ;;  %11934 = vmatpush1.bf16.msra.mxu0 %v18936_v22  ;;  %v10722_v2 = vpop.f32.mrf.mxu1  ;;  %v20810_v43 = vpop.f32.mrf.mxu0  ;;  %v18954_v22 = vld [vmem:[#allocation12 + $0x10] ss:$8 sps:$4 sm:$0xff]   ;;  %v17800_v41 = vcombine.high %v7498_v0, %v7502_v61 }
 0x675   :  { %11965 = vmatprep.mubr.bf16.mxu0 %v11146_v17  ;;  %v20812_v46 = vadd.f32 %v10722_v2, %v10682_v39  ;;  %11016 = vmatprep.subr.bf16.mxu1 %v17848_v60  ;;  %v18959_v60 = vld [vmem:[#allocation12 + $0x4] ss:$8 sps:$4 sm:$0xff]   ;;  %v17799_v39 = vcombine.low %v7498_v0, %v7502_v61  ;;  %v18962_v17 = vld [vmem:[#allocation12 + $0xf4] ss:$8 sps:$4 sm:$0xff]   ;;  %v18975_v0 = vld [vmem:[#allocation12 + $0xa0] ss:$8 sps:$4 sm:$0xff]  }
 0x676   :  { %v10724_v59 = vpop.f32.mrf.mxu1  ;;  %v10847_v52 = vpop.f32.mrf.mxu0  ;;  %11935 = vmatprep.subr.bf16.mxu0 %v18941_v54  ;;  %v17920_v54 = vcombine.high %v7618_v57, %v7622_v32  ;;  %v7614_v2 = vld [vmem:[#allocation9 + $0x7b8] sm:$0xff] }
 0x677   :  { %11017 = vmatpush1.bf16.msra.mxu1 %v17847_v10  ;;  %v7610_v10 = vld [vmem:[#allocation9 + $0x798] sm:$0xff] }
 0x678   :  { %11936 = vmatpush1.bf16.msra.mxu0 %v18939_v58  ;;  %v10725_v47 = vpop.f32.mrf.mxu1  ;;  %v10848_v15 = vpop.f32.mrf.mxu0  ;;  %11018 = vmatprep.subr.bf16.mxu1 %v17840_v31  ;;  %v17919_v58 = vcombine.low %v7618_v57, %v7622_v32  ;;  %v18960_v31 = vld [vmem:[#allocation12 + $0xf0] ss:$8 sps:$4 sm:$0xff]   ;;  %v17911_v52 = vcombine.low %v7610_v10, %v7614_v2  ;;  %v18983_v32 = vld [vmem:[#allocation12 + $0x84] ss:$8 sps:$4 sm:$0xff]  }
 0x679   :  { %11937 = vmatprep.subr.bf16.mxu0 %v18944_v4  ;;  %v17912_v4 = vcombine.high %v7610_v10, %v7614_v2  ;;  %v7606_v59 = vld [vmem:[#allocation9 + $0x778] sm:$0xff] }
 0x67a   :  { %v17904_v47 = vcombine.high %v7602_v62, %v7606_v59  ;;  %v18968_v15 = vld [vmem:[#allocation12 + $0xd4] ss:$8 sps:$4 sm:$0xff]   ;;  %v18978_v57 = vld [vmem:[#allocation12 + $0x90] ss:$8 sps:$4 sm:$0xff]  }
 0x67b   :  { %11019 = vmatpush1.bf16.msra.mxu1 %v17839_v30  ;;  %v18963_v30 = vld [vmem:[#allocation12 + $0xe0] ss:$8 sps:$4 sm:$0xff]   ;;  %v7802_v2 = vld [vmem:[#allocation9 + $0xd98] sm:$0xff] }
 0x67c   :  { %11938 = vmatpush1.bf16.msra.mxu0 %v18942_v48  ;;  %11020 = vmatprep.subr.bf16.mxu1 %v17832_v25  ;;  %v7594_v48 = vld [vmem:[#allocation9 + $0x718] sm:$0xff] }
 0x67d   :  { %11939 = vmatprep.subr.bf16.mxu0 %v18947_v51  ;;  %v7598_v25 = vld [vmem:[#allocation9 + $0x738] sm:$0xff]  ;;  %v17903_v51 = vcombine.low %v7602_v62, %v7606_v59 }
 0x67e   :  { %v17896_v16 = vcombine.high %v7594_v48, %v7598_v25 }
 0x67f   :  { %11021 = vmatpush1.bf16.msra.mxu1 %v17831_v35  ;;  %v18971_v35 = vld [vmem:[#allocation12 + $0xc4] ss:$8 sps:$4 sm:$0xff]  }
 0x680   :  { %11940 = vmatpush1.bf16.msra.mxu0 %v18945_v37  ;;  %11022 = vmatprep.subr.bf16.mxu1 %v17824_v63  ;;  %v7586_v37 = vld [vmem:[#allocation9 + $0x6d8] sm:$0xff] }
 0x681   :  { %11941 = vmatprep.subr.bf16.mxu0 %v18950_v34  ;;  %v7590_v63 = vld [vmem:[#allocation9 + $0x6f8] sm:$0xff]  ;;  %v17895_v34 = vcombine.low %v7594_v48, %v7598_v25  ;;  %v19010_v25 = vld [vmem:[#allocation12 + $0x264] ss:$8 sps:$4 sm:$0xff]  }
 0x682   :  { %v17888_v27 = vcombine.high %v7586_v37, %v7590_v63 }
 0x683   :  { %11023 = vmatpush1.bf16.msra.mxu1 %v17823_v42  ;;  %v18974_v42 = vld [vmem:[#allocation12 + $0xb4] ss:$8 sps:$4 sm:$0xff]  }
 0x684   :  { %11942 = vmatpush1.bf16.msra.mxu0 %v18948_v38  ;;  %11024 = vmatprep.subr.bf16.mxu1 %v17816_v40  ;;  %v7578_v38 = vld [vmem:[#allocation9 + $0x698] sm:$0xff] }
 0x685   :  { %11943 = vmatprep.subr.bf16.mxu0 %v18953_v29  ;;  %v7582_v40 = vld [vmem:[#allocation9 + $0x6b8] sm:$0xff]  ;;  %v17887_v29 = vcombine.low %v7586_v37, %v7590_v63 }
 0x686   :  { %v17880_v18 = vcombine.high %v7578_v38, %v7582_v40  ;;  %v7786_v37 = vld [vmem:[#allocation9 + $0xd18] sm:$0xff] }
 0x687   :  { %11025 = vmatpush1.bf16.msra.mxu1 %v17815_v21  ;;  %v18977_v21 = vld [vmem:[#allocation12 + $0xa4] ss:$8 sps:$4 sm:$0xff]   ;;  %v7790_v63 = vld [vmem:[#allocation9 + $0xd38] sm:$0xff] }
 0x688   :  { %11944 = vmatpush1.bf16.msra.mxu0 %v18951_v44  ;;  %11026 = vmatprep.subr.bf16.mxu1 %v17808_v26  ;;  %v7570_v44 = vld [vmem:[#allocation9 + $0x658] sm:$0xff] }
 0x689   :  { %11945 = vmatprep.subr.bf16.mxu0 %v18956_v36  ;;  %v7574_v26 = vld [vmem:[#allocation9 + $0x678] sm:$0xff]  ;;  %v17879_v36 = vcombine.low %v7578_v38, %v7582_v40  ;;  %v18088_v40 = vcombine.high %v7786_v37, %v7790_v63 }
 0x68a   :  { %v17872_v61 = vcombine.high %v7570_v44, %v7574_v26 }
 0x68b   :  { %11027 = vmatpush1.bf16.msra.mxu1 %v17807_v24  ;;  %v18980_v24 = vld [vmem:[#allocation12 + $0x94] ss:$8 sps:$4 sm:$0xff]  }
 0x68c   :  { %11946 = vmatpush1.bf16.msra.mxu0 %v18954_v22  ;;  %11028 = vmatprep.subr.bf16.mxu1 %v17800_v41  ;;  %v7562_v22 = vld [vmem:[#allocation9 + $0x618] sm:$0xff] }
 0x68d   :  { %11947 = vmatprep.subr.bf16.mxu0 %v18959_v60  ;;  %v7566_v41 = vld [vmem:[#allocation9 + $0x638] sm:$0xff]  ;;  %v17871_v60 = vcombine.low %v7570_v44, %v7574_v26  ;;  %v18087_v44 = vcombine.low %v7786_v37, %v7790_v63 }
 0x68e   :  { %v17864_v19 = vcombine.high %v7562_v22, %v7566_v41  ;;  %v7858_v37 = vld [vmem:[#allocation9 + $0xf58] sm:$0xff] }
 0x68f   :  { %11029 = vmatpush1.bf16.msra.mxu1 %v17799_v39  ;;  %v7810_v39 = vld [vmem:[#allocation9 + $0xdd8] sm:$0xff] }
 0x690   :  { %11948 = vmatpush1.bf16.msra.mxu0 %v18957_v9  ;;  %11030 = vmatprep.subr.bf16.mxu1 %v17920_v54  ;;  %v7814_v9 = vld [vmem:[#allocation9 + $0xdf8] sm:$0xff]  ;;  %v17863_v54 = vcombine.low %v7562_v22, %v7566_v41 }
 0x691   :  { %11949 = vmatprep.subr.bf16.mxu0 %v18962_v17  ;;  %v18981_v17 = vld [vmem:[#allocation12 + $0x80] ss:$8 sps:$4 sm:$0xff]   ;;  %v18112_v10 = vcombine.high %v7810_v39, %v7814_v9  ;;  %v7862_v63 = vld [vmem:[#allocation9 + $0xf78] sm:$0xff] }
 0x693   :  { %11031 = vmatpush2.bf16.msra.mxu1 %v17919_v58  ;;  %v7806_v58 = vld [vmem:[#allocation9 + $0xdb8] sm:$0xff] }
 0x694   :  { %11950 = vmatpush2.bf16.msra.mxu0 %v18960_v31  ;;  %11032 = vmatprep.subr.bf16.mxu1 %v17912_v4  ;;  %v19004_v31 = vld [vmem:[#allocation12 + $0x274] ss:$8 sps:$4 sm:$0xff]   ;;  %v20043_v4 = vpop.eup %20042  ;;  %v18104_v62 = vcombine.high %v7802_v2, %v7806_v58 }
 0x695   :  { %11951 = vmatprep.subr.bf16.mxu0 %v18965_v5  ;;  %v18111_v5 = vcombine.low %v7810_v39, %v7814_v9  ;;  %v11145_v59 = vpack.c.bf16 %v20043_v4, %v20043_v4  ;;  %v7874_v4 = vld [vmem:[#allocation9 + $0xfd8] sm:$0xff] }
 0x697   :  { %11033 = vmatpush2.bf16.msra.mxu1 %v17911_v52  ;;  %v10762_v52 = vadd.f32 %v20780_v49, %v20806_v8 }
 0x698   :  { %11952 = vmatpush2.bf16.msra.mxu0 %v18963_v30  ;;  %11034 = vmatprep.subr.bf16.mxu1 %v17904_v47  ;;  %v7794_v30 = vld [vmem:[#allocation9 + $0xd58] sm:$0xff] }
 0x699   :  { %11953 = vmatprep.subr.bf16.mxu0 %v18968_v15  ;;  %v7798_v47 = vld [vmem:[#allocation9 + $0xd78] sm:$0xff] }
 0x69a   :  { %v19002_v15 = vld [vmem:[#allocation12 + $0x270] ss:$8 sps:$4 sm:$0xff]   ;;  %v18096_v49 = vcombine.high %v7794_v30, %v7798_v47 }
 0x69b   :  { %11035 = vmatpush2.bf16.msra.mxu1 %v17903_v51 }
 0x69c   :  { %11954 = vmatpush2.bf16.msra.mxu0 %v18966_v14  ;;  %11036 = vmatprep.subr.bf16.mxu1 %v17896_v16  ;;  %v18103_v16 = vcombine.low %v7802_v2, %v7806_v58  ;;  %v19040_v2 = vld [vmem:[#allocation12 + $0x214] ss:$8 sps:$4 sm:$0xff]  }
 0x69d   :  { %11955 = vmatprep.subr.bf16.mxu0 %v18971_v35 }
 0x69f   :  { %11037 = vmatpush2.bf16.msra.mxu1 %v17895_v34 }
 0x6a0   :  { %11956 = vmatpush2.bf16.msra.mxu0 %v18969_v55  ;;  %11038 = vmatprep.subr.bf16.mxu1 %v17888_v27  ;;  %v19016_v55 = vld [vmem:[#allocation12 + $0x254] ss:$8 sps:$4 sm:$0xff]  }
 0x6a1   :  { %11957 = vmatprep.subr.bf16.mxu0 %v18974_v42  ;;  %v18095_v42 = vcombine.low %v7794_v30, %v7798_v47  ;;  %v7866_v47 = vld [vmem:[#allocation9 + $0xf98] sm:$0xff] }
 0x6a3   :  { %11039 = vmatpush2.bf16.msra.mxu1 %v17887_v29  ;;  %v7778_v29 = vld [vmem:[#allocation9 + $0xcd8] sm:$0xff] }
 0x6a4   :  { %11958 = vmatpush2.bf16.msra.mxu0 %v18972_v12  ;;  %11040 = vmatprep.subr.bf16.mxu1 %v17880_v18  ;;  %v7782_v12 = vld [vmem:[#allocation9 + $0xcf8] sm:$0xff] }
 0x6a5   :  { %11959 = vmatprep.subr.bf16.mxu0 %v18977_v21  ;;  %v19014_v18 = vld [vmem:[#allocation12 + $0x250] ss:$8 sps:$4 sm:$0xff]   ;;  %v19022_v21 = vld [vmem:[#allocation12 + $0x244] ss:$8 sps:$4 sm:$0xff]   ;;  %v18080_v26 = vcombine.high %v7778_v29, %v7782_v12  ;;  %v18079_v22 = vcombine.low %v7778_v29, %v7782_v12  ;;  %v18159_v29 = vcombine.low %v7858_v37, %v7862_v63 }
 0x6a7   :  { %11041 = vmatpush2.bf16.msra.mxu1 %v17879_v36  ;;  %v7770_v36 = vld [vmem:[#allocation9 + $0xc98] sm:$0xff] }
 0x6a8   :  { %11960 = vmatpush2.bf16.msra.mxu0 %v18975_v0  ;;  %11042 = vmatprep.subr.bf16.mxu1 %v17872_v61  ;;  %v7774_v0 = vld [vmem:[#allocation9 + $0xcb8] sm:$0xff]  ;;  %v19020_v61 = vld [vmem:[#allocation12 + $0x240] ss:$8 sps:$4 sm:$0xff]  }
 0x6a9   :  { %11961 = vmatprep.subr.bf16.mxu0 %v18980_v24  ;;  %v19028_v24 = vld [vmem:[#allocation12 + $0x234] ss:$8 sps:$4 sm:$0xff]   ;;  %v18072_v41 = vcombine.high %v7770_v36, %v7774_v0  ;;  %v18071_v39 = vcombine.low %v7770_v36, %v7774_v0  ;;  %v10764_v36 = vadd.f32 %v20788_v33, %v20812_v46  ;;  %v19068_v33 = vld [vmem:[#allocation12 + $0x2b0] ss:$8 sps:$4 sm:$0xff]   ;;  %v19073_v46 = vld [vmem:[#allocation12 + $0x2a4] ss:$8 sps:$4 sm:$0xff]  }
 0x6ab   :  { %11043 = vmatpush2.bf16.msra.mxu1 %v17871_v60  ;;  %v7762_v60 = vld [vmem:[#allocation9 + $0xc58] sm:$0xff] }
 0x6ac   :  { %11962 = vmatpush2.bf16.msra.mxu0 %v18978_v57  ;;  %11044 = vmatprep.subr.bf16.mxu1 %v17864_v19  ;;  %v7766_v57 = vld [vmem:[#allocation9 + $0xc78] sm:$0xff] }
 0x6ad   :  { %11963 = vmatprep.subr.bf16.mxu0 %v18983_v32  ;;  %v19026_v19 = vld [vmem:[#allocation12 + $0x230] ss:$8 sps:$4 sm:$0xff]   ;;  %v19034_v32 = vld [vmem:[#allocation12 + $0x224] ss:$8 sps:$4 sm:$0xff]   ;;  %v18064_v9 = vcombine.high %v7762_v60, %v7766_v57  ;;  %v18063_v58 = vcombine.low %v7762_v60, %v7766_v57  ;;  %v19065_v60 = vld [vmem:[#allocation12 + $0x2c0] ss:$8 sps:$4 sm:$0xff]  }
 0x6ae   :  { %v19070_v57 = vld [vmem:[#allocation12 + $0x2b4] ss:$8 sps:$4 sm:$0xff]  }
 0x6af   :  { %11045 = vmatpush2.bf16.msra.mxu1 %v17863_v54  ;;  %v7754_v54 = vld [vmem:[#allocation9 + $0xc18] sm:$0xff] }
 0x6b0   :  { %11964 = vmatpush2.bf16.msra.mxu0 %v18981_v17  ;;  %11096 = vmatprep.subr.bf16.mxu1 %v18112_v10  ;;  %v7758_v17 = vld [vmem:[#allocation9 + $0xc38] sm:$0xff]  ;;  %v19032_v10 = vld [vmem:[#allocation12 + $0x220] ss:$8 sps:$4 sm:$0xff]  }
 0x6b1   :  { %12015 = vmatprep.subr.bf16.mxu0 %v19004_v31  ;;  %v18056_v31 = vcombine.high %v7754_v54, %v7758_v17 }
 0x6b2   :  { %v10802_v48 = vpop.f32.mrf.mxu1  ;;  %11047 = vmatmul.mubr.bf16.vlgmr.msra.gmra.mxu1 %v20698_v1  ;;  %v19008_v1 = vld [vmem:[#allocation12 + $0x260] ss:$8 sps:$4 sm:$0xff]  }
 0x6b3   :  { %v20818_v51 = vadd.f32 %v10802_v48, %v10762_v52  ;;  %v20820_v14 = vpop.f32.mrf.mxu0  ;;  %11966 = vmatmul.mubr.bf16.vlgmr.msra.gmra.mxu0 %v11145_v59  ;;  %11097 = vmatpush1.bf16.msra.mxu1 %v18111_v5  ;;  %v7878_v5 = vld [vmem:[#allocation9 + $0xff8] sm:$0xff]  ;;  %v19046_v59 = vld [vmem:[#allocation12 + $0x204] ss:$8 sps:$4 sm:$0xff]   ;;  %v18055_v52 = vcombine.low %v7754_v54, %v7758_v17  ;;  %v19044_v48 = vld [vmem:[#allocation12 + $0x200] ss:$8 sps:$4 sm:$0xff]  }
 0x6b4   :  { %11128 = vmatprep.mubr.bf16.mxu1 %v20742_v11  ;;  %v20823_v35 = vpop.f32.mrf.mxu1  ;;  %11098 = vmatprep.subr.bf16.mxu1 %v18104_v62  ;;  %v19038_v62 = vld [vmem:[#allocation12 + $0x210] ss:$8 sps:$4 sm:$0xff]   ;;  %v18176_v30 = vcombine.high %v7874_v4, %v7878_v5 }
 0x6b5   :  { %v20825_v8 = vpop.f32.mrf.mxu0  ;;  %12016 = vmatpush1.bf16.msra.mxu0 %v19002_v15  ;;  %v7870_v15 = vld [vmem:[#allocation9 + $0xfb8] sm:$0xff] }
 0x6b6   :  { %v10806_v34 = vpop.f32.mrf.mxu1  ;;  %12017 = vmatprep.subr.bf16.mxu0 %v19010_v25  ;;  %v19052_v25 = vld [vmem:[#allocation12 + $0x2f4] ss:$8 sps:$4 sm:$0xff]  }
 0x6b7   :  { %v10929_v27 = vpop.f32.mrf.mxu0  ;;  %11099 = vmatpush1.bf16.msra.mxu1 %v18103_v16  ;;  %v18175_v16 = vcombine.low %v7874_v4, %v7878_v5  ;;  %v19058_v34 = vld [vmem:[#allocation12 + $0x2e4] ss:$8 sps:$4 sm:$0xff]   ;;  %v7818_v17 = vld [vmem:[#allocation9 + $0xe18] sm:$0xff] }
 0x6b8   :  { %v10807_v38 = vpop.f32.mrf.mxu1  ;;  %11100 = vmatprep.subr.bf16.mxu1 %v18096_v49  ;;  %v18168_v49 = vcombine.high %v7866_v47, %v7870_v15  ;;  %v18160_v27 = vcombine.high %v7858_v37, %v7862_v63  ;;  %v19074_v5 = vld [vmem:[#allocation12 + $0x290] ss:$8 sps:$4 sm:$0xff]  }
 0x6b9   :  { %v10930_v11 = vpop.f32.mrf.mxu0  ;;  %12018 = vmatpush1.bf16.msra.mxu0 %v19008_v1  ;;  %v19050_v1 = vld [vmem:[#allocation12 + $0x2f0] ss:$8 sps:$4 sm:$0xff]  }
 0x6ba   :  { %12019 = vmatprep.subr.bf16.mxu0 %v19016_v55  ;;  %v18167_v55 = vcombine.low %v7866_v47, %v7870_v15  ;;  %v7854_v38 = vld [vmem:[#allocation9 + $0xf38] sm:$0xff]  ;;  %v19077_v47 = vld [vmem:[#allocation12 + $0x280] ss:$8 sps:$4 sm:$0xff]  }
 0x6bb   :  { %11101 = vmatpush1.bf16.msra.mxu1 %v18095_v42  ;;  %v7850_v42 = vld [vmem:[#allocation9 + $0xf18] sm:$0xff] }
 0x6bc   :  { %11102 = vmatprep.subr.bf16.mxu1 %v18088_v40  ;;  %v19056_v40 = vld [vmem:[#allocation12 + $0x2e0] ss:$8 sps:$4 sm:$0xff]   ;;  %v19064_v11 = vld [vmem:[#allocation12 + $0x2d4] ss:$8 sps:$4 sm:$0xff]   ;;  %v18152_v12 = vcombine.high %v7850_v42, %v7854_v38  ;;  %v18151_v0 = vcombine.low %v7850_v42, %v7854_v38 }
 0x6bd   :  { %12020 = vmatpush1.bf16.msra.mxu0 %v19014_v18  ;;  %v7842_v18 = vld [vmem:[#allocation9 + $0xed8] sm:$0xff] }
 0x6be   :  { %12021 = vmatprep.subr.bf16.mxu0 %v19022_v21  ;;  %v7846_v21 = vld [vmem:[#allocation9 + $0xef8] sm:$0xff] }
 0x6bf   :  { %11103 = vmatpush1.bf16.msra.mxu1 %v18087_v44  ;;  %v19062_v44 = vld [vmem:[#allocation12 + $0x2d0] ss:$8 sps:$4 sm:$0xff]   ;;  %v18992_v42 = vld [vmem:[#allocation12 + $0x154] ss:$8 sps:$4 sm:$0xff]  }
 0x6c0   :  { %11104 = vmatprep.subr.bf16.mxu1 %v18080_v26  ;;  %v19067_v26 = vld [vmem:[#allocation12 + $0x2c4] ss:$8 sps:$4 sm:$0xff]  }
 0x6c1   :  { %12022 = vmatpush1.bf16.msra.mxu0 %v19020_v61  ;;  %v18144_v61 = vcombine.high %v7842_v18, %v7846_v21 }
 0x6c2   :  { %12023 = vmatprep.subr.bf16.mxu0 %v19028_v24  ;;  %v10805_v24 = vadd.f32 %v20823_v35, %v10764_v36  ;;  %v18996_v36 = vld [vmem:[#allocation12 + $0x130] ss:$8 sps:$4 sm:$0xff]  }
 0x6c3   :  { %11105 = vmatpush1.bf16.msra.mxu1 %v18079_v22  ;;  %v7834_v22 = vld [vmem:[#allocation9 + $0xe98] sm:$0xff] }
 0x6c4   :  { %11106 = vmatprep.subr.bf16.mxu1 %v18072_v41  ;;  %v7838_v41 = vld [vmem:[#allocation9 + $0xeb8] sm:$0xff]  ;;  %20044 = vtanh.f32 %v10805_v24 }
 0x6c5   :  { %12024 = vmatpush1.bf16.msra.mxu0 %v19026_v19  ;;  %v18143_v19 = vcombine.low %v7842_v18, %v7846_v21  ;;  %v18135_v54 = vcombine.low %v7834_v22, %v7838_v41  ;;  %v18995_v18 = vld [vmem:[#allocation12 + $0x144] ss:$8 sps:$4 sm:$0xff]   ;;  %v19005_v24 = vld [vmem:[#allocation12 + $0x110] ss:$8 sps:$4 sm:$0xff]   ;;  %20046 = vtanh.f32 %v20818_v51 }
 0x6c6   :  { %12025 = vmatprep.subr.bf16.mxu0 %v19034_v32  ;;  %v18136_v32 = vcombine.high %v7834_v22, %v7838_v41  ;;  %v19011_v22 = vld [vmem:[#allocation12 + $0x100] ss:$8 sps:$4 sm:$0xff]   ;;  %v19019_v41 = vld [vmem:[#allocation12 + $0x1f4] ss:$8 sps:$4 sm:$0xff]   ;;  %v19085_v51 = vld [vmem:[#allocation12 + $0x364] ss:$8 sps:$4 sm:$0xff]  }
 0x6c7   :  { %11107 = vmatpush1.bf16.msra.mxu1 %v18071_v39  ;;  %v7826_v39 = vld [vmem:[#allocation9 + $0xe58] sm:$0xff] }
 0x6c8   :  { %11108 = vmatprep.subr.bf16.mxu1 %v18064_v9  ;;  %v7830_v9 = vld [vmem:[#allocation9 + $0xe78] sm:$0xff] }
 0x6c9   :  { %12026 = vmatpush1.bf16.msra.mxu0 %v19032_v10  ;;  %v18128_v35 = vcombine.high %v7826_v39, %v7830_v9  ;;  %v7822_v10 = vld [vmem:[#allocation9 + $0xe38] sm:$0xff] }
 0x6ca   :  { %12027 = vmatprep.subr.bf16.mxu0 %v19040_v2  ;;  %v19071_v2 = vld [vmem:[#allocation12 + $0x2a0] ss:$8 sps:$4 sm:$0xff]   ;;  %v18120_v4 = vcombine.high %v7818_v17, %v7822_v10 }
 0x6cb   :  { %11109 = vmatpush1.bf16.msra.mxu1 %v18063_v58  ;;  %v19076_v58 = vld [vmem:[#allocation12 + $0x294] ss:$8 sps:$4 sm:$0xff]  }
 0x6cc   :  { %11110 = vmatprep.subr.bf16.mxu1 %v18056_v31  ;;  %v18127_v31 = vcombine.low %v7826_v39, %v7830_v9  ;;  %v19029_v39 = vld [vmem:[#allocation12 + $0x1d0] ss:$8 sps:$4 sm:$0xff]   ;;  %v19037_v9 = vld [vmem:[#allocation12 + $0x1c4] ss:$8 sps:$4 sm:$0xff]  }
 0x6cd   :  { %12028 = vmatpush1.bf16.msra.mxu0 %v19038_v62  ;;  %v19079_v62 = vld [vmem:[#allocation12 + $0x284] ss:$8 sps:$4 sm:$0xff]  }
 0x6ce   :  { %12029 = vmatprep.subr.bf16.mxu0 %v19046_v59  ;;  %v18119_v59 = vcombine.low %v7818_v17, %v7822_v10  ;;  %v19047_v17 = vld [vmem:[#allocation12 + $0x1a0] ss:$8 sps:$4 sm:$0xff]   ;;  %v19055_v10 = vld [vmem:[#allocation12 + $0x194] ss:$8 sps:$4 sm:$0xff]  }
 0x6cf   :  { %11111 = vmatpush1.bf16.msra.mxu1 %v18055_v52  ;;  %v18986_v52 = vld [vmem:[#allocation12 + $0x174] ss:$8 sps:$4 sm:$0xff]  }
 0x6d0   :  { %11112 = vmatprep.subr.bf16.mxu1 %v18176_v30  ;;  %v7900_v30 = vrot.slane %v20795_v20, %v20512_v45 }
 0x6d1   :  { %12030 = vmatpush1.bf16.msra.mxu0 %v19044_v48  ;;  %v20045_v15 = vpop.eup %20044  ;;  %v7904_v48 = vrot.slane %v20795_v20, %v20535_v23 }
 0x6d2   :  { %12031 = vmatprep.subr.bf16.mxu0 %v19052_v25  ;;  %v18984_v25 = vld [vmem:[#allocation12 + $0x170] ss:$8 sps:$4 sm:$0xff]   ;;  %v11148_v37 = vpack.c.bf16 %v20045_v15, %v20045_v15  ;;  %v19083_v15 = vld [vmem:[#allocation12 + $0x360] ss:$8 sps:$4 sm:$0xff]  }
 0x6d3   :  { %11113 = vmatpush2.bf16.msra.mxu1 %v18175_v16  ;;  %v18989_v16 = vld [vmem:[#allocation12 + $0x164] ss:$8 sps:$4 sm:$0xff]  }
 0x6d4   :  { %11114 = vmatprep.subr.bf16.mxu1 %v18168_v49  ;;  %v10844_v49 = vadd.f32 %v20803_v28, %v7900_v30 }
 0x6d5   :  { %12032 = vmatpush2.bf16.msra.mxu0 %v19050_v1  ;;  %v10846_v1 = vadd.f32 %v20810_v43, %v7904_v48 }
 0x6d6   :  { %12033 = vmatprep.subr.bf16.mxu0 %v19058_v34 }
 0x6d7   :  { %11115 = vmatpush2.bf16.msra.mxu1 %v18167_v55 }
 0x6d8   :  { %11116 = vmatprep.subr.bf16.mxu1 %v18160_v27  ;;  %v18987_v27 = vld [vmem:[#allocation12 + $0x160] ss:$8 sps:$4 sm:$0xff]  }
 0x6d9   :  { %12034 = vmatpush2.bf16.msra.mxu0 %v19056_v40 }
 0x6da   :  { %12035 = vmatprep.subr.bf16.mxu0 %v19064_v11 }
 0x6db   :  { %11117 = vmatpush2.bf16.msra.mxu1 %v18159_v29 }
 0x6dc   :  { %11118 = vmatprep.subr.bf16.mxu1 %v18152_v12 }
 0x6dd   :  { %12036 = vmatpush2.bf16.msra.mxu0 %v19062_v44  ;;  %v18993_v44 = vld [vmem:[#allocation12 + $0x140] ss:$8 sps:$4 sm:$0xff]  }
 0x6de   :  { %12037 = vmatprep.subr.bf16.mxu0 %v19067_v26  ;;  %v18998_v26 = vld [vmem:[#allocation12 + $0x134] ss:$8 sps:$4 sm:$0xff]  }
 0x6df   :  { %11119 = vmatpush2.bf16.msra.mxu1 %v18151_v0  ;;  %v18999_v0 = vld [vmem:[#allocation12 + $0x120] ss:$8 sps:$4 sm:$0xff]  }
 0x6e0   :  { %11120 = vmatprep.subr.bf16.mxu1 %v18144_v61  ;;  %v19007_v61 = vld [vmem:[#allocation12 + $0x114] ss:$8 sps:$4 sm:$0xff]  }
 0x6e1   :  { %12038 = vmatpush2.bf16.msra.mxu0 %v19065_v60  ;;  %v19017_v60 = vld [vmem:[#allocation12 + $0x1f0] ss:$8 sps:$4 sm:$0xff]  }
 0x6e2   :  { %12039 = vmatprep.subr.bf16.mxu0 %v19070_v57  ;;  %v19025_v57 = vld [vmem:[#allocation12 + $0x1e4] ss:$8 sps:$4 sm:$0xff]  }
 0x6e3   :  { %11121 = vmatpush2.bf16.msra.mxu1 %v18143_v19  ;;  %v19023_v19 = vld [vmem:[#allocation12 + $0x1e0] ss:$8 sps:$4 sm:$0xff]  }
 0x6e4   :  { %11122 = vmatprep.subr.bf16.mxu1 %v18136_v32  ;;  %v19031_v32 = vld [vmem:[#allocation12 + $0x1d4] ss:$8 sps:$4 sm:$0xff]  }
 0x6e5   :  { %12040 = vmatpush2.bf16.msra.mxu0 %v19068_v33  ;;  %v19035_v33 = vld [vmem:[#allocation12 + $0x1c0] ss:$8 sps:$4 sm:$0xff]  }
 0x6e6   :  { %12041 = vmatprep.subr.bf16.mxu0 %v19073_v46  ;;  %v19043_v46 = vld [vmem:[#allocation12 + $0x1b4] ss:$8 sps:$4 sm:$0xff]  }
 0x6e7   :  { %11123 = vmatpush2.bf16.msra.mxu1 %v18135_v54  ;;  %v19041_v54 = vld [vmem:[#allocation12 + $0x1b0] ss:$8 sps:$4 sm:$0xff]  }
 0x6e8   :  { %11124 = vmatprep.subr.bf16.mxu1 %v18128_v35  ;;  %v19049_v35 = vld [vmem:[#allocation12 + $0x1a4] ss:$8 sps:$4 sm:$0xff]  }
 0x6e9   :  { %12042 = vmatpush2.bf16.msra.mxu0 %v19071_v2  ;;  %v19053_v2 = vld [vmem:[#allocation12 + $0x190] ss:$8 sps:$4 sm:$0xff]  }
 0x6ea   :  { %12043 = vmatprep.subr.bf16.mxu0 %v19076_v58  ;;  %v19061_v58 = vld [vmem:[#allocation12 + $0x184] ss:$8 sps:$4 sm:$0xff]  }
 0x6eb   :  { %11125 = vmatpush2.bf16.msra.mxu1 %v18127_v31  ;;  %v19059_v31 = vld [vmem:[#allocation12 + $0x180] ss:$8 sps:$4 sm:$0xff]  }
 0x6ec   :  { %11126 = vmatprep.subr.bf16.mxu1 %v18120_v4  ;;  %v19082_v4 = vld [vmem:[#allocation12 + $0x374] ss:$8 sps:$4 sm:$0xff]  }
 0x6ed   :  { %12044 = vmatpush2.bf16.msra.mxu0 %v19074_v5  ;;  %v20047_v5 = vpop.eup %20046 }
 0x6ee   :  { %12045 = vmatprep.subr.bf16.mxu0 %v19079_v62  ;;  %v19080_v62 = vld [vmem:[#allocation12 + $0x370] ss:$8 sps:$4 sm:$0xff]  }
 0x6ef   :  { %11127 = vmatpush2.bf16.msra.mxu1 %v18119_v59  ;;  %v11147_v59 = vpack.c.bf16 %v20047_v5, %v20047_v5 }
 0x6f0   :  { %11974 = vmatprep.subr.bf16.mxu1 %v18986_v52 }
 0x6f1   :  { %12046 = vmatpush2.bf16.msra.mxu0 %v19077_v47 }
 0x6f2   :  { %v10884_v63 = vpop.f32.mrf.mxu1  ;;  %11129 = vmatmul.mubr.bf16.vlgmr.msra.gmra.mxu1 %v20744_v3  ;;  %v18990_v3 = vld [vmem:[#allocation12 + $0x150] ss:$8 sps:$4 sm:$0xff]  }
 0x6f3   :  { %v10885_v34 = vadd.f32 %v10884_v63, %v10844_v49  ;;  %v20837_v55 = vpop.f32.mrf.mxu0  ;;  %11975 = vmatpush1.bf16.msra.mxu1 %v18984_v25  ;;  %12006 = vmatprep.mubr.bf16.mxu1 %v11148_v37  ;;  %v19088_v25 = vld [vmem:[#allocation12 + $0x354] ss:$8 sps:$4 sm:$0xff]  }
 0x6f4   :  { %v10886_v20 = vpop.f32.mrf.mxu1  ;;  %11976 = vmatprep.subr.bf16.mxu1 %v18989_v16 }
 0x6f5   :  { %v10887_v38 = vadd.f32 %v10886_v20, %v10846_v1  ;;  %v20839_v40 = vpop.f32.mrf.mxu0  ;;  %v20842_v28 = vadd.f32 %v20820_v14, %v10885_v34  ;;  %v19001_v14 = vld [vmem:[#allocation12 + $0x124] ss:$8 sps:$4 sm:$0xff]   ;;  %v19086_v1 = vld [vmem:[#allocation12 + $0x350] ss:$8 sps:$4 sm:$0xff]  }
 0x6f6   :  { %v10888_v11 = vpop.f32.mrf.mxu1 }
 0x6f7   :  { %v11011_v29 = vpop.f32.mrf.mxu0  ;;  %11977 = vmatpush1.bf16.msra.mxu1 %v18987_v27  ;;  %v20845_v43 = vadd.f32 %v20825_v8, %v10887_v38  ;;  %v19013_v8 = vld [vmem:[#allocation12 + $0x104] ss:$8 sps:$4 sm:$0xff]   ;;  %v19094_v38 = vld [vmem:[#allocation12 + $0x334] ss:$8 sps:$4 sm:$0xff]  }
 0x6f8   :  { %v10889_v12 = vpop.f32.mrf.mxu1  ;;  %11978 = vmatprep.subr.bf16.mxu1 %v18992_v42  ;;  %v19091_v27 = vld [vmem:[#allocation12 + $0x344] ss:$8 sps:$4 sm:$0xff]   ;;  %v19089_v42 = vld [vmem:[#allocation12 + $0x340] ss:$8 sps:$4 sm:$0xff]  }
 0x6f9   :  { %v11012_v21 = vpop.f32.mrf.mxu0  ;;  %v19097_v11 = vld [vmem:[#allocation12 + $0x324] ss:$8 sps:$4 sm:$0xff]   ;;  %v19100_v12 = vld [vmem:[#allocation12 + $0x314] ss:$8 sps:$4 sm:$0xff]  }
 0x6fb   :  { %11979 = vmatpush1.bf16.msra.mxu1 %v18990_v3  ;;  %v19095_v3 = vld [vmem:[#allocation12 + $0x320] ss:$8 sps:$4 sm:$0xff]  }
 0x6fc   :  { %11980 = vmatprep.subr.bf16.mxu1 %v18995_v18 }
 0x6ff   :  { %11981 = vmatpush1.bf16.msra.mxu1 %v18993_v44  ;;  %v19098_v44 = vld [vmem:[#allocation12 + $0x310] ss:$8 sps:$4 sm:$0xff]  }
 0x700   :  { %11982 = vmatprep.subr.bf16.mxu1 %v18998_v26  ;;  %v19103_v26 = vld [vmem:[#allocation12 + $0x304] ss:$8 sps:$4 sm:$0xff]  }
 0x703   :  { %11983 = vmatpush1.bf16.msra.mxu1 %v18996_v36  ;;  %v19101_v36 = vld [vmem:[#allocation12 + $0x300] ss:$8 sps:$4 sm:$0xff]  }
 0x704   :  { %11984 = vmatprep.subr.bf16.mxu1 %v19001_v14  ;;  %v19106_v14 = vld [vmem:[#allocation12 + $0x3f4] ss:$8 sps:$4 sm:$0xff]  }
 0x707   :  { %11985 = vmatpush1.bf16.msra.mxu1 %v18999_v0  ;;  %v19104_v0 = vld [vmem:[#allocation12 + $0x3f0] ss:$8 sps:$4 sm:$0xff]  }
 0x708   :  { %11986 = vmatprep.subr.bf16.mxu1 %v19007_v61  ;;  %v19109_v61 = vld [vmem:[#allocation12 + $0x3e4] ss:$8 sps:$4 sm:$0xff]  }
 0x70b   :  { %11987 = vmatpush1.bf16.msra.mxu1 %v19005_v24  ;;  %v19107_v24 = vld [vmem:[#allocation12 + $0x3e0] ss:$8 sps:$4 sm:$0xff]  }
 0x70c   :  { %11988 = vmatprep.subr.bf16.mxu1 %v19013_v8  ;;  %v19112_v8 = vld [vmem:[#allocation12 + $0x3d4] ss:$8 sps:$4 sm:$0xff]  }
 0x70f   :  { %11989 = vmatpush1.bf16.msra.mxu1 %v19011_v22  ;;  %v19110_v22 = vld [vmem:[#allocation12 + $0x3d0] ss:$8 sps:$4 sm:$0xff]  }
 0x710   :  { %11990 = vmatprep.subr.bf16.mxu1 %v19019_v41  ;;  %v19115_v41 = vld [vmem:[#allocation12 + $0x3c4] ss:$8 sps:$4 sm:$0xff]  }
 0x713   :  { %11991 = vmatpush2.bf16.msra.mxu1 %v19017_v60  ;;  %v19113_v60 = vld [vmem:[#allocation12 + $0x3c0] ss:$8 sps:$4 sm:$0xff]  }
 0x714   :  { %11992 = vmatprep.subr.bf16.mxu1 %v19025_v57  ;;  %v19118_v57 = vld [vmem:[#allocation12 + $0x3b4] ss:$8 sps:$4 sm:$0xff]  }
 0x717   :  { %11993 = vmatpush2.bf16.msra.mxu1 %v19023_v19  ;;  %v19116_v19 = vld [vmem:[#allocation12 + $0x3b0] ss:$8 sps:$4 sm:$0xff]  }
 0x718   :  { %11994 = vmatprep.subr.bf16.mxu1 %v19031_v32  ;;  %v19121_v32 = vld [vmem:[#allocation12 + $0x3a4] ss:$8 sps:$4 sm:$0xff]  }
 0x71b   :  { %11995 = vmatpush2.bf16.msra.mxu1 %v19029_v39  ;;  %v19119_v39 = vld [vmem:[#allocation12 + $0x3a0] ss:$8 sps:$4 sm:$0xff]  }
 0x71c   :  { %11996 = vmatprep.subr.bf16.mxu1 %v19037_v9  ;;  %v19124_v9 = vld [vmem:[#allocation12 + $0x394] ss:$8 sps:$4 sm:$0xff]  }
 0x71f   :  { %11997 = vmatpush2.bf16.msra.mxu1 %v19035_v33  ;;  %v19122_v33 = vld [vmem:[#allocation12 + $0x390] ss:$8 sps:$4 sm:$0xff]  }
 0x720   :  { %11998 = vmatprep.subr.bf16.mxu1 %v19043_v46  ;;  %v19127_v46 = vld [vmem:[#allocation12 + $0x384] ss:$8 sps:$4 sm:$0xff]  }
 0x723   :  { %11999 = vmatpush2.bf16.msra.mxu1 %v19041_v54  ;;  %v19125_v54 = vld [vmem:[#allocation12 + $0x380] ss:$8 sps:$4 sm:$0xff]  }
 0x724   :  { %12000 = vmatprep.subr.bf16.mxu1 %v19049_v35  ;;  %v20065_v35 = vld [vmem:[#allocation10] sm:$0xff] }
 0x727   :  { %12001 = vmatpush2.bf16.msra.mxu1 %v19047_v17  ;;  %v7908_v17 = vrot.slane %v20065_v35, %v20566_v50 }
 0x728   :  { %12002 = vmatprep.subr.bf16.mxu1 %v19055_v10  ;;  %v7912_v10 = vrot.slane %v20065_v35, %v20569_v53  ;;  %v19149_v35 = vld [vmem:[#allocation15 + $0x4a8] ss:$148 sps:$4 sm:$0xff]  }
 0x72b   :  { %12003 = vmatpush2.bf16.msra.mxu1 %v19053_v2  ;;  %v11008_v2 = vadd.f32 %v20837_v55, %v7908_v17  ;;  %v19130_v55 = vld [vmem:[#allocation15 + $0x81c] ss:$148 sps:$4 sm:$0xff]   ;;  %v19157_v17 = vld [vmem:[#allocation15 + $0x384] ss:$148 sps:$4 sm:$0xff]  }
 0x72c   :  { %12004 = vmatprep.subr.bf16.mxu1 %v19061_v58  ;;  %15880 = vmatprep.subr.bf16.mxu0 %v19130_v55  ;;  %v19191_v55 = vld [vmem:[#allocation15 + $0xf10] ss:$148 sps:$4 sm:$0xff]  }
 0x72f   :  { %12005 = vmatpush2.bf16.msra.mxu1 %v19059_v31  ;;  %v11010_v31 = vadd.f32 %v20839_v40, %v7912_v10  ;;  %v19134_v40 = vld [vmem:[#allocation15 + $0x6f0] ss:$148 sps:$4 sm:$0xff]   ;;  %v19155_v10 = vld [vmem:[#allocation15 + $0x380] ss:$148 sps:$4 sm:$0xff]  }
 0x730   :  { %12056 = vmatprep.subr.bf16.mxu1 %v19082_v4 }
 0x732   :  { %v10966_v52 = vpop.f32.mrf.mxu1  ;;  %12007 = vmatmul.mubr.bf16.vlgmr.msra.gmra.mxu1 %v11147_v59 }
 0x733   :  { %v10967_v30 = vadd.f32 %v10966_v52, %v20842_v28  ;;  %v20849_v47 = vpop.f32.mrf.mxu0  ;;  %12057 = vmatpush1.bf16.msra.mxu1 %v19080_v62  ;;  %v19092_v28 = vld [vmem:[#allocation12 + $0x330] ss:$8 sps:$4 sm:$0xff]  }
 0x734   :  { %v10968_v48 = vpop.f32.mrf.mxu1  ;;  %12058 = vmatprep.subr.bf16.mxu1 %v19085_v51 }
 0x735   :  { %v10969_v16 = vadd.f32 %v10968_v48, %v20845_v43  ;;  %v20852_v49 = vpop.f32.mrf.mxu0  ;;  %20048 = vtanh.f32 %v10967_v30 }
 0x736   :  { %v10970_v37 = vpop.f32.mrf.mxu1 }
 0x737   :  { %20050 = vtanh.f32 %v10969_v16  ;;  %v11093_v63 = vpop.f32.mrf.mxu0  ;;  %12059 = vmatpush1.bf16.msra.mxu1 %v19083_v15  ;;  %v19128_v37 = vld [vmem:[#allocation15 + $0x818] ss:$148 sps:$4 sm:$0xff]  }
 0x738   :  { %v10971_v34 = vpop.f32.mrf.mxu1  ;;  %12060 = vmatprep.subr.bf16.mxu1 %v19088_v25  ;;  %v19133_v63 = vld [vmem:[#allocation15 + $0x824] ss:$148 sps:$4 sm:$0xff]  }
 0x739   :  { %v11094_v20 = vpop.f32.mrf.mxu0  ;;  %v19142_v34 = vld [vmem:[#allocation15 + $0x5cc] ss:$148 sps:$4 sm:$0xff]  }
 0x73a   :  { %v19146_v20 = vld [vmem:[#allocation15 + $0x4a0] ss:$148 sps:$4 sm:$0xff]  }
 0x73b   :  { %12061 = vmatpush1.bf16.msra.mxu1 %v19086_v1  ;;  %v19136_v1 = vld [vmem:[#allocation15 + $0x6f4] ss:$148 sps:$4 sm:$0xff]  }
 0x73c   :  { %12062 = vmatprep.subr.bf16.mxu1 %v19091_v27  ;;  %v19140_v27 = vld [vmem:[#allocation15 + $0x5c8] ss:$148 sps:$4 sm:$0xff]  }
 0x73f   :  { %12063 = vmatpush1.bf16.msra.mxu1 %v19089_v42  ;;  %v19152_v42 = vld [vmem:[#allocation15 + $0x378] ss:$148 sps:$4 sm:$0xff]  }
 0x740   :  { %12064 = vmatprep.subr.bf16.mxu1 %v19094_v38  ;;  %v19160_v38 = vld [vmem:[#allocation15 + $0x254] ss:$148 sps:$4 sm:$0xff]  }
 0x742   :  { %v20049_v29 = vpop.eup %20048 }
 0x743   :  { %12065 = vmatpush1.bf16.msra.mxu1 %v19092_v28  ;;  %v11149_v21 = vpack.c.bf16 %v20049_v29, %v20049_v29  ;;  %v19158_v28 = vld [vmem:[#allocation15 + $0x250] ss:$148 sps:$4 sm:$0xff]   ;;  %v19164_v29 = vld [vmem:[#allocation15 + $0x128] ss:$148 sps:$4 sm:$0xff]  }
 0x744   :  { %v20051_v43 = vpop.eup %20050  ;;  %12066 = vmatprep.subr.bf16.mxu1 %v19097_v11  ;;  %v19166_v11 = vld [vmem:[#allocation15 + $0x12c] ss:$148 sps:$4 sm:$0xff]  }
 0x745   :  { %v11150_v18 = vpack.c.bf16 %v20051_v43, %v20051_v43  ;;  %v19170_v43 = vld [vmem:[#allocation15] ss:$148 sps:$4 sm:$0xff]  }
 0x747   :  { %12047 = vmatprep.mubr.bf16.mxu0 %v11150_v18  ;;  %12067 = vmatpush1.bf16.msra.mxu1 %v19095_v3  ;;  %v19172_v3 = vld [vmem:[#allocation15 + $0x4] ss:$148 sps:$4 sm:$0xff]  }
 0x748   :  { %12048 = vmatmul.mubr.bf16.vlgmr.msra.gmra.mxu0 %v11149_v21  ;;  %12068 = vmatprep.subr.bf16.mxu1 %v19100_v12  ;;  %v19178_v12 = vld [vmem:[#allocation15 + $0x115c] ss:$148 sps:$4 sm:$0xff]   ;;  %v19176_v18 = vld [vmem:[#allocation15 + $0x1158] ss:$148 sps:$4 sm:$0xff]   ;;  %v19184_v21 = vld [vmem:[#allocation15 + $0x1034] ss:$148 sps:$4 sm:$0xff]  }
 0x749   :  { %15881 = vmatpush1.bf16.msra.mxu0 %v19128_v37 }
 0x74a   :  { %15882 = vmatprep.subr.bf16.mxu0 %v19136_v1 }
 0x74b   :  { %12069 = vmatpush1.bf16.msra.mxu1 %v19098_v44  ;;  %v19182_v44 = vld [vmem:[#allocation15 + $0x1030] ss:$148 sps:$4 sm:$0xff]  }
 0x74c   :  { %12070 = vmatprep.subr.bf16.mxu1 %v19103_v26 }
 0x74d   :  { %15883 = vmatpush1.bf16.msra.mxu0 %v19134_v40 }
 0x74e   :  { %15884 = vmatprep.subr.bf16.mxu0 %v19142_v34 }
 0x74f   :  { %12071 = vmatpush1.bf16.msra.mxu1 %v19101_v36  ;;  %v19190_v36 = vld [vmem:[#allocation15 + $0xf0c] ss:$148 sps:$4 sm:$0xff]  }
 0x750   :  { %12072 = vmatprep.subr.bf16.mxu1 %v19106_v14 }
 0x751   :  { %15885 = vmatpush1.bf16.msra.mxu0 %v19140_v27 }
 0x753   :  { %12073 = vmatpush2.bf16.msra.mxu1 %v19104_v0 }
 0x754   :  { %12074 = vmatprep.subr.bf16.mxu1 %v19109_v61 }
 0x757   :  { %12075 = vmatpush2.bf16.msra.mxu1 %v19107_v24  ;;  %v19188_v24 = vld [vmem:[#allocation15 + $0xf08] ss:$148 sps:$4 sm:$0xff]  }
 0x758   :  { %12076 = vmatprep.subr.bf16.mxu1 %v19112_v8 }
 0x75b   :  { %12077 = vmatpush2.bf16.msra.mxu1 %v19110_v22 }
 0x75c   :  { %12078 = vmatprep.subr.bf16.mxu1 %v19115_v41 }
 0x75f   :  { %12079 = vmatpush2.bf16.msra.mxu1 %v19113_v60 }
 0x760   :  { %12080 = vmatprep.subr.bf16.mxu1 %v19118_v57 }
 0x763   :  { %12081 = vmatpush2.bf16.msra.mxu1 %v19116_v19  ;;  %v19131_v19 = vld [vmem:[#allocation15 + $0x820] ss:$148 sps:$4 sm:$0xff]  }
 0x764   :  { %12082 = vmatprep.subr.bf16.mxu1 %v19121_v32 }
 0x767   :  { %12083 = vmatpush2.bf16.msra.mxu1 %v19119_v39  ;;  %v19139_v39 = vld [vmem:[#allocation15 + $0x6fc] ss:$148 sps:$4 sm:$0xff]  }
 0x768   :  { %12084 = vmatprep.subr.bf16.mxu1 %v19124_v9  ;;  %v19137_v9 = vld [vmem:[#allocation15 + $0x6f8] ss:$148 sps:$4 sm:$0xff]  }
 0x76b   :  { %12085 = vmatpush2.bf16.msra.mxu1 %v19122_v33  ;;  %v19145_v33 = vld [vmem:[#allocation15 + $0x5d4] ss:$148 sps:$4 sm:$0xff]  }
 0x76c   :  { %12086 = vmatprep.subr.bf16.mxu1 %v19127_v46  ;;  %v19143_v46 = vld [vmem:[#allocation15 + $0x5d0] ss:$148 sps:$4 sm:$0xff]  }
 0x76f   :  { %12087 = vmatpush2.bf16.msra.mxu1 %v19125_v54  ;;  %v19151_v54 = vld [vmem:[#allocation15 + $0x4ac] ss:$148 sps:$4 sm:$0xff]  }
 0x770   :  { %15921 = vmatprep.subr.bf16.mxu1 %v19133_v63 }
 0x772   :  { %v11048_v58 = vpop.f32.mrf.mxu1 }
 0x773   :  { %v11049_v4 = vadd.f32 %v11048_v58, %v11008_v2  ;;  %v20858_v5 = vpop.f32.mrf.mxu0  ;;  %v19163_v2 = vld [vmem:[#allocation15 + $0x25c] ss:$148 sps:$4 sm:$0xff]   ;;  %v19161_v58 = vld [vmem:[#allocation15 + $0x258] ss:$148 sps:$4 sm:$0xff]  }
 0x774   :  { %v11050_v62 = vpop.f32.mrf.mxu1 }
 0x775   :  { %v11051_v59 = vadd.f32 %v11050_v62, %v11010_v31  ;;  %v20860_v51 = vpop.f32.mrf.mxu0  ;;  %v11090_v52 = vadd.f32 %v20849_v47, %v11049_v4  ;;  %v19148_v47 = vld [vmem:[#allocation15 + $0x4a4] ss:$148 sps:$4 sm:$0xff]   ;;  %v19169_v31 = vld [vmem:[#allocation15 + $0x134] ss:$148 sps:$4 sm:$0xff]   ;;  %v19175_v62 = vld [vmem:[#allocation15 + $0xc] ss:$148 sps:$4 sm:$0xff]  }
 0x776   :  { %v11052_v30 = vpop.f32.mrf.mxu1  ;;  %15886 = vmatprep.subr.bf16.mxu0 %v19148_v47  ;;  %v19167_v4 = vld [vmem:[#allocation15 + $0x130] ss:$148 sps:$4 sm:$0xff]  }
 0x777   :  { %v11971_v15 = vpop.f32.mrf.mxu0  ;;  %v11092_v48 = vadd.f32 %v20852_v49, %v11051_v59  ;;  %v19154_v49 = vld [vmem:[#allocation15 + $0x37c] ss:$148 sps:$4 sm:$0xff]   ;;  %15887 = vmatpush1.bf16.msra.mxu0 %v19146_v20  ;;  %v19179_v30 = vld [vmem:[#allocation15 + $0x1160] ss:$148 sps:$4 sm:$0xff]  }
 0x778   :  { %v11053_v25 = vpop.f32.mrf.mxu1  ;;  %15888 = vmatprep.subr.bf16.mxu0 %v19154_v49  ;;  %v19173_v59 = vld [vmem:[#allocation15 + $0x8] ss:$148 sps:$4 sm:$0xff]  }
 0x779   :  { %v11972_v16 = vpop.f32.mrf.mxu0  ;;  %v19187_v15 = vld [vmem:[#allocation15 + $0x103c] ss:$148 sps:$4 sm:$0xff]  }
 0x77a   :  { %v11281_v25 = vld [vmem:[#allocation13] sm:$0x3]  ;;  %v19193_v16 = vld [vmem:[#allocation15 + $0xf14] ss:$148 sps:$4 sm:$0xff]  }
 0x77b   :  { %15889 = vmatpush1.bf16.msra.mxu0 %v19152_v42  ;;  %v11286_v37 = vrot.slane %v11281_v25, %v20441_v6  ;;  %v11290_v63 = vrot.slane %v11281_v25, %v20444_v13  ;;  %v19233_v25 = vld [vmem:[#allocation15 + $0x708] ss:$148 sps:$4 sm:$0xff]  }
 0x77c   :  { %15890 = vmatprep.subr.bf16.mxu0 %v19160_v38 }
 0x77d   :  { %v11968_v1 = vadd.f32 %v20858_v5, %v11286_v37  ;;  %v11970_v34 = vadd.f32 %v20860_v51, %v11290_v63  ;;  %v19205_v51 = vld [vmem:[#allocation15 + $0xcc4] ss:$148 sps:$4 sm:$0xff]   ;;  %v19239_v63 = vld [vmem:[#allocation15 + $0x5e0] ss:$148 sps:$4 sm:$0xff]  }
 0x77e   :  { %v19241_v37 = vld [vmem:[#allocation15 + $0x5e4] ss:$148 sps:$4 sm:$0xff]  }
 0x77f   :  { %15891 = vmatpush1.bf16.msra.mxu0 %v19158_v28 }
 0x780   :  { %15892 = vmatprep.subr.bf16.mxu0 %v19166_v11  ;;  %v19196_v11 = vld [vmem:[#allocation15 + $0xde4] ss:$148 sps:$4 sm:$0xff]  }
 0x783   :  { %15893 = vmatpush1.bf16.msra.mxu0 %v19164_v29  ;;  %v19199_v29 = vld [vmem:[#allocation15 + $0xdec] ss:$148 sps:$4 sm:$0xff]  }
 0x784   :  { %15894 = vmatprep.subr.bf16.mxu0 %v19172_v3 }
 0x787   :  { %15895 = vmatpush1.bf16.msra.mxu0 %v19170_v43  ;;  %v19194_v43 = vld [vmem:[#allocation15 + $0xde0] ss:$148 sps:$4 sm:$0xff]  }
 0x788   :  { %15896 = vmatprep.subr.bf16.mxu0 %v19178_v12  ;;  %v19197_v12 = vld [vmem:[#allocation15 + $0xde8] ss:$148 sps:$4 sm:$0xff]  }
 0x78b   :  { %15897 = vmatpush2.bf16.msra.mxu0 %v19176_v18 }
 0x78c   :  { %15898 = vmatprep.subr.bf16.mxu0 %v19184_v21  ;;  %v19202_v21 = vld [vmem:[#allocation15 + $0xcbc] ss:$148 sps:$4 sm:$0xff]  }
 0x78f   :  { %15899 = vmatpush2.bf16.msra.mxu0 %v19182_v44 }
 0x790   :  { %15900 = vmatprep.subr.bf16.mxu0 %v19190_v36  ;;  %v19203_v36 = vld [vmem:[#allocation15 + $0xcc0] ss:$148 sps:$4 sm:$0xff]  }
 0x793   :  { %15901 = vmatpush2.bf16.msra.mxu0 %v19188_v24  ;;  %v19209_v24 = vld [vmem:[#allocation15 + $0xb98] ss:$148 sps:$4 sm:$0xff]  }
 0x794   :  { %15902 = vmatprep.subr.bf16.mxu0 %v19196_v11  ;;  %v19254_v11 = vld [vmem:[#allocation15 + $0x260] ss:$148 sps:$4 sm:$0xff]  }
 0x797   :  { %15903 = vmatpush2.bf16.msra.mxu0 %v19194_v43  ;;  %v19265_v43 = vld [vmem:[#allocation15 + $0x144] ss:$148 sps:$4 sm:$0xff]  }
 0x798   :  { %15904 = vmatprep.subr.bf16.mxu0 %v19202_v21  ;;  %v19271_v21 = vld [vmem:[#allocation15 + $0x1c] ss:$148 sps:$4 sm:$0xff]  }
 0x7b2   :  { %v11130_v26 = vpop.f32.mrf.mxu1 }
 0x7b3   :  { %v11131_v14 = vadd.f32 %v11130_v26, %v11090_v52  ;;  %v19181_v52 = vld [vmem:[#allocation15 + $0x1164] ss:$148 sps:$4 sm:$0xff]  }
 0x7b4   :  { %v11132_v0 = vpop.f32.mrf.mxu1  ;;  %v19200_v26 = vld [vmem:[#allocation15 + $0xcb8] ss:$148 sps:$4 sm:$0xff]  }
 0x7b5   :  { %v11133_v61 = vadd.f32 %v11132_v0, %v11092_v48  ;;  %20052 = vtanh.f32 %v11131_v14  ;;  %v19185_v48 = vld [vmem:[#allocation15 + $0x1038] ss:$148 sps:$4 sm:$0xff]   ;;  %15905 = vmatpush2.bf16.msra.mxu0 %v19200_v26  ;;  %v19208_v14 = vld [vmem:[#allocation15 + $0xb94] ss:$148 sps:$4 sm:$0xff]   ;;  %v19211_v0 = vld [vmem:[#allocation15 + $0xb9c] ss:$148 sps:$4 sm:$0xff]  }
 0x7b6   :  { %v11134_v8 = vpop.f32.mrf.mxu1  ;;  %15906 = vmatprep.subr.bf16.mxu0 %v19208_v14  ;;  %v19274_v26 = vld [vmem:[#allocation15 + $0x116c] ss:$148 sps:$4 sm:$0xff]   ;;  %v19272_v14 = vld [vmem:[#allocation15 + $0x1168] ss:$148 sps:$4 sm:$0xff]  }
 0x7b7   :  { %20054 = vtanh.f32 %v11133_v61  ;;  %v19206_v61 = vld [vmem:[#allocation15 + $0xb90] ss:$148 sps:$4 sm:$0xff]   ;;  %v19214_v8 = vld [vmem:[#allocation15 + $0xa6c] ss:$148 sps:$4 sm:$0xff]  }
 0x7b8   :  { %v11135_v22 = vpop.f32.mrf.mxu1 }
 0x7b9   :  { %15907 = vmatpush2.bf16.msra.mxu0 %v19206_v61  ;;  %v19217_v22 = vld [vmem:[#allocation15 + $0xa74] ss:$148 sps:$4 sm:$0xff]   ;;  %v19280_v61 = vld [vmem:[#allocation15 + $0x1044] ss:$148 sps:$4 sm:$0xff]  }
 0x7ba   :  { %15908 = vmatprep.subr.bf16.mxu0 %v19214_v8  ;;  %v19278_v8 = vld [vmem:[#allocation15 + $0x1040] ss:$148 sps:$4 sm:$0xff]  }
 0x7c2   :  { %v20053_v41 = vpop.eup %20052 }
 0x7c3   :  { %v11151_v32 = vpack.c.bf16 %v20053_v41, %v20053_v41  ;;  %v19212_v41 = vld [vmem:[#allocation15 + $0xa68] ss:$148 sps:$4 sm:$0xff]  }
 0x7c4   :  { %v20055_v60 = vpop.eup %20054  ;;  %15909 = vmatpush2.bf16.msra.mxu0 %v19212_v41  ;;  %v19286_v41 = vld [vmem:[#allocation15 + $0xf1c] ss:$148 sps:$4 sm:$0xff]  }
 0x7c5   :  { %v11152_v57 = vpack.c.bf16 %v20055_v60, %v20055_v60  ;;  %v19215_v60 = vld [vmem:[#allocation15 + $0xa70] ss:$148 sps:$4 sm:$0xff]  }
 0x7c7   :  { %12088 = vmatprep.mubr.bf16.mxu1 %v11152_v57  ;;  %v19220_v57 = vld [vmem:[#allocation15 + $0x944] ss:$148 sps:$4 sm:$0xff]  }
 0x7c8   :  { %12089 = vmatmul.mubr.bf16.vlgmr.msra.gmra.mxu1 %v11151_v32  ;;  %v19218_v32 = vld [vmem:[#allocation15 + $0x940] ss:$148 sps:$4 sm:$0xff]   ;;  %15910 = vmatprep.subr.bf16.mxu0 %v19220_v57  ;;  %v19284_v57 = vld [vmem:[#allocation15 + $0xf18] ss:$148 sps:$4 sm:$0xff]  }
 0x7c9   :  { %15922 = vmatpush1.bf16.msra.mxu1 %v19131_v19  ;;  %v19223_v19 = vld [vmem:[#allocation15 + $0x94c] ss:$148 sps:$4 sm:$0xff]   ;;  %15911 = vmatpush2.bf16.msra.mxu0 %v19218_v32  ;;  %v19292_v32 = vld [vmem:[#allocation15 + $0xdf4] ss:$148 sps:$4 sm:$0xff]  }
 0x7ca   :  { %15923 = vmatprep.subr.bf16.mxu1 %v19139_v39  ;;  %v19221_v39 = vld [vmem:[#allocation15 + $0x948] ss:$148 sps:$4 sm:$0xff]  }
 0x7cd   :  { %15924 = vmatpush1.bf16.msra.mxu1 %v19137_v9  ;;  %v19226_v9 = vld [vmem:[#allocation15 + $0x82c] ss:$148 sps:$4 sm:$0xff]  }
 0x7ce   :  { %15925 = vmatprep.subr.bf16.mxu1 %v19145_v33  ;;  %v19229_v33 = vld [vmem:[#allocation15 + $0x834] ss:$148 sps:$4 sm:$0xff]   ;;  %15962 = vmatprep.subr.bf16.mxu0 %v19226_v9  ;;  %v19290_v9 = vld [vmem:[#allocation15 + $0xdf0] ss:$148 sps:$4 sm:$0xff]  }
 0x7d1   :  { %15926 = vmatpush1.bf16.msra.mxu1 %v19143_v46 }
 0x7d2   :  { %15927 = vmatprep.subr.bf16.mxu1 %v19151_v54 }
 0x7d5   :  { %15928 = vmatpush1.bf16.msra.mxu1 %v19149_v35 }
 0x7d6   :  { %15929 = vmatprep.subr.bf16.mxu1 %v19157_v17 }
 0x7d9   :  { %15930 = vmatpush1.bf16.msra.mxu1 %v19155_v10 }
 0x7da   :  { %15931 = vmatprep.subr.bf16.mxu1 %v19163_v2 }
 0x7dd   :  { %15932 = vmatpush1.bf16.msra.mxu1 %v19161_v58 }
 0x7de   :  { %15933 = vmatprep.subr.bf16.mxu1 %v19169_v31 }
 0x7e1   :  { %15934 = vmatpush1.bf16.msra.mxu1 %v19167_v4 }
 0x7e2   :  { %15935 = vmatprep.subr.bf16.mxu1 %v19175_v62  ;;  %v19224_v62 = vld [vmem:[#allocation15 + $0x828] ss:$148 sps:$4 sm:$0xff]  }
 0x7e5   :  { %15936 = vmatpush1.bf16.msra.mxu1 %v19173_v59  ;;  %v19227_v59 = vld [vmem:[#allocation15 + $0x830] ss:$148 sps:$4 sm:$0xff]  }
 0x7e6   :  { %15937 = vmatprep.subr.bf16.mxu1 %v19181_v52 }
 0x7e9   :  { %15938 = vmatpush2.bf16.msra.mxu1 %v19179_v30  ;;  %v19232_v30 = vld [vmem:[#allocation15 + $0x704] ss:$148 sps:$4 sm:$0xff]  }
 0x7ea   :  { %15939 = vmatprep.subr.bf16.mxu1 %v19187_v15  ;;  %v19235_v15 = vld [vmem:[#allocation15 + $0x70c] ss:$148 sps:$4 sm:$0xff]  }
 0x7ed   :  { %15940 = vmatpush2.bf16.msra.mxu1 %v19185_v48  ;;  %v19230_v48 = vld [vmem:[#allocation15 + $0x700] ss:$148 sps:$4 sm:$0xff]  }
 0x7ee   :  { %15941 = vmatprep.subr.bf16.mxu1 %v19193_v16  ;;  %v19238_v16 = vld [vmem:[#allocation15 + $0x5dc] ss:$148 sps:$4 sm:$0xff]  }
 0x7f1   :  { %15942 = vmatpush2.bf16.msra.mxu1 %v19191_v55  ;;  %v19236_v55 = vld [vmem:[#allocation15 + $0x5d8] ss:$148 sps:$4 sm:$0xff]  }
 0x7f2   :  { %v12008_v40 = vpop.f32.mrf.mxu1  ;;  %15943 = vmatprep.subr.bf16.mxu1 %v19199_v29  ;;  %v19257_v29 = vld [vmem:[#allocation15 + $0x268] ss:$148 sps:$4 sm:$0xff]  }
 0x7f3   :  { %v12009_v27 = vadd.f32 %v12008_v40, %v11968_v1  ;;  %v19244_v1 = vld [vmem:[#allocation15 + $0x4b4] ss:$148 sps:$4 sm:$0xff]   ;;  %v19247_v40 = vld [vmem:[#allocation15 + $0x4bc] ss:$148 sps:$4 sm:$0xff]  }
 0x7f4   :  { %v12010_v47 = vpop.f32.mrf.mxu1 }
 0x7f5   :  { %v12011_v20 = vadd.f32 %v12010_v47, %v11970_v34  ;;  %15944 = vmatpush2.bf16.msra.mxu1 %v19197_v12  ;;  %v19242_v34 = vld [vmem:[#allocation15 + $0x4b0] ss:$148 sps:$4 sm:$0xff]   ;;  %v19250_v47 = vld [vmem:[#allocation15 + $0x38c] ss:$148 sps:$4 sm:$0xff]  }
 0x7f6   :  { %v12012_v49 = vpop.f32.mrf.mxu1  ;;  %15945 = vmatprep.subr.bf16.mxu1 %v19205_v51  ;;  %v19260_v12 = vld [vmem:[#allocation15 + $0x138] ss:$148 sps:$4 sm:$0xff]   ;;  %v19266_v51 = vld [vmem:[#allocation15 + $0x10] ss:$148 sps:$4 sm:$0xff]  }
 0x7f7   :  { %v19248_v49 = vld [vmem:[#allocation15 + $0x388] ss:$148 sps:$4 sm:$0xff]  }
 0x7f8   :  { %v12013_v42 = vpop.f32.mrf.mxu1 }
 0x7f9   :  { %15946 = vmatpush2.bf16.msra.mxu1 %v19203_v36  ;;  %v19251_v42 = vld [vmem:[#allocation15 + $0x390] ss:$148 sps:$4 sm:$0xff]   ;;  %v19277_v36 = vld [vmem:[#allocation15 + $0x1174] ss:$148 sps:$4 sm:$0xff]  }
 0x7fa   :  { %15947 = vmatprep.subr.bf16.mxu1 %v19211_v0  ;;  %v19275_v0 = vld [vmem:[#allocation15 + $0x1170] ss:$148 sps:$4 sm:$0xff]  }
 0x7fd   :  { %15948 = vmatpush2.bf16.msra.mxu1 %v19209_v24  ;;  %v19283_v24 = vld [vmem:[#allocation15 + $0x104c] ss:$148 sps:$4 sm:$0xff]  }
 0x7fe   :  { %15949 = vmatprep.subr.bf16.mxu1 %v19217_v22  ;;  %v19281_v22 = vld [vmem:[#allocation15 + $0x1048] ss:$148 sps:$4 sm:$0xff]  }
 0x801   :  { %15950 = vmatpush2.bf16.msra.mxu1 %v19215_v60  ;;  %v19289_v60 = vld [vmem:[#allocation15 + $0xf24] ss:$148 sps:$4 sm:$0xff]  }
 0x802   :  { %15951 = vmatprep.subr.bf16.mxu1 %v19223_v19  ;;  %v19287_v19 = vld [vmem:[#allocation15 + $0xf20] ss:$148 sps:$4 sm:$0xff]  }
 0x805   :  { %15952 = vmatpush2.bf16.msra.mxu1 %v19221_v39  ;;  %v19295_v39 = vld [vmem:[#allocation15 + $0xdfc] ss:$148 sps:$4 sm:$0xff]  }
 0x806   :  { %16003 = vmatprep.subr.bf16.mxu1 %v19229_v33  ;;  %v19293_v33 = vld [vmem:[#allocation15 + $0xdf8] ss:$148 sps:$4 sm:$0xff]  }
 0x808   :  { %v12049_v38 = vpop.f32.mrf.mxu0 }
 0x809   :  { %v12050_v28 = vadd.f32 %v12049_v38, %v12009_v27  ;;  %v19245_v27 = vld [vmem:[#allocation15 + $0x4b8] ss:$148 sps:$4 sm:$0xff]  }
 0x80a   :  { %v12051_v3 = vpop.f32.mrf.mxu0  ;;  %v19256_v38 = vld [vmem:[#allocation15 + $0x264] ss:$148 sps:$4 sm:$0xff]  }
 0x80b   :  { %v12052_v18 = vadd.f32 %v12051_v3, %v12011_v20  ;;  %v19253_v20 = vld [vmem:[#allocation15 + $0x394] ss:$148 sps:$4 sm:$0xff]   ;;  %v19262_v3 = vld [vmem:[#allocation15 + $0x13c] ss:$148 sps:$4 sm:$0xff]  }
 0x80c   :  { %v12053_v5 = vpop.f32.mrf.mxu0 }
 0x80d   :  { %v19268_v5 = vld [vmem:[#allocation15 + $0x14] ss:$148 sps:$4 sm:$0xff]  }
 0x80e   :  { %v12054_v44 = vpop.f32.mrf.mxu0 }
 0x80f   :  { %v19269_v44 = vld [vmem:[#allocation15 + $0x18] ss:$148 sps:$4 sm:$0xff]  }
 0x888   :  { %v12090_v46 = vpop.f32.mrf.mxu1 }
 0x889   :  { %v12091_v54 = vadd.f32 %v12090_v46, %v12050_v28  ;;  %v19259_v28 = vld [vmem:[#allocation15 + $0x26c] ss:$148 sps:$4 sm:$0xff]  }
 0x88a   :  { %v12092_v35 = vpop.f32.mrf.mxu1  ;;  %v19298_v46 = vld [vmem:[#allocation15 + $0xccc] ss:$148 sps:$4 sm:$0xff]  }
 0x88b   :  { %v12093_v17 = vadd.f32 %v12092_v35, %v12052_v18  ;;  %20056 = vtanh.f32 %v12091_v54  ;;  %v19263_v18 = vld [vmem:[#allocation15 + $0x140] ss:$148 sps:$4 sm:$0xff]   ;;  %v19296_v35 = vld [vmem:[#allocation15 + $0xcc8] ss:$148 sps:$4 sm:$0xff]  }
 0x88c   :  { %v12094_v10 = vpop.f32.mrf.mxu1  ;;  %v19301_v54 = vld [vmem:[#allocation15 + $0xcd4] ss:$148 sps:$4 sm:$0xff]  }
 0x88d   :  { %20058 = vtanh.f32 %v12093_v17  ;;  %v19299_v17 = vld [vmem:[#allocation15 + $0xcd0] ss:$148 sps:$4 sm:$0xff]  }
 0x88e   :  { %v12095_v2 = vpop.f32.mrf.mxu1  ;;  %v19304_v10 = vld [vmem:[#allocation15 + $0xba4] ss:$148 sps:$4 sm:$0xff]  }
 0x88f   :  { %v19307_v2 = vld [vmem:[#allocation15 + $0xbac] ss:$148 sps:$4 sm:$0xff]  }
 0x898   :  { %v20057_v58 = vpop.eup %20056 }
 0x899   :  { %v20870_v52 = vpack.c.bf16 %v20057_v58, %v20057_v58  ;;  %v19302_v58 = vld [vmem:[#allocation15 + $0xba0] ss:$148 sps:$4 sm:$0xff]  }
 0x89a   :  { %v20059_v31 = vpop.eup %20058 }
 0x89b   :  { %v20868_v4 = vpack.c.bf16 %v20059_v31, %v20059_v31  ;;  %v19305_v31 = vld [vmem:[#allocation15 + $0xba8] ss:$148 sps:$4 sm:$0xff]  }
 0x89d   :  { %15912 = vmatprep.mubr.bf16.mxu0 %v20868_v4  ;;  %15953 = vmatprep.mubr.bf16.mxu1 %v20868_v4 }
 0x89e   :  { %15913 = vmatmul.mubr.bf16.vlgmr.msra.gmra.mxu0 %v20870_v52  ;;  %15954 = vmatmul.mubr.bf16.vlgmr.msra.gmra.mxu1 %v20870_v52 }
 0x89f   :  { %15963 = vmatpush1.bf16.msra.mxu0 %v19224_v62  ;;  %16004 = vmatpush1.bf16.msra.mxu1 %v19227_v59  ;;  %v19310_v62 = vld [vmem:[#allocation15 + $0xa7c] ss:$148 sps:$4 sm:$0xff]   ;;  %v19313_v59 = vld [vmem:[#allocation15 + $0xa84] ss:$148 sps:$4 sm:$0xff]  }
 0x8a0   :  { %15994 = vmatprep.mubr.bf16.mxu0 %v20868_v4  ;;  %16035 = vmatprep.mubr.bf16.mxu1 %v20868_v4 }
 0x8a1   :  { %15964 = vmatprep.subr.bf16.mxu0 %v19232_v30  ;;  %16005 = vmatprep.subr.bf16.mxu1 %v19235_v15  ;;  %v19308_v30 = vld [vmem:[#allocation15 + $0xa78] ss:$148 sps:$4 sm:$0xff]   ;;  %v19311_v15 = vld [vmem:[#allocation15 + $0xa80] ss:$148 sps:$4 sm:$0xff]  }
 0x8a3   :  { %15965 = vmatpush1.bf16.msra.mxu0 %v19230_v48  ;;  %16006 = vmatpush1.bf16.msra.mxu1 %v19233_v25  ;;  %v19316_v48 = vld [vmem:[#allocation15 + $0x954] ss:$148 sps:$4 sm:$0xff]   ;;  %v19319_v25 = vld [vmem:[#allocation15 + $0x95c] ss:$148 sps:$4 sm:$0xff]  }
 0x8a4   :  { %15966 = vmatprep.subr.bf16.mxu0 %v19238_v16  ;;  %16007 = vmatprep.subr.bf16.mxu1 %v19241_v37  ;;  %v19314_v16 = vld [vmem:[#allocation15 + $0x950] ss:$148 sps:$4 sm:$0xff]   ;;  %v19317_v37 = vld [vmem:[#allocation15 + $0x958] ss:$148 sps:$4 sm:$0xff]  }
 0x8a7   :  { %15967 = vmatpush1.bf16.msra.mxu0 %v19236_v55  ;;  %16008 = vmatpush1.bf16.msra.mxu1 %v19239_v63  ;;  %v19322_v55 = vld [vmem:[#allocation15 + $0x83c] ss:$148 sps:$4 sm:$0xff]   ;;  %v19325_v63 = vld [vmem:[#allocation15 + $0x844] ss:$148 sps:$4 sm:$0xff]  }
 0x8a8   :  { %15968 = vmatprep.subr.bf16.mxu0 %v19244_v1  ;;  %16009 = vmatprep.subr.bf16.mxu1 %v19247_v40  ;;  %v19320_v1 = vld [vmem:[#allocation15 + $0x838] ss:$148 sps:$4 sm:$0xff]   ;;  %v19323_v40 = vld [vmem:[#allocation15 + $0x840] ss:$148 sps:$4 sm:$0xff]  }
 0x8ab   :  { %15969 = vmatpush1.bf16.msra.mxu0 %v19242_v34  ;;  %16010 = vmatpush1.bf16.msra.mxu1 %v19245_v27  ;;  %v19328_v34 = vld [vmem:[#allocation15 + $0x714] ss:$148 sps:$4 sm:$0xff]   ;;  %v19331_v27 = vld [vmem:[#allocation15 + $0x71c] ss:$148 sps:$4 sm:$0xff]  }
 0x8ac   :  { %15970 = vmatprep.subr.bf16.mxu0 %v19250_v47  ;;  %16011 = vmatprep.subr.bf16.mxu1 %v19253_v20  ;;  %v19326_v47 = vld [vmem:[#allocation15 + $0x710] ss:$148 sps:$4 sm:$0xff]   ;;  %v19329_v20 = vld [vmem:[#allocation15 + $0x718] ss:$148 sps:$4 sm:$0xff]  }
 0x8af   :  { %15971 = vmatpush1.bf16.msra.mxu0 %v19248_v49  ;;  %16012 = vmatpush1.bf16.msra.mxu1 %v19251_v42  ;;  %v19334_v49 = vld [vmem:[#allocation15 + $0x5ec] ss:$148 sps:$4 sm:$0xff]   ;;  %v19337_v42 = vld [vmem:[#allocation15 + $0x5f4] ss:$148 sps:$4 sm:$0xff]  }
 0x8b0   :  { %15972 = vmatprep.subr.bf16.mxu0 %v19256_v38  ;;  %16013 = vmatprep.subr.bf16.mxu1 %v19259_v28  ;;  %v19332_v38 = vld [vmem:[#allocation15 + $0x5e8] ss:$148 sps:$4 sm:$0xff]   ;;  %v19335_v28 = vld [vmem:[#allocation15 + $0x5f0] ss:$148 sps:$4 sm:$0xff]  }
 0x8b3   :  { %15973 = vmatpush1.bf16.msra.mxu0 %v19254_v11  ;;  %16014 = vmatpush1.bf16.msra.mxu1 %v19257_v29  ;;  %v19340_v11 = vld [vmem:[#allocation15 + $0x4c4] ss:$148 sps:$4 sm:$0xff]   ;;  %v19343_v29 = vld [vmem:[#allocation15 + $0x4cc] ss:$148 sps:$4 sm:$0xff]  }
 0x8b4   :  { %15974 = vmatprep.subr.bf16.mxu0 %v19262_v3  ;;  %16015 = vmatprep.subr.bf16.mxu1 %v19265_v43  ;;  %v19338_v3 = vld [vmem:[#allocation15 + $0x4c0] ss:$148 sps:$4 sm:$0xff]   ;;  %v19341_v43 = vld [vmem:[#allocation15 + $0x4c8] ss:$148 sps:$4 sm:$0xff]  }
 0x8b7   :  { %15975 = vmatpush1.bf16.msra.mxu0 %v19260_v12  ;;  %16016 = vmatpush1.bf16.msra.mxu1 %v19263_v18  ;;  %v19346_v12 = vld [vmem:[#allocation15 + $0x39c] ss:$148 sps:$4 sm:$0xff]   ;;  %v19349_v18 = vld [vmem:[#allocation15 + $0x3a4] ss:$148 sps:$4 sm:$0xff]  }
 0x8b8   :  { %15976 = vmatprep.subr.bf16.mxu0 %v19268_v5  ;;  %16017 = vmatprep.subr.bf16.mxu1 %v19271_v21  ;;  %v19344_v5 = vld [vmem:[#allocation15 + $0x398] ss:$148 sps:$4 sm:$0xff]   ;;  %v19347_v21 = vld [vmem:[#allocation15 + $0x3a0] ss:$148 sps:$4 sm:$0xff]  }
 0x8bb   :  { %15977 = vmatpush1.bf16.msra.mxu0 %v19266_v51  ;;  %16018 = vmatpush1.bf16.msra.mxu1 %v19269_v44  ;;  %v19352_v51 = vld [vmem:[#allocation15 + $0x274] ss:$148 sps:$4 sm:$0xff]   ;;  %v19355_v44 = vld [vmem:[#allocation15 + $0x27c] ss:$148 sps:$4 sm:$0xff]  }
 0x8bc   :  { %15978 = vmatprep.subr.bf16.mxu0 %v19274_v26  ;;  %16019 = vmatprep.subr.bf16.mxu1 %v19277_v36  ;;  %v19350_v26 = vld [vmem:[#allocation15 + $0x270] ss:$148 sps:$4 sm:$0xff]   ;;  %v19353_v36 = vld [vmem:[#allocation15 + $0x278] ss:$148 sps:$4 sm:$0xff]  }
 0x8bf   :  { %15979 = vmatpush2.bf16.msra.mxu0 %v19272_v14  ;;  %16020 = vmatpush2.bf16.msra.mxu1 %v19275_v0  ;;  %v19358_v14 = vld [vmem:[#allocation15 + $0x14c] ss:$148 sps:$4 sm:$0xff]   ;;  %v19361_v0 = vld [vmem:[#allocation15 + $0x154] ss:$148 sps:$4 sm:$0xff]  }
 0x8c0   :  { %15980 = vmatprep.subr.bf16.mxu0 %v19280_v61  ;;  %16021 = vmatprep.subr.bf16.mxu1 %v19283_v24  ;;  %v19356_v61 = vld [vmem:[#allocation15 + $0x148] ss:$148 sps:$4 sm:$0xff]   ;;  %v19359_v24 = vld [vmem:[#allocation15 + $0x150] ss:$148 sps:$4 sm:$0xff]  }
 0x8c3   :  { %15981 = vmatpush2.bf16.msra.mxu0 %v19278_v8  ;;  %16022 = vmatpush2.bf16.msra.mxu1 %v19281_v22  ;;  %v19364_v8 = vld [vmem:[#allocation15 + $0x24] ss:$148 sps:$4 sm:$0xff]   ;;  %v19367_v22 = vld [vmem:[#allocation15 + $0x2c] ss:$148 sps:$4 sm:$0xff]  }
 0x8c4   :  { %15982 = vmatprep.subr.bf16.mxu0 %v19286_v41  ;;  %16023 = vmatprep.subr.bf16.mxu1 %v19289_v60  ;;  %v19362_v41 = vld [vmem:[#allocation15 + $0x20] ss:$148 sps:$4 sm:$0xff]   ;;  %v19365_v60 = vld [vmem:[#allocation15 + $0x28] ss:$148 sps:$4 sm:$0xff]  }
 0x8c7   :  { %15983 = vmatpush2.bf16.msra.mxu0 %v19284_v57  ;;  %16024 = vmatpush2.bf16.msra.mxu1 %v19287_v19  ;;  %v19370_v57 = vld [vmem:[#allocation15 + $0x117c] ss:$148 sps:$4 sm:$0xff]   ;;  %v19373_v19 = vld [vmem:[#allocation15 + $0x1184] ss:$148 sps:$4 sm:$0xff]  }
 0x8c8   :  { %15984 = vmatprep.subr.bf16.mxu0 %v19292_v32  ;;  %16025 = vmatprep.subr.bf16.mxu1 %v19295_v39  ;;  %v19368_v32 = vld [vmem:[#allocation15 + $0x1178] ss:$148 sps:$4 sm:$0xff]   ;;  %v19371_v39 = vld [vmem:[#allocation15 + $0x1180] ss:$148 sps:$4 sm:$0xff]  }
 0x8cb   :  { %15985 = vmatpush2.bf16.msra.mxu0 %v19290_v9  ;;  %16026 = vmatpush2.bf16.msra.mxu1 %v19293_v33  ;;  %v19376_v9 = vld [vmem:[#allocation15 + $0x1054] ss:$148 sps:$4 sm:$0xff]   ;;  %v19379_v33 = vld [vmem:[#allocation15 + $0x105c] ss:$148 sps:$4 sm:$0xff]  }
 0x8cc   :  { %15986 = vmatprep.subr.bf16.mxu0 %v19298_v46  ;;  %16027 = vmatprep.subr.bf16.mxu1 %v19301_v54  ;;  %v19374_v46 = vld [vmem:[#allocation15 + $0x1050] ss:$148 sps:$4 sm:$0xff]   ;;  %v19377_v54 = vld [vmem:[#allocation15 + $0x1058] ss:$148 sps:$4 sm:$0xff]  }
 0x8cf   :  { %15987 = vmatpush2.bf16.msra.mxu0 %v19296_v35  ;;  %16028 = vmatpush2.bf16.msra.mxu1 %v19299_v17  ;;  %v19382_v35 = vld [vmem:[#allocation15 + $0xf2c] ss:$148 sps:$4 sm:$0xff]   ;;  %v19385_v17 = vld [vmem:[#allocation15 + $0xf34] ss:$148 sps:$4 sm:$0xff]  }
 0x8d0   :  { %15988 = vmatprep.subr.bf16.mxu0 %v19304_v10  ;;  %16029 = vmatprep.subr.bf16.mxu1 %v19307_v2  ;;  %v19380_v10 = vld [vmem:[#allocation15 + $0xf28] ss:$148 sps:$4 sm:$0xff]   ;;  %v19383_v2 = vld [vmem:[#allocation15 + $0xf30] ss:$148 sps:$4 sm:$0xff]  }
 0x8d3   :  { %15989 = vmatpush2.bf16.msra.mxu0 %v19302_v58  ;;  %16030 = vmatpush2.bf16.msra.mxu1 %v19305_v31  ;;  %v19388_v58 = vld [vmem:[#allocation15 + $0xe04] ss:$148 sps:$4 sm:$0xff]   ;;  %v19391_v31 = vld [vmem:[#allocation15 + $0xe0c] ss:$148 sps:$4 sm:$0xff]  }
 0x8d4   :  { %15990 = vmatprep.subr.bf16.mxu0 %v19310_v62  ;;  %16031 = vmatprep.subr.bf16.mxu1 %v19313_v59  ;;  %v19386_v62 = vld [vmem:[#allocation15 + $0xe00] ss:$148 sps:$4 sm:$0xff]   ;;  %v19389_v59 = vld [vmem:[#allocation15 + $0xe08] ss:$148 sps:$4 sm:$0xff]  }
 0x8d7   :  { %15991 = vmatpush2.bf16.msra.mxu0 %v19308_v30  ;;  %16032 = vmatpush2.bf16.msra.mxu1 %v19311_v15  ;;  %v19394_v30 = vld [vmem:[#allocation15 + $0xcdc] ss:$148 sps:$4 sm:$0xff]   ;;  %v19397_v15 = vld [vmem:[#allocation15 + $0xce4] ss:$148 sps:$4 sm:$0xff]  }
 0x8d8   :  { %15992 = vmatprep.subr.bf16.mxu0 %v19316_v48  ;;  %16033 = vmatprep.subr.bf16.mxu1 %v19319_v25  ;;  %v19392_v48 = vld [vmem:[#allocation15 + $0xcd8] ss:$148 sps:$4 sm:$0xff]   ;;  %v19395_v25 = vld [vmem:[#allocation15 + $0xce0] ss:$148 sps:$4 sm:$0xff]  }
 0x8db   :  { %15993 = vmatpush2.bf16.msra.mxu0 %v19314_v16  ;;  %16034 = vmatpush2.bf16.msra.mxu1 %v19317_v37  ;;  %v19400_v16 = vld [vmem:[#allocation15 + $0xbb4] ss:$148 sps:$4 sm:$0xff]   ;;  %v19403_v37 = vld [vmem:[#allocation15 + $0xbbc] ss:$148 sps:$4 sm:$0xff]  }
 0x8dc   :  { %16044 = vmatprep.subr.bf16.mxu0 %v19322_v55  ;;  %16085 = vmatprep.subr.bf16.mxu1 %v19325_v63  ;;  %v19398_v55 = vld [vmem:[#allocation15 + $0xbb0] ss:$148 sps:$4 sm:$0xff]   ;;  %v19401_v63 = vld [vmem:[#allocation15 + $0xbb8] ss:$148 sps:$4 sm:$0xff]  }
 0x8de   :  { %15995 = vmatmul.mubr.bf16.vlgmr.msra.gmra.mxu0 %v20870_v52  ;;  %16036 = vmatmul.mubr.bf16.vlgmr.msra.gmra.mxu1 %v20870_v52 }
 0x8df   :  { %16045 = vmatpush1.bf16.msra.mxu0 %v19320_v1  ;;  %16076 = vmatprep.mubr.bf16.mxu0 %v20868_v4  ;;  %v19406_v1 = vld [vmem:[#allocation15 + $0xa8c] ss:$148 sps:$4 sm:$0xff]  }
 0x8e0   :  { %16086 = vmatpush1.bf16.msra.mxu1 %v19323_v40  ;;  %16117 = vmatprep.mubr.bf16.mxu1 %v20868_v4  ;;  %v19409_v40 = vld [vmem:[#allocation15 + $0xa94] ss:$148 sps:$4 sm:$0xff]  }
 0x8e1   :  { %16046 = vmatprep.subr.bf16.mxu0 %v19328_v34  ;;  %16087 = vmatprep.subr.bf16.mxu1 %v19331_v27  ;;  %v19404_v34 = vld [vmem:[#allocation15 + $0xa88] ss:$148 sps:$4 sm:$0xff]   ;;  %v19407_v27 = vld [vmem:[#allocation15 + $0xa90] ss:$148 sps:$4 sm:$0xff]  }
 0x8e3   :  { %16047 = vmatpush1.bf16.msra.mxu0 %v19326_v47  ;;  %v19412_v47 = vld [vmem:[#allocation15 + $0x964] ss:$148 sps:$4 sm:$0xff]  }
 0x8e4   :  { %16088 = vmatpush1.bf16.msra.mxu1 %v19329_v20  ;;  %16048 = vmatprep.subr.bf16.mxu0 %v19334_v49  ;;  %v19415_v20 = vld [vmem:[#allocation15 + $0x96c] ss:$148 sps:$4 sm:$0xff]  }
 0x8e5   :  { %16089 = vmatprep.subr.bf16.mxu1 %v19337_v42  ;;  %v19410_v49 = vld [vmem:[#allocation15 + $0x960] ss:$148 sps:$4 sm:$0xff]   ;;  %v19413_v42 = vld [vmem:[#allocation15 + $0x968] ss:$148 sps:$4 sm:$0xff]  }
 0x8e7   :  { %16049 = vmatpush1.bf16.msra.mxu0 %v19332_v38  ;;  %v19418_v38 = vld [vmem:[#allocation15 + $0x84c] ss:$148 sps:$4 sm:$0xff]  }
 0x8e8   :  { %16090 = vmatpush1.bf16.msra.mxu1 %v19335_v28  ;;  %16050 = vmatprep.subr.bf16.mxu0 %v19340_v11  ;;  %v19421_v28 = vld [vmem:[#allocation15 + $0x854] ss:$148 sps:$4 sm:$0xff]  }
 0x8e9   :  { %16091 = vmatprep.subr.bf16.mxu1 %v19343_v29  ;;  %v19416_v11 = vld [vmem:[#allocation15 + $0x848] ss:$148 sps:$4 sm:$0xff]   ;;  %v19419_v29 = vld [vmem:[#allocation15 + $0x850] ss:$148 sps:$4 sm:$0xff]  }
 0x8eb   :  { %16051 = vmatpush1.bf16.msra.mxu0 %v19338_v3  ;;  %v19424_v3 = vld [vmem:[#allocation15 + $0x724] ss:$148 sps:$4 sm:$0xff]  }
 0x8ec   :  { %16092 = vmatpush1.bf16.msra.mxu1 %v19341_v43  ;;  %16052 = vmatprep.subr.bf16.mxu0 %v19346_v12  ;;  %v19427_v43 = vld [vmem:[#allocation15 + $0x72c] ss:$148 sps:$4 sm:$0xff]  }
 0x8ed   :  { %16093 = vmatprep.subr.bf16.mxu1 %v19349_v18  ;;  %v19422_v12 = vld [vmem:[#allocation15 + $0x720] ss:$148 sps:$4 sm:$0xff]   ;;  %v19425_v18 = vld [vmem:[#allocation15 + $0x728] ss:$148 sps:$4 sm:$0xff]  }
 0x8ef   :  { %16053 = vmatpush1.bf16.msra.mxu0 %v19344_v5  ;;  %v19430_v5 = vld [vmem:[#allocation15 + $0x5fc] ss:$148 sps:$4 sm:$0xff]  }
 0x8f0   :  { %16094 = vmatpush1.bf16.msra.mxu1 %v19347_v21  ;;  %16054 = vmatprep.subr.bf16.mxu0 %v19352_v51  ;;  %v19433_v21 = vld [vmem:[#allocation15 + $0x604] ss:$148 sps:$4 sm:$0xff]  }
 0x8f1   :  { %16095 = vmatprep.subr.bf16.mxu1 %v19355_v44  ;;  %v19428_v51 = vld [vmem:[#allocation15 + $0x5f8] ss:$148 sps:$4 sm:$0xff]   ;;  %v19431_v44 = vld [vmem:[#allocation15 + $0x600] ss:$148 sps:$4 sm:$0xff]  }
 0x8f3   :  { %16055 = vmatpush1.bf16.msra.mxu0 %v19350_v26  ;;  %v19436_v26 = vld [vmem:[#allocation15 + $0x4d4] ss:$148 sps:$4 sm:$0xff]  }
 0x8f4   :  { %16096 = vmatpush1.bf16.msra.mxu1 %v19353_v36  ;;  %16056 = vmatprep.subr.bf16.mxu0 %v19358_v14  ;;  %v19439_v36 = vld [vmem:[#allocation15 + $0x4dc] ss:$148 sps:$4 sm:$0xff]  }
 0x8f5   :  { %16097 = vmatprep.subr.bf16.mxu1 %v19361_v0  ;;  %v19434_v14 = vld [vmem:[#allocation15 + $0x4d0] ss:$148 sps:$4 sm:$0xff]   ;;  %v19437_v0 = vld [vmem:[#allocation15 + $0x4d8] ss:$148 sps:$4 sm:$0xff]  }
 0x8f7   :  { %16057 = vmatpush1.bf16.msra.mxu0 %v19356_v61  ;;  %v19442_v61 = vld [vmem:[#allocation15 + $0x3ac] ss:$148 sps:$4 sm:$0xff]  }
 0x8f8   :  { %16098 = vmatpush1.bf16.msra.mxu1 %v19359_v24  ;;  %16058 = vmatprep.subr.bf16.mxu0 %v19364_v8  ;;  %v19445_v24 = vld [vmem:[#allocation15 + $0x3b4] ss:$148 sps:$4 sm:$0xff]  }
 0x8f9   :  { %16099 = vmatprep.subr.bf16.mxu1 %v19367_v22  ;;  %v19440_v8 = vld [vmem:[#allocation15 + $0x3a8] ss:$148 sps:$4 sm:$0xff]   ;;  %v19443_v22 = vld [vmem:[#allocation15 + $0x3b0] ss:$148 sps:$4 sm:$0xff]  }
 0x8fb   :  { %16059 = vmatpush1.bf16.msra.mxu0 %v19362_v41  ;;  %v19448_v41 = vld [vmem:[#allocation15 + $0x284] ss:$148 sps:$4 sm:$0xff]  }
 0x8fc   :  { %16100 = vmatpush1.bf16.msra.mxu1 %v19365_v60  ;;  %16060 = vmatprep.subr.bf16.mxu0 %v19370_v57  ;;  %v19451_v60 = vld [vmem:[#allocation15 + $0x28c] ss:$148 sps:$4 sm:$0xff]  }
 0x8fd   :  { %16101 = vmatprep.subr.bf16.mxu1 %v19373_v19  ;;  %v19446_v57 = vld [vmem:[#allocation15 + $0x280] ss:$148 sps:$4 sm:$0xff]   ;;  %v19449_v19 = vld [vmem:[#allocation15 + $0x288] ss:$148 sps:$4 sm:$0xff]  }
 0x8ff   :  { %16061 = vmatpush2.bf16.msra.mxu0 %v19368_v32  ;;  %v19454_v32 = vld [vmem:[#allocation15 + $0x15c] ss:$148 sps:$4 sm:$0xff]  }
 0x900   :  { %16102 = vmatpush2.bf16.msra.mxu1 %v19371_v39  ;;  %16062 = vmatprep.subr.bf16.mxu0 %v19376_v9  ;;  %v19457_v39 = vld [vmem:[#allocation15 + $0x164] ss:$148 sps:$4 sm:$0xff]  }
 0x901   :  { %16103 = vmatprep.subr.bf16.mxu1 %v19379_v33  ;;  %v19452_v9 = vld [vmem:[#allocation15 + $0x158] ss:$148 sps:$4 sm:$0xff]   ;;  %v19455_v33 = vld [vmem:[#allocation15 + $0x160] ss:$148 sps:$4 sm:$0xff]  }
 0x903   :  { %16063 = vmatpush2.bf16.msra.mxu0 %v19374_v46  ;;  %v19460_v46 = vld [vmem:[#allocation15 + $0x34] ss:$148 sps:$4 sm:$0xff]  }
 0x904   :  { %16104 = vmatpush2.bf16.msra.mxu1 %v19377_v54  ;;  %16064 = vmatprep.subr.bf16.mxu0 %v19382_v35  ;;  %v19463_v54 = vld [vmem:[#allocation15 + $0x3c] ss:$148 sps:$4 sm:$0xff]  }
 0x905   :  { %16105 = vmatprep.subr.bf16.mxu1 %v19385_v17  ;;  %v19458_v35 = vld [vmem:[#allocation15 + $0x30] ss:$148 sps:$4 sm:$0xff]   ;;  %v19461_v17 = vld [vmem:[#allocation15 + $0x38] ss:$148 sps:$4 sm:$0xff]  }
 0x907   :  { %16065 = vmatpush2.bf16.msra.mxu0 %v19380_v10  ;;  %v19466_v10 = vld [vmem:[#allocation15 + $0x118c] ss:$148 sps:$4 sm:$0xff]  }
 0x908   :  { %16106 = vmatpush2.bf16.msra.mxu1 %v19383_v2  ;;  %16066 = vmatprep.subr.bf16.mxu0 %v19388_v58  ;;  %v19469_v2 = vld [vmem:[#allocation15 + $0x1194] ss:$148 sps:$4 sm:$0xff]  }
 0x909   :  { %16107 = vmatprep.subr.bf16.mxu1 %v19391_v31  ;;  %v19464_v58 = vld [vmem:[#allocation15 + $0x1188] ss:$148 sps:$4 sm:$0xff]   ;;  %v19467_v31 = vld [vmem:[#allocation15 + $0x1190] ss:$148 sps:$4 sm:$0xff]  }
 0x90b   :  { %16067 = vmatpush2.bf16.msra.mxu0 %v19386_v62  ;;  %v19472_v62 = vld [vmem:[#allocation15 + $0x1064] ss:$148 sps:$4 sm:$0xff]  }
 0x90c   :  { %16108 = vmatpush2.bf16.msra.mxu1 %v19389_v59  ;;  %16068 = vmatprep.subr.bf16.mxu0 %v19394_v30  ;;  %v19475_v59 = vld [vmem:[#allocation15 + $0x106c] ss:$148 sps:$4 sm:$0xff]  }
 0x90d   :  { %16109 = vmatprep.subr.bf16.mxu1 %v19397_v15  ;;  %v19470_v30 = vld [vmem:[#allocation15 + $0x1060] ss:$148 sps:$4 sm:$0xff]   ;;  %v19473_v15 = vld [vmem:[#allocation15 + $0x1068] ss:$148 sps:$4 sm:$0xff]  }
 0x90f   :  { %16069 = vmatpush2.bf16.msra.mxu0 %v19392_v48  ;;  %v19478_v48 = vld [vmem:[#allocation15 + $0xf3c] ss:$148 sps:$4 sm:$0xff]  }
 0x910   :  { %16110 = vmatpush2.bf16.msra.mxu1 %v19395_v25  ;;  %16070 = vmatprep.subr.bf16.mxu0 %v19400_v16  ;;  %v19481_v25 = vld [vmem:[#allocation15 + $0xf44] ss:$148 sps:$4 sm:$0xff]  }
 0x911   :  { %16111 = vmatprep.subr.bf16.mxu1 %v19403_v37  ;;  %v19476_v16 = vld [vmem:[#allocation15 + $0xf38] ss:$148 sps:$4 sm:$0xff]   ;;  %v19479_v37 = vld [vmem:[#allocation15 + $0xf40] ss:$148 sps:$4 sm:$0xff]  }
 0x913   :  { %16071 = vmatpush2.bf16.msra.mxu0 %v19398_v55  ;;  %v19484_v55 = vld [vmem:[#allocation15 + $0xe14] ss:$148 sps:$4 sm:$0xff]  }
 0x914   :  { %16112 = vmatpush2.bf16.msra.mxu1 %v19401_v63  ;;  %16072 = vmatprep.subr.bf16.mxu0 %v19406_v1  ;;  %v19487_v63 = vld [vmem:[#allocation15 + $0xe1c] ss:$148 sps:$4 sm:$0xff]  }
 0x915   :  { %16113 = vmatprep.subr.bf16.mxu1 %v19409_v40  ;;  %v19482_v1 = vld [vmem:[#allocation15 + $0xe10] ss:$148 sps:$4 sm:$0xff]   ;;  %v19485_v40 = vld [vmem:[#allocation15 + $0xe18] ss:$148 sps:$4 sm:$0xff]  }
 0x917   :  { %16073 = vmatpush2.bf16.msra.mxu0 %v19404_v34  ;;  %v19490_v34 = vld [vmem:[#allocation15 + $0xcec] ss:$148 sps:$4 sm:$0xff]  }
 0x918   :  { %16114 = vmatpush2.bf16.msra.mxu1 %v19407_v27  ;;  %16074 = vmatprep.subr.bf16.mxu0 %v19412_v47  ;;  %v19493_v27 = vld [vmem:[#allocation15 + $0xcf4] ss:$148 sps:$4 sm:$0xff]  }
 0x919   :  { %16115 = vmatprep.subr.bf16.mxu1 %v19415_v20  ;;  %v19488_v47 = vld [vmem:[#allocation15 + $0xce8] ss:$148 sps:$4 sm:$0xff]   ;;  %v19491_v20 = vld [vmem:[#allocation15 + $0xcf0] ss:$148 sps:$4 sm:$0xff]  }
 0x91b   :  { %16075 = vmatpush2.bf16.msra.mxu0 %v19410_v49  ;;  %v19496_v49 = vld [vmem:[#allocation15 + $0xbc4] ss:$148 sps:$4 sm:$0xff]  }
 0x91c   :  { %16116 = vmatpush2.bf16.msra.mxu1 %v19413_v42  ;;  %16126 = vmatprep.subr.bf16.mxu0 %v19418_v38  ;;  %v19499_v42 = vld [vmem:[#allocation15 + $0xbcc] ss:$148 sps:$4 sm:$0xff]  }
 0x91d   :  { %16167 = vmatprep.subr.bf16.mxu1 %v19421_v28  ;;  %v19494_v38 = vld [vmem:[#allocation15 + $0xbc0] ss:$148 sps:$4 sm:$0xff]   ;;  %v19497_v28 = vld [vmem:[#allocation15 + $0xbc8] ss:$148 sps:$4 sm:$0xff]  }
 0x91e   :  { %16077 = vmatmul.mubr.bf16.vlgmr.msra.gmra.mxu0 %v20870_v52 }
 0x91f   :  { %16118 = vmatmul.mubr.bf16.vlgmr.msra.gmra.mxu1 %v20870_v52  ;;  %16127 = vmatpush1.bf16.msra.mxu0 %v19416_v11  ;;  %v19502_v11 = vld [vmem:[#allocation15 + $0xa9c] ss:$148 sps:$4 sm:$0xff]  }
 0x920   :  { %16158 = vmatprep.mubr.bf16.mxu0 %v20868_v4  ;;  %16168 = vmatpush1.bf16.msra.mxu1 %v19419_v29  ;;  %v19505_v29 = vld [vmem:[#allocation15 + $0xaa4] ss:$148 sps:$4 sm:$0xff]  }
 0x921   :  { %16199 = vmatprep.mubr.bf16.mxu1 %v20868_v4  ;;  %16128 = vmatprep.subr.bf16.mxu0 %v19424_v3  ;;  %v19500_v3 = vld [vmem:[#allocation15 + $0xa98] ss:$148 sps:$4 sm:$0xff]  }
 0x922   :  { %16169 = vmatprep.subr.bf16.mxu1 %v19427_v43  ;;  %v19503_v43 = vld [vmem:[#allocation15 + $0xaa0] ss:$148 sps:$4 sm:$0xff]  }
 0x923   :  { %16129 = vmatpush1.bf16.msra.mxu0 %v19422_v12  ;;  %v19508_v12 = vld [vmem:[#allocation15 + $0x974] ss:$148 sps:$4 sm:$0xff]  }
 0x924   :  { %16170 = vmatpush1.bf16.msra.mxu1 %v19425_v18  ;;  %16130 = vmatprep.subr.bf16.mxu0 %v19430_v5  ;;  %v19511_v18 = vld [vmem:[#allocation15 + $0x97c] ss:$148 sps:$4 sm:$0xff]  }
 0x925   :  { %16171 = vmatprep.subr.bf16.mxu1 %v19433_v21  ;;  %v19506_v5 = vld [vmem:[#allocation15 + $0x970] ss:$148 sps:$4 sm:$0xff]   ;;  %v19509_v21 = vld [vmem:[#allocation15 + $0x978] ss:$148 sps:$4 sm:$0xff]  }
 0x927   :  { %16131 = vmatpush1.bf16.msra.mxu0 %v19428_v51  ;;  %v19514_v51 = vld [vmem:[#allocation15 + $0x85c] ss:$148 sps:$4 sm:$0xff]  }
 0x928   :  { %16172 = vmatpush1.bf16.msra.mxu1 %v19431_v44  ;;  %16132 = vmatprep.subr.bf16.mxu0 %v19436_v26  ;;  %v20886_v44 = vld [vmem:[#allocation16] sm:$0xff] }
 0x929   :  { %16173 = vmatprep.subr.bf16.mxu1 %v19439_v36  ;;  %v19517_v26 = vld [vmem:[#allocation15 + $0x864] ss:$148 sps:$4 sm:$0xff]  }
 0x92a   :  { %v19512_v36 = vld [vmem:[#allocation15 + $0x858] ss:$148 sps:$4 sm:$0xff]  }
 0x92b   :  { %16133 = vmatpush1.bf16.msra.mxu0 %v19434_v14  ;;  %v12722_v14 = vrot.slane %v20886_v44, %v20441_v6 }
 0x92c   :  { %16174 = vmatpush1.bf16.msra.mxu1 %v19437_v0  ;;  %16134 = vmatprep.subr.bf16.mxu0 %v19442_v61  ;;  %v12730_v0 = vrot.slane %v20886_v44, %v20477_v56  ;;  %v19515_v61 = vld [vmem:[#allocation15 + $0x860] ss:$148 sps:$4 sm:$0xff]  }
 0x92d   :  { %16175 = vmatprep.subr.bf16.mxu1 %v19445_v24  ;;  %v12726_v24 = vrot.slane %v20886_v44, %v20444_v13 }
 0x92f   :  { %16135 = vmatpush1.bf16.msra.mxu0 %v19440_v8  ;;  %v12734_v8 = vrot.slane %v20886_v44, %v20491_v7 }
 0x930   :  { %16176 = vmatpush1.bf16.msra.mxu1 %v19443_v22  ;;  %16136 = vmatprep.subr.bf16.mxu0 %v19448_v41  ;;  %v19520_v22 = vld [vmem:[#allocation15 + $0x734] ss:$148 sps:$4 sm:$0xff]  }
 0x931   :  { %16177 = vmatprep.subr.bf16.mxu1 %v19451_v60 }
 0x933   :  { %16137 = vmatpush1.bf16.msra.mxu0 %v19446_v57  ;;  %v19523_v57 = vld [vmem:[#allocation15 + $0x73c] ss:$148 sps:$4 sm:$0xff]  }
 0x934   :  { %16178 = vmatpush1.bf16.msra.mxu1 %v19449_v19  ;;  %16138 = vmatprep.subr.bf16.mxu0 %v19454_v32 }
 0x935   :  { %16179 = vmatprep.subr.bf16.mxu1 %v19457_v39  ;;  %v19518_v39 = vld [vmem:[#allocation15 + $0x730] ss:$148 sps:$4 sm:$0xff]  }
 0x937   :  { %16139 = vmatpush1.bf16.msra.mxu0 %v19452_v9 }
 0x938   :  { %16180 = vmatpush1.bf16.msra.mxu1 %v19455_v33  ;;  %16140 = vmatprep.subr.bf16.mxu0 %v19460_v46  ;;  %v19521_v46 = vld [vmem:[#allocation15 + $0x738] ss:$148 sps:$4 sm:$0xff]  }
 0x939   :  { %16181 = vmatprep.subr.bf16.mxu1 %v19463_v54  ;;  %v19526_v54 = vld [vmem:[#allocation15 + $0x60c] ss:$148 sps:$4 sm:$0xff]  }
 0x93b   :  { %16141 = vmatpush1.bf16.msra.mxu0 %v19458_v35 }
 0x93c   :  { %16182 = vmatpush1.bf16.msra.mxu1 %v19461_v17  ;;  %16142 = vmatprep.subr.bf16.mxu0 %v19466_v10  ;;  %v19529_v10 = vld [vmem:[#allocation15 + $0x614] ss:$148 sps:$4 sm:$0xff]  }
 0x93d   :  { %16183 = vmatprep.subr.bf16.mxu1 %v19469_v2 }
 0x93f   :  { %16143 = vmatpush2.bf16.msra.mxu0 %v19464_v58 }
 0x940   :  { %16184 = vmatpush2.bf16.msra.mxu1 %v19467_v31  ;;  %16144 = vmatprep.subr.bf16.mxu0 %v19472_v62  ;;  %v19524_v31 = vld [vmem:[#allocation15 + $0x608] ss:$148 sps:$4 sm:$0xff]  }
 0x941   :  { %16185 = vmatprep.subr.bf16.mxu1 %v19475_v59 }
 0x943   :  { %16145 = vmatpush2.bf16.msra.mxu0 %v19470_v30  ;;  %v19527_v30 = vld [vmem:[#allocation15 + $0x610] ss:$148 sps:$4 sm:$0xff]  }
 0x944   :  { %16186 = vmatpush2.bf16.msra.mxu1 %v19473_v15  ;;  %16146 = vmatprep.subr.bf16.mxu0 %v19478_v48  ;;  %v19532_v15 = vld [vmem:[#allocation15 + $0x4e4] ss:$148 sps:$4 sm:$0xff]   ;;  %v19535_v48 = vld [vmem:[#allocation15 + $0x4ec] ss:$148 sps:$4 sm:$0xff]  }
 0x945   :  { %16187 = vmatprep.subr.bf16.mxu1 %v19481_v25  ;;  %v19530_v25 = vld [vmem:[#allocation15 + $0x4e0] ss:$148 sps:$4 sm:$0xff]  }
 0x947   :  { %16147 = vmatpush2.bf16.msra.mxu0 %v19476_v16  ;;  %v19533_v16 = vld [vmem:[#allocation15 + $0x4e8] ss:$148 sps:$4 sm:$0xff]  }
 0x948   :  { %16188 = vmatpush2.bf16.msra.mxu1 %v19479_v37  ;;  %16148 = vmatprep.subr.bf16.mxu0 %v19484_v55  ;;  %v19538_v37 = vld [vmem:[#allocation15 + $0x3bc] ss:$148 sps:$4 sm:$0xff]   ;;  %v19541_v55 = vld [vmem:[#allocation15 + $0x3c4] ss:$148 sps:$4 sm:$0xff]  }
 0x949   :  { %16189 = vmatprep.subr.bf16.mxu1 %v19487_v63  ;;  %v19536_v63 = vld [vmem:[#allocation15 + $0x3b8] ss:$148 sps:$4 sm:$0xff]  }
 0x94b   :  { %16149 = vmatpush2.bf16.msra.mxu0 %v19482_v1  ;;  %v19539_v1 = vld [vmem:[#allocation15 + $0x3c0] ss:$148 sps:$4 sm:$0xff]  }
 0x94c   :  { %16190 = vmatpush2.bf16.msra.mxu1 %v19485_v40  ;;  %16150 = vmatprep.subr.bf16.mxu0 %v19490_v34  ;;  %v19544_v40 = vld [vmem:[#allocation15 + $0x294] ss:$148 sps:$4 sm:$0xff]   ;;  %v19547_v34 = vld [vmem:[#allocation15 + $0x29c] ss:$148 sps:$4 sm:$0xff]  }
 0x94d   :  { %16191 = vmatprep.subr.bf16.mxu1 %v19493_v27  ;;  %v19542_v27 = vld [vmem:[#allocation15 + $0x290] ss:$148 sps:$4 sm:$0xff]  }
 0x94f   :  { %16151 = vmatpush2.bf16.msra.mxu0 %v19488_v47  ;;  %v19545_v47 = vld [vmem:[#allocation15 + $0x298] ss:$148 sps:$4 sm:$0xff]  }
 0x950   :  { %16192 = vmatpush2.bf16.msra.mxu1 %v19491_v20  ;;  %16152 = vmatprep.subr.bf16.mxu0 %v19496_v49  ;;  %v19550_v20 = vld [vmem:[#allocation15 + $0x16c] ss:$148 sps:$4 sm:$0xff]   ;;  %v19553_v49 = vld [vmem:[#allocation15 + $0x174] ss:$148 sps:$4 sm:$0xff]  }
 0x951   :  { %16193 = vmatprep.subr.bf16.mxu1 %v19499_v42  ;;  %v19548_v42 = vld [vmem:[#allocation15 + $0x168] ss:$148 sps:$4 sm:$0xff]  }
 0x953   :  { %16153 = vmatpush2.bf16.msra.mxu0 %v19494_v38  ;;  %v19551_v38 = vld [vmem:[#allocation15 + $0x170] ss:$148 sps:$4 sm:$0xff]  }
 0x954   :  { %16194 = vmatpush2.bf16.msra.mxu1 %v19497_v28  ;;  %16154 = vmatprep.subr.bf16.mxu0 %v19502_v11  ;;  %v19556_v28 = vld [vmem:[#allocation15 + $0x44] ss:$148 sps:$4 sm:$0xff]   ;;  %v19559_v11 = vld [vmem:[#allocation15 + $0x4c] ss:$148 sps:$4 sm:$0xff]  }
 0x955   :  { %16195 = vmatprep.subr.bf16.mxu1 %v19505_v29  ;;  %v19554_v29 = vld [vmem:[#allocation15 + $0x40] ss:$148 sps:$4 sm:$0xff]  }
 0x957   :  { %16155 = vmatpush2.bf16.msra.mxu0 %v19500_v3  ;;  %v19557_v3 = vld [vmem:[#allocation15 + $0x48] ss:$148 sps:$4 sm:$0xff]  }
 0x958   :  { %16196 = vmatpush2.bf16.msra.mxu1 %v19503_v43  ;;  %16156 = vmatprep.subr.bf16.mxu0 %v19508_v12  ;;  %v19562_v43 = vld [vmem:[#allocation15 + $0x119c] ss:$148 sps:$4 sm:$0xff]   ;;  %v19565_v12 = vld [vmem:[#allocation15 + $0x11a4] ss:$148 sps:$4 sm:$0xff]  }
 0x959   :  { %16197 = vmatprep.subr.bf16.mxu1 %v19511_v18  ;;  %v19560_v18 = vld [vmem:[#allocation15 + $0x1198] ss:$148 sps:$4 sm:$0xff]  }
 0x95b   :  { %16157 = vmatpush2.bf16.msra.mxu0 %v19506_v5  ;;  %v19563_v5 = vld [vmem:[#allocation15 + $0x11a0] ss:$148 sps:$4 sm:$0xff]  }
 0x95c   :  { %16198 = vmatpush2.bf16.msra.mxu1 %v19509_v21  ;;  %16208 = vmatprep.subr.bf16.mxu0 %v19514_v51  ;;  %v19568_v21 = vld [vmem:[#allocation15 + $0x1074] ss:$148 sps:$4 sm:$0xff]   ;;  %v19571_v51 = vld [vmem:[#allocation15 + $0x107c] ss:$148 sps:$4 sm:$0xff]  }
 0x95d   :  { %16249 = vmatprep.subr.bf16.mxu1 %v19517_v26  ;;  %v19566_v26 = vld [vmem:[#allocation15 + $0x1070] ss:$148 sps:$4 sm:$0xff]  }
 0x95e   :  { %16159 = vmatmul.mubr.bf16.vlgmr.msra.gmra.mxu0 %v20870_v52  ;;  %v15914_v41 = vpop.f32.mrf.mxu0  ;;  %v15955_v60 = vpop.f32.mrf.mxu1 }
 0x95f   :  { %16200 = vmatmul.mubr.bf16.vlgmr.msra.gmra.mxu1 %v20870_v52  ;;  %v15915_v19 = vadd.f32 %v15914_v41, %v12722_v14  ;;  %v15956_v32 = vadd.f32 %v15955_v60, %v12730_v0  ;;  %16209 = vmatpush1.bf16.msra.mxu0 %v19512_v36  ;;  %v19569_v36 = vld [vmem:[#allocation15 + $0x1078] ss:$148 sps:$4 sm:$0xff]   ;;  %v19577_v0 = vld [vmem:[#allocation15 + $0xf54] ss:$148 sps:$4 sm:$0xff]  }
 0x960   :  { %16240 = vmatprep.mubr.bf16.mxu0 %v20868_v4  ;;  %16250 = vmatpush1.bf16.msra.mxu1 %v19515_v61  ;;  %v15916_v9 = vpop.f32.mrf.mxu0  ;;  %v15957_v33 = vpop.f32.mrf.mxu1  ;;  %v19574_v14 = vld [vmem:[#allocation15 + $0xf4c] ss:$148 sps:$4 sm:$0xff]   ;;  %v19572_v61 = vld [vmem:[#allocation15 + $0xf48] ss:$148 sps:$4 sm:$0xff]  }
 0x961   :  { %16658 = vst [vmem:[%s21099_s11] sm:$0xff] %v15915_v19  ;;  %16660 = vst [vmem:[%s21099_s11 + $0x10] sm:$0xff] %v15956_v32  ;;  %16281 = vmatprep.mubr.bf16.mxu1 %v20868_v4  ;;  %v15917_v35 = vadd.f32 %v15916_v9, %v12726_v24  ;;  %v15958_v17 = vadd.f32 %v15957_v33, %v12734_v8  ;;  %16210 = vmatprep.subr.bf16.mxu0 %v19520_v22  ;;  %v19575_v24 = vld [vmem:[#allocation15 + $0xf50] ss:$148 sps:$4 sm:$0xff]   ;;  %v19583_v22 = vld [vmem:[#allocation15 + $0xe2c] ss:$148 sps:$4 sm:$0xff]  }
 0x962   :  { %16251 = vmatprep.subr.bf16.mxu1 %v19523_v57  ;;  %v15918_v2 = vpop.f32.mrf.mxu0  ;;  %v15959_v58 = vpop.f32.mrf.mxu1  ;;  %v19580_v8 = vld [vmem:[#allocation15 + $0xe24] ss:$148 sps:$4 sm:$0xff]   ;;  %v19578_v41 = vld [vmem:[#allocation15 + $0xe20] ss:$148 sps:$4 sm:$0xff]   ;;  %v19581_v60 = vld [vmem:[#allocation15 + $0xe28] ss:$148 sps:$4 sm:$0xff]  }
 0x963   :  { %16659 = vst [vmem:[%s21099_s11 + $0x8] sm:$0xff] %v15917_v35  ;;  %16661 = vst [vmem:[%s21099_s11 + $0x18] sm:$0xff] %v15958_v17  ;;  %16211 = vmatpush1.bf16.msra.mxu0 %v19518_v39  ;;  %v19586_v57 = vld [vmem:[#allocation15 + $0xcfc] ss:$148 sps:$4 sm:$0xff]   ;;  %v19589_v19 = vld [vmem:[#allocation15 + $0xd04] ss:$148 sps:$4 sm:$0xff]  }
 0x964   :  { %16252 = vmatpush1.bf16.msra.mxu1 %v19521_v46  ;;  %v15919_v62 = vpop.f32.mrf.mxu0  ;;  %v15960_v59 = vpop.f32.mrf.mxu1  ;;  %16212 = vmatprep.subr.bf16.mxu0 %v19526_v54  ;;  %v19584_v32 = vld [vmem:[#allocation15 + $0xcf8] ss:$148 sps:$4 sm:$0xff]   ;;  %v19587_v39 = vld [vmem:[#allocation15 + $0xd00] ss:$148 sps:$4 sm:$0xff]   ;;  %v19595_v33 = vld [vmem:[#allocation15 + $0xbdc] ss:$148 sps:$4 sm:$0xff]  }
 0x965   :  { %16253 = vmatprep.subr.bf16.mxu1 %v19529_v10  ;;  %v19592_v9 = vld [vmem:[#allocation15 + $0xbd4] ss:$148 sps:$4 sm:$0xff]   ;;  %v19590_v46 = vld [vmem:[#allocation15 + $0xbd0] ss:$148 sps:$4 sm:$0xff]   ;;  %v19593_v54 = vld [vmem:[#allocation15 + $0xbd8] ss:$148 sps:$4 sm:$0xff]  }
 0x966   :  { %v19598_v35 = vld [vmem:[#allocation15 + $0xaac] ss:$148 sps:$4 sm:$0xff]   ;;  %v19601_v17 = vld [vmem:[#allocation15 + $0xab4] ss:$148 sps:$4 sm:$0xff]   ;;  %v19599_v2 = vld [vmem:[#allocation15 + $0xab0] ss:$148 sps:$4 sm:$0xff]  }
 0x967   :  { %16213 = vmatpush1.bf16.msra.mxu0 %v19524_v31  ;;  %v19596_v10 = vld [vmem:[#allocation15 + $0xaa8] ss:$148 sps:$4 sm:$0xff]   ;;  %v19604_v58 = vld [vmem:[#allocation15 + $0x984] ss:$148 sps:$4 sm:$0xff]   ;;  %v19607_v31 = vld [vmem:[#allocation15 + $0x98c] ss:$148 sps:$4 sm:$0xff]  }
 0x968   :  { %16254 = vmatpush1.bf16.msra.mxu1 %v19527_v30  ;;  %16214 = vmatprep.subr.bf16.mxu0 %v19532_v15  ;;  %v19602_v62 = vld [vmem:[#allocation15 + $0x980] ss:$148 sps:$4 sm:$0xff]   ;;  %v19605_v59 = vld [vmem:[#allocation15 + $0x988] ss:$148 sps:$4 sm:$0xff]  }
 0x969   :  { %16255 = vmatprep.subr.bf16.mxu1 %v19535_v48  ;;  %v19610_v30 = vld [vmem:[#allocation15 + $0x86c] ss:$148 sps:$4 sm:$0xff]   ;;  %v19613_v15 = vld [vmem:[#allocation15 + $0x874] ss:$148 sps:$4 sm:$0xff]   ;;  %v12738_v48 = vrot.slane %v20886_v44, %v20512_v45 }
 0x96b   :  { %16215 = vmatpush1.bf16.msra.mxu0 %v19530_v25  ;;  %v12746_v25 = vrot.slane %v20886_v44, %v20566_v50 }
 0x96c   :  { %16256 = vmatpush1.bf16.msra.mxu1 %v19533_v16  ;;  %16216 = vmatprep.subr.bf16.mxu0 %v19538_v37  ;;  %v19608_v16 = vld [vmem:[#allocation15 + $0x868] ss:$148 sps:$4 sm:$0xff]   ;;  %v19611_v37 = vld [vmem:[#allocation15 + $0x870] ss:$148 sps:$4 sm:$0xff]  }
 0x96d   :  { %16257 = vmatprep.subr.bf16.mxu1 %v19541_v55  ;;  %v12742_v55 = vrot.slane %v20886_v44, %v20535_v23 }
 0x96f   :  { %16217 = vmatpush1.bf16.msra.mxu0 %v19536_v63  ;;  %v12750_v63 = vrot.slane %v20886_v44, %v20569_v53 }
 0x970   :  { %16258 = vmatpush1.bf16.msra.mxu1 %v19539_v1  ;;  %16218 = vmatprep.subr.bf16.mxu0 %v19544_v40  ;;  %v19616_v1 = vld [vmem:[#allocation15 + $0x744] ss:$148 sps:$4 sm:$0xff]  }
 0x971   :  { %16259 = vmatprep.subr.bf16.mxu1 %v19547_v34 }
 0x973   :  { %16219 = vmatpush1.bf16.msra.mxu0 %v19542_v27  ;;  %v19619_v27 = vld [vmem:[#allocation15 + $0x74c] ss:$148 sps:$4 sm:$0xff]  }
 0x974   :  { %16260 = vmatpush1.bf16.msra.mxu1 %v19545_v47  ;;  %16220 = vmatprep.subr.bf16.mxu0 %v19550_v20 }
 0x975   :  { %16261 = vmatprep.subr.bf16.mxu1 %v19553_v49  ;;  %v19614_v49 = vld [vmem:[#allocation15 + $0x740] ss:$148 sps:$4 sm:$0xff]  }
 0x977   :  { %16221 = vmatpush1.bf16.msra.mxu0 %v19548_v42 }
 0x978   :  { %16262 = vmatpush1.bf16.msra.mxu1 %v19551_v38  ;;  %16222 = vmatprep.subr.bf16.mxu0 %v19556_v28  ;;  %v19617_v28 = vld [vmem:[#allocation15 + $0x748] ss:$148 sps:$4 sm:$0xff]  }
 0x979   :  { %16263 = vmatprep.subr.bf16.mxu1 %v19559_v11  ;;  %v19622_v11 = vld [vmem:[#allocation15 + $0x61c] ss:$148 sps:$4 sm:$0xff]  }
 0x97b   :  { %16223 = vmatpush1.bf16.msra.mxu0 %v19554_v29 }
 0x97c   :  { %16264 = vmatpush1.bf16.msra.mxu1 %v19557_v3  ;;  %16224 = vmatprep.subr.bf16.mxu0 %v19562_v43  ;;  %v19625_v3 = vld [vmem:[#allocation15 + $0x624] ss:$148 sps:$4 sm:$0xff]  }
 0x97d   :  { %16265 = vmatprep.subr.bf16.mxu1 %v19565_v12 }
 0x97f   :  { %16225 = vmatpush2.bf16.msra.mxu0 %v19560_v18  ;;  %v19620_v18 = vld [vmem:[#allocation15 + $0x618] ss:$148 sps:$4 sm:$0xff]  }
 0x980   :  { %16266 = vmatpush2.bf16.msra.mxu1 %v19563_v5  ;;  %16226 = vmatprep.subr.bf16.mxu0 %v19568_v21 }
 0x981   :  { %16267 = vmatprep.subr.bf16.mxu1 %v19571_v51  ;;  %v19623_v51 = vld [vmem:[#allocation15 + $0x620] ss:$148 sps:$4 sm:$0xff]  }
 0x983   :  { %16227 = vmatpush2.bf16.msra.mxu0 %v19566_v26  ;;  %v19628_v26 = vld [vmem:[#allocation15 + $0x4f4] ss:$148 sps:$4 sm:$0xff]  }
 0x984   :  { %16268 = vmatpush2.bf16.msra.mxu1 %v19569_v36  ;;  %16228 = vmatprep.subr.bf16.mxu0 %v19574_v14  ;;  %v19631_v36 = vld [vmem:[#allocation15 + $0x4fc] ss:$148 sps:$4 sm:$0xff]  }
 0x985   :  { %16269 = vmatprep.subr.bf16.mxu1 %v19577_v0  ;;  %v19626_v14 = vld [vmem:[#allocation15 + $0x4f0] ss:$148 sps:$4 sm:$0xff]   ;;  %v19629_v0 = vld [vmem:[#allocation15 + $0x4f8] ss:$148 sps:$4 sm:$0xff]  }
 0x987   :  { %16229 = vmatpush2.bf16.msra.mxu0 %v19572_v61  ;;  %v19634_v61 = vld [vmem:[#allocation15 + $0x3cc] ss:$148 sps:$4 sm:$0xff]  }
 0x988   :  { %16270 = vmatpush2.bf16.msra.mxu1 %v19575_v24  ;;  %16230 = vmatprep.subr.bf16.mxu0 %v19580_v8  ;;  %v19637_v24 = vld [vmem:[#allocation15 + $0x3d4] ss:$148 sps:$4 sm:$0xff]  }
 0x989   :  { %16271 = vmatprep.subr.bf16.mxu1 %v19583_v22  ;;  %v19632_v8 = vld [vmem:[#allocation15 + $0x3c8] ss:$148 sps:$4 sm:$0xff]   ;;  %v19635_v22 = vld [vmem:[#allocation15 + $0x3d0] ss:$148 sps:$4 sm:$0xff]  }
 0x98b   :  { %16231 = vmatpush2.bf16.msra.mxu0 %v19578_v41  ;;  %v19640_v41 = vld [vmem:[#allocation15 + $0x2a4] ss:$148 sps:$4 sm:$0xff]  }
 0x98c   :  { %16272 = vmatpush2.bf16.msra.mxu1 %v19581_v60  ;;  %16232 = vmatprep.subr.bf16.mxu0 %v19586_v57  ;;  %v19643_v60 = vld [vmem:[#allocation15 + $0x2ac] ss:$148 sps:$4 sm:$0xff]  }
 0x98d   :  { %16273 = vmatprep.subr.bf16.mxu1 %v19589_v19  ;;  %v19638_v57 = vld [vmem:[#allocation15 + $0x2a0] ss:$148 sps:$4 sm:$0xff]   ;;  %v19641_v19 = vld [vmem:[#allocation15 + $0x2a8] ss:$148 sps:$4 sm:$0xff]  }
 0x98f   :  { %16233 = vmatpush2.bf16.msra.mxu0 %v19584_v32  ;;  %v19646_v32 = vld [vmem:[#allocation15 + $0x17c] ss:$148 sps:$4 sm:$0xff]  }
 0x990   :  { %16274 = vmatpush2.bf16.msra.mxu1 %v19587_v39  ;;  %16234 = vmatprep.subr.bf16.mxu0 %v19592_v9  ;;  %v19649_v39 = vld [vmem:[#allocation15 + $0x184] ss:$148 sps:$4 sm:$0xff]  }
 0x991   :  { %16275 = vmatprep.subr.bf16.mxu1 %v19595_v33  ;;  %v19644_v9 = vld [vmem:[#allocation15 + $0x178] ss:$148 sps:$4 sm:$0xff]   ;;  %v19647_v33 = vld [vmem:[#allocation15 + $0x180] ss:$148 sps:$4 sm:$0xff]  }
 0x993   :  { %16235 = vmatpush2.bf16.msra.mxu0 %v19590_v46  ;;  %v19652_v46 = vld [vmem:[#allocation15 + $0x54] ss:$148 sps:$4 sm:$0xff]  }
 0x994   :  { %16276 = vmatpush2.bf16.msra.mxu1 %v19593_v54  ;;  %16236 = vmatprep.subr.bf16.mxu0 %v19598_v35  ;;  %v19655_v54 = vld [vmem:[#allocation15 + $0x5c] ss:$148 sps:$4 sm:$0xff]  }
 0x995   :  { %16277 = vmatprep.subr.bf16.mxu1 %v19601_v17  ;;  %v19650_v35 = vld [vmem:[#allocation15 + $0x50] ss:$148 sps:$4 sm:$0xff]   ;;  %v19653_v17 = vld [vmem:[#allocation15 + $0x58] ss:$148 sps:$4 sm:$0xff]  }
 0x997   :  { %16237 = vmatpush2.bf16.msra.mxu0 %v19596_v10  ;;  %v19658_v10 = vld [vmem:[#allocation15 + $0x11ac] ss:$148 sps:$4 sm:$0xff]  }
 0x998   :  { %16278 = vmatpush2.bf16.msra.mxu1 %v19599_v2  ;;  %16238 = vmatprep.subr.bf16.mxu0 %v19604_v58  ;;  %v19661_v2 = vld [vmem:[#allocation15 + $0x11b4] ss:$148 sps:$4 sm:$0xff]  }
 0x999   :  { %16279 = vmatprep.subr.bf16.mxu1 %v19607_v31  ;;  %v19656_v58 = vld [vmem:[#allocation15 + $0x11a8] ss:$148 sps:$4 sm:$0xff]   ;;  %v19659_v31 = vld [vmem:[#allocation15 + $0x11b0] ss:$148 sps:$4 sm:$0xff]  }
 0x99b   :  { %16239 = vmatpush2.bf16.msra.mxu0 %v19602_v62  ;;  %v19664_v62 = vld [vmem:[#allocation15 + $0x1084] ss:$148 sps:$4 sm:$0xff]  }
 0x99c   :  { %16280 = vmatpush2.bf16.msra.mxu1 %v19605_v59  ;;  %16290 = vmatprep.subr.bf16.mxu0 %v19610_v30  ;;  %v19667_v59 = vld [vmem:[#allocation15 + $0x108c] ss:$148 sps:$4 sm:$0xff]  }
 0x99d   :  { %16331 = vmatprep.subr.bf16.mxu1 %v19613_v15  ;;  %v19662_v30 = vld [vmem:[#allocation15 + $0x1080] ss:$148 sps:$4 sm:$0xff]   ;;  %v19665_v15 = vld [vmem:[#allocation15 + $0x1088] ss:$148 sps:$4 sm:$0xff]  }
 0x99e   :  { %v15996_v40 = vpop.f32.mrf.mxu0  ;;  %v16037_v34 = vpop.f32.mrf.mxu1  ;;  %16241 = vmatmul.mubr.bf16.vlgmr.msra.gmra.mxu0 %v20870_v52 }
 0x99f   :  { %v15997_v47 = vadd.f32 %v15996_v40, %v12738_v48  ;;  %v16038_v20 = vadd.f32 %v16037_v34, %v12746_v25  ;;  %16282 = vmatmul.mubr.bf16.vlgmr.msra.gmra.mxu1 %v20870_v52  ;;  %16291 = vmatpush1.bf16.msra.mxu0 %v19608_v16  ;;  %v19670_v48 = vld [vmem:[#allocation15 + $0xf5c] ss:$148 sps:$4 sm:$0xff]   ;;  %v19673_v25 = vld [vmem:[#allocation15 + $0xf64] ss:$148 sps:$4 sm:$0xff]   ;;  %v19682_v34 = vld [vmem:[#allocation15 + $0xd0c] ss:$148 sps:$4 sm:$0xff]  }
 0x9a0   :  { %16322 = vmatprep.mubr.bf16.mxu0 %v20868_v4  ;;  %16332 = vmatpush1.bf16.msra.mxu1 %v19611_v37  ;;  %v15998_v42 = vpop.f32.mrf.mxu0  ;;  %v16039_v38 = vpop.f32.mrf.mxu1  ;;  %v19668_v16 = vld [vmem:[#allocation15 + $0xf58] ss:$148 sps:$4 sm:$0xff]   ;;  %v19671_v37 = vld [vmem:[#allocation15 + $0xf60] ss:$148 sps:$4 sm:$0xff]  }
 0x9a1   :  { %16662 = vst [vmem:[%s21099_s11 + $0x20] sm:$0xff] %v15997_v47  ;;  %16664 = vst [vmem:[%s21099_s11 + $0x30] sm:$0xff] %v16038_v20  ;;  %16363 = vmatprep.mubr.bf16.mxu1 %v20868_v4  ;;  %v15999_v44 = vadd.f32 %v15998_v42, %v12742_v55  ;;  %v16040_v29 = vadd.f32 %v16039_v38, %v12750_v63  ;;  %16292 = vmatprep.subr.bf16.mxu0 %v19616_v1  ;;  %v19676_v55 = vld [vmem:[#allocation15 + $0xe34] ss:$148 sps:$4 sm:$0xff]   ;;  %v19679_v63 = vld [vmem:[#allocation15 + $0xe3c] ss:$148 sps:$4 sm:$0xff]  }
 0x9a2   :  { %v16000_v43 = vpop.f32.mrf.mxu0  ;;  %v16041_v12 = vpop.f32.mrf.mxu1  ;;  %16333 = vmatprep.subr.bf16.mxu1 %v19619_v27  ;;  %v19674_v1 = vld [vmem:[#allocation15 + $0xe30] ss:$148 sps:$4 sm:$0xff]   ;;  %v19677_v40 = vld [vmem:[#allocation15 + $0xe38] ss:$148 sps:$4 sm:$0xff]   ;;  %v19685_v27 = vld [vmem:[#allocation15 + $0xd14] ss:$148 sps:$4 sm:$0xff]  }
 0x9a3   :  { %16663 = vst [vmem:[%s21099_s11 + $0x28] sm:$0xff] %v15999_v44  ;;  %16665 = vst [vmem:[%s21099_s11 + $0x38] sm:$0xff] %v16040_v29  ;;  %16293 = vmatpush1.bf16.msra.mxu0 %v19614_v49  ;;  %v19680_v47 = vld [vmem:[#allocation15 + $0xd08] ss:$148 sps:$4 sm:$0xff]   ;;  %v19683_v20 = vld [vmem:[#allocation15 + $0xd10] ss:$148 sps:$4 sm:$0xff]  }
 0x9a4   :  { %16334 = vmatpush1.bf16.msra.mxu1 %v19617_v28  ;;  %v16001_v5 = vpop.f32.mrf.mxu0  ;;  %v16042_v21 = vpop.f32.mrf.mxu1  ;;  %16294 = vmatprep.subr.bf16.mxu0 %v19622_v11  ;;  %v19688_v49 = vld [vmem:[#allocation15 + $0xbe4] ss:$148 sps:$4 sm:$0xff]   ;;  %v19691_v42 = vld [vmem:[#allocation15 + $0xbec] ss:$148 sps:$4 sm:$0xff]   ;;  %v19689_v28 = vld [vmem:[#allocation15 + $0xbe8] ss:$148 sps:$4 sm:$0xff]  }
 0x9a5   :  { %16335 = vmatprep.subr.bf16.mxu1 %v19625_v3  ;;  %v19686_v38 = vld [vmem:[#allocation15 + $0xbe0] ss:$148 sps:$4 sm:$0xff]   ;;  %v19694_v11 = vld [vmem:[#allocation15 + $0xabc] ss:$148 sps:$4 sm:$0xff]   ;;  %v19697_v44 = vld [vmem:[#allocation15 + $0xac4] ss:$148 sps:$4 sm:$0xff]  }
 0x9a6   :  { %v19692_v29 = vld [vmem:[#allocation15 + $0xab8] ss:$148 sps:$4 sm:$0xff]   ;;  %v19695_v3 = vld [vmem:[#allocation15 + $0xac0] ss:$148 sps:$4 sm:$0xff]   ;;  %v19703_v12 = vld [vmem:[#allocation15 + $0x99c] ss:$148 sps:$4 sm:$0xff]  }
 0x9a7   :  { %16295 = vmatpush1.bf16.msra.mxu0 %v19620_v18  ;;  %v19700_v43 = vld [vmem:[#allocation15 + $0x994] ss:$148 sps:$4 sm:$0xff]   ;;  %v19698_v18 = vld [vmem:[#allocation15 + $0x990] ss:$148 sps:$4 sm:$0xff]   ;;  %v19701_v5 = vld [vmem:[#allocation15 + $0x998] ss:$148 sps:$4 sm:$0xff]  }
 0x9a8   :  { %16336 = vmatpush1.bf16.msra.mxu1 %v19623_v51  ;;  %16296 = vmatprep.subr.bf16.mxu0 %v19628_v26  ;;  %v20936_v21 = vld [vmem:[#allocation16 + $0x8] sm:$0xff]  ;;  %v19706_v51 = vld [vmem:[#allocation15 + $0x87c] ss:$148 sps:$4 sm:$0xff]   ;;  %v19709_v26 = vld [vmem:[#allocation15 + $0x884] ss:$148 sps:$4 sm:$0xff]  }
 0x9a9   :  { %16337 = vmatprep.subr.bf16.mxu1 %v19631_v36  ;;  %v12754_v36 = vrot.slane %v20936_v21, %v20441_v6 }
 0x9ab   :  { %16297 = vmatpush1.bf16.msra.mxu0 %v19626_v14  ;;  %v19704_v14 = vld [vmem:[#allocation15 + $0x878] ss:$148 sps:$4 sm:$0xff]  }
 0x9ac   :  { %16338 = vmatpush1.bf16.msra.mxu1 %v19629_v0  ;;  %16298 = vmatprep.subr.bf16.mxu0 %v19634_v61  ;;  %v12762_v0 = vrot.slane %v20936_v21, %v20477_v56  ;;  %v19707_v61 = vld [vmem:[#allocation15 + $0x880] ss:$148 sps:$4 sm:$0xff]  }
 0x9ad   :  { %16339 = vmatprep.subr.bf16.mxu1 %v19637_v24  ;;  %v12758_v24 = vrot.slane %v20936_v21, %v20444_v13 }
 0x9af   :  { %16299 = vmatpush1.bf16.msra.mxu0 %v19632_v8  ;;  %v19712_v8 = vld [vmem:[#allocation15 + $0x754] ss:$148 sps:$4 sm:$0xff]  }
 0x9b0   :  { %16340 = vmatpush1.bf16.msra.mxu1 %v19635_v22  ;;  %16300 = vmatprep.subr.bf16.mxu0 %v19640_v41  ;;  %v12766_v41 = vrot.slane %v20936_v21, %v20491_v7 }
 0x9b1   :  { %16341 = vmatprep.subr.bf16.mxu1 %v19643_v60  ;;  %v19715_v60 = vld [vmem:[#allocation15 + $0x75c] ss:$148 sps:$4 sm:$0xff]  }
 0x9b3   :  { %16301 = vmatpush1.bf16.msra.mxu0 %v19638_v57 }
 0x9b4   :  { %16342 = vmatpush1.bf16.msra.mxu1 %v19641_v19  ;;  %16302 = vmatprep.subr.bf16.mxu0 %v19646_v32  ;;  %v19710_v32 = vld [vmem:[#allocation15 + $0x750] ss:$148 sps:$4 sm:$0xff]  }
 0x9b5   :  { %16343 = vmatprep.subr.bf16.mxu1 %v19649_v39 }
 0x9b7   :  { %16303 = vmatpush1.bf16.msra.mxu0 %v19644_v9 }
 0x9b8   :  { %16344 = vmatpush1.bf16.msra.mxu1 %v19647_v33  ;;  %16304 = vmatprep.subr.bf16.mxu0 %v19652_v46  ;;  %v19713_v33 = vld [vmem:[#allocation15 + $0x758] ss:$148 sps:$4 sm:$0xff]  }
 0x9b9   :  { %16345 = vmatprep.subr.bf16.mxu1 %v19655_v54  ;;  %v19718_v46 = vld [vmem:[#allocation15 + $0x62c] ss:$148 sps:$4 sm:$0xff]  }
 0x9bb   :  { %16305 = vmatpush1.bf16.msra.mxu0 %v19650_v35 }
 0x9bc   :  { %16346 = vmatpush1.bf16.msra.mxu1 %v19653_v17  ;;  %16306 = vmatprep.subr.bf16.mxu0 %v19658_v10  ;;  %v19721_v17 = vld [vmem:[#allocation15 + $0x634] ss:$148 sps:$4 sm:$0xff]  }
 0x9bd   :  { %16347 = vmatprep.subr.bf16.mxu1 %v19661_v2 }
 0x9bf   :  { %16307 = vmatpush2.bf16.msra.mxu0 %v19656_v58 }
 0x9c0   :  { %16348 = vmatpush2.bf16.msra.mxu1 %v19659_v31  ;;  %16308 = vmatprep.subr.bf16.mxu0 %v19664_v62  ;;  %v19716_v31 = vld [vmem:[#allocation15 + $0x628] ss:$148 sps:$4 sm:$0xff]  }
 0x9c1   :  { %16349 = vmatprep.subr.bf16.mxu1 %v19667_v59  ;;  %v19719_v59 = vld [vmem:[#allocation15 + $0x630] ss:$148 sps:$4 sm:$0xff]  }
 0x9c3   :  { %16309 = vmatpush2.bf16.msra.mxu0 %v19662_v30  ;;  %v19724_v30 = vld [vmem:[#allocation15 + $0x504] ss:$148 sps:$4 sm:$0xff]  }
 0x9c4   :  { %16350 = vmatpush2.bf16.msra.mxu1 %v19665_v15  ;;  %16310 = vmatprep.subr.bf16.mxu0 %v19670_v48  ;;  %v19727_v48 = vld [vmem:[#allocation15 + $0x50c] ss:$148 sps:$4 sm:$0xff]  }
 0x9c5   :  { %16351 = vmatprep.subr.bf16.mxu1 %v19673_v25  ;;  %v19722_v25 = vld [vmem:[#allocation15 + $0x500] ss:$148 sps:$4 sm:$0xff]  }
 0x9c7   :  { %16311 = vmatpush2.bf16.msra.mxu0 %v19668_v16  ;;  %v19725_v16 = vld [vmem:[#allocation15 + $0x508] ss:$148 sps:$4 sm:$0xff]  }
 0x9c8   :  { %16352 = vmatpush2.bf16.msra.mxu1 %v19671_v37  ;;  %16312 = vmatprep.subr.bf16.mxu0 %v19676_v55  ;;  %v19730_v37 = vld [vmem:[#allocation15 + $0x3dc] ss:$148 sps:$4 sm:$0xff]   ;;  %v19733_v55 = vld [vmem:[#allocation15 + $0x3e4] ss:$148 sps:$4 sm:$0xff]  }
 0x9c9   :  { %16353 = vmatprep.subr.bf16.mxu1 %v19679_v63  ;;  %v19728_v63 = vld [vmem:[#allocation15 + $0x3d8] ss:$148 sps:$4 sm:$0xff]  }
 0x9cb   :  { %16313 = vmatpush2.bf16.msra.mxu0 %v19674_v1  ;;  %v19731_v1 = vld [vmem:[#allocation15 + $0x3e0] ss:$148 sps:$4 sm:$0xff]  }
 0x9cc   :  { %16354 = vmatpush2.bf16.msra.mxu1 %v19677_v40  ;;  %16314 = vmatprep.subr.bf16.mxu0 %v19682_v34  ;;  %v19736_v40 = vld [vmem:[#allocation15 + $0x2b4] ss:$148 sps:$4 sm:$0xff]   ;;  %v19739_v34 = vld [vmem:[#allocation15 + $0x2bc] ss:$148 sps:$4 sm:$0xff]  }
 0x9cd   :  { %16355 = vmatprep.subr.bf16.mxu1 %v19685_v27  ;;  %v19734_v27 = vld [vmem:[#allocation15 + $0x2b0] ss:$148 sps:$4 sm:$0xff]  }
 0x9cf   :  { %16315 = vmatpush2.bf16.msra.mxu0 %v19680_v47  ;;  %v19737_v47 = vld [vmem:[#allocation15 + $0x2b8] ss:$148 sps:$4 sm:$0xff]  }
 0x9d0   :  { %16356 = vmatpush2.bf16.msra.mxu1 %v19683_v20  ;;  %16316 = vmatprep.subr.bf16.mxu0 %v19688_v49  ;;  %v19742_v20 = vld [vmem:[#allocation15 + $0x18c] ss:$148 sps:$4 sm:$0xff]   ;;  %v19745_v49 = vld [vmem:[#allocation15 + $0x194] ss:$148 sps:$4 sm:$0xff]  }
 0x9d1   :  { %16357 = vmatprep.subr.bf16.mxu1 %v19691_v42  ;;  %v19740_v42 = vld [vmem:[#allocation15 + $0x188] ss:$148 sps:$4 sm:$0xff]  }
 0x9d3   :  { %16317 = vmatpush2.bf16.msra.mxu0 %v19686_v38  ;;  %v19743_v38 = vld [vmem:[#allocation15 + $0x190] ss:$148 sps:$4 sm:$0xff]  }
 0x9d4   :  { %16358 = vmatpush2.bf16.msra.mxu1 %v19689_v28  ;;  %16318 = vmatprep.subr.bf16.mxu0 %v19694_v11  ;;  %v19748_v28 = vld [vmem:[#allocation15 + $0x64] ss:$148 sps:$4 sm:$0xff]   ;;  %v19751_v11 = vld [vmem:[#allocation15 + $0x6c] ss:$148 sps:$4 sm:$0xff]  }
 0x9d5   :  { %16359 = vmatprep.subr.bf16.mxu1 %v19697_v44  ;;  %v19746_v44 = vld [vmem:[#allocation15 + $0x60] ss:$148 sps:$4 sm:$0xff]  }
 0x9d7   :  { %16319 = vmatpush2.bf16.msra.mxu0 %v19692_v29  ;;  %v19749_v29 = vld [vmem:[#allocation15 + $0x68] ss:$148 sps:$4 sm:$0xff]  }
 0x9d8   :  { %16360 = vmatpush2.bf16.msra.mxu1 %v19695_v3  ;;  %16320 = vmatprep.subr.bf16.mxu0 %v19700_v43  ;;  %v19754_v3 = vld [vmem:[#allocation15 + $0x11bc] ss:$148 sps:$4 sm:$0xff]   ;;  %v19757_v43 = vld [vmem:[#allocation15 + $0x11c4] ss:$148 sps:$4 sm:$0xff]  }
 0x9d9   :  { %16361 = vmatprep.subr.bf16.mxu1 %v19703_v12  ;;  %v19752_v12 = vld [vmem:[#allocation15 + $0x11b8] ss:$148 sps:$4 sm:$0xff]  }
 0x9db   :  { %16321 = vmatpush2.bf16.msra.mxu0 %v19698_v18  ;;  %v19755_v18 = vld [vmem:[#allocation15 + $0x11c0] ss:$148 sps:$4 sm:$0xff]  }
 0x9dc   :  { %16362 = vmatpush2.bf16.msra.mxu1 %v19701_v5  ;;  %16372 = vmatprep.subr.bf16.mxu0 %v19706_v51  ;;  %v19760_v5 = vld [vmem:[#allocation15 + $0x1094] ss:$148 sps:$4 sm:$0xff]   ;;  %v19763_v51 = vld [vmem:[#allocation15 + $0x109c] ss:$148 sps:$4 sm:$0xff]  }
 0x9dd   :  { %16413 = vmatprep.subr.bf16.mxu1 %v19709_v26  ;;  %v19758_v26 = vld [vmem:[#allocation15 + $0x1090] ss:$148 sps:$4 sm:$0xff]  }
 0x9de   :  { %v16078_v22 = vpop.f32.mrf.mxu0  ;;  %16323 = vmatmul.mubr.bf16.vlgmr.msra.gmra.mxu0 %v20870_v52 }
 0x9df   :  { %v16079_v57 = vadd.f32 %v16078_v22, %v12754_v36  ;;  %v16119_v19 = vpop.f32.mrf.mxu1  ;;  %16364 = vmatmul.mubr.bf16.vlgmr.msra.gmra.mxu1 %v20870_v52  ;;  %16373 = vmatpush1.bf16.msra.mxu0 %v19704_v14  ;;  %v19761_v36 = vld [vmem:[#allocation15 + $0x1098] ss:$148 sps:$4 sm:$0xff]  }
 0x9e0   :  { %v16120_v39 = vadd.f32 %v16119_v19, %v12762_v0  ;;  %16404 = vmatprep.mubr.bf16.mxu0 %v20868_v4  ;;  %16414 = vmatpush1.bf16.msra.mxu1 %v19707_v61  ;;  %v16080_v9 = vpop.f32.mrf.mxu0  ;;  %v19766_v14 = vld [vmem:[#allocation15 + $0xf6c] ss:$148 sps:$4 sm:$0xff]   ;;  %v19769_v0 = vld [vmem:[#allocation15 + $0xf74] ss:$148 sps:$4 sm:$0xff]   ;;  %v19781_v19 = vld [vmem:[#allocation15 + $0xd24] ss:$148 sps:$4 sm:$0xff]  }
 0x9e1   :  { %16666 = vst [vmem:[%s21099_s11 + $0x40] sm:$0xff] %v16079_v57  ;;  %16445 = vmatprep.mubr.bf16.mxu1 %v20868_v4  ;;  %v16081_v54 = vadd.f32 %v16080_v9, %v12758_v24  ;;  %v16121_v35 = vpop.f32.mrf.mxu1  ;;  %16374 = vmatprep.subr.bf16.mxu0 %v19712_v8  ;;  %v19764_v61 = vld [vmem:[#allocation15 + $0xf68] ss:$148 sps:$4 sm:$0xff]   ;;  %v19767_v24 = vld [vmem:[#allocation15 + $0xf70] ss:$148 sps:$4 sm:$0xff]  }
 0x9e2   :  { %16668 = vst [vmem:[%s21099_s11 + $0x50] sm:$0xff] %v16120_v39  ;;  %v16122_v10 = vadd.f32 %v16121_v35, %v12766_v41  ;;  %v16082_v2 = vpop.f32.mrf.mxu0  ;;  %16415 = vmatprep.subr.bf16.mxu1 %v19715_v60  ;;  %v19772_v8 = vld [vmem:[#allocation15 + $0xe44] ss:$148 sps:$4 sm:$0xff]   ;;  %v19775_v22 = vld [vmem:[#allocation15 + $0xe4c] ss:$148 sps:$4 sm:$0xff]  }
 0x9e3   :  { %16667 = vst [vmem:[%s21099_s11 + $0x48] sm:$0xff] %v16081_v54  ;;  %v16123_v58 = vpop.f32.mrf.mxu1  ;;  %16375 = vmatpush1.bf16.msra.mxu0 %v19710_v32  ;;  %v19770_v41 = vld [vmem:[#allocation15 + $0xe40] ss:$148 sps:$4 sm:$0xff]   ;;  %v19773_v60 = vld [vmem:[#allocation15 + $0xe48] ss:$148 sps:$4 sm:$0xff]  }
 0x9e4   :  { %16669 = vst [vmem:[%s21099_s11 + $0x58] sm:$0xff] %v16122_v10  ;;  %16416 = vmatpush1.bf16.msra.mxu1 %v19713_v33  ;;  %v16083_v62 = vpop.f32.mrf.mxu0  ;;  %16376 = vmatprep.subr.bf16.mxu0 %v19718_v46  ;;  %v19778_v57 = vld [vmem:[#allocation15 + $0xd1c] ss:$148 sps:$4 sm:$0xff]   ;;  %v19776_v32 = vld [vmem:[#allocation15 + $0xd18] ss:$148 sps:$4 sm:$0xff]  }
 0x9e5   :  { %v16124_v15 = vpop.f32.mrf.mxu1  ;;  %16417 = vmatprep.subr.bf16.mxu1 %v19721_v17  ;;  %v19779_v39 = vld [vmem:[#allocation15 + $0xd20] ss:$148 sps:$4 sm:$0xff]   ;;  %v19787_v33 = vld [vmem:[#allocation15 + $0xbfc] ss:$148 sps:$4 sm:$0xff]   ;;  %v19785_v54 = vld [vmem:[#allocation15 + $0xbf8] ss:$148 sps:$4 sm:$0xff]  }
 0x9e6   :  { %v19784_v9 = vld [vmem:[#allocation15 + $0xbf4] ss:$148 sps:$4 sm:$0xff]   ;;  %v19782_v46 = vld [vmem:[#allocation15 + $0xbf0] ss:$148 sps:$4 sm:$0xff]   ;;  %v19790_v35 = vld [vmem:[#allocation15 + $0xacc] ss:$148 sps:$4 sm:$0xff]  }
 0x9e7   :  { %16377 = vmatpush1.bf16.msra.mxu0 %v19716_v31  ;;  %v19793_v17 = vld [vmem:[#allocation15 + $0xad4] ss:$148 sps:$4 sm:$0xff]   ;;  %v19791_v2 = vld [vmem:[#allocation15 + $0xad0] ss:$148 sps:$4 sm:$0xff]   ;;  %v19799_v31 = vld [vmem:[#allocation15 + $0x9ac] ss:$148 sps:$4 sm:$0xff]  }
 0x9e8   :  { %16418 = vmatpush1.bf16.msra.mxu1 %v19719_v59  ;;  %16378 = vmatprep.subr.bf16.mxu0 %v19724_v30  ;;  %v19788_v10 = vld [vmem:[#allocation15 + $0xac8] ss:$148 sps:$4 sm:$0xff]   ;;  %v19796_v58 = vld [vmem:[#allocation15 + $0x9a4] ss:$148 sps:$4 sm:$0xff]   ;;  %v19794_v62 = vld [vmem:[#allocation15 + $0x9a0] ss:$148 sps:$4 sm:$0xff]  }
 0x9e9   :  { %16419 = vmatprep.subr.bf16.mxu1 %v19727_v48  ;;  %v19797_v59 = vld [vmem:[#allocation15 + $0x9a8] ss:$148 sps:$4 sm:$0xff]   ;;  %v19802_v30 = vld [vmem:[#allocation15 + $0x88c] ss:$148 sps:$4 sm:$0xff]   ;;  %v12770_v48 = vrot.slane %v20936_v21, %v20512_v45 }
 0x9ea   :  { %v19805_v15 = vld [vmem:[#allocation15 + $0x894] ss:$148 sps:$4 sm:$0xff]  }
 0x9eb   :  { %16379 = vmatpush1.bf16.msra.mxu0 %v19722_v25  ;;  %v19800_v25 = vld [vmem:[#allocation15 + $0x888] ss:$148 sps:$4 sm:$0xff]  }
 0x9ec   :  { %16420 = vmatpush1.bf16.msra.mxu1 %v19725_v16  ;;  %16380 = vmatprep.subr.bf16.mxu0 %v19730_v37  ;;  %v12778_v16 = vrot.slane %v20936_v21, %v20566_v50  ;;  %v19803_v37 = vld [vmem:[#allocation15 + $0x890] ss:$148 sps:$4 sm:$0xff]  }
 0x9ed   :  { %16421 = vmatprep.subr.bf16.mxu1 %v19733_v55  ;;  %v12774_v55 = vrot.slane %v20936_v21, %v20535_v23 }
 0x9ef   :  { %16381 = vmatpush1.bf16.msra.mxu0 %v19728_v63  ;;  %v19808_v63 = vld [vmem:[#allocation15 + $0x764] ss:$148 sps:$4 sm:$0xff]  }
 0x9f0   :  { %16422 = vmatpush1.bf16.msra.mxu1 %v19731_v1  ;;  %16382 = vmatprep.subr.bf16.mxu0 %v19736_v40  ;;  %v12782_v40 = vrot.slane %v20936_v21, %v20569_v53 }
 0x9f1   :  { %16423 = vmatprep.subr.bf16.mxu1 %v19739_v34  ;;  %v19811_v34 = vld [vmem:[#allocation15 + $0x76c] ss:$148 sps:$4 sm:$0xff]  }
 0x9f3   :  { %16383 = vmatpush1.bf16.msra.mxu0 %v19734_v27 }
 0x9f4   :  { %16424 = vmatpush1.bf16.msra.mxu1 %v19737_v47  ;;  %16384 = vmatprep.subr.bf16.mxu0 %v19742_v20  ;;  %v19806_v20 = vld [vmem:[#allocation15 + $0x760] ss:$148 sps:$4 sm:$0xff]  }
 0x9f5   :  { %16425 = vmatprep.subr.bf16.mxu1 %v19745_v49 }
 0x9f7   :  { %16385 = vmatpush1.bf16.msra.mxu0 %v19740_v42 }
 0x9f8   :  { %16426 = vmatpush1.bf16.msra.mxu1 %v19743_v38  ;;  %16386 = vmatprep.subr.bf16.mxu0 %v19748_v28  ;;  %v19809_v38 = vld [vmem:[#allocation15 + $0x768] ss:$148 sps:$4 sm:$0xff]  }
 0x9f9   :  { %16427 = vmatprep.subr.bf16.mxu1 %v19751_v11  ;;  %v19814_v28 = vld [vmem:[#allocation15 + $0x63c] ss:$148 sps:$4 sm:$0xff]  }
 0x9fb   :  { %16387 = vmatpush1.bf16.msra.mxu0 %v19746_v44  ;;  %v19817_v44 = vld [vmem:[#allocation15 + $0x644] ss:$148 sps:$4 sm:$0xff]  }
 0x9fc   :  { %16428 = vmatpush1.bf16.msra.mxu1 %v19749_v29  ;;  %16388 = vmatprep.subr.bf16.mxu0 %v19754_v3 }
 0x9fd   :  { %16429 = vmatprep.subr.bf16.mxu1 %v19757_v43 }
 0x9ff   :  { %16389 = vmatpush2.bf16.msra.mxu0 %v19752_v12  ;;  %v19812_v12 = vld [vmem:[#allocation15 + $0x638] ss:$148 sps:$4 sm:$0xff]  }
 0xa00   :  { %16430 = vmatpush2.bf16.msra.mxu1 %v19755_v18  ;;  %16390 = vmatprep.subr.bf16.mxu0 %v19760_v5  ;;  %v19815_v5 = vld [vmem:[#allocation15 + $0x640] ss:$148 sps:$4 sm:$0xff]  }
 0xa01   :  { %16431 = vmatprep.subr.bf16.mxu1 %v19763_v51  ;;  %v19820_v51 = vld [vmem:[#allocation15 + $0x514] ss:$148 sps:$4 sm:$0xff]  }
 0xa03   :  { %16391 = vmatpush2.bf16.msra.mxu0 %v19758_v26 }
 0xa04   :  { %16432 = vmatpush2.bf16.msra.mxu1 %v19761_v36  ;;  %16392 = vmatprep.subr.bf16.mxu0 %v19766_v14  ;;  %v19823_v36 = vld [vmem:[#allocation15 + $0x51c] ss:$148 sps:$4 sm:$0xff]  }
 0xa05   :  { %16433 = vmatprep.subr.bf16.mxu1 %v19769_v0  ;;  %v19818_v14 = vld [vmem:[#allocation15 + $0x510] ss:$148 sps:$4 sm:$0xff]   ;;  %v19821_v0 = vld [vmem:[#allocation15 + $0x518] ss:$148 sps:$4 sm:$0xff]  }
 0xa07   :  { %16393 = vmatpush2.bf16.msra.mxu0 %v19764_v61  ;;  %v19826_v61 = vld [vmem:[#allocation15 + $0x3ec] ss:$148 sps:$4 sm:$0xff]  }
 0xa08   :  { %16434 = vmatpush2.bf16.msra.mxu1 %v19767_v24  ;;  %16394 = vmatprep.subr.bf16.mxu0 %v19772_v8  ;;  %v19829_v24 = vld [vmem:[#allocation15 + $0x3f4] ss:$148 sps:$4 sm:$0xff]  }
 0xa09   :  { %16435 = vmatprep.subr.bf16.mxu1 %v19775_v22  ;;  %v19824_v8 = vld [vmem:[#allocation15 + $0x3e8] ss:$148 sps:$4 sm:$0xff]   ;;  %v19827_v22 = vld [vmem:[#allocation15 + $0x3f0] ss:$148 sps:$4 sm:$0xff]  }
 0xa0b   :  { %16395 = vmatpush2.bf16.msra.mxu0 %v19770_v41  ;;  %v19832_v41 = vld [vmem:[#allocation15 + $0x2c4] ss:$148 sps:$4 sm:$0xff]  }
 0xa0c   :  { %16436 = vmatpush2.bf16.msra.mxu1 %v19773_v60  ;;  %16396 = vmatprep.subr.bf16.mxu0 %v19778_v57  ;;  %v19835_v60 = vld [vmem:[#allocation15 + $0x2cc] ss:$148 sps:$4 sm:$0xff]  }
 0xa0d   :  { %16437 = vmatprep.subr.bf16.mxu1 %v19781_v19  ;;  %v19830_v57 = vld [vmem:[#allocation15 + $0x2c0] ss:$148 sps:$4 sm:$0xff]   ;;  %v19833_v19 = vld [vmem:[#allocation15 + $0x2c8] ss:$148 sps:$4 sm:$0xff]  }
 0xa0f   :  { %16397 = vmatpush2.bf16.msra.mxu0 %v19776_v32  ;;  %v19838_v32 = vld [vmem:[#allocation15 + $0x19c] ss:$148 sps:$4 sm:$0xff]  }
 0xa10   :  { %16438 = vmatpush2.bf16.msra.mxu1 %v19779_v39  ;;  %16398 = vmatprep.subr.bf16.mxu0 %v19784_v9  ;;  %v19841_v39 = vld [vmem:[#allocation15 + $0x1a4] ss:$148 sps:$4 sm:$0xff]  }
 0xa11   :  { %16439 = vmatprep.subr.bf16.mxu1 %v19787_v33  ;;  %v19836_v9 = vld [vmem:[#allocation15 + $0x198] ss:$148 sps:$4 sm:$0xff]   ;;  %v19839_v33 = vld [vmem:[#allocation15 + $0x1a0] ss:$148 sps:$4 sm:$0xff]  }
 0xa13   :  { %16399 = vmatpush2.bf16.msra.mxu0 %v19782_v46  ;;  %v19844_v46 = vld [vmem:[#allocation15 + $0x74] ss:$148 sps:$4 sm:$0xff]  }
 0xa14   :  { %16440 = vmatpush2.bf16.msra.mxu1 %v19785_v54  ;;  %16400 = vmatprep.subr.bf16.mxu0 %v19790_v35  ;;  %v19847_v54 = vld [vmem:[#allocation15 + $0x7c] ss:$148 sps:$4 sm:$0xff]  }
 0xa15   :  { %16441 = vmatprep.subr.bf16.mxu1 %v19793_v17  ;;  %v19842_v35 = vld [vmem:[#allocation15 + $0x70] ss:$148 sps:$4 sm:$0xff]   ;;  %v19845_v17 = vld [vmem:[#allocation15 + $0x78] ss:$148 sps:$4 sm:$0xff]  }
 0xa17   :  { %16401 = vmatpush2.bf16.msra.mxu0 %v19788_v10  ;;  %v19850_v10 = vld [vmem:[#allocation15 + $0x11cc] ss:$148 sps:$4 sm:$0xff]  }
 0xa18   :  { %16442 = vmatpush2.bf16.msra.mxu1 %v19791_v2  ;;  %16402 = vmatprep.subr.bf16.mxu0 %v19796_v58  ;;  %v19853_v2 = vld [vmem:[#allocation15 + $0x11d4] ss:$148 sps:$4 sm:$0xff]  }
 0xa19   :  { %16443 = vmatprep.subr.bf16.mxu1 %v19799_v31  ;;  %v19848_v58 = vld [vmem:[#allocation15 + $0x11c8] ss:$148 sps:$4 sm:$0xff]   ;;  %v19851_v31 = vld [vmem:[#allocation15 + $0x11d0] ss:$148 sps:$4 sm:$0xff]  }
 0xa1b   :  { %16403 = vmatpush2.bf16.msra.mxu0 %v19794_v62  ;;  %v19856_v62 = vld [vmem:[#allocation15 + $0x10a4] ss:$148 sps:$4 sm:$0xff]  }
 0xa1c   :  { %16444 = vmatpush2.bf16.msra.mxu1 %v19797_v59  ;;  %16454 = vmatprep.subr.bf16.mxu0 %v19802_v30  ;;  %v19859_v59 = vld [vmem:[#allocation15 + $0x10ac] ss:$148 sps:$4 sm:$0xff]  }
 0xa1d   :  { %16495 = vmatprep.subr.bf16.mxu1 %v19805_v15  ;;  %v19854_v30 = vld [vmem:[#allocation15 + $0x10a0] ss:$148 sps:$4 sm:$0xff]   ;;  %v19857_v15 = vld [vmem:[#allocation15 + $0x10a8] ss:$148 sps:$4 sm:$0xff]  }
 0xa1e   :  { %v16160_v1 = vpop.f32.mrf.mxu0  ;;  %16405 = vmatmul.mubr.bf16.vlgmr.msra.gmra.mxu0 %v20870_v52 }
 0xa1f   :  { %v16161_v27 = vadd.f32 %v16160_v1, %v12770_v48  ;;  %v16201_v47 = vpop.f32.mrf.mxu1  ;;  %16446 = vmatmul.mubr.bf16.vlgmr.msra.gmra.mxu1 %v20870_v52  ;;  %16455 = vmatpush1.bf16.msra.mxu0 %v19800_v25  ;;  %v19862_v48 = vld [vmem:[#allocation15 + $0xf7c] ss:$148 sps:$4 sm:$0xff]   ;;  %v19865_v25 = vld [vmem:[#allocation15 + $0xf84] ss:$148 sps:$4 sm:$0xff]  }
 0xa20   :  { %v16202_v49 = vadd.f32 %v16201_v47, %v12778_v16  ;;  %16486 = vmatprep.mubr.bf16.mxu0 %v20868_v4  ;;  %16496 = vmatpush1.bf16.msra.mxu1 %v19803_v37  ;;  %v16162_v42 = vpop.f32.mrf.mxu0  ;;  %v19860_v16 = vld [vmem:[#allocation15 + $0xf78] ss:$148 sps:$4 sm:$0xff]   ;;  %v19863_v37 = vld [vmem:[#allocation15 + $0xf80] ss:$148 sps:$4 sm:$0xff]   ;;  %v19866_v1 = vld [vmem:[#allocation15 + $0xe50] ss:$148 sps:$4 sm:$0xff]  }
 0xa21   :  { %16670 = vst [vmem:[%s21099_s11 + $0x60] sm:$0xff] %v16161_v27  ;;  %16527 = vmatprep.mubr.bf16.mxu1 %v20868_v4  ;;  %v16163_v21 = vadd.f32 %v16162_v42, %v12774_v55  ;;  %v16203_v11 = vpop.f32.mrf.mxu1  ;;  %16456 = vmatprep.subr.bf16.mxu0 %v19808_v63  ;;  %v19868_v55 = vld [vmem:[#allocation15 + $0xe54] ss:$148 sps:$4 sm:$0xff]   ;;  %v19871_v63 = vld [vmem:[#allocation15 + $0xe5c] ss:$148 sps:$4 sm:$0xff]  }
 0xa22   :  { %16672 = vst [vmem:[%s21099_s11 + $0x70] sm:$0xff] %v16202_v49  ;;  %v16204_v29 = vadd.f32 %v16203_v11, %v12782_v40  ;;  %v16164_v3 = vpop.f32.mrf.mxu0  ;;  %16497 = vmatprep.subr.bf16.mxu1 %v19811_v34  ;;  %v19869_v40 = vld [vmem:[#allocation15 + $0xe58] ss:$148 sps:$4 sm:$0xff]   ;;  %v19877_v27 = vld [vmem:[#allocation15 + $0xd34] ss:$148 sps:$4 sm:$0xff]  }
 0xa23   :  { %16671 = vst [vmem:[%s21099_s11 + $0x68] sm:$0xff] %v16163_v21  ;;  %v16205_v43 = vpop.f32.mrf.mxu1  ;;  %16457 = vmatpush1.bf16.msra.mxu0 %v19806_v20  ;;  %v19874_v34 = vld [vmem:[#allocation15 + $0xd2c] ss:$148 sps:$4 sm:$0xff]   ;;  %v19872_v47 = vld [vmem:[#allocation15 + $0xd28] ss:$148 sps:$4 sm:$0xff]  }
 0xa24   :  { %16673 = vst [vmem:[%s21099_s11 + $0x78] sm:$0xff] %v16204_v29  ;;  %16498 = vmatpush1.bf16.msra.mxu1 %v19809_v38  ;;  %v16165_v18 = vpop.f32.mrf.mxu0  ;;  %16458 = vmatprep.subr.bf16.mxu0 %v19814_v28  ;;  %v19875_v20 = vld [vmem:[#allocation15 + $0xd30] ss:$148 sps:$4 sm:$0xff]   ;;  %v19883_v42 = vld [vmem:[#allocation15 + $0xc0c] ss:$148 sps:$4 sm:$0xff]  }
 0xa25   :  { %v16206_v26 = vpop.f32.mrf.mxu1  ;;  %16499 = vmatprep.subr.bf16.mxu1 %v19817_v44  ;;  %v19880_v49 = vld [vmem:[#allocation15 + $0xc04] ss:$148 sps:$4 sm:$0xff]   ;;  %v19878_v38 = vld [vmem:[#allocation15 + $0xc00] ss:$148 sps:$4 sm:$0xff]   ;;  %v19881_v28 = vld [vmem:[#allocation15 + $0xc08] ss:$148 sps:$4 sm:$0xff]  }
 0xa26   :  { %v19886_v21 = vld [vmem:[#allocation15 + $0xadc] ss:$148 sps:$4 sm:$0xff]   ;;  %v19889_v11 = vld [vmem:[#allocation15 + $0xae4] ss:$148 sps:$4 sm:$0xff]   ;;  %v19887_v29 = vld [vmem:[#allocation15 + $0xae0] ss:$148 sps:$4 sm:$0xff]  }
 0xa27   :  { %16459 = vmatpush1.bf16.msra.mxu0 %v19812_v12  ;;  %v19884_v44 = vld [vmem:[#allocation15 + $0xad8] ss:$148 sps:$4 sm:$0xff]   ;;  %v19892_v3 = vld [vmem:[#allocation15 + $0x9b4] ss:$148 sps:$4 sm:$0xff]   ;;  %v19895_v43 = vld [vmem:[#allocation15 + $0x9bc] ss:$148 sps:$4 sm:$0xff]  }
 0xa28   :  { %16500 = vmatpush1.bf16.msra.mxu1 %v19815_v5  ;;  %16460 = vmatprep.subr.bf16.mxu0 %v19820_v51  ;;  %v19890_v12 = vld [vmem:[#allocation15 + $0x9b0] ss:$148 sps:$4 sm:$0xff]   ;;  %v19893_v18 = vld [vmem:[#allocation15 + $0x9b8] ss:$148 sps:$4 sm:$0xff]  }
 0xa29   :  { %16501 = vmatprep.subr.bf16.mxu1 %v19823_v36  ;;  %v20986_v5 = vld [vmem:[#allocation16 + $0x10] sm:$0xff]  ;;  %v19901_v26 = vld [vmem:[#allocation15 + $0x8a4] ss:$148 sps:$4 sm:$0xff]  }
 0xa2a   :  { %v19898_v51 = vld [vmem:[#allocation15 + $0x89c] ss:$148 sps:$4 sm:$0xff]   ;;  %v12786_v36 = vrot.slane %v20986_v5, %v20441_v6 }
 0xa2b   :  { %16461 = vmatpush1.bf16.msra.mxu0 %v19818_v14  ;;  %v19896_v14 = vld [vmem:[#allocation15 + $0x898] ss:$148 sps:$4 sm:$0xff]  }
 0xa2c   :  { %16502 = vmatpush1.bf16.msra.mxu1 %v19821_v0  ;;  %16462 = vmatprep.subr.bf16.mxu0 %v19826_v61  ;;  %v12794_v0 = vrot.slane %v20986_v5, %v20477_v56  ;;  %v19899_v61 = vld [vmem:[#allocation15 + $0x8a0] ss:$148 sps:$4 sm:$0xff]  }
 0xa2d   :  { %16503 = vmatprep.subr.bf16.mxu1 %v19829_v24  ;;  %v12790_v24 = vrot.slane %v20986_v5, %v20444_v13 }
 0xa2f   :  { %16463 = vmatpush1.bf16.msra.mxu0 %v19824_v8  ;;  %v19904_v8 = vld [vmem:[#allocation15 + $0x774] ss:$148 sps:$4 sm:$0xff]  }
 0xa30   :  { %16504 = vmatpush1.bf16.msra.mxu1 %v19827_v22  ;;  %16464 = vmatprep.subr.bf16.mxu0 %v19832_v41  ;;  %v12798_v41 = vrot.slane %v20986_v5, %v20491_v7 }
 0xa31   :  { %16505 = vmatprep.subr.bf16.mxu1 %v19835_v60  ;;  %v19907_v60 = vld [vmem:[#allocation15 + $0x77c] ss:$148 sps:$4 sm:$0xff]  }
 0xa33   :  { %16465 = vmatpush1.bf16.msra.mxu0 %v19830_v57 }
 0xa34   :  { %16506 = vmatpush1.bf16.msra.mxu1 %v19833_v19  ;;  %16466 = vmatprep.subr.bf16.mxu0 %v19838_v32  ;;  %v19902_v32 = vld [vmem:[#allocation15 + $0x770] ss:$148 sps:$4 sm:$0xff]  }
 0xa35   :  { %16507 = vmatprep.subr.bf16.mxu1 %v19841_v39 }
 0xa37   :  { %16467 = vmatpush1.bf16.msra.mxu0 %v19836_v9 }
 0xa38   :  { %16508 = vmatpush1.bf16.msra.mxu1 %v19839_v33  ;;  %16468 = vmatprep.subr.bf16.mxu0 %v19844_v46  ;;  %v19905_v33 = vld [vmem:[#allocation15 + $0x778] ss:$148 sps:$4 sm:$0xff]  }
 0xa39   :  { %16509 = vmatprep.subr.bf16.mxu1 %v19847_v54  ;;  %v19910_v46 = vld [vmem:[#allocation15 + $0x64c] ss:$148 sps:$4 sm:$0xff]  }
 0xa3b   :  { %16469 = vmatpush1.bf16.msra.mxu0 %v19842_v35 }
 0xa3c   :  { %16510 = vmatpush1.bf16.msra.mxu1 %v19845_v17  ;;  %16470 = vmatprep.subr.bf16.mxu0 %v19850_v10  ;;  %v19913_v17 = vld [vmem:[#allocation15 + $0x654] ss:$148 sps:$4 sm:$0xff]  }
 0xa3d   :  { %16511 = vmatprep.subr.bf16.mxu1 %v19853_v2 }
 0xa3f   :  { %16471 = vmatpush2.bf16.msra.mxu0 %v19848_v58 }
 0xa40   :  { %16512 = vmatpush2.bf16.msra.mxu1 %v19851_v31  ;;  %16472 = vmatprep.subr.bf16.mxu0 %v19856_v62  ;;  %v19908_v31 = vld [vmem:[#allocation15 + $0x648] ss:$148 sps:$4 sm:$0xff]  }
 0xa41   :  { %16513 = vmatprep.subr.bf16.mxu1 %v19859_v59  ;;  %v19911_v59 = vld [vmem:[#allocation15 + $0x650] ss:$148 sps:$4 sm:$0xff]  }
 0xa43   :  { %16473 = vmatpush2.bf16.msra.mxu0 %v19854_v30  ;;  %v19916_v30 = vld [vmem:[#allocation15 + $0x524] ss:$148 sps:$4 sm:$0xff]  }
 0xa44   :  { %16514 = vmatpush2.bf16.msra.mxu1 %v19857_v15  ;;  %16474 = vmatprep.subr.bf16.mxu0 %v19862_v48  ;;  %v19919_v48 = vld [vmem:[#allocation15 + $0x52c] ss:$148 sps:$4 sm:$0xff]  }
 0xa45   :  { %16515 = vmatprep.subr.bf16.mxu1 %v19865_v25  ;;  %v19914_v25 = vld [vmem:[#allocation15 + $0x520] ss:$148 sps:$4 sm:$0xff]  }
 0xa47   :  { %16475 = vmatpush2.bf16.msra.mxu0 %v19860_v16  ;;  %v19917_v16 = vld [vmem:[#allocation15 + $0x528] ss:$148 sps:$4 sm:$0xff]  }
 0xa48   :  { %16516 = vmatpush2.bf16.msra.mxu1 %v19863_v37  ;;  %16476 = vmatprep.subr.bf16.mxu0 %v19868_v55  ;;  %v19922_v37 = vld [vmem:[#allocation15 + $0x3fc] ss:$148 sps:$4 sm:$0xff]   ;;  %v19925_v55 = vld [vmem:[#allocation15 + $0x404] ss:$148 sps:$4 sm:$0xff]  }
 0xa49   :  { %16517 = vmatprep.subr.bf16.mxu1 %v19871_v63  ;;  %v19920_v63 = vld [vmem:[#allocation15 + $0x3f8] ss:$148 sps:$4 sm:$0xff]  }
 0xa4b   :  { %16477 = vmatpush2.bf16.msra.mxu0 %v19866_v1  ;;  %v19923_v1 = vld [vmem:[#allocation15 + $0x400] ss:$148 sps:$4 sm:$0xff]  }
 0xa4c   :  { %16518 = vmatpush2.bf16.msra.mxu1 %v19869_v40  ;;  %16478 = vmatprep.subr.bf16.mxu0 %v19874_v34  ;;  %v19928_v40 = vld [vmem:[#allocation15 + $0x2d4] ss:$148 sps:$4 sm:$0xff]   ;;  %v19931_v34 = vld [vmem:[#allocation15 + $0x2dc] ss:$148 sps:$4 sm:$0xff]  }
 0xa4d   :  { %16519 = vmatprep.subr.bf16.mxu1 %v19877_v27  ;;  %v19926_v27 = vld [vmem:[#allocation15 + $0x2d0] ss:$148 sps:$4 sm:$0xff]  }
 0xa4f   :  { %16479 = vmatpush2.bf16.msra.mxu0 %v19872_v47  ;;  %v19929_v47 = vld [vmem:[#allocation15 + $0x2d8] ss:$148 sps:$4 sm:$0xff]  }
 0xa50   :  { %16520 = vmatpush2.bf16.msra.mxu1 %v19875_v20  ;;  %16480 = vmatprep.subr.bf16.mxu0 %v19880_v49  ;;  %v19934_v20 = vld [vmem:[#allocation15 + $0x1ac] ss:$148 sps:$4 sm:$0xff]   ;;  %v19937_v49 = vld [vmem:[#allocation15 + $0x1b4] ss:$148 sps:$4 sm:$0xff]  }
 0xa51   :  { %16521 = vmatprep.subr.bf16.mxu1 %v19883_v42  ;;  %v19932_v42 = vld [vmem:[#allocation15 + $0x1a8] ss:$148 sps:$4 sm:$0xff]  }
 0xa53   :  { %16481 = vmatpush2.bf16.msra.mxu0 %v19878_v38  ;;  %v19935_v38 = vld [vmem:[#allocation15 + $0x1b0] ss:$148 sps:$4 sm:$0xff]  }
 0xa54   :  { %16522 = vmatpush2.bf16.msra.mxu1 %v19881_v28  ;;  %16482 = vmatprep.subr.bf16.mxu0 %v19886_v21  ;;  %v19940_v28 = vld [vmem:[#allocation15 + $0x84] ss:$148 sps:$4 sm:$0xff]   ;;  %v19943_v21 = vld [vmem:[#allocation15 + $0x8c] ss:$148 sps:$4 sm:$0xff]  }
 0xa55   :  { %16523 = vmatprep.subr.bf16.mxu1 %v19889_v11  ;;  %v19938_v11 = vld [vmem:[#allocation15 + $0x80] ss:$148 sps:$4 sm:$0xff]  }
 0xa57   :  { %16483 = vmatpush2.bf16.msra.mxu0 %v19884_v44  ;;  %v19941_v44 = vld [vmem:[#allocation15 + $0x88] ss:$148 sps:$4 sm:$0xff]  }
 0xa58   :  { %16524 = vmatpush2.bf16.msra.mxu1 %v19887_v29  ;;  %16484 = vmatprep.subr.bf16.mxu0 %v19892_v3  ;;  %v19946_v29 = vld [vmem:[#allocation15 + $0x11dc] ss:$148 sps:$4 sm:$0xff]   ;;  %v19949_v3 = vld [vmem:[#allocation15 + $0x11e4] ss:$148 sps:$4 sm:$0xff]  }
 0xa59   :  { %16525 = vmatprep.subr.bf16.mxu1 %v19895_v43  ;;  %v19944_v43 = vld [vmem:[#allocation15 + $0x11d8] ss:$148 sps:$4 sm:$0xff]  }
 0xa5b   :  { %16485 = vmatpush2.bf16.msra.mxu0 %v19890_v12  ;;  %v19947_v12 = vld [vmem:[#allocation15 + $0x11e0] ss:$148 sps:$4 sm:$0xff]  }
 0xa5c   :  { %16526 = vmatpush2.bf16.msra.mxu1 %v19893_v18  ;;  %16536 = vmatprep.subr.bf16.mxu0 %v19898_v51  ;;  %v19952_v18 = vld [vmem:[#allocation15 + $0x10b4] ss:$148 sps:$4 sm:$0xff]   ;;  %v19955_v51 = vld [vmem:[#allocation15 + $0x10bc] ss:$148 sps:$4 sm:$0xff]  }
 0xa5d   :  { %16577 = vmatprep.subr.bf16.mxu1 %v19901_v26  ;;  %v19950_v26 = vld [vmem:[#allocation15 + $0x10b0] ss:$148 sps:$4 sm:$0xff]  }
 0xa5e   :  { %v16242_v22 = vpop.f32.mrf.mxu0  ;;  %16487 = vmatmul.mubr.bf16.vlgmr.msra.gmra.mxu0 %v20870_v52 }
 0xa5f   :  { %v16243_v57 = vadd.f32 %v16242_v22, %v12786_v36  ;;  %v16283_v19 = vpop.f32.mrf.mxu1  ;;  %16528 = vmatmul.mubr.bf16.vlgmr.msra.gmra.mxu1 %v20870_v52  ;;  %16537 = vmatpush1.bf16.msra.mxu0 %v19896_v14  ;;  %v19953_v36 = vld [vmem:[#allocation15 + $0x10b8] ss:$148 sps:$4 sm:$0xff]  }
 0xa60   :  { %v16284_v39 = vadd.f32 %v16283_v19, %v12794_v0  ;;  %16568 = vmatprep.mubr.bf16.mxu0 %v20868_v4  ;;  %16578 = vmatpush1.bf16.msra.mxu1 %v19899_v61  ;;  %v16244_v9 = vpop.f32.mrf.mxu0  ;;  %v19958_v14 = vld [vmem:[#allocation15 + $0xf8c] ss:$148 sps:$4 sm:$0xff]   ;;  %v19961_v0 = vld [vmem:[#allocation15 + $0xf94] ss:$148 sps:$4 sm:$0xff]   ;;  %v19973_v19 = vld [vmem:[#allocation15 + $0xd44] ss:$148 sps:$4 sm:$0xff]  }
 0xa61   :  { %16674 = vst [vmem:[%s21099_s11 + $0x80] sm:$0xff] %v16243_v57  ;;  %16609 = vmatprep.mubr.bf16.mxu1 %v20868_v4  ;;  %v16245_v54 = vadd.f32 %v16244_v9, %v12790_v24  ;;  %v16285_v35 = vpop.f32.mrf.mxu1  ;;  %16538 = vmatprep.subr.bf16.mxu0 %v19904_v8  ;;  %v19956_v61 = vld [vmem:[#allocation15 + $0xf88] ss:$148 sps:$4 sm:$0xff]   ;;  %v19959_v24 = vld [vmem:[#allocation15 + $0xf90] ss:$148 sps:$4 sm:$0xff]  }
 0xa62   :  { %16676 = vst [vmem:[%s21099_s11 + $0x90] sm:$0xff] %v16284_v39  ;;  %v16286_v10 = vadd.f32 %v16285_v35, %v12798_v41  ;;  %v16246_v2 = vpop.f32.mrf.mxu0  ;;  %16579 = vmatprep.subr.bf16.mxu1 %v19907_v60  ;;  %v19964_v8 = vld [vmem:[#allocation15 + $0xe64] ss:$148 sps:$4 sm:$0xff]   ;;  %v19967_v22 = vld [vmem:[#allocation15 + $0xe6c] ss:$148 sps:$4 sm:$0xff]  }
 0xa63   :  { %16675 = vst [vmem:[%s21099_s11 + $0x88] sm:$0xff] %v16245_v54  ;;  %v16287_v58 = vpop.f32.mrf.mxu1  ;;  %16539 = vmatpush1.bf16.msra.mxu0 %v19902_v32  ;;  %v19962_v41 = vld [vmem:[#allocation15 + $0xe60] ss:$148 sps:$4 sm:$0xff]   ;;  %v19965_v60 = vld [vmem:[#allocation15 + $0xe68] ss:$148 sps:$4 sm:$0xff]  }
 0xa64   :  { %16677 = vst [vmem:[%s21099_s11 + $0x98] sm:$0xff] %v16286_v10  ;;  %16580 = vmatpush1.bf16.msra.mxu1 %v19905_v33  ;;  %v16247_v62 = vpop.f32.mrf.mxu0  ;;  %16540 = vmatprep.subr.bf16.mxu0 %v19910_v46  ;;  %v19970_v57 = vld [vmem:[#allocation15 + $0xd3c] ss:$148 sps:$4 sm:$0xff]   ;;  %v19968_v32 = vld [vmem:[#allocation15 + $0xd38] ss:$148 sps:$4 sm:$0xff]  }
 0xa65   :  { %v16288_v15 = vpop.f32.mrf.mxu1  ;;  %16581 = vmatprep.subr.bf16.mxu1 %v19913_v17  ;;  %v19971_v39 = vld [vmem:[#allocation15 + $0xd40] ss:$148 sps:$4 sm:$0xff]   ;;  %v19979_v33 = vld [vmem:[#allocation15 + $0xc1c] ss:$148 sps:$4 sm:$0xff]   ;;  %v19977_v54 = vld [vmem:[#allocation15 + $0xc18] ss:$148 sps:$4 sm:$0xff]  }
 0xa66   :  { %v19976_v9 = vld [vmem:[#allocation15 + $0xc14] ss:$148 sps:$4 sm:$0xff]   ;;  %v19974_v46 = vld [vmem:[#allocation15 + $0xc10] ss:$148 sps:$4 sm:$0xff]   ;;  %v19982_v35 = vld [vmem:[#allocation15 + $0xaec] ss:$148 sps:$4 sm:$0xff]   ;;  %v12802_v15 = vrot.slane %v20986_v5, %v20512_v45 }
 0xa67   :  { %16541 = vmatpush1.bf16.msra.mxu0 %v19908_v31  ;;  %v19985_v17 = vld [vmem:[#allocation15 + $0xaf4] ss:$148 sps:$4 sm:$0xff]   ;;  %v19983_v2 = vld [vmem:[#allocation15 + $0xaf0] ss:$148 sps:$4 sm:$0xff]   ;;  %v19991_v31 = vld [vmem:[#allocation15 + $0x9cc] ss:$148 sps:$4 sm:$0xff]  }
 0xa68   :  { %16582 = vmatpush1.bf16.msra.mxu1 %v19911_v59  ;;  %16542 = vmatprep.subr.bf16.mxu0 %v19916_v30  ;;  %v19980_v10 = vld [vmem:[#allocation15 + $0xae8] ss:$148 sps:$4 sm:$0xff]   ;;  %v19988_v58 = vld [vmem:[#allocation15 + $0x9c4] ss:$148 sps:$4 sm:$0xff]   ;;  %v19986_v62 = vld [vmem:[#allocation15 + $0x9c0] ss:$148 sps:$4 sm:$0xff]  }
 0xa69   :  { %16583 = vmatprep.subr.bf16.mxu1 %v19919_v48  ;;  %v19989_v59 = vld [vmem:[#allocation15 + $0x9c8] ss:$148 sps:$4 sm:$0xff]  }
 0xa6a   :  { %v19992_v30 = vld [vmem:[#allocation15 + $0x11e8] ss:$148 sps:$4 sm:$0xff]  }
 0xa6b   :  { %16543 = vmatpush1.bf16.msra.mxu0 %v19914_v25  ;;  %v19993_v48 = vld [vmem:[#allocation15 + $0x8a8] ss:$148 sps:$4 sm:$0xff]   ;;  %v12810_v25 = vrot.slane %v20986_v5, %v20566_v50 }
 0xa6c   :  { %16584 = vmatpush1.bf16.msra.mxu1 %v19917_v16  ;;  %16544 = vmatprep.subr.bf16.mxu0 %v19922_v37  ;;  %v19994_v16 = vld [vmem:[#allocation15 + $0x10c0] ss:$148 sps:$4 sm:$0xff]   ;;  %v12806_v37 = vrot.slane %v20986_v5, %v20535_v23 }
 0xa6d   :  { %16585 = vmatprep.subr.bf16.mxu1 %v19925_v55 }
 0xa6f   :  { %16545 = vmatpush1.bf16.msra.mxu0 %v19920_v63  ;;  %v12814_v63 = vrot.slane %v20986_v5, %v20569_v53 }
 0xa70   :  { %16586 = vmatpush1.bf16.msra.mxu1 %v19923_v1  ;;  %16546 = vmatprep.subr.bf16.mxu0 %v19928_v40 }
 0xa71   :  { %16587 = vmatprep.subr.bf16.mxu1 %v19931_v34  ;;  %v19995_v34 = vld [vmem:[#allocation15 + $0x780] ss:$148 sps:$4 sm:$0xff]  }
 0xa73   :  { %16547 = vmatpush1.bf16.msra.mxu0 %v19926_v27 }
 0xa74   :  { %16588 = vmatpush1.bf16.msra.mxu1 %v19929_v47  ;;  %16548 = vmatprep.subr.bf16.mxu0 %v19934_v20  ;;  %v19996_v20 = vld [vmem:[#allocation15 + $0xf98] ss:$148 sps:$4 sm:$0xff]  }
 0xa75   :  { %16589 = vmatprep.subr.bf16.mxu1 %v19937_v49 }
 0xa77   :  { %16549 = vmatpush1.bf16.msra.mxu0 %v19932_v42 }
 0xa78   :  { %16590 = vmatpush1.bf16.msra.mxu1 %v19935_v38  ;;  %16550 = vmatprep.subr.bf16.mxu0 %v19940_v28  ;;  %v19997_v28 = vld [vmem:[#allocation15 + $0x658] ss:$148 sps:$4 sm:$0xff]  }
 0xa79   :  { %16591 = vmatprep.subr.bf16.mxu1 %v19943_v21 }
 0xa7b   :  { %16551 = vmatpush1.bf16.msra.mxu0 %v19938_v11  ;;  %v19998_v11 = vld [vmem:[#allocation15 + $0xe70] ss:$148 sps:$4 sm:$0xff]  }
 0xa7c   :  { %16592 = vmatpush1.bf16.msra.mxu1 %v19941_v44  ;;  %16552 = vmatprep.subr.bf16.mxu0 %v19946_v29  ;;  %v19999_v29 = vld [vmem:[#allocation15 + $0x530] ss:$148 sps:$4 sm:$0xff]  }
 0xa7d   :  { %16593 = vmatprep.subr.bf16.mxu1 %v19949_v3  ;;  %v20000_v3 = vld [vmem:[#allocation15 + $0xd48] ss:$148 sps:$4 sm:$0xff]  }
 0xa7f   :  { %16553 = vmatpush2.bf16.msra.mxu0 %v19944_v43  ;;  %v20001_v43 = vld [vmem:[#allocation15 + $0x408] ss:$148 sps:$4 sm:$0xff]  }
 0xa80   :  { %16594 = vmatpush2.bf16.msra.mxu1 %v19947_v12  ;;  %16554 = vmatprep.subr.bf16.mxu0 %v19952_v18  ;;  %v20002_v12 = vld [vmem:[#allocation15 + $0xc20] ss:$148 sps:$4 sm:$0xff]  }
 0xa81   :  { %16595 = vmatprep.subr.bf16.mxu1 %v19955_v51  ;;  %v20003_v18 = vld [vmem:[#allocation15 + $0x2e0] ss:$148 sps:$4 sm:$0xff]   ;;  %v20004_v51 = vld [vmem:[#allocation15 + $0xaf8] ss:$148 sps:$4 sm:$0xff]  }
 0xa83   :  { %16555 = vmatpush2.bf16.msra.mxu0 %v19950_v26  ;;  %v20005_v26 = vld [vmem:[#allocation15 + $0x1b8] ss:$148 sps:$4 sm:$0xff]  }
 0xa84   :  { %16596 = vmatpush2.bf16.msra.mxu1 %v19953_v36  ;;  %16556 = vmatprep.subr.bf16.mxu0 %v19958_v14  ;;  %v20006_v36 = vld [vmem:[#allocation15 + $0x9d0] ss:$148 sps:$4 sm:$0xff]  }
 0xa85   :  { %16597 = vmatprep.subr.bf16.mxu1 %v19961_v0  ;;  %v20007_v14 = vld [vmem:[#allocation15 + $0x90] ss:$148 sps:$4 sm:$0xff]   ;;  %v12712_v0 = vld [vmem:[#allocation16 + $0x18] sm:$0xff] }
 0xa87   :  { %16557 = vmatpush2.bf16.msra.mxu0 %v19956_v61  ;;  %v12818_v61 = vrot.slane %v12712_v0, %v20441_v6 }
 0xa88   :  { %16598 = vmatpush2.bf16.msra.mxu1 %v19959_v24  ;;  %16558 = vmatprep.subr.bf16.mxu0 %v19964_v8  ;;  %v12826_v24 = vrot.slane %v12712_v0, %v20477_v56  ;;  %v12822_v8 = vrot.slane %v12712_v0, %v20444_v13 }
 0xa89   :  { %16599 = vmatprep.subr.bf16.mxu1 %v19967_v22 }
 0xa8b   :  { %16559 = vmatpush2.bf16.msra.mxu0 %v19962_v41  ;;  %v12830_v41 = vrot.slane %v12712_v0, %v20491_v7 }
 0xa8c   :  { %16600 = vmatpush2.bf16.msra.mxu1 %v19965_v60  ;;  %16560 = vmatprep.subr.bf16.mxu0 %v19970_v57 }
 0xa8d   :  { %16601 = vmatprep.subr.bf16.mxu1 %v19973_v19 }
 0xa8f   :  { %16561 = vmatpush2.bf16.msra.mxu0 %v19968_v32 }
 0xa90   :  { %16602 = vmatpush2.bf16.msra.mxu1 %v19971_v39  ;;  %16562 = vmatprep.subr.bf16.mxu0 %v19976_v9 }
 0xa91   :  { %16603 = vmatprep.subr.bf16.mxu1 %v19979_v33 }
 0xa93   :  { %16563 = vmatpush2.bf16.msra.mxu0 %v19974_v46 }
 0xa94   :  { %16604 = vmatpush2.bf16.msra.mxu1 %v19977_v54  ;;  %16564 = vmatprep.subr.bf16.mxu0 %v19982_v35 }
 0xa95   :  { %16605 = vmatprep.subr.bf16.mxu1 %v19985_v17  ;;  %v12834_v17 = vrot.slane %v12712_v0, %v20512_v45 }
 0xa97   :  { %16565 = vmatpush2.bf16.msra.mxu0 %v19980_v10  ;;  %v12842_v10 = vrot.slane %v12712_v0, %v20566_v50 }
 0xa98   :  { %16606 = vmatpush2.bf16.msra.mxu1 %v19983_v2  ;;  %16566 = vmatprep.subr.bf16.mxu0 %v19988_v58  ;;  %v12838_v2 = vrot.slane %v12712_v0, %v20535_v23 }
 0xa99   :  { %16607 = vmatprep.subr.bf16.mxu1 %v19991_v31  ;;  %v12846_v31 = vrot.slane %v12712_v0, %v20569_v53 }
 0xa9b   :  { %16567 = vmatpush2.bf16.msra.mxu0 %v19986_v62 }
 0xa9c   :  { %16608 = vmatpush2.bf16.msra.mxu1 %v19989_v59  ;;  %18897 = vmatprep.subr.bf16.mxu0 %v19992_v30 }
 0xa9e   :  { %v16324_v55 = vpop.f32.mrf.mxu0  ;;  %16569 = vmatmul.mubr.bf16.vlgmr.msra.gmra.mxu0 %v20870_v52 }
 0xa9f   :  { %v16325_v1 = vadd.f32 %v16324_v55, %v12802_v15  ;;  %v16365_v40 = vpop.f32.mrf.mxu1  ;;  %16610 = vmatmul.mubr.bf16.vlgmr.msra.gmra.mxu1 %v20870_v52  ;;  %18898 = vmatpush3.bf16.msra.mxu0 %v19993_v48  ;;  %v12713_v55 = vld [vmem:[#allocation16 + $0x20] sm:$0x1f] }
 0xaa0   :  { %v16366_v27 = vadd.f32 %v16365_v40, %v12810_v25  ;;  %16650 = vmatprep.mubr.bf16.mxu0 %v20868_v4  ;;  %v16326_v47 = vpop.f32.mrf.mxu0  ;;  %18899 = vmatprep.subr.bf16.mxu0 %v19994_v16  ;;  %v12854_v40 = vrot.slane %v12713_v55, %v20444_v13 }
 0xaa1   :  { %16678 = vst [vmem:[%s21099_s11 + $0xa0] sm:$0xff] %v16325_v1  ;;  %v16327_v49 = vadd.f32 %v16326_v47, %v12806_v37  ;;  %v16367_v42 = vpop.f32.mrf.mxu1  ;;  %v12858_v1 = vrot.slane %v12713_v55, %v20477_v56 }
 0xaa2   :  { %16680 = vst [vmem:[%s21099_s11 + $0xb0] sm:$0xff] %v16366_v27  ;;  %v16368_v5 = vadd.f32 %v16367_v42, %v12814_v63  ;;  %v16328_v38 = vpop.f32.mrf.mxu0  ;;  %v12850_v63 = vrot.slane %v12713_v55, %v20441_v6  ;;  %v12862_v27 = vrot.slane %v12713_v55, %v20491_v7 }
 0xaa3   :  { %16679 = vst [vmem:[%s21099_s11 + $0xa8] sm:$0xff] %v16327_v49  ;;  %v16369_v4 = vpop.f32.mrf.mxu1  ;;  %18900 = vmatpush3.bf16.msra.mxu0 %v19995_v34 }
 0xaa4   :  { %16681 = vst [vmem:[%s21099_s11 + $0xb8] sm:$0xff] %v16368_v5  ;;  %v16329_v21 = vpop.f32.mrf.mxu0  ;;  %18901 = vmatprep.subr.bf16.mxu0 %v19996_v20 }
 0xaa5   :  { %v16370_v44 = vpop.f32.mrf.mxu1  ;;  %v12866_v21 = vrot.slane %v12713_v55, %v20512_v45 }
 0xaa7   :  { %18902 = vmatpush3.bf16.msra.mxu0 %v19997_v28 }
 0xaa8   :  { %18903 = vmatprep.subr.bf16.mxu0 %v19998_v11 }
 0xaab   :  { %18904 = vmatpush3.bf16.msra.mxu0 %v19999_v29 }
 0xaac   :  { %18905 = vmatprep.subr.bf16.mxu0 %v20000_v3 }
 0xaaf   :  { %18906 = vmatpush3.bf16.msra.mxu0 %v20001_v43 }
 0xab0   :  { %18907 = vmatprep.subr.bf16.mxu0 %v20002_v12 }
 0xab3   :  { %18908 = vmatpush3.bf16.msra.mxu0 %v20003_v18 }
 0xab4   :  { %18909 = vmatprep.subr.bf16.mxu0 %v20004_v51 }
 0xab7   :  { %18910 = vmatpush3.bf16.msra.mxu0 %v20005_v26 }
 0xab8   :  { %18911 = vmatprep.subr.bf16.mxu0 %v20006_v36 }
 0xabb   :  { %18912 = vmatpush3.bf16.msra.mxu0 %v20007_v14 }
 0xabe   :  { %16651 = vmatmul.mubr.bf16.vlgmr.msra.gmra.mxu0 %v20870_v52 }
 0xade   :  { %v16406_v22 = vpop.f32.mrf.mxu0 }
 0xadf   :  { %v16407_v60 = vadd.f32 %v16406_v22, %v12818_v61  ;;  %v16447_v57 = vpop.f32.mrf.mxu1 }
 0xae0   :  { %v16448_v19 = vadd.f32 %v16447_v57, %v12826_v24  ;;  %v16408_v32 = vpop.f32.mrf.mxu0 }
 0xae1   :  { %16682 = vst [vmem:[%s21099_s11 + $0xc0] sm:$0xff] %v16407_v60  ;;  %v16409_v39 = vadd.f32 %v16408_v32, %v12822_v8  ;;  %v16449_v52 = vpop.f32.mrf.mxu1 }
 0xae2   :  { %16684 = vst [vmem:[%s21099_s11 + $0xd0] sm:$0xff] %v16448_v19  ;;  %v16450_v9 = vadd.f32 %v16449_v52, %v12830_v41  ;;  %v16410_v33 = vpop.f32.mrf.mxu0 }
 0xae3   :  { %16683 = vst [vmem:[%s21099_s11 + $0xc8] sm:$0xff] %v16409_v39  ;;  %v16451_v46 = vpop.f32.mrf.mxu1 }
 0xae4   :  { %16685 = vst [vmem:[%s21099_s11 + $0xd8] sm:$0xff] %v16450_v9  ;;  %v16411_v54 = vpop.f32.mrf.mxu0 }
 0xae5   :  { %v16452_v35 = vpop.f32.mrf.mxu1 }
 0xb1e   :  { %v16488_v58 = vpop.f32.mrf.mxu0 }
 0xb1f   :  { %v16489_v62 = vadd.f32 %v16488_v58, %v12834_v17  ;;  %v16529_v59 = vpop.f32.mrf.mxu1 }
 0xb20   :  { %v16530_v30 = vadd.f32 %v16529_v59, %v12842_v10  ;;  %v16490_v15 = vpop.f32.mrf.mxu0 }
 0xb21   :  { %16686 = vst [vmem:[%s21099_s11 + $0xe0] sm:$0xff] %v16489_v62  ;;  %v16491_v48 = vadd.f32 %v16490_v15, %v12838_v2  ;;  %v16531_v25 = vpop.f32.mrf.mxu1 }
 0xb22   :  { %16688 = vst [vmem:[%s21099_s11 + $0xf0] sm:$0xff] %v16530_v30  ;;  %v16532_v50 = vadd.f32 %v16531_v25, %v12846_v31  ;;  %v16492_v16 = vpop.f32.mrf.mxu0 }
 0xb23   :  { %16687 = vst [vmem:[%s21099_s11 + $0xe8] sm:$0xff] %v16491_v48  ;;  %v16533_v23 = vpop.f32.mrf.mxu1 }
 0xb24   :  { %16689 = vst [vmem:[%s21099_s11 + $0xf8] sm:$0xff] %v16532_v50  ;;  %v16493_v53 = vpop.f32.mrf.mxu0 }
 0xb25   :  { %v16534_v37 = vpop.f32.mrf.mxu1 }
 0xb5e   :  { %v16570_v34 = vpop.f32.mrf.mxu0 }
 0xb5f   :  { %v16571_v47 = vadd.f32 %v16570_v34, %v12850_v63  ;;  %v16611_v20 = vpop.f32.mrf.mxu1 }
 0xb60   :  { %v16612_v49 = vadd.f32 %v16611_v20, %v12858_v1  ;;  %v16572_v42 = vpop.f32.mrf.mxu0 }
 0xb61   :  { %16690 = vst [vmem:[%s21099_s11 + $0x100] sm:$0xff] %v16571_v47  ;;  %v16573_v5 = vadd.f32 %v16572_v42, %v12854_v40  ;;  %v16613_v38 = vpop.f32.mrf.mxu1 }
 0xb62   :  { %16692 = vst [vmem:[%s21099_s11 + $0x110] sm:$0xff] %v16612_v49  ;;  %v16614_v6 = vadd.f32 %v16613_v38, %v12862_v27  ;;  %v16574_v56 = vpop.f32.mrf.mxu0 }
 0xb63   :  { %16691 = vst [vmem:[%s21099_s11 + $0x108] sm:$0xff] %v16573_v5  ;;  %v16615_v13 = vpop.f32.mrf.mxu1 }
 0xb64   :  { %16693 = vst [vmem:[%s21099_s11 + $0x118] sm:$0xff] %v16614_v6  ;;  %v16575_v7 = vpop.f32.mrf.mxu0 }
 0xb65   :  { %v16616_v4 = vpop.f32.mrf.mxu1 }
 0xb7e   :  { %v18913_v28 = vpop.f32.mrf.mxu0 }
 0xb80   :  { %v18914_v11 = vpop.f32.mrf.mxu0 }
 0xb81   :  { %v18915_v44 = vadd.f32 %v18914_v11, %v18913_v28 }
 0xb82   :  { %v18916_v29 = vpop.f32.mrf.mxu0 }
 0xb83   :  { %v16653_v3 = vadd.f32 %v18915_v44, %v12866_v21 }
 0xb84   :  { %v18917_v43 = vpop.f32.mrf.mxu0 }
 0xb85   :  { %16694 = vst [vmem:[%s21099_s11 + $0x120] sm:$0xff] %v16653_v3 }
 0xb86   :  { %16699 = vsyncpa [#allocation3], 1 }
 0xb87   :  { %16700 = vsyncpa [#allocation5], 1 }
 0xb88   :  { %16701 = vsyncpa [#allocation8], 1 }
 0xb89   :  { %16702 = vsyncpa [#allocation11], 1 }
 0xb8a   :  { %16703 = vsyncpa [#allocation14], 1 }
 0xb8b   :  { %16704 = vsyncpa [#allocation17], 1 }

</bundles_post_ra>
